<compile_context>
chip_gen: v6e
topology: v6e:2x2x1
jax: 0.10.0
libtpu: 0.0.40
codegen_flags: <defaults>
</compile_context>

<pallas_src>
import functools

import jax
import jax.numpy as jnp
from jax.experimental import pallas as pl
from jax.experimental.pallas import tpu as pltpu


def _gelu(x):
    # tanh-form GELU: the tanh goes to the EUP slot instead of a ~15-op VALU
    # erf chain.  (~1e-3 abs difference vs. PyTorch's exact-erf nn.GELU.)
    c = 0.7978845608028654  # sqrt(2/pi)
    return 0.5 * x * (1.0 + jnp.tanh(c * (x + 0.044715 * x * x * x)))


# ----------------------------------------------------------------------------
# Fused matmul + bias + activation kernel
# ----------------------------------------------------------------------------
def _fused_matmul_kernel(a_ref, w_ref, b_ref, o_ref, *, activation):
    acc = jnp.dot(a_ref[...], w_ref[...], preferred_element_type=jnp.float32)
    acc = acc + b_ref[...]                      # (1, N) broadcasts over rows
    if activation == "gelu":
        acc = _gelu(acc)
    elif activation == "sigmoid":
        acc = jax.nn.sigmoid(acc)
    o_ref[...] = acc.astype(o_ref.dtype)


def fused_matmul(a, w, b, activation="none", out_dtype=jnp.float32, tm=256):
    """act(a @ w + b) fused in one Pallas kernel — no HBM padding, bf16 MXU inputs."""
    M, K = a.shape
    K2, N = w.shape
    assert K == K2
    a = a.astype(jnp.bfloat16)
    w = w.astype(jnp.bfloat16)
    b = b.astype(jnp.float32).reshape(1, N)
    tm_eff = tm if M > tm else M                # full-dim M block when M <= tm
    grid_m = pl.cdiv(M, tm_eff)
    return pl.pallas_call(
        functools.partial(_fused_matmul_kernel, activation=activation),
        out_shape=jax.ShapeDtypeStruct((M, N), out_dtype),
        grid_spec=pltpu.PrefetchScalarGridSpec(
            num_scalar_prefetch=0,
            grid=(grid_m,),
            in_specs=[
                pl.BlockSpec((tm_eff, K), lambda i: (i, 0)),   # K unblocked (full dim)
                pl.BlockSpec((K, N), lambda i: (0, 0)),        # full weight resident
                pl.BlockSpec((1, N), lambda i: (0, 0)),
            ],
            out_specs=pl.BlockSpec((tm_eff, N), lambda i: (i, 0)),
        ),
        compiler_params=pltpu.CompilerParams(dimension_semantics=("parallel",)),
    )(a, w, b)


# ----------------------------------------------------------------------------
# Fused bottleneck: [Linear + folded eval BatchNorm1d] -> [Linear + GELU]
# ----------------------------------------------------------------------------
def _bottleneck_kernel(a_ref, w1_ref, b1_ref, w2_ref, b2_ref, d_ref):
    z = jnp.dot(a_ref[...], w1_ref[...], preferred_element_type=jnp.float32)
    z = z + b1_ref[...]                              # latent (B, latent_dim), f32
    d = jnp.dot(z.astype(jnp.bfloat16), w2_ref[...], preferred_element_type=jnp.float32)
    d = d + b2_ref[...]
    d_ref[...] = _gelu(d).astype(d_ref.dtype)


def bottleneck(conv_flat, w1, b1, w2, b2, out_dtype=jnp.bfloat16):
    """encoder_out + decoder_in fused in ONE kernel; latent never touches HBM."""
    M, K = conv_flat.shape
    L = w1.shape[1]
    N = w2.shape[1]
    return pl.pallas_call(
        _bottleneck_kernel,
        out_shape=jax.ShapeDtypeStruct((M, N), out_dtype),
        grid_spec=pltpu.PrefetchScalarGridSpec(
            num_scalar_prefetch=0,
            grid=(1,),
            in_specs=[
                pl.BlockSpec((M, K), lambda i: (0, 0)),
                pl.BlockSpec((K, L), lambda i: (0, 0)),
                pl.BlockSpec((1, L), lambda i: (0, 0)),
                pl.BlockSpec((L, N), lambda i: (0, 0)),
                pl.BlockSpec((1, N), lambda i: (0, 0)),
            ],
            out_specs=pl.BlockSpec((M, N), lambda i: (0, 0)),
        ),
        compiler_params=pltpu.CompilerParams(dimension_semantics=("arbitrary",)),
    )(conv_flat.astype(jnp.bfloat16), w1.astype(jnp.bfloat16),
      b1.astype(jnp.float32).reshape(1, L), w2.astype(jnp.bfloat16),
      b2.astype(jnp.float32).reshape(1, N))


# ----------------------------------------------------------------------------
# Conv / ConvTranspose wrappers (im2col glue + fused Pallas matmul)
# ----------------------------------------------------------------------------
def conv2d(x, w_oihw, b, stride, padding, activation, out_dtype=jnp.bfloat16):
    """x: (B, H, W, Cin) NHWC;  w: PyTorch OIHW (Cout, Cin, kh, kw)."""
    B, H, W, Cin = x.shape
    Cout, _, kh, kw = w_oihw.shape
    x = x.astype(jnp.bfloat16)                 # half the im2col HBM bytes
    xp = jnp.pad(x, ((0, 0), (padding, padding), (padding, padding), (0, 0)))
    Ho = (H + 2 * padding - kh) // stride + 1
    Wo = (W + 2 * padding - kw) // stride + 1
    cols = []
    for i in range(kh):
        for j in range(kw):
            cols.append(xp[:, i:i + stride * (Ho - 1) + 1:stride,
                            j:j + stride * (Wo - 1) + 1:stride, :])
    patches = jnp.concatenate(cols, axis=-1).reshape(B * Ho * Wo, kh * kw * Cin)
    w_mat = jnp.transpose(w_oihw, (2, 3, 1, 0)).reshape(kh * kw * Cin, Cout)
    out = fused_matmul(patches, w_mat, b, activation, out_dtype=out_dtype)
    return out.reshape(B, Ho, Wo, Cout)


def conv_transpose2d(x, w_iohw, b, stride, padding, output_padding, activation,
                     out_dtype=jnp.bfloat16):
    """nn.ConvTranspose2d(k=3, s=2, p=1, op in {0,1}) via sub-pixel decomposition.

    out[2*qy+ry, 2*qx+rx] only reads x[qy+dy, qx+dx], dy,dx in {0,1}, with kernel
    taps ky = 1 (ry=0,dy=0), 2 (ry=1,dy=0), 0 (ry=1,dy=1) (same for x-axis).  The
    whole layer is ONE matmul: 2x2-window im2col (K=4*Cin) @ (4*Cin, 4*Cout)
    phase-weight matrix, followed by depth-to-space — no structural zeros from
    input dilation.
    """
    assert stride == 2 and padding == 1 and output_padding in (0, 1)
    B, H, W, Cin = x.shape
    _, Cout, kh, kw = w_iohw.shape
    assert kh == 3 and kw == 3
    x = x.astype(jnp.bfloat16)

    # 2x2-window im2col over x padded with one zero row/col at bottom/right.
    xp = jnp.pad(x, ((0, 0), (0, 1), (0, 1), (0, 0)))
    taps = [xp[:, dy:dy + H, dx:dx + W, :] for dy in (0, 1) for dx in (0, 1)]
    patches = jnp.concatenate(taps, axis=-1).reshape(B * H * W, 4 * Cin)

    # Phase weights: rows ordered (dy, dx, ci), cols ordered (ry, rx, co).
    wf = w_iohw.astype(jnp.float32)            # (Cin, Cout, kh, kw)
    zero = jnp.zeros((Cin, Cout), jnp.float32)
    k_of = {(0, 0): 1, (1, 0): 2, (1, 1): 0}   # (phase r, tap d) -> kernel index
    rows = []
    for dy in (0, 1):
        for dx in (0, 1):
            blocks = []
            for ry in (0, 1):
                for rx in (0, 1):
                    ky, kx = k_of.get((ry, dy)), k_of.get((rx, dx))
                    blocks.append(zero if ky is None or kx is None else wf[:, :, ky, kx])
            rows.append(jnp.concatenate(blocks, axis=1))       # (Cin, 4*Cout)
    w_mat = jnp.concatenate(rows, axis=0)                      # (4*Cin, 4*Cout)
    b4 = jnp.tile(b.astype(jnp.float32), 4)                    # bias per (phase, co)

    out = fused_matmul(patches, w_mat, b4, activation, out_dtype=out_dtype)
    out = out.reshape(B, H, W, 2, 2, Cout)                     # (B, qy, qx, ry, rx, co)
    out = jnp.transpose(out, (0, 1, 3, 2, 4, 5)).reshape(B, 2 * H, 2 * W, Cout)
    Ho = 2 * H - 1 + output_padding
    Wo = 2 * W - 1 + output_padding
    return out[:, :Ho, :Wo, :]


# ----------------------------------------------------------------------------
# Parameters + forward
# ----------------------------------------------------------------------------
def init_params(key, latent_dim=2, hidden=(32, 64, 128, 256)):
    ks = iter(jax.random.split(key, 32))
    p = {}
    cin = 1
    p["enc_convs"] = []
    for h in hidden:
        w = jax.random.normal(next(ks), (h, cin, 3, 3), jnp.float32) * 0.05
        b = jax.random.normal(next(ks), (h,), jnp.float32) * 0.05
        p["enc_convs"].append((w, b))
        cin = h
    enc_numel = hidden[-1] * 2 * 2  # encoder_out_shape = (1, 256, 2, 2)
    p["enc_out_w"] = jax.random.normal(next(ks), (enc_numel, latent_dim), jnp.float32) * 0.05
    p["enc_out_b"] = jnp.zeros((latent_dim,), jnp.float32)
    # BatchNorm1d(latent_dim): PyTorch default init, eval-mode running stats.
    p["bn_gamma"] = jnp.ones((latent_dim,), jnp.float32)
    p["bn_beta"] = jnp.zeros((latent_dim,), jnp.float32)
    p["bn_mean"] = jnp.zeros((latent_dim,), jnp.float32)
    p["bn_var"] = jnp.ones((latent_dim,), jnp.float32)
    p["dec_in_w"] = jax.random.normal(next(ks), (latent_dim, enc_numel), jnp.float32) * 0.05
    p["dec_in_b"] = jax.random.normal(next(ks), (enc_numel,), jnp.float32) * 0.05
    rev = list(reversed(hidden))  # [256, 128, 64, 32]
    p["dec_convts"] = []
    for i in range(len(rev) - 1):
        w = jax.random.normal(next(ks), (rev[i], rev[i + 1], 3, 3), jnp.float32) * 0.05
        b = jax.random.normal(next(ks), (rev[i + 1],), jnp.float32) * 0.05
        p["dec_convts"].append((w, b))
    p["dec_last_ct_w"] = jax.random.normal(next(ks), (rev[-1], rev[-1], 3, 3), jnp.float32) * 0.05
    p["dec_last_ct_b"] = jax.random.normal(next(ks), (rev[-1],), jnp.float32) * 0.05
    p["dec_final_w"] = jax.random.normal(next(ks), (1, rev[-1], 3, 3), jnp.float32) * 0.05
    p["dec_final_b"] = jax.random.normal(next(ks), (1,), jnp.float32) * 0.05
    return p


def ae_conv_forward(params, x, hidden=(32, 64, 128, 256)):
    B = x.shape[0]
    # ---------------- encode ----------------
    img = x.reshape(B, 1, 28, 28)             # NCHW, matches x.view(-1, 1, 28, 28)
    h = jnp.transpose(img, (0, 2, 3, 1))      # -> NHWC for the conv path
    for w, b in params["enc_convs"]:
        h = conv2d(h, w, b, stride=2, padding=1, activation="gelu",
                   out_dtype=jnp.bfloat16)
    # flatten exactly like PyTorch (channel-major NCHW order)
    conv_flat = jnp.transpose(h, (0, 3, 1, 2)).reshape(B, -1)
    # Linear + eval-mode BatchNorm1d folded, then Linear + GELU — one fused kernel.
    scale = params["bn_gamma"] / jnp.sqrt(params["bn_var"] + 1e-5)
    w_eff = params["enc_out_w"] * scale[None, :]
    b_eff = (params["enc_out_b"] - params["bn_mean"]) * scale + params["bn_beta"]
    d = bottleneck(conv_flat, w_eff, b_eff, params["dec_in_w"], params["dec_in_b"],
                   out_dtype=jnp.bfloat16)
    # ---------------- decode ----------------
    h = d.reshape(B, hidden[-1], 2, 2)        # NCHW view as in PyTorch
    h = jnp.transpose(h, (0, 2, 3, 1))        # -> NHWC
    out_pads = (1, 0, 1)                      # spatial: 2->4->7->14 (mirrors encoder)
    for (w, b), op in zip(params["dec_convts"], out_pads):
        h = conv_transpose2d(h, w, b, stride=2, padding=1, output_padding=op,
                             activation="gelu")
    h = conv_transpose2d(h, params["dec_last_ct_w"], params["dec_last_ct_b"],
                         stride=2, padding=1, output_padding=1, activation="gelu")  # 14->28
    h = conv2d(h, params["dec_final_w"], params["dec_final_b"], stride=1, padding=1,
               activation="sigmoid", out_dtype=jnp.float32)
    x_rec = jnp.transpose(h, (0, 3, 1, 2)).reshape(B, -1).astype(jnp.float32)  # (B, 784)
    return x_rec


if __name__ == "__main__":
    key = jax.random.PRNGKey(0)
    pkey, xkey = jax.random.split(key)
    params = init_params(pkey)
    x = jax.random.uniform(xkey, (2, 784), jnp.float32)  # flattened MNIST-like batch
    fwd = jax.jit(ae_conv_forward)
    out = fwd(params, x)
    jax.block_until_ready(out)
    assert out.shape == (2, 784), out.shape
    assert bool(jnp.all(jnp.isfinite(out)))
    print("KERNEL_OK")
</pallas_src>

<mosaic_0001>
module attributes {stable_mosaic.version = 11 : i64} {
  func.func @_fused_matmul_kernel(%arg0: i32, %arg1: memref<256x9xbf16, #tpu.memory_space<vmem>>, %arg2: memref<9x32xbf16, #tpu.memory_space<vmem>>, %arg3: memref<1x32xf32, #tpu.memory_space<vmem>>, %arg4: memref<256x32xbf16, #tpu.memory_space<vmem>>) attributes {dimension_semantics = [#tpu.dimension_semantics<parallel>], iteration_bounds = array<i64: 2>, scalar_prefetch = 0 : i64, scratch_operands = 0 : i64, tpu.core_type = #tpu.core_type<tc>, window_params = [{transform_indices = @transform_0, window_bounds = array<i64: 256, 9>}, {pipeline_mode = #tpu.pipeline_mode<synchronous>, transform_indices = @transform_1, window_bounds = array<i64: 9, 32>}, {pipeline_mode = #tpu.pipeline_mode<synchronous>, transform_indices = @transform_2, window_bounds = array<i64: 1, 32>}, {transform_indices = @transform_3, window_bounds = array<i64: 256, 32>}]} {
    %c0 = arith.constant 0 : index
    %c0_0 = arith.constant 0 : index
    %0 = vector.load %arg1[%c0, %c0_0] : memref<256x9xbf16, #tpu.memory_space<vmem>>, vector<256x9xbf16>
    %c0_1 = arith.constant 0 : index
    %c0_2 = arith.constant 0 : index
    %1 = vector.load %arg2[%c0_1, %c0_2] : memref<9x32xbf16, #tpu.memory_space<vmem>>, vector<9x32xbf16>
    %cst = arith.constant dense<0.000000e+00> : vector<256x32xf32>
    %2 = tpu.matmul %0, %1, %cst {dimension_numbers = #tpu.dot_dimension_numbers<[1], [0], [0], [1], [0, 0, 1, 1], [], []>} : vector<256x9xbf16>, vector<9x32xbf16>, vector<256x32xf32> -> vector<256x32xf32>
    %c0_3 = arith.constant 0 : index
    %c0_4 = arith.constant 0 : index
    %3 = vector.load %arg3[%c0_3, %c0_4] : memref<1x32xf32, #tpu.memory_space<vmem>>, vector<1x32xf32>
    %4 = vector.broadcast %3 : vector<1x32xf32> to vector<256x32xf32>
    %5 = arith.addf %2, %4 : vector<256x32xf32>
    %cst_5 = arith.constant 5.000000e-01 : f32
    %6 = vector.broadcast %cst_5 : f32 to vector<256x32xf32>
    %7 = arith.mulf %6, %5 : vector<256x32xf32>
    %cst_6 = arith.constant 4.471500e-02 : f32
    %8 = vector.broadcast %cst_6 : f32 to vector<256x32xf32>
    %9 = arith.mulf %8, %5 : vector<256x32xf32>
    %10 = arith.mulf %9, %5 : vector<256x32xf32>
    %11 = arith.mulf %10, %5 : vector<256x32xf32>
    %12 = arith.addf %5, %11 : vector<256x32xf32>
    %cst_7 = arith.constant 0.797884583 : f32
    %13 = vector.broadcast %cst_7 : f32 to vector<256x32xf32>
    %14 = arith.mulf %13, %12 : vector<256x32xf32>
    %15 = math.tanh %14 : vector<256x32xf32>
    %cst_8 = arith.constant 1.000000e+00 : f32
    %16 = vector.broadcast %cst_8 : f32 to vector<256x32xf32>
    %17 = arith.addf %16, %15 : vector<256x32xf32>
    %18 = arith.mulf %7, %17 : vector<256x32xf32>
    %19 = arith.truncf %18 : vector<256x32xf32> to vector<256x32xbf16>
    %c0_9 = arith.constant 0 : index
    %c0_10 = arith.constant 0 : index
    %20 = vector.load %arg4[%c0_9, %c0_10] : memref<256x32xbf16, #tpu.memory_space<vmem>>, vector<256x32xbf16>
    tpu.vector_store %arg4[%c0_9, %c0_10], %19 {strides = array<i32>} : memref<256x32xbf16, #tpu.memory_space<vmem>>, vector<256x32xbf16>,
    return
  }
  func.func @transform_0(%arg0: i32) -> (i32, i32) {
    %c0_i32 = arith.constant 0 : i32
    %c0_i32_0 = arith.constant 0 : i32
    return %arg0, %c0_i32 : i32, i32
  }
  func.func @transform_1(%arg0: i32) -> (i32, i32) {
    %c0_i32 = arith.constant 0 : i32
    %c0_i32_0 = arith.constant 0 : i32
    %c0_i32_1 = arith.constant 0 : i32
    return %c0_i32, %c0_i32_0 : i32, i32
  }
  func.func @transform_2(%arg0: i32) -> (i32, i32) {
    %c0_i32 = arith.constant 0 : i32
    %c0_i32_0 = arith.constant 0 : i32
    %c0_i32_1 = arith.constant 0 : i32
    return %c0_i32, %c0_i32_0 : i32, i32
  }
  func.func @transform_3(%arg0: i32) -> (i32, i32) {
    %c0_i32 = arith.constant 0 : i32
    %c0_i32_0 = arith.constant 0 : i32
    return %arg0, %c0_i32 : i32, i32
  }
}

module attributes {stable_mosaic.version = 11 : i64} {
  func.func @_fused_matmul_kernel(%arg0: i32, %arg1: memref<98x288xbf16, #tpu.memory_space<vmem>>, %arg2: memref<288x64xbf16, #tpu.memory_space<vmem>>, %arg3: memref<1x64xf32, #tpu.memory_space<vmem>>, %arg4: memref<98x64xbf16, #tpu.memory_space<vmem>>) attributes {dimension_semantics = [#tpu.dimension_semantics<parallel>], iteration_bounds = array<i64: 1>, scalar_prefetch = 0 : i64, scratch_operands = 0 : i64, tpu.core_type = #tpu.core_type<tc>, window_params = [{transform_indices = @transform_0, window_bounds = array<i64: 98, 288>}, {pipeline_mode = #tpu.pipeline_mode<synchronous>, transform_indices = @transform_1, window_bounds = array<i64: 288, 64>}, {pipeline_mode = #tpu.pipeline_mode<synchronous>, transform_indices = @transform_2, window_bounds = array<i64: 1, 64>}, {transform_indices = @transform_3, window_bounds = array<i64: 98, 64>}]} {
    %c0 = arith.constant 0 : index
    %c0_0 = arith.constant 0 : index
    %0 = vector.load %arg1[%c0, %c0_0] : memref<98x288xbf16, #tpu.memory_space<vmem>>, vector<98x288xbf16>
    %c0_1 = arith.constant 0 : index
    %c0_2 = arith.constant 0 : index
    %1 = vector.load %arg2[%c0_1, %c0_2] : memref<288x64xbf16, #tpu.memory_space<vmem>>, vector<288x64xbf16>
    %cst = arith.constant dense<0.000000e+00> : vector<98x64xf32>
    %2 = tpu.matmul %0, %1, %cst {dimension_numbers = #tpu.dot_dimension_numbers<[1], [0], [0], [1], [0, 0, 1, 1], [], []>} : vector<98x288xbf16>, vector<288x64xbf16>, vector<98x64xf32> -> vector<98x64xf32>
    %c0_3 = arith.constant 0 : index
    %c0_4 = arith.constant 0 : index
    %3 = vector.load %arg3[%c0_3, %c0_4] : memref<1x64xf32, #tpu.memory_space<vmem>>, vector<1x64xf32>
    %4 = vector.broadcast %3 : vector<1x64xf32> to vector<98x64xf32>
    %5 = arith.addf %2, %4 : vector<98x64xf32>
    %cst_5 = arith.constant 5.000000e-01 : f32
    %6 = vector.broadcast %cst_5 : f32 to vector<98x64xf32>
    %7 = arith.mulf %6, %5 : vector<98x64xf32>
    %cst_6 = arith.constant 4.471500e-02 : f32
    %8 = vector.broadcast %cst_6 : f32 to vector<98x64xf32>
    %9 = arith.mulf %8, %5 : vector<98x64xf32>
    %10 = arith.mulf %9, %5 : vector<98x64xf32>
    %11 = arith.mulf %10, %5 : vector<98x64xf32>
    %12 = arith.addf %5, %11 : vector<98x64xf32>
    %cst_7 = arith.constant 0.797884583 : f32
    %13 = vector.broadcast %cst_7 : f32 to vector<98x64xf32>
    %14 = arith.mulf %13, %12 : vector<98x64xf32>
    %15 = math.tanh %14 : vector<98x64xf32>
    %cst_8 = arith.constant 1.000000e+00 : f32
    %16 = vector.broadcast %cst_8 : f32 to vector<98x64xf32>
    %17 = arith.addf %16, %15 : vector<98x64xf32>
    %18 = arith.mulf %7, %17 : vector<98x64xf32>
    %19 = arith.truncf %18 : vector<98x64xf32> to vector<98x64xbf16>
    %c0_9 = arith.constant 0 : index
    %c0_10 = arith.constant 0 : index
    %20 = vector.load %arg4[%c0_9, %c0_10] : memref<98x64xbf16, #tpu.memory_space<vmem>>, vector<98x64xbf16>
    tpu.vector_store %arg4[%c0_9, %c0_10], %19 {strides = array<i32>} : memref<98x64xbf16, #tpu.memory_space<vmem>>, vector<98x64xbf16>,
    return
  }
  func.func @transform_0(%arg0: i32) -> (i32, i32) {
    %c0_i32 = arith.constant 0 : i32
    %c0_i32_0 = arith.constant 0 : i32
    return %arg0, %c0_i32 : i32, i32
  }
  func.func @transform_1(%arg0: i32) -> (i32, i32) {
    %c0_i32 = arith.constant 0 : i32
    %c0_i32_0 = arith.constant 0 : i32
    %c0_i32_1 = arith.constant 0 : i32
    return %c0_i32, %c0_i32_0 : i32, i32
  }
  func.func @transform_2(%arg0: i32) -> (i32, i32) {
    %c0_i32 = arith.constant 0 : i32
    %c0_i32_0 = arith.constant 0 : i32
    %c0_i32_1 = arith.constant 0 : i32
    return %c0_i32, %c0_i32_0 : i32, i32
  }
  func.func @transform_3(%arg0: i32) -> (i32, i32) {
    %c0_i32 = arith.constant 0 : i32
    %c0_i32_0 = arith.constant 0 : i32
    return %arg0, %c0_i32 : i32, i32
  }
}

module attributes {stable_mosaic.version = 11 : i64} {
  func.func @_fused_matmul_kernel(%arg0: i32, %arg1: memref<32x576xbf16, #tpu.memory_space<vmem>>, %arg2: memref<576x128xbf16, #tpu.memory_space<vmem>>, %arg3: memref<1x128xf32, #tpu.memory_space<vmem>>, %arg4: memref<32x128xbf16, #tpu.memory_space<vmem>>) attributes {dimension_semantics = [#tpu.dimension_semantics<parallel>], iteration_bounds = array<i64: 1>, scalar_prefetch = 0 : i64, scratch_operands = 0 : i64, tpu.core_type = #tpu.core_type<tc>, window_params = [{transform_indices = @transform_0, window_bounds = array<i64: 32, 576>}, {pipeline_mode = #tpu.pipeline_mode<synchronous>, transform_indices = @transform_1, window_bounds = array<i64: 576, 128>}, {pipeline_mode = #tpu.pipeline_mode<synchronous>, transform_indices = @transform_2, window_bounds = array<i64: 1, 128>}, {transform_indices = @transform_3, window_bounds = array<i64: 32, 128>}]} {
    %c0 = arith.constant 0 : index
    %c0_0 = arith.constant 0 : index
    %0 = vector.load %arg1[%c0, %c0_0] : memref<32x576xbf16, #tpu.memory_space<vmem>>, vector<32x576xbf16>
    %c0_1 = arith.constant 0 : index
    %c0_2 = arith.constant 0 : index
    %1 = vector.load %arg2[%c0_1, %c0_2] : memref<576x128xbf16, #tpu.memory_space<vmem>>, vector<576x128xbf16>
    %cst = arith.constant dense<0.000000e+00> : vector<32x128xf32>
    %2 = tpu.matmul %0, %1, %cst {dimension_numbers = #tpu.dot_dimension_numbers<[1], [0], [0], [1], [0, 0, 1, 1], [], []>} : vector<32x576xbf16>, vector<576x128xbf16>, vector<32x128xf32> -> vector<32x128xf32>
    %c0_3 = arith.constant 0 : index
    %c0_4 = arith.constant 0 : index
    %3 = vector.load %arg3[%c0_3, %c0_4] : memref<1x128xf32, #tpu.memory_space<vmem>>, vector<1x128xf32>
    %4 = vector.broadcast %3 : vector<1x128xf32> to vector<32x128xf32>
    %5 = arith.addf %2, %4 : vector<32x128xf32>
    %cst_5 = arith.constant 5.000000e-01 : f32
    %6 = vector.broadcast %cst_5 : f32 to vector<32x128xf32>
    %7 = arith.mulf %6, %5 : vector<32x128xf32>
    %cst_6 = arith.constant 4.471500e-02 : f32
    %8 = vector.broadcast %cst_6 : f32 to vector<32x128xf32>
    %9 = arith.mulf %8, %5 : vector<32x128xf32>
    %10 = arith.mulf %9, %5 : vector<32x128xf32>
    %11 = arith.mulf %10, %5 : vector<32x128xf32>
    %12 = arith.addf %5, %11 : vector<32x128xf32>
    %cst_7 = arith.constant 0.797884583 : f32
    %13 = vector.broadcast %cst_7 : f32 to vector<32x128xf32>
    %14 = arith.mulf %13, %12 : vector<32x128xf32>
    %15 = math.tanh %14 : vector<32x128xf32>
    %cst_8 = arith.constant 1.000000e+00 : f32
    %16 = vector.broadcast %cst_8 : f32 to vector<32x128xf32>
    %17 = arith.addf %16, %15 : vector<32x128xf32>
    %18 = arith.mulf %7, %17 : vector<32x128xf32>
    %19 = arith.truncf %18 : vector<32x128xf32> to vector<32x128xbf16>
    %c0_9 = arith.constant 0 : index
    %c0_10 = arith.constant 0 : index
    %20 = vector.load %arg4[%c0_9, %c0_10] : memref<32x128xbf16, #tpu.memory_space<vmem>>, vector<32x128xbf16>
    tpu.vector_store %arg4[%c0_9, %c0_10], %19 {strides = array<i32>} : memref<32x128xbf16, #tpu.memory_space<vmem>>, vector<32x128xbf16>,
    return
  }
  func.func @transform_0(%arg0: i32) -> (i32, i32) {
    %c0_i32 = arith.constant 0 : i32
    %c0_i32_0 = arith.constant 0 : i32
    return %arg0, %c0_i32 : i32, i32
  }
  func.func @transform_1(%arg0: i32) -> (i32, i32) {
    %c0_i32 = arith.constant 0 : i32
    %c0_i32_0 = arith.constant 0 : i32
    %c0_i32_1 = arith.constant 0 : i32
    return %c0_i32, %c0_i32_0 : i32, i32
  }
  func.func @transform_2(%arg0: i32) -> (i32, i32) {
    %c0_i32 = arith.constant 0 : i32
    %c0_i32_0 = arith.constant 0 : i32
    %c0_i32_1 = arith.constant 0 : i32
    return %c0_i32, %c0_i32_0 : i32, i32
  }
  func.func @transform_3(%arg0: i32) -> (i32, i32) {
    %c0_i32 = arith.constant 0 : i32
    %c0_i32_0 = arith.constant 0 : i32
    return %arg0, %c0_i32 : i32, i32
  }
}

module attributes {stable_mosaic.version = 11 : i64} {
  func.func @_fused_matmul_kernel(%arg0: i32, %arg1: memref<8x1152xbf16, #tpu.memory_space<vmem>>, %arg2: memref<1152x256xbf16, #tpu.memory_space<vmem>>, %arg3: memref<1x256xf32, #tpu.memory_space<vmem>>, %arg4: memref<8x256xbf16, #tpu.memory_space<vmem>>) attributes {dimension_semantics = [#tpu.dimension_semantics<parallel>], iteration_bounds = array<i64: 1>, scalar_prefetch = 0 : i64, scratch_operands = 0 : i64, tpu.core_type = #tpu.core_type<tc>, window_params = [{transform_indices = @transform_0, window_bounds = array<i64: 8, 1152>}, {pipeline_mode = #tpu.pipeline_mode<synchronous>, transform_indices = @transform_1, window_bounds = array<i64: 1152, 256>}, {pipeline_mode = #tpu.pipeline_mode<synchronous>, transform_indices = @transform_2, window_bounds = array<i64: 1, 256>}, {transform_indices = @transform_3, window_bounds = array<i64: 8, 256>}]} {
    %c0 = arith.constant 0 : index
    %c0_0 = arith.constant 0 : index
    %0 = vector.load %arg1[%c0, %c0_0] : memref<8x1152xbf16, #tpu.memory_space<vmem>>, vector<8x1152xbf16>
    %c0_1 = arith.constant 0 : index
    %c0_2 = arith.constant 0 : index
    %1 = vector.load %arg2[%c0_1, %c0_2] : memref<1152x256xbf16, #tpu.memory_space<vmem>>, vector<1152x256xbf16>
    %cst = arith.constant dense<0.000000e+00> : vector<8x256xf32>
    %2 = tpu.matmul %0, %1, %cst {dimension_numbers = #tpu.dot_dimension_numbers<[1], [0], [0], [1], [0, 0, 1, 1], [], []>} : vector<8x1152xbf16>, vector<1152x256xbf16>, vector<8x256xf32> -> vector<8x256xf32>
    %c0_3 = arith.constant 0 : index
    %c0_4 = arith.constant 0 : index
    %3 = vector.load %arg3[%c0_3, %c0_4] : memref<1x256xf32, #tpu.memory_space<vmem>>, vector<1x256xf32>
    %4 = vector.broadcast %3 : vector<1x256xf32> to vector<8x256xf32>
    %5 = arith.addf %2, %4 : vector<8x256xf32>
    %cst_5 = arith.constant 5.000000e-01 : f32
    %6 = vector.broadcast %cst_5 : f32 to vector<8x256xf32>
    %7 = arith.mulf %6, %5 : vector<8x256xf32>
    %cst_6 = arith.constant 4.471500e-02 : f32
    %8 = vector.broadcast %cst_6 : f32 to vector<8x256xf32>
    %9 = arith.mulf %8, %5 : vector<8x256xf32>
    %10 = arith.mulf %9, %5 : vector<8x256xf32>
    %11 = arith.mulf %10, %5 : vector<8x256xf32>
    %12 = arith.addf %5, %11 : vector<8x256xf32>
    %cst_7 = arith.constant 0.797884583 : f32
    %13 = vector.broadcast %cst_7 : f32 to vector<8x256xf32>
    %14 = arith.mulf %13, %12 : vector<8x256xf32>
    %15 = math.tanh %14 : vector<8x256xf32>
    %cst_8 = arith.constant 1.000000e+00 : f32
    %16 = vector.broadcast %cst_8 : f32 to vector<8x256xf32>
    %17 = arith.addf %16, %15 : vector<8x256xf32>
    %18 = arith.mulf %7, %17 : vector<8x256xf32>
    %19 = arith.truncf %18 : vector<8x256xf32> to vector<8x256xbf16>
    %c0_9 = arith.constant 0 : index
    %c0_10 = arith.constant 0 : index
    %20 = vector.load %arg4[%c0_9, %c0_10] : memref<8x256xbf16, #tpu.memory_space<vmem>>, vector<8x256xbf16>
    tpu.vector_store %arg4[%c0_9, %c0_10], %19 {strides = array<i32>} : memref<8x256xbf16, #tpu.memory_space<vmem>>, vector<8x256xbf16>,
    return
  }
  func.func @transform_0(%arg0: i32) -> (i32, i32) {
    %c0_i32 = arith.constant 0 : i32
    %c0_i32_0 = arith.constant 0 : i32
    return %arg0, %c0_i32 : i32, i32
  }
  func.func @transform_1(%arg0: i32) -> (i32, i32) {
    %c0_i32 = arith.constant 0 : i32
    %c0_i32_0 = arith.constant 0 : i32
    %c0_i32_1 = arith.constant 0 : i32
    return %c0_i32, %c0_i32_0 : i32, i32
  }
  func.func @transform_2(%arg0: i32) -> (i32, i32) {
    %c0_i32 = arith.constant 0 : i32
    %c0_i32_0 = arith.constant 0 : i32
    %c0_i32_1 = arith.constant 0 : i32
    return %c0_i32, %c0_i32_0 : i32, i32
  }
  func.func @transform_3(%arg0: i32) -> (i32, i32) {
    %c0_i32 = arith.constant 0 : i32
    %c0_i32_0 = arith.constant 0 : i32
    return %arg0, %c0_i32 : i32, i32
  }
}

module attributes {stable_mosaic.version = 11 : i64} {
  func.func @_bottleneck_kernel(%arg0: i32, %arg1: memref<2x1024xbf16, #tpu.memory_space<vmem>>, %arg2: memref<1024x2xbf16, #tpu.memory_space<vmem>>, %arg3: memref<1x2xf32, #tpu.memory_space<vmem>>, %arg4: memref<2x1024xbf16, #tpu.memory_space<vmem>>, %arg5: memref<1x1024xf32, #tpu.memory_space<vmem>>, %arg6: memref<2x1024xbf16, #tpu.memory_space<vmem>>) attributes {dimension_semantics = [#tpu.dimension_semantics<arbitrary>], iteration_bounds = array<i64: 1>, scalar_prefetch = 0 : i64, scratch_operands = 0 : i64, tpu.core_type = #tpu.core_type<tc>, window_params = [{pipeline_mode = #tpu.pipeline_mode<synchronous>, transform_indices = @transform_0, window_bounds = array<i64: 2, 1024>}, {pipeline_mode = #tpu.pipeline_mode<synchronous>, transform_indices = @transform_1, window_bounds = array<i64: 1024, 2>}, {pipeline_mode = #tpu.pipeline_mode<synchronous>, transform_indices = @transform_2, window_bounds = array<i64: 1, 2>}, {pipeline_mode = #tpu.pipeline_mode<synchronous>, transform_indices = @transform_3, window_bounds = array<i64: 2, 1024>}, {pipeline_mode = #tpu.pipeline_mode<synchronous>, transform_indices = @transform_4, window_bounds = array<i64: 1, 1024>}, {pipeline_mode = #tpu.pipeline_mode<synchronous>, transform_indices = @transform_5, window_bounds = array<i64: 2, 1024>}]} {
    %c0 = arith.constant 0 : index
    %c0_0 = arith.constant 0 : index
    %0 = vector.load %arg1[%c0, %c0_0] : memref<2x1024xbf16, #tpu.memory_space<vmem>>, vector<2x1024xbf16>
    %c0_1 = arith.constant 0 : index
    %c0_2 = arith.constant 0 : index
    %1 = vector.load %arg2[%c0_1, %c0_2] : memref<1024x2xbf16, #tpu.memory_space<vmem>>, vector<1024x2xbf16>
    %cst = arith.constant dense<0.000000e+00> : vector<2x2xf32>
    %2 = tpu.matmul %0, %1, %cst {dimension_numbers = #tpu.dot_dimension_numbers<[1], [0], [0], [1], [0, 0, 1, 1], [], []>} : vector<2x1024xbf16>, vector<1024x2xbf16>, vector<2x2xf32> -> vector<2x2xf32>
    %c0_3 = arith.constant 0 : index
    %c0_4 = arith.constant 0 : index
    %3 = vector.load %arg3[%c0_3, %c0_4] : memref<1x2xf32, #tpu.memory_space<vmem>>, vector<1x2xf32>
    %4 = vector.broadcast %3 : vector<1x2xf32> to vector<2x2xf32>
    %5 = arith.addf %2, %4 : vector<2x2xf32>
    %6 = arith.truncf %5 : vector<2x2xf32> to vector<2x2xbf16>
    %c0_5 = arith.constant 0 : index
    %c0_6 = arith.constant 0 : index
    %7 = vector.load %arg4[%c0_5, %c0_6] : memref<2x1024xbf16, #tpu.memory_space<vmem>>, vector<2x1024xbf16>
    %cst_7 = arith.constant dense<0.000000e+00> : vector<2x1024xf32>
    %8 = tpu.matmul %6, %7, %cst_7 {dimension_numbers = #tpu.dot_dimension_numbers<[1], [0], [0], [1], [0, 0, 1, 1], [], []>} : vector<2x2xbf16>, vector<2x1024xbf16>, vector<2x1024xf32> -> vector<2x1024xf32>
    %c0_8 = arith.constant 0 : index
    %c0_9 = arith.constant 0 : index
    %9 = vector.load %arg5[%c0_8, %c0_9] : memref<1x1024xf32, #tpu.memory_space<vmem>>, vector<1x1024xf32>
    %10 = vector.broadcast %9 : vector<1x1024xf32> to vector<2x1024xf32>
    %11 = arith.addf %8, %10 : vector<2x1024xf32>
    %cst_10 = arith.constant 5.000000e-01 : f32
    %12 = vector.broadcast %cst_10 : f32 to vector<2x1024xf32>
    %13 = arith.mulf %12, %11 : vector<2x1024xf32>
    %cst_11 = arith.constant 4.471500e-02 : f32
    %14 = vector.broadcast %cst_11 : f32 to vector<2x1024xf32>
    %15 = arith.mulf %14, %11 : vector<2x1024xf32>
    %16 = arith.mulf %15, %11 : vector<2x1024xf32>
    %17 = arith.mulf %16, %11 : vector<2x1024xf32>
    %18 = arith.addf %11, %17 : vector<2x1024xf32>
    %cst_12 = arith.constant 0.797884583 : f32
    %19 = vector.broadcast %cst_12 : f32 to vector<2x1024xf32>
    %20 = arith.mulf %19, %18 : vector<2x1024xf32>
    %21 = math.tanh %20 : vector<2x1024xf32>
    %cst_13 = arith.constant 1.000000e+00 : f32
    %22 = vector.broadcast %cst_13 : f32 to vector<2x1024xf32>
    %23 = arith.addf %22, %21 : vector<2x1024xf32>
    %24 = arith.mulf %13, %23 : vector<2x1024xf32>
    %25 = arith.truncf %24 : vector<2x1024xf32> to vector<2x1024xbf16>
    %c0_14 = arith.constant 0 : index
    %c0_15 = arith.constant 0 : index
    %26 = vector.load %arg6[%c0_14, %c0_15] : memref<2x1024xbf16, #tpu.memory_space<vmem>>, vector<2x1024xbf16>
    tpu.vector_store %arg6[%c0_14, %c0_15], %25 {strides = array<i32>} : memref<2x1024xbf16, #tpu.memory_space<vmem>>, vector<2x1024xbf16>,
    return
  }
  func.func @transform_0(%arg0: i32) -> (i32, i32) {
    %c0_i32 = arith.constant 0 : i32
    %c0_i32_0 = arith.constant 0 : i32
    %c0_i32_1 = arith.constant 0 : i32
    return %c0_i32, %c0_i32_0 : i32, i32
  }
  func.func @transform_1(%arg0: i32) -> (i32, i32) {
    %c0_i32 = arith.constant 0 : i32
    %c0_i32_0 = arith.constant 0 : i32
    %c0_i32_1 = arith.constant 0 : i32
    return %c0_i32, %c0_i32_0 : i32, i32
  }
  func.func @transform_2(%arg0: i32) -> (i32, i32) {
    %c0_i32 = arith.constant 0 : i32
    %c0_i32_0 = arith.constant 0 : i32
    %c0_i32_1 = arith.constant 0 : i32
    return %c0_i32, %c0_i32_0 : i32, i32
  }
  func.func @transform_3(%arg0: i32) -> (i32, i32) {
    %c0_i32 = arith.constant 0 : i32
    %c0_i32_0 = arith.constant 0 : i32
    %c0_i32_1 = arith.constant 0 : i32
    return %c0_i32, %c0_i32_0 : i32, i32
  }
  func.func @transform_4(%arg0: i32) -> (i32, i32) {
    %c0_i32 = arith.constant 0 : i32
    %c0_i32_0 = arith.constant 0 : i32
    %c0_i32_1 = arith.constant 0 : i32
    return %c0_i32, %c0_i32_0 : i32, i32
  }
  func.func @transform_5(%arg0: i32) -> (i32, i32) {
    %c0_i32 = arith.constant 0 : i32
    %c0_i32_0 = arith.constant 0 : i32
    %c0_i32_1 = arith.constant 0 : i32
    return %c0_i32, %c0_i32_0 : i32, i32
  }
}

module attributes {stable_mosaic.version = 11 : i64} {
  func.func @_fused_matmul_kernel(%arg0: i32, %arg1: memref<8x1024xbf16, #tpu.memory_space<vmem>>, %arg2: memref<1024x512xbf16, #tpu.memory_space<vmem>>, %arg3: memref<1x512xf32, #tpu.memory_space<vmem>>, %arg4: memref<8x512xbf16, #tpu.memory_space<vmem>>) attributes {dimension_semantics = [#tpu.dimension_semantics<parallel>], iteration_bounds = array<i64: 1>, scalar_prefetch = 0 : i64, scratch_operands = 0 : i64, tpu.core_type = #tpu.core_type<tc>, window_params = [{transform_indices = @transform_0, window_bounds = array<i64: 8, 1024>}, {pipeline_mode = #tpu.pipeline_mode<synchronous>, transform_indices = @transform_1, window_bounds = array<i64: 1024, 512>}, {pipeline_mode = #tpu.pipeline_mode<synchronous>, transform_indices = @transform_2, window_bounds = array<i64: 1, 512>}, {transform_indices = @transform_3, window_bounds = array<i64: 8, 512>}]} {
    %c0 = arith.constant 0 : index
    %c0_0 = arith.constant 0 : index
    %0 = vector.load %arg1[%c0, %c0_0] : memref<8x1024xbf16, #tpu.memory_space<vmem>>, vector<8x1024xbf16>
    %c0_1 = arith.constant 0 : index
    %c0_2 = arith.constant 0 : index
    %1 = vector.load %arg2[%c0_1, %c0_2] : memref<1024x512xbf16, #tpu.memory_space<vmem>>, vector<1024x512xbf16>
    %cst = arith.constant dense<0.000000e+00> : vector<8x512xf32>
    %2 = tpu.matmul %0, %1, %cst {dimension_numbers = #tpu.dot_dimension_numbers<[1], [0], [0], [1], [0, 0, 1, 1], [], []>} : vector<8x1024xbf16>, vector<1024x512xbf16>, vector<8x512xf32> -> vector<8x512xf32>
    %c0_3 = arith.constant 0 : index
    %c0_4 = arith.constant 0 : index
    %3 = vector.load %arg3[%c0_3, %c0_4] : memref<1x512xf32, #tpu.memory_space<vmem>>, vector<1x512xf32>
    %4 = vector.broadcast %3 : vector<1x512xf32> to vector<8x512xf32>
    %5 = arith.addf %2, %4 : vector<8x512xf32>
    %cst_5 = arith.constant 5.000000e-01 : f32
    %6 = vector.broadcast %cst_5 : f32 to vector<8x512xf32>
    %7 = arith.mulf %6, %5 : vector<8x512xf32>
    %cst_6 = arith.constant 4.471500e-02 : f32
    %8 = vector.broadcast %cst_6 : f32 to vector<8x512xf32>
    %9 = arith.mulf %8, %5 : vector<8x512xf32>
    %10 = arith.mulf %9, %5 : vector<8x512xf32>
    %11 = arith.mulf %10, %5 : vector<8x512xf32>
    %12 = arith.addf %5, %11 : vector<8x512xf32>
    %cst_7 = arith.constant 0.797884583 : f32
    %13 = vector.broadcast %cst_7 : f32 to vector<8x512xf32>
    %14 = arith.mulf %13, %12 : vector<8x512xf32>
    %15 = math.tanh %14 : vector<8x512xf32>
    %cst_8 = arith.constant 1.000000e+00 : f32
    %16 = vector.broadcast %cst_8 : f32 to vector<8x512xf32>
    %17 = arith.addf %16, %15 : vector<8x512xf32>
    %18 = arith.mulf %7, %17 : vector<8x512xf32>
    %19 = arith.truncf %18 : vector<8x512xf32> to vector<8x512xbf16>
    %c0_9 = arith.constant 0 : index
    %c0_10 = arith.constant 0 : index
    %20 = vector.load %arg4[%c0_9, %c0_10] : memref<8x512xbf16, #tpu.memory_space<vmem>>, vector<8x512xbf16>
    tpu.vector_store %arg4[%c0_9, %c0_10], %19 {strides = array<i32>} : memref<8x512xbf16, #tpu.memory_space<vmem>>, vector<8x512xbf16>,
    return
  }
  func.func @transform_0(%arg0: i32) -> (i32, i32) {
    %c0_i32 = arith.constant 0 : i32
    %c0_i32_0 = arith.constant 0 : i32
    return %arg0, %c0_i32 : i32, i32
  }
  func.func @transform_1(%arg0: i32) -> (i32, i32) {
    %c0_i32 = arith.constant 0 : i32
    %c0_i32_0 = arith.constant 0 : i32
    %c0_i32_1 = arith.constant 0 : i32
    return %c0_i32, %c0_i32_0 : i32, i32
  }
  func.func @transform_2(%arg0: i32) -> (i32, i32) {
    %c0_i32 = arith.constant 0 : i32
    %c0_i32_0 = arith.constant 0 : i32
    %c0_i32_1 = arith.constant 0 : i32
    return %c0_i32, %c0_i32_0 : i32, i32
  }
  func.func @transform_3(%arg0: i32) -> (i32, i32) {
    %c0_i32 = arith.constant 0 : i32
    %c0_i32_0 = arith.constant 0 : i32
    return %arg0, %c0_i32 : i32, i32
  }
}

module attributes {stable_mosaic.version = 11 : i64} {
  func.func @_fused_matmul_kernel(%arg0: i32, %arg1: memref<32x512xbf16, #tpu.memory_space<vmem>>, %arg2: memref<512x256xbf16, #tpu.memory_space<vmem>>, %arg3: memref<1x256xf32, #tpu.memory_space<vmem>>, %arg4: memref<32x256xbf16, #tpu.memory_space<vmem>>) attributes {dimension_semantics = [#tpu.dimension_semantics<parallel>], iteration_bounds = array<i64: 1>, scalar_prefetch = 0 : i64, scratch_operands = 0 : i64, tpu.core_type = #tpu.core_type<tc>, window_params = [{transform_indices = @transform_0, window_bounds = array<i64: 32, 512>}, {pipeline_mode = #tpu.pipeline_mode<synchronous>, transform_indices = @transform_1, window_bounds = array<i64: 512, 256>}, {pipeline_mode = #tpu.pipeline_mode<synchronous>, transform_indices = @transform_2, window_bounds = array<i64: 1, 256>}, {transform_indices = @transform_3, window_bounds = array<i64: 32, 256>}]} {
    %c0 = arith.constant 0 : index
    %c0_0 = arith.constant 0 : index
    %0 = vector.load %arg1[%c0, %c0_0] : memref<32x512xbf16, #tpu.memory_space<vmem>>, vector<32x512xbf16>
    %c0_1 = arith.constant 0 : index
    %c0_2 = arith.constant 0 : index
    %1 = vector.load %arg2[%c0_1, %c0_2] : memref<512x256xbf16, #tpu.memory_space<vmem>>, vector<512x256xbf16>
    %cst = arith.constant dense<0.000000e+00> : vector<32x256xf32>
    %2 = tpu.matmul %0, %1, %cst {dimension_numbers = #tpu.dot_dimension_numbers<[1], [0], [0], [1], [0, 0, 1, 1], [], []>} : vector<32x512xbf16>, vector<512x256xbf16>, vector<32x256xf32> -> vector<32x256xf32>
    %c0_3 = arith.constant 0 : index
    %c0_4 = arith.constant 0 : index
    %3 = vector.load %arg3[%c0_3, %c0_4] : memref<1x256xf32, #tpu.memory_space<vmem>>, vector<1x256xf32>
    %4 = vector.broadcast %3 : vector<1x256xf32> to vector<32x256xf32>
    %5 = arith.addf %2, %4 : vector<32x256xf32>
    %cst_5 = arith.constant 5.000000e-01 : f32
    %6 = vector.broadcast %cst_5 : f32 to vector<32x256xf32>
    %7 = arith.mulf %6, %5 : vector<32x256xf32>
    %cst_6 = arith.constant 4.471500e-02 : f32
    %8 = vector.broadcast %cst_6 : f32 to vector<32x256xf32>
    %9 = arith.mulf %8, %5 : vector<32x256xf32>
    %10 = arith.mulf %9, %5 : vector<32x256xf32>
    %11 = arith.mulf %10, %5 : vector<32x256xf32>
    %12 = arith.addf %5, %11 : vector<32x256xf32>
    %cst_7 = arith.constant 0.797884583 : f32
    %13 = vector.broadcast %cst_7 : f32 to vector<32x256xf32>
    %14 = arith.mulf %13, %12 : vector<32x256xf32>
    %15 = math.tanh %14 : vector<32x256xf32>
    %cst_8 = arith.constant 1.000000e+00 : f32
    %16 = vector.broadcast %cst_8 : f32 to vector<32x256xf32>
    %17 = arith.addf %16, %15 : vector<32x256xf32>
    %18 = arith.mulf %7, %17 : vector<32x256xf32>
    %19 = arith.truncf %18 : vector<32x256xf32> to vector<32x256xbf16>
    %c0_9 = arith.constant 0 : index
    %c0_10 = arith.constant 0 : index
    %20 = vector.load %arg4[%c0_9, %c0_10] : memref<32x256xbf16, #tpu.memory_space<vmem>>, vector<32x256xbf16>
    tpu.vector_store %arg4[%c0_9, %c0_10], %19 {strides = array<i32>} : memref<32x256xbf16, #tpu.memory_space<vmem>>, vector<32x256xbf16>,
    return
  }
  func.func @transform_0(%arg0: i32) -> (i32, i32) {
    %c0_i32 = arith.constant 0 : i32
    %c0_i32_0 = arith.constant 0 : i32
    return %arg0, %c0_i32 : i32, i32
  }
  func.func @transform_1(%arg0: i32) -> (i32, i32) {
    %c0_i32 = arith.constant 0 : i32
    %c0_i32_0 = arith.constant 0 : i32
    %c0_i32_1 = arith.constant 0 : i32
    return %c0_i32, %c0_i32_0 : i32, i32
  }
  func.func @transform_2(%arg0: i32) -> (i32, i32) {
    %c0_i32 = arith.constant 0 : i32
    %c0_i32_0 = arith.constant 0 : i32
    %c0_i32_1 = arith.constant 0 : i32
    return %c0_i32, %c0_i32_0 : i32, i32
  }
  func.func @transform_3(%arg0: i32) -> (i32, i32) {
    %c0_i32 = arith.constant 0 : i32
    %c0_i32_0 = arith.constant 0 : i32
    return %arg0, %c0_i32 : i32, i32
  }
}

module attributes {stable_mosaic.version = 11 : i64} {
  func.func @_fused_matmul_kernel(%arg0: i32, %arg1: memref<98x256xbf16, #tpu.memory_space<vmem>>, %arg2: memref<256x128xbf16, #tpu.memory_space<vmem>>, %arg3: memref<1x128xf32, #tpu.memory_space<vmem>>, %arg4: memref<98x128xbf16, #tpu.memory_space<vmem>>) attributes {dimension_semantics = [#tpu.dimension_semantics<parallel>], iteration_bounds = array<i64: 1>, scalar_prefetch = 0 : i64, scratch_operands = 0 : i64, tpu.core_type = #tpu.core_type<tc>, window_params = [{transform_indices = @transform_0, window_bounds = array<i64: 98, 256>}, {pipeline_mode = #tpu.pipeline_mode<synchronous>, transform_indices = @transform_1, window_bounds = array<i64: 256, 128>}, {pipeline_mode = #tpu.pipeline_mode<synchronous>, transform_indices = @transform_2, window_bounds = array<i64: 1, 128>}, {transform_indices = @transform_3, window_bounds = array<i64: 98, 128>}]} {
    %c0 = arith.constant 0 : index
    %c0_0 = arith.constant 0 : index
    %0 = vector.load %arg1[%c0, %c0_0] : memref<98x256xbf16, #tpu.memory_space<vmem>>, vector<98x256xbf16>
    %c0_1 = arith.constant 0 : index
    %c0_2 = arith.constant 0 : index
    %1 = vector.load %arg2[%c0_1, %c0_2] : memref<256x128xbf16, #tpu.memory_space<vmem>>, vector<256x128xbf16>
    %cst = arith.constant dense<0.000000e+00> : vector<98x128xf32>
    %2 = tpu.matmul %0, %1, %cst {dimension_numbers = #tpu.dot_dimension_numbers<[1], [0], [0], [1], [0, 0, 1, 1], [], []>} : vector<98x256xbf16>, vector<256x128xbf16>, vector<98x128xf32> -> vector<98x128xf32>
    %c0_3 = arith.constant 0 : index
    %c0_4 = arith.constant 0 : index
    %3 = vector.load %arg3[%c0_3, %c0_4] : memref<1x128xf32, #tpu.memory_space<vmem>>, vector<1x128xf32>
    %4 = vector.broadcast %3 : vector<1x128xf32> to vector<98x128xf32>
    %5 = arith.addf %2, %4 : vector<98x128xf32>
    %cst_5 = arith.constant 5.000000e-01 : f32
    %6 = vector.broadcast %cst_5 : f32 to vector<98x128xf32>
    %7 = arith.mulf %6, %5 : vector<98x128xf32>
    %cst_6 = arith.constant 4.471500e-02 : f32
    %8 = vector.broadcast %cst_6 : f32 to vector<98x128xf32>
    %9 = arith.mulf %8, %5 : vector<98x128xf32>
    %10 = arith.mulf %9, %5 : vector<98x128xf32>
    %11 = arith.mulf %10, %5 : vector<98x128xf32>
    %12 = arith.addf %5, %11 : vector<98x128xf32>
    %cst_7 = arith.constant 0.797884583 : f32
    %13 = vector.broadcast %cst_7 : f32 to vector<98x128xf32>
    %14 = arith.mulf %13, %12 : vector<98x128xf32>
    %15 = math.tanh %14 : vector<98x128xf32>
    %cst_8 = arith.constant 1.000000e+00 : f32
    %16 = vector.broadcast %cst_8 : f32 to vector<98x128xf32>
    %17 = arith.addf %16, %15 : vector<98x128xf32>
    %18 = arith.mulf %7, %17 : vector<98x128xf32>
    %19 = arith.truncf %18 : vector<98x128xf32> to vector<98x128xbf16>
    %c0_9 = arith.constant 0 : index
    %c0_10 = arith.constant 0 : index
    %20 = vector.load %arg4[%c0_9, %c0_10] : memref<98x128xbf16, #tpu.memory_space<vmem>>, vector<98x128xbf16>
    tpu.vector_store %arg4[%c0_9, %c0_10], %19 {strides = array<i32>} : memref<98x128xbf16, #tpu.memory_space<vmem>>, vector<98x128xbf16>,
    return
  }
  func.func @transform_0(%arg0: i32) -> (i32, i32) {
    %c0_i32 = arith.constant 0 : i32
    %c0_i32_0 = arith.constant 0 : i32
    return %arg0, %c0_i32 : i32, i32
  }
  func.func @transform_1(%arg0: i32) -> (i32, i32) {
    %c0_i32 = arith.constant 0 : i32
    %c0_i32_0 = arith.constant 0 : i32
    %c0_i32_1 = arith.constant 0 : i32
    return %c0_i32, %c0_i32_0 : i32, i32
  }
  func.func @transform_2(%arg0: i32) -> (i32, i32) {
    %c0_i32 = arith.constant 0 : i32
    %c0_i32_0 = arith.constant 0 : i32
    %c0_i32_1 = arith.constant 0 : i32
    return %c0_i32, %c0_i32_0 : i32, i32
  }
  func.func @transform_3(%arg0: i32) -> (i32, i32) {
    %c0_i32 = arith.constant 0 : i32
    %c0_i32_0 = arith.constant 0 : i32
    return %arg0, %c0_i32 : i32, i32
  }
}

module attributes {stable_mosaic.version = 11 : i64} {
  func.func @_fused_matmul_kernel(%arg0: i32, %arg1: memref<256x128xbf16, #tpu.memory_space<vmem>>, %arg2: memref<128x128xbf16, #tpu.memory_space<vmem>>, %arg3: memref<1x128xf32, #tpu.memory_space<vmem>>, %arg4: memref<256x128xbf16, #tpu.memory_space<vmem>>) attributes {dimension_semantics = [#tpu.dimension_semantics<parallel>], iteration_bounds = array<i64: 2>, scalar_prefetch = 0 : i64, scratch_operands = 0 : i64, tpu.core_type = #tpu.core_type<tc>, window_params = [{transform_indices = @transform_0, window_bounds = array<i64: 256, 128>}, {pipeline_mode = #tpu.pipeline_mode<synchronous>, transform_indices = @transform_1, window_bounds = array<i64: 128, 128>}, {pipeline_mode = #tpu.pipeline_mode<synchronous>, transform_indices = @transform_2, window_bounds = array<i64: 1, 128>}, {transform_indices = @transform_3, window_bounds = array<i64: 256, 128>}]} {
    %c0 = arith.constant 0 : index
    %c0_0 = arith.constant 0 : index
    %0 = vector.load %arg1[%c0, %c0_0] : memref<256x128xbf16, #tpu.memory_space<vmem>>, vector<256x128xbf16>
    %c0_1 = arith.constant 0 : index
    %c0_2 = arith.constant 0 : index
    %1 = vector.load %arg2[%c0_1, %c0_2] : memref<128x128xbf16, #tpu.memory_space<vmem>>, vector<128x128xbf16>
    %cst = arith.constant dense<0.000000e+00> : vector<256x128xf32>
    %2 = tpu.matmul %0, %1, %cst {dimension_numbers = #tpu.dot_dimension_numbers<[1], [0], [0], [1], [0, 0, 1, 1], [], []>} : vector<256x128xbf16>, vector<128x128xbf16>, vector<256x128xf32> -> vector<256x128xf32>
    %c0_3 = arith.constant 0 : index
    %c0_4 = arith.constant 0 : index
    %3 = vector.load %arg3[%c0_3, %c0_4] : memref<1x128xf32, #tpu.memory_space<vmem>>, vector<1x128xf32>
    %4 = vector.broadcast %3 : vector<1x128xf32> to vector<256x128xf32>
    %5 = arith.addf %2, %4 : vector<256x128xf32>
    %cst_5 = arith.constant 5.000000e-01 : f32
    %6 = vector.broadcast %cst_5 : f32 to vector<256x128xf32>
    %7 = arith.mulf %6, %5 : vector<256x128xf32>
    %cst_6 = arith.constant 4.471500e-02 : f32
    %8 = vector.broadcast %cst_6 : f32 to vector<256x128xf32>
    %9 = arith.mulf %8, %5 : vector<256x128xf32>
    %10 = arith.mulf %9, %5 : vector<256x128xf32>
    %11 = arith.mulf %10, %5 : vector<256x128xf32>
    %12 = arith.addf %5, %11 : vector<256x128xf32>
    %cst_7 = arith.constant 0.797884583 : f32
    %13 = vector.broadcast %cst_7 : f32 to vector<256x128xf32>
    %14 = arith.mulf %13, %12 : vector<256x128xf32>
    %15 = math.tanh %14 : vector<256x128xf32>
    %cst_8 = arith.constant 1.000000e+00 : f32
    %16 = vector.broadcast %cst_8 : f32 to vector<256x128xf32>
    %17 = arith.addf %16, %15 : vector<256x128xf32>
    %18 = arith.mulf %7, %17 : vector<256x128xf32>
    %19 = arith.truncf %18 : vector<256x128xf32> to vector<256x128xbf16>
    %c0_9 = arith.constant 0 : index
    %c0_10 = arith.constant 0 : index
    %20 = vector.load %arg4[%c0_9, %c0_10] : memref<256x128xbf16, #tpu.memory_space<vmem>>, vector<256x128xbf16>
    tpu.vector_store %arg4[%c0_9, %c0_10], %19 {strides = array<i32>} : memref<256x128xbf16, #tpu.memory_space<vmem>>, vector<256x128xbf16>,
    return
  }
  func.func @transform_0(%arg0: i32) -> (i32, i32) {
    %c0_i32 = arith.constant 0 : i32
    %c0_i32_0 = arith.constant 0 : i32
    return %arg0, %c0_i32 : i32, i32
  }
  func.func @transform_1(%arg0: i32) -> (i32, i32) {
    %c0_i32 = arith.constant 0 : i32
    %c0_i32_0 = arith.constant 0 : i32
    %c0_i32_1 = arith.constant 0 : i32
    return %c0_i32, %c0_i32_0 : i32, i32
  }
  func.func @transform_2(%arg0: i32) -> (i32, i32) {
    %c0_i32 = arith.constant 0 : i32
    %c0_i32_0 = arith.constant 0 : i32
    %c0_i32_1 = arith.constant 0 : i32
    return %c0_i32, %c0_i32_0 : i32, i32
  }
  func.func @transform_3(%arg0: i32) -> (i32, i32) {
    %c0_i32 = arith.constant 0 : i32
    %c0_i32_0 = arith.constant 0 : i32
    return %arg0, %c0_i32 : i32, i32
  }
}

module attributes {stable_mosaic.version = 11 : i64} {
  func.func @_fused_matmul_kernel(%arg0: i32, %arg1: memref<256x288xbf16, #tpu.memory_space<vmem>>, %arg2: memref<288x1xbf16, #tpu.memory_space<vmem>>, %arg3: memref<1x1xf32, #tpu.memory_space<vmem>>, %arg4: memref<256x1xf32, #tpu.memory_space<vmem>>) attributes {dimension_semantics = [#tpu.dimension_semantics<parallel>], iteration_bounds = array<i64: 7>, scalar_prefetch = 0 : i64, scratch_operands = 0 : i64, tpu.core_type = #tpu.core_type<tc>, window_params = [{transform_indices = @transform_0, window_bounds = array<i64: 256, 288>}, {pipeline_mode = #tpu.pipeline_mode<synchronous>, transform_indices = @transform_1, window_bounds = array<i64: 288, 1>}, {pipeline_mode = #tpu.pipeline_mode<synchronous>, transform_indices = @transform_2, window_bounds = array<i64: 1, 1>}, {transform_indices = @transform_3, window_bounds = array<i64: 256, 1>}]} {
    %c0 = arith.constant 0 : index
    %c0_0 = arith.constant 0 : index
    %0 = vector.load %arg1[%c0, %c0_0] : memref<256x288xbf16, #tpu.memory_space<vmem>>, vector<256x288xbf16>
    %c0_1 = arith.constant 0 : index
    %c0_2 = arith.constant 0 : index
    %1 = vector.load %arg2[%c0_1, %c0_2] : memref<288x1xbf16, #tpu.memory_space<vmem>>, vector<288x1xbf16>
    %cst = arith.constant dense<0.000000e+00> : vector<256x1xf32>
    %2 = tpu.matmul %0, %1, %cst {dimension_numbers = #tpu.dot_dimension_numbers<[1], [0], [0], [1], [0, 0, 1, 1], [], []>} : vector<256x288xbf16>, vector<288x1xbf16>, vector<256x1xf32> -> vector<256x1xf32>
    %c0_3 = arith.constant 0 : index
    %c0_4 = arith.constant 0 : index
    %3 = vector.load %arg3[%c0_3, %c0_4] : memref<1x1xf32, #tpu.memory_space<vmem>>, vector<1x1xf32>
    %4 = vector.broadcast %3 : vector<1x1xf32> to vector<256x1xf32>
    %5 = arith.addf %2, %4 : vector<256x1xf32>
    %6 = arith.negf %5 : vector<256x1xf32>
    %7 = math.exp %6 : vector<256x1xf32>
    %cst_5 = arith.constant 1.000000e+00 : f32
    %8 = vector.broadcast %cst_5 : f32 to vector<256x1xf32>
    %9 = arith.addf %8, %7 : vector<256x1xf32>
    %10 = arith.divf %8, %9 : vector<256x1xf32>
    %c0_6 = arith.constant 0 : index
    %c0_7 = arith.constant 0 : index
    %11 = vector.load %arg4[%c0_6, %c0_7] : memref<256x1xf32, #tpu.memory_space<vmem>>, vector<256x1xf32>
    tpu.vector_store %arg4[%c0_6, %c0_7], %10 {strides = array<i32>} : memref<256x1xf32, #tpu.memory_space<vmem>>, vector<256x1xf32>,
    return
  }
  func.func @transform_0(%arg0: i32) -> (i32, i32) {
    %c0_i32 = arith.constant 0 : i32
    %c0_i32_0 = arith.constant 0 : i32
    return %arg0, %c0_i32 : i32, i32
  }
  func.func @transform_1(%arg0: i32) -> (i32, i32) {
    %c0_i32 = arith.constant 0 : i32
    %c0_i32_0 = arith.constant 0 : i32
    %c0_i32_1 = arith.constant 0 : i32
    return %c0_i32, %c0_i32_0 : i32, i32
  }
  func.func @transform_2(%arg0: i32) -> (i32, i32) {
    %c0_i32 = arith.constant 0 : i32
    %c0_i32_0 = arith.constant 0 : i32
    %c0_i32_1 = arith.constant 0 : i32
    return %c0_i32, %c0_i32_0 : i32, i32
  }
  func.func @transform_3(%arg0: i32) -> (i32, i32) {
    %c0_i32 = arith.constant 0 : i32
    %c0_i32_0 = arith.constant 0 : i32
    return %arg0, %c0_i32 : i32, i32
  }
}

</mosaic_0001>

<bundles_post_ra>
// kernel: ae_conv_forward.10
= control target key start
LH: loop header
LB: loop body
LE: loop exit
PB: predicated region body
PF: predicated region fallthrough
CT: control target
= control target key end

     0   :  { %8 = vsyncpa [#allocation3], 0  ;;  %s1851_s12 = smov 0   ;;  %s1853_s13 = smov 0   ;;  %s2381_s0 = inlined_call_operand.vmem [shape: bf16[392,9], index: 0, kind: input, shape index: {}]   ;;  %s2382_s1 = inlined_call_operand.vmem [shape: bf16[9,32], index: 1, kind: input, shape index: {}]   ;;  %s2383_s2 = inlined_call_operand.hbm [shape: f32[1,32], index: 2, kind: input, shape index: {}]   ;;  %s2384_s3 = inlined_call_operand.vmem [shape: bf16[392,32], index: 3, kind: output, shape index: {}]  }
   0x1   :  { %s1855_s14 = smov 0  }
   0x2 LB: > { %s1864_s15 = sadd.s32 4294967295, %s1795_s14   ;;  %s1866_s16 = sadd.s32 1, %s1795_s14   ;;  %s1795_s14 = sphi %s1855_s14, %s2392_s14   ;;  %s1791_s13 = sphi %s1853_s13, %s2391_s13   ;;  %s1787_s12 = sphi %s1851_s12, %s2390_s12  }
   0x3   : > { %s86_s17 = ssub.s32 %s1795_s14, %s1866_s16  ;;  %s89_s18 = sadd.s32 1, %s1791_s13 }
   0x4   : > { %p87_p0 = scmp.eq.s32.totalorder %s86_s17, 0  ;;  %p99_p1 = scmp.ne.s32.totalorder %s1791_s13, %s1787_s12 }
   0x5   : > { %p100_p2 = scmp.eq.s32.totalorder %s1864_s15, 1  ;;  %p1351_p3 = scmp.ge.s32.totalorder %s1795_s14, 1 }
   0x6   : > { %s1874_s19 = scalar_select %p87_p0, %s1791_s13, %s89_s18  }
   0x7   : > { %p1876_p4 = por %p100_p2, %p99_p1  ;;  %p113_p5 = scmp.lt.s32.totalorder %s1795_s14, 3 }
   0x8   : > { %p1538_p6 = scmp.eq.s32.totalorder %s1864_s15, 0  ;;  %s1829_s22 = smov [#allocation2]  }
   0x9   : > { %p1881_p7 = pnand %p1351_p3, %p113_p5  ;;  %s129_s23 = sshll.u32 %s1829_s22, 4  ;;  %s130_s23 = int_to_ptr.vmem [resolvable:$true] %s129_s23 }
   0xa   : > { %s1722_s24 = scalar_lea.vmem %s130_s23, 16  ;;  %s1729_s25 = scalar_lea.vmem %s130_s23, 32 }
   0xb   : > { %p1534_p8 = pneg %p1881_p7  ;;  %p1723_p11 = scmp.ne.s32.totalorder %s130_s23, %s1722_s24 }
   0xc   : > { %p1730_p0 = scmp.lt.s32.totalorder %s130_s23, %s130_s23  ;;  %p1731_p1 = scmp.lt.s32.totalorder %s1729_s25, %s1722_s24 }
   0xd   : > { %p1535_p9 = pnand %p1538_p6, %p1534_p8 }
   0xe   : > { %p1732_p2 = por %p1731_p1, %p1730_p0 }
   0xf   : > { %p1713_p10 = pneg %p1535_p9 }
  0x11   : > { %p1725_p12 = pnand %p1723_p11, %p1713_p10 }
  0x13   : > { %p1726_p13 = pneg %p1725_p12 }
  0x15   : > { %p1733_p3 = pnand %p1732_p2, %p1726_p13 }
  0x17   : > { %1736 = shalt.err (!%p1733_p3)
}
  0x18   : > { %1537 = dma.hbm_to_vmem [thread:$0]  (!%p1535_p9), %s2383_s2, 16, %s130_s23, [#allocation3]  }
  0x19   : > { %159 = sbr.rel (%p1881_p7) target bundleno = 401 (0x191), region = 32 }
  0x1e   : > { %1782 = dma.done.wait (%p1538_p6), [#allocation3], 16  }
  0x1f   : > { %1784 = vsyncadd (%p1538_p6), [#allocation3], 4294967280  ;;  %vm381_vm0 = vcmask 1043456   ;;  %s1899_s28 = sshll.u32 %s1864_s15, 5  ;;  %vm382_vm1 = vcmask 1044480   ;;  %v1830_v0 = vmov 65535  }
  0x20   : > { %p191_p5 = scmp.lt.s32.totalorder %s1899_s28, 48  ;;  %v383_v1 = vsel %vm381_vm0, 4294967295, %v1830_v0  ;;  %vm332_vm2 = vcmask 72704   ;;  %v1630_v3 = vld [vmem:[%s2382_s1] sm:$0x1f]   ;;  %vm965_vm3 = vcmask 257024  }
  0x21   : > { %v384_v2 = vsel %vm382_vm1, %v383_v1, 0  ;;  %v1943_v21 = vld [vmem:[#allocation2] ss:$0 sm:$0xff]  ;;  %s183_s9 = sand.u32 1, %s1787_s12   ;;  %s1006_s12 = ssub.s32 (%p1876_p4), 49, %s1899_s28 }
  0x22   : > { %s192_s29 = scalar_select %p191_p5, %s1899_s28, 48  ;;  %v386_v5 = vand.u32 %v1630_v3, %v384_v2 }
  0x23   : > { %s1356_s10 = sshll.u32 %s183_s9, 7  ;;  %s1474_s14 = sshll.u32 (%p1876_p4), %s1864_s15, 7 }
  0x24   : > { %s1358_s30 = sshll.u32 %s192_s29, 2  ;;  %1494 = vmatprep.subr.bf16.mxu0 %v386_v5  ;;  %1528 = vmatprep.subr.bf16.mxu1 %v386_v5  ;;  %s2028_s11 = scalar_lea.vmem [#allocation4], %s1356_s10  }
  0x25   : > { %s1906_s6 = scalar_lea.vmem %s2381_s0, %s1358_s30  ;;  %1495 = vmatpush3.bf16.msra.mxu0 %v386_v5  ;;  %1529 = vmatpush3.bf16.msra.mxu1 %v386_v5  ;;  %p1007_p6 = scmp.lt.s32.totalorder (%p1876_p4), %s1006_s12, 32 }
  0x26   : > { %v1631_v4 = vld [vmem:[%s1906_s6] sm:$0xff]   ;;  %v1633_v7 = vld [vmem:[%s1906_s6 + $0x8] sm:$0xff]   ;;  %v1635_v9 = vld [vmem:[%s1906_s6 + $0x10] sm:$0xff]   ;;  %s2253_s21 = scalar_lea.vmem (%p1876_p4), %s2384_s3, %s1474_s14  }
  0x27   : > { %v1632_v6 = vld [vmem:[%s1906_s6 + $0x40] sm:$0xff]   ;;  %1496 = vmatprep.mubr.msk.bf16.mxu0 %vm332_vm2, %v1631_v4  ;;  %v1634_v8 = vld [vmem:[%s1906_s6 + $0x48] sm:$0xff]   ;;  %v1636_v10 = vld [vmem:[%s1906_s6 + $0x50] sm:$0xff]  }
  0x28   : > { %1512 = vmatprep.mubr.msk.bf16.mxu1 %vm332_vm2, %v1632_v6  ;;  %1497 = vmatmul.mubr.msk.bf16.vlgmr.msra.gmra.mxu0 %vm332_vm2, %v1633_v7  ;;  %v1637_v11 = vld [vmem:[%s1906_s6 + $0x18] sm:$0xff]   ;;  %v1639_v13 = vld [vmem:[%s1906_s6 + $0x20] sm:$0xff]   ;;  %v1641_v15 = vld [vmem:[%s1906_s6 + $0x28] sm:$0xff]  }
  0x29   : > { %1513 = vmatmul.mubr.msk.bf16.vlgmr.msra.gmra.mxu1 %vm332_vm2, %v1634_v8  ;;  %1500 = vmatprep.mubr.msk.bf16.mxu0 %vm332_vm2, %v1635_v9  ;;  %v1638_v12 = vld [vmem:[%s1906_s6 + $0x58] sm:$0xff]   ;;  %v1640_v14 = vld [vmem:[%s1906_s6 + $0x60] sm:$0xff]   ;;  %v1642_v16 = vld [vmem:[%s1906_s6 + $0x68] sm:$0xff]  }
  0x2a   : > { %1516 = vmatprep.mubr.msk.bf16.mxu1 %vm332_vm2, %v1636_v10  ;;  %v1643_v17 = vld [vmem:[%s1906_s6 + $0x30] sm:$0xff]   ;;  %v1645_v19 = vld [vmem:[%s1906_s6 + $0x38] sm:$0xff]  }
  0x2b   : > { %v1644_v18 = vld [vmem:[%s1906_s6 + $0x70] sm:$0xff]   ;;  %v1646_v20 = vld [vmem:[%s1906_s6 + $0x78] sm:$0xff]  }
  0x30   : > { %1501 = vmatmul.mubr.msk.bf16.gmra.mxu0 %vm332_vm2, %v1637_v11 }
  0x31   : > { %1517 = vmatmul.mubr.msk.bf16.gmra.mxu1 %vm332_vm2, %v1638_v12  ;;  %1504 = vmatprep.mubr.msk.bf16.mxu0 %vm332_vm2, %v1639_v13 }
  0x32   : > { %1520 = vmatprep.mubr.msk.bf16.mxu1 %vm332_vm2, %v1640_v14 }
  0x38   : > { %1505 = vmatmul.mubr.msk.bf16.gmra.mxu0 %vm332_vm2, %v1641_v15 }
  0x39   : > { %1521 = vmatmul.mubr.msk.bf16.gmra.mxu1 %vm332_vm2, %v1642_v16  ;;  %1508 = vmatprep.mubr.msk.bf16.mxu0 %vm332_vm2, %v1643_v17 }
  0x3a   : > { %1524 = vmatprep.mubr.msk.bf16.mxu1 %vm332_vm2, %v1644_v18 }
  0x40   : > { %1509 = vmatmul.mubr.msk.bf16.gmra.mxu0 %vm332_vm2, %v1645_v19 }
  0x41   : > { %1525 = vmatmul.mubr.msk.bf16.gmra.mxu1 %vm332_vm2, %v1646_v20 }
  0xe8   : > { %v1498_v22 = vpop.f32.mrf.mxu0 }
  0xe9   : > { %v1514_v23 = vpop.f32.mrf.mxu1  ;;  %v431_v24 = vadd.f32 %v1498_v22, %v1943_v21 }
  0xea   : > { %v495_v25 = vadd.f32 %v1514_v23, %v1943_v21  ;;  %v422_v26 = vpop.f32.mrf.mxu0 }
  0xeb   : > { %v486_v27 = vpop.f32.mrf.mxu1  ;;  %v583_v28 = vmul.f32 0.044715, %v431_v24  ;;  %v423_v30 = vadd.f32 %v1943_v21, %v422_v26  ;;  %v1959_v58 = vmul.f32 0.5, %v431_v24 }
  0xec   : > { %v599_v29 = vmul.f32 0.044715, %v495_v25  ;;  %v487_v31 = vadd.f32 %v1943_v21, %v486_v27  ;;  %v1499_v32 = vpop.f32.mrf.mxu0  ;;  %v1962_v2 = vmul.f32 0.5, %v495_v25 }
  0xed   : > { %v1515_v33 = vpop.f32.mrf.mxu1  ;;  %v615_v34 = vmul.f32 %v583_v28, %v431_v24  ;;  %v434_v36 = vadd.f32 %v1499_v32, %v1943_v21  ;;  %v581_v38 = vmul.f32 0.044715, %v423_v30  ;;  %v1974_v17 = vmul.f32 0.5, %v423_v30 }
  0xee   : > { %v631_v35 = vmul.f32 %v599_v29, %v495_v25  ;;  %v1951_v37 = vadd.f32 %v1515_v33, %v1943_v21  ;;  %v597_v39 = vmul.f32 0.044715, %v487_v31  ;;  %v425_v40 = vpop.f32.mrf.mxu0  ;;  %v1977_v20 = vmul.f32 0.5, %v487_v31 }
  0xef   : > { %v489_v41 = vpop.f32.mrf.mxu1  ;;  %v647_v42 = vmul.f32 %v615_v34, %v431_v24  ;;  %v584_v44 = vmul.f32 0.044715, %v434_v36  ;;  %v613_v45 = vmul.f32 %v581_v38, %v423_v30  ;;  %v426_v51 = vadd.f32 %v1943_v21, %v425_v40 }
  0xf0   : > { %v663_v43 = vmul.f32 %v631_v35, %v495_v25  ;;  %v629_v46 = vmul.f32 %v597_v39, %v487_v31  ;;  %v600_v47 = vmul.f32 0.044715, %v1951_v37  ;;  %v1502_v52 = vpop.f32.mrf.mxu0  ;;  %v1957_v56 = vadd.f32 %v1943_v21, %v489_v41 }
  0xf1   : > { %v679_v48 = vadd.f32 %v647_v42, %v431_v24  ;;  %v616_v50 = vmul.f32 %v584_v44, %v434_v36  ;;  %v645_v53 = vmul.f32 %v613_v45, %v423_v30  ;;  %v1518_v57 = vpop.f32.mrf.mxu1  ;;  %v582_v1 = vmul.f32 0.044715, %v426_v51 }
  0xf2   : > { %v695_v49 = vadd.f32 %v663_v43, %v495_v25  ;;  %v661_v54 = vmul.f32 %v629_v46, %v487_v31  ;;  %v632_v55 = vmul.f32 %v600_v47, %v1951_v37  ;;  %v598_v4 = vmul.f32 0.044715, %v1957_v56  ;;  %v438_v5 = vpop.f32.mrf.mxu0 }
  0xf3   : > { %v711_v59 = vmul.f32 0.7978846, %v679_v48  ;;  %v648_v61 = vmul.f32 %v616_v50, %v434_v36  ;;  %v677_v62 = vadd.f32 %v645_v53, %v423_v30  ;;  %v502_v9 = vpop.f32.mrf.mxu1  ;;  %v614_v11 = vmul.f32 %v582_v1, %v426_v51 }
  0xf4   : > { %v727_v60 = vmul.f32 0.7978846, %v695_v49  ;;  %v693_v63 = vadd.f32 %v661_v54, %v487_v31  ;;  %v664_v0 = vmul.f32 %v632_v55, %v1951_v37  ;;  %v630_v12 = vmul.f32 %v598_v4, %v1957_v56  ;;  %v1503_v24 = vpop.f32.mrf.mxu0 }
  0xf5   : > { %1647 = vtanh.f32 %v711_v59  ;;  %v680_v3 = vadd.f32 %v648_v61, %v434_v36  ;;  %v709_v6 = vmul.f32 0.7978846, %v677_v62  ;;  %v447_v13 = vadd.f32 %v1502_v52, %v1943_v21  ;;  %v1519_v25 = vpop.f32.mrf.mxu1 }
  0xf6   : > { %1649 = vtanh.f32 %v727_v60  ;;  %v725_v7 = vmul.f32 0.7978846, %v693_v63  ;;  %v696_v8 = vadd.f32 %v664_v0, %v1951_v37  ;;  %v1969_v15 = vadd.f32 %v1518_v57, %v1943_v21 }
  0xf7   : > { %v712_v10 = vmul.f32 0.7978846, %v680_v3  ;;  %1651 = vtanh.f32 %v709_v6  ;;  %v1972_v16 = vadd.f32 %v1943_v21, %v438_v5  ;;  %v646_v18 = vmul.f32 %v614_v11, %v426_v51 }
  0xf8   : > { %v728_v14 = vmul.f32 0.7978846, %v696_v8  ;;  %1653 = vtanh.f32 %v725_v7  ;;  %v662_v19 = vmul.f32 %v630_v12, %v1957_v56  ;;  %v587_v22 = vmul.f32 0.044715, %v447_v13  ;;  %v505_v7 = vpop.f32.mrf.mxu1 }
  0xf9   : > { %1655 = vtanh.f32 %v712_v10  ;;  %v603_v23 = vmul.f32 0.044715, %v1969_v15  ;;  %v1980_v26 = vmul.f32 0.5, %v434_v36  ;;  %v678_v27 = vadd.f32 %v646_v18, %v426_v51 }
  0xfa   : > { %1657 = vtanh.f32 %v728_v14  ;;  %v694_v28 = vadd.f32 %v662_v19, %v1957_v56  ;;  %v619_v29 = vmul.f32 %v587_v22, %v447_v13  ;;  %v585_v32 = vmul.f32 0.044715, %v1972_v16 }
  0xfb   : > { %v635_v30 = vmul.f32 %v603_v23, %v1969_v15  ;;  %v1986_v31 = vadd.f32 %v1943_v21, %v502_v9  ;;  %v710_v33 = vmul.f32 0.7978846, %v678_v27  ;;  %v1989_v35 = vadd.f32 %v1503_v24, %v1943_v21 }
  0xfc   : > { %v726_v34 = vmul.f32 0.7978846, %v694_v28  ;;  %v1992_v36 = vadd.f32 %v1519_v25, %v1943_v21  ;;  %v1995_v38 = vmul.f32 0.5, %v1951_v37  ;;  %v651_v39 = vmul.f32 %v619_v29, %v447_v13 }
  0xfd   : > { %v667_v40 = vmul.f32 %v635_v30, %v1969_v15  ;;  %v617_v41 = vmul.f32 %v585_v32, %v1972_v16  ;;  %v1999_v42 = vmul.f32 0.5, %v426_v51  ;;  %1659 = vtanh.f32 %v710_v33  ;;  %v441_v51 = vpop.f32.mrf.mxu0  ;;  %v1522_v30 = vpop.f32.mrf.mxu1 }
  0xfe   : > { %v601_v43 = vmul.f32 0.044715, %v1986_v31  ;;  %v588_v44 = vmul.f32 0.044715, %v1989_v35  ;;  %1661 = vtanh.f32 %v726_v34  ;;  %v683_v45 = vadd.f32 %v651_v39, %v447_v13 }
  0xff   : > { %v699_v46 = vadd.f32 %v667_v40, %v1969_v15  ;;  %v649_v37 = vmul.f32 %v617_v41, %v1972_v16  ;;  %v2007_v47 = vmul.f32 0.5, %v1957_v56  ;;  %v604_v50 = vmul.f32 0.044715, %v1992_v36  ;;  %v1506_v29 = vpop.f32.mrf.mxu0 }
 0x100   : > { %v633_v48 = vmul.f32 %v601_v43, %v1986_v31  ;;  %v620_v49 = vmul.f32 %v588_v44, %v1989_v35  ;;  %v2012_v53 = vmul.f32 0.5, %v447_v13  ;;  %v715_v54 = vmul.f32 0.7978846, %v683_v45 }
 0x101   : > { %v731_v55 = vmul.f32 0.7978846, %v699_v46  ;;  %v681_v57 = vadd.f32 %v649_v37, %v1972_v16  ;;  %v636_v62 = vmul.f32 %v604_v50, %v1992_v36  ;;  %v2019_v1 = vadd.f32 %v1943_v21, %v441_v51 }
 0x102   : > { %v1648_v52 = vpop.eup %1647  ;;  %v665_v56 = vmul.f32 %v633_v48, %v1986_v31  ;;  %v652_v61 = vmul.f32 %v620_v49, %v1989_v35  ;;  %1663 = vtanh.f32 %v715_v54  ;;  %v2040_v40 = vadd.f32 %v1943_v21, %v505_v7  ;;  %v454_v54 = vpop.f32.mrf.mxu0 }
 0x103   : > { %v1650_v59 = vpop.eup %1649  ;;  %v775_v60 = vadd.f32 1.0, %v1648_v52  ;;  %v713_v0 = vmul.f32 0.7978846, %v681_v57  ;;  %1665 = vtanh.f32 %v731_v55  ;;  %v668_v11 = vmul.f32 %v636_v62, %v1992_v36  ;;  %v518_v62 = vpop.f32.mrf.mxu1 }
 0x104   : > { %v791_v63 = vadd.f32 1.0, %v1650_v59  ;;  %v1652_v3 = vpop.eup %1651  ;;  %v697_v5 = vadd.f32 %v665_v56, %v1986_v31  ;;  %v684_v6 = vadd.f32 %v652_v61, %v1989_v35  ;;  %v586_v28 = vmul.f32 0.044715, %v2019_v1 }
 0x105   : > { %v807_v4 = vmul.f32 %v775_v60, %v1959_v58  ;;  %v1654_v8 = vpop.eup %1653  ;;  %v773_v10 = vadd.f32 1.0, %v1652_v3  ;;  %1667 = vtanh.f32 %v713_v0  ;;  %v700_v25 = vadd.f32 %v668_v11, %v1992_v36 }
 0x106   : > { %v823_v9 = vmul.f32 %v791_v63, %v1962_v2  ;;  %v1656_v12 = vpop.eup %1655  ;;  %v789_v14 = vadd.f32 1.0, %v1654_v8  ;;  %v729_v18 = vmul.f32 0.7978846, %v697_v5  ;;  %v716_v19 = vmul.f32 0.7978846, %v684_v6 }
 0x107   : > { %v1444_v13 = vpack.c.bf16 %v807_v4, %v807_v4  ;;  %v1658_v22 = vpop.eup %1657  ;;  %v805_v23 = vmul.f32 %v773_v10, %v1974_v17  ;;  %v776_v24 = vadd.f32 1.0, %v1656_v12  ;;  %v732_v33 = vmul.f32 0.7978846, %v700_v25 }
 0x108   : > { %v1460_v58 = vpack.c.bf16 %v823_v9, %v823_v9  ;;  %v821_v2 = vmul.f32 %v789_v14, %v1977_v20  ;;  %v792_v27 = vadd.f32 1.0, %v1658_v22  ;;  %1669 = vtanh.f32 %v729_v18 }
 0x109   : > { %968 = vst.msk [vmem:[%s2028_s11 + $0x8] sm:$0xf] %vm965_vm3, %v1444_v13  ;;  %v1442_v17 = vpack.c.bf16 %v805_v23, %v805_v23  ;;  %v808_v32 = vmul.f32 %v776_v24, %v1980_v26  ;;  %1671 = vtanh.f32 %v716_v19  ;;  %v618_v20 = vmul.f32 %v586_v28, %v2019_v1  ;;  %v1523_v28 = vpop.f32.mrf.mxu1 }
 0x10a   : > { %984 = vst.msk [vmem:[%s2028_s11 + $0x48] sm:$0xf] %vm965_vm3, %v1460_v58  ;;  %v1458_v34 = vpack.c.bf16 %v821_v2, %v821_v2  ;;  %v824_v39 = vmul.f32 %v792_v27, %v1995_v38  ;;  %v1660_v41 = vpop.eup %1659  ;;  %1673 = vtanh.f32 %v732_v33  ;;  %v2045_v44 = vadd.f32 %v1506_v29, %v1943_v21 }
 0x10b   : > { %966 = vst.msk [vmem:[%s2028_s11] sm:$0xf] %vm965_vm3, %v1442_v17  ;;  %v1445_v43 = vpack.c.bf16 %v808_v32, %v808_v32  ;;  %v2048_v26 = vadd.f32 %v1522_v30, %v1943_v21  ;;  %v1662_v45 = vpop.eup %1661  ;;  %v774_v46 = vadd.f32 1.0, %v1660_v41  ;;  %v571_v37 = vmul.f32 0.5, %v1969_v15 }
 0x10c   : > { %982 = vst.msk [vmem:[%s2028_s11 + $0x40] sm:$0xf] %vm965_vm3, %v1458_v34  ;;  %v1461_v38 = vpack.c.bf16 %v824_v39, %v824_v39  ;;  %v650_v48 = vmul.f32 %v618_v20, %v2019_v1  ;;  %v790_v49 = vadd.f32 1.0, %v1662_v45  ;;  %v553_v50 = vmul.f32 0.5, %v1972_v16 }
 0x10d   : > { %969 = vst.msk [vmem:[%s2028_s11 + $0xc] sm:$0xf] %vm965_vm3, %v1445_v43  ;;  %v602_v51 = vmul.f32 0.044715, %v2040_v40  ;;  %v591_v52 = vmul.f32 0.044715, %v2045_v44  ;;  %v806_v55 = vmul.f32 %v774_v46, %v1999_v42  ;;  %v2071_v3 = vadd.f32 %v1943_v21, %v454_v54 }
 0x10e   : > { %985 = vst.msk [vmem:[%s2028_s11 + $0x4c] sm:$0xf] %vm965_vm3, %v1461_v38  ;;  %v569_v57 = vmul.f32 0.5, %v1986_v31  ;;  %v682_v15 = vadd.f32 %v650_v48, %v2019_v1  ;;  %v607_v59 = vmul.f32 0.044715, %v2048_v26  ;;  %v822_v60 = vmul.f32 %v790_v49, %v2007_v47  ;;  %v521_v49 = vpop.f32.mrf.mxu1 }
 0x10f   : > { %v556_v16 = vmul.f32 0.5, %v1989_v35  ;;  %v634_v56 = vmul.f32 %v602_v51, %v2040_v40  ;;  %v623_v61 = vmul.f32 %v591_v52, %v2045_v44  ;;  %v1664_v63 = vpop.eup %1663  ;;  %v1443_v0 = vpack.c.bf16 %v806_v55, %v806_v55 }
 0x110   : > { %v714_v42 = vmul.f32 0.7978846, %v682_v15  ;;  %v639_v31 = vmul.f32 %v607_v59, %v2048_v26  ;;  %v1666_v4 = vpop.eup %1665  ;;  %v1459_v5 = vpack.c.bf16 %v822_v60, %v822_v60  ;;  %v779_v47 = vadd.f32 1.0, %v1664_v63 }
 0x111   : > { %v666_v6 = vmul.f32 %v634_v56, %v2040_v40  ;;  %v655_v35 = vmul.f32 %v623_v61, %v2045_v44  ;;  %967 = vst.msk [vmem:[%s2028_s11 + $0x4] sm:$0xf] %vm965_vm3, %v1443_v0  ;;  %v795_v8 = vadd.f32 1.0, %v1666_v4  ;;  %v2079_v10 = vadd.f32 %v1943_v21, %v518_v62 }
 0x112   : > { %v1668_v7 = vpop.eup %1667  ;;  %1675 = vtanh.f32 %v714_v42  ;;  %v671_v9 = vmul.f32 %v639_v31, %v2048_v26  ;;  %983 = vst.msk [vmem:[%s2028_s11 + $0x44] sm:$0xf] %vm965_vm3, %v1459_v5  ;;  %v811_v11 = vmul.f32 %v779_v47, %v2012_v53  ;;  %v572_v19 = vmul.f32 0.5, %v1992_v36  ;;  %v1507_v53 = vpop.f32.mrf.mxu0 }
 0x113   : > { %v777_v12 = vadd.f32 1.0, %v1668_v7  ;;  %v698_v13 = vadd.f32 %v666_v6, %v2040_v40  ;;  %v687_v14 = vadd.f32 %v655_v35, %v2045_v44  ;;  %v827_v18 = vmul.f32 %v795_v8, %v571_v37  ;;  %v1526_v5 = vpop.f32.mrf.mxu1 }
 0x114   : > { %v703_v22 = vadd.f32 %v671_v9, %v2048_v26  ;;  %v589_v58 = vmul.f32 0.044715, %v2071_v3  ;;  %v1448_v24 = vpack.c.bf16 %v811_v11, %v811_v11  ;;  %v605_v39 = vmul.f32 0.044715, %v2079_v10  ;;  %v457_v48 = vpop.f32.mrf.mxu0 }
 0x115   : > { %v1670_v23 = vpop.eup %1669  ;;  %v809_v25 = vmul.f32 %v777_v12, %v553_v50  ;;  %v730_v2 = vmul.f32 0.7978846, %v698_v13  ;;  %v719_v27 = vmul.f32 0.7978846, %v687_v14  ;;  %v1464_v30 = vpack.c.bf16 %v827_v18, %v827_v18 }
 0x116   : > { %v1672_v29 = vpop.eup %1671  ;;  %v793_v17 = vadd.f32 1.0, %v1670_v23  ;;  %v735_v32 = vmul.f32 0.7978846, %v703_v22  ;;  %v621_v33 = vmul.f32 %v589_v58, %v2071_v3  ;;  %972 = vst.msk [vmem:[%s2028_s11 + $0x18] sm:$0xf] %vm965_vm3, %v1448_v24  ;;  %v2097_v45 = vadd.f32 %v1507_v53, %v1943_v21  ;;  %v1510_v0 = vpop.f32.mrf.mxu0 }
 0x117   : > { %v1446_v36 = vpack.c.bf16 %v809_v25, %v809_v25  ;;  %v780_v34 = vadd.f32 1.0, %v1672_v29  ;;  %1677 = vtanh.f32 %v730_v2  ;;  %v1674_v20 = vpop.eup %1673  ;;  %988 = vst.msk [vmem:[%s2028_s11 + $0x58] sm:$0xf] %vm965_vm3, %v1464_v30  ;;  %v637_v37 = vmul.f32 %v605_v39, %v2079_v10  ;;  %v534_v30 = vpop.f32.mrf.mxu1 }
 0x118   : > { %v825_v41 = vmul.f32 %v793_v17, %v569_v57  ;;  %1679 = vtanh.f32 %v719_v27  ;;  %v653_v43 = vmul.f32 %v621_v33, %v2071_v3  ;;  %v796_v46 = vadd.f32 1.0, %v1674_v20  ;;  %v470_v27 = vpop.f32.mrf.mxu0 }
 0x119   : > { %970 = vst.msk [vmem:[%s2028_s11 + $0x10] sm:$0xf] %vm965_vm3, %v1446_v36  ;;  %v812_v38 = vmul.f32 %v780_v34, %v556_v16  ;;  %1681 = vtanh.f32 %v735_v32  ;;  %v592_v52 = vmul.f32 0.044715, %v2097_v45  ;;  %v669_v57 = vmul.f32 %v637_v37, %v2079_v10 }
 0x11a   : > { %v1462_v50 = vpack.c.bf16 %v825_v41, %v825_v41  ;;  %v685_v51 = vadd.f32 %v653_v43, %v2071_v3  ;;  %v828_v55 = vmul.f32 %v796_v46, %v572_v19  ;;  %v2106_v15 = vadd.f32 %v1523_v28, %v1943_v21 }
 0x11b   : > { %v1449_v54 = vpack.c.bf16 %v812_v38, %v812_v38  ;;  %v624_v60 = vmul.f32 %v592_v52, %v2097_v45  ;;  %v2112_v16 = vadd.f32 %v1943_v21, %v457_v48  ;;  %v2115_v56 = vadd.f32 %v1943_v21, %v521_v49  ;;  %v1527_v52 = vpop.f32.mrf.mxu1 }
 0x11c   : > { %986 = vst.msk [vmem:[%s2028_s11 + $0x50] sm:$0xf] %vm965_vm3, %v1462_v50  ;;  %v717_v59 = vmul.f32 0.7978846, %v685_v51  ;;  %v1465_v61 = vpack.c.bf16 %v828_v55, %v828_v55  ;;  %v701_v62 = vadd.f32 %v669_v57, %v2079_v10  ;;  %v608_v63 = vmul.f32 0.044715, %v2106_v15  ;;  %v1511_v51 = vpop.f32.mrf.mxu0 }
 0x11d   : > { %973 = vst.msk [vmem:[%s2028_s11 + $0x1c] sm:$0xf] %vm965_vm3, %v1449_v54  ;;  %v554_v42 = vmul.f32 0.5, %v2019_v1  ;;  %v656_v31 = vmul.f32 %v624_v60, %v2097_v45  ;;  %v590_v4 = vmul.f32 0.044715, %v2112_v16  ;;  %v570_v6 = vmul.f32 0.5, %v2040_v40 }
 0x11e   : > { %1683 = vtanh.f32 %v717_v59  ;;  %989 = vst.msk [vmem:[%s2028_s11 + $0x5c] sm:$0xf] %vm965_vm3, %v1465_v61  ;;  %v733_v35 = vmul.f32 0.7978846, %v701_v62  ;;  %v640_v7 = vmul.f32 %v608_v63, %v2106_v15  ;;  %v606_v8 = vmul.f32 0.044715, %v2115_v56 }
 0x11f   : > { %v1676_v47 = vpop.eup %1675  ;;  %v688_v11 = vadd.f32 %v656_v31, %v2097_v45  ;;  %v622_v1 = vmul.f32 %v590_v4, %v2112_v16  ;;  %v2132_v12 = vadd.f32 %v1510_v0, %v1943_v21  ;;  %v2137_v40 = vadd.f32 %v1526_v5, %v1943_v21 }
 0x120   : > { %v778_v9 = vadd.f32 1.0, %v1676_v47  ;;  %1685 = vtanh.f32 %v733_v35  ;;  %v672_v13 = vmul.f32 %v640_v7, %v2106_v15  ;;  %v638_v14 = vmul.f32 %v606_v8, %v2115_v56 }
 0x121   : > { %v559_v19 = vmul.f32 0.5, %v2045_v44  ;;  %v720_v22 = vmul.f32 0.7978846, %v688_v11  ;;  %v654_v58 = vmul.f32 %v622_v1, %v2112_v16  ;;  %v575_v23 = vmul.f32 0.5, %v2048_v26  ;;  %v473_v11 = vpop.f32.mrf.mxu0 }
 0x122   : > { %v810_v18 = vmul.f32 %v778_v9, %v554_v42  ;;  %v704_v24 = vadd.f32 %v672_v13, %v2106_v15  ;;  %v670_v25 = vmul.f32 %v638_v14, %v2115_v56  ;;  %v595_v2 = vmul.f32 0.044715, %v2132_v12 }
 0x123   : > { %1687 = vtanh.f32 %v720_v22  ;;  %v686_v29 = vadd.f32 %v654_v58, %v2112_v16  ;;  %v611_v44 = vmul.f32 0.044715, %v2137_v40  ;;  %v2153_v43 = vadd.f32 %v1943_v21, %v470_v27 }
 0x124   : > { %v1678_v53 = vpop.eup %1677  ;;  %v1447_v28 = vpack.c.bf16 %v810_v18, %v810_v18  ;;  %v736_v33 = vmul.f32 0.7978846, %v704_v24  ;;  %v702_v26 = vadd.f32 %v670_v25, %v2115_v56  ;;  %v627_v36 = vmul.f32 %v595_v2, %v2132_v12 }
 0x125   : > { %v1680_v17 = vpop.eup %1679  ;;  %v794_v32 = vadd.f32 1.0, %v1678_v53  ;;  %v718_v20 = vmul.f32 0.7978846, %v686_v29  ;;  %v643_v41 = vmul.f32 %v611_v44, %v2137_v40  ;;  %v557_v57 = vmul.f32 0.5, %v2071_v3 }
 0x126   : > { %v1682_v34 = vpop.eup %1681  ;;  %971 = vst.msk [vmem:[%s2028_s11 + $0x14] sm:$0xf] %vm965_vm3, %v1447_v28  ;;  %v783_v39 = vadd.f32 1.0, %v1680_v17  ;;  %1689 = vtanh.f32 %v736_v33  ;;  %v734_v37 = vmul.f32 0.7978846, %v702_v26  ;;  %v659_v49 = vmul.f32 %v627_v36, %v2132_v12 }
 0x127   : > { %v826_v38 = vmul.f32 %v794_v32, %v570_v6  ;;  %v799_v46 = vadd.f32 1.0, %v1682_v34  ;;  %1691 = vtanh.f32 %v718_v20  ;;  %v675_v50 = vmul.f32 %v643_v41, %v2137_v40 }
 0x128   : > { %v815_v48 = vmul.f32 %v783_v39, %v559_v19  ;;  %1693 = vtanh.f32 %v734_v37  ;;  %v691_v60 = vadd.f32 %v659_v49, %v2132_v12  ;;  %v593_v62 = vmul.f32 0.044715, %v2153_v43 }
 0x129   : > { %v1463_v54 = vpack.c.bf16 %v826_v38, %v826_v38  ;;  %v831_v55 = vmul.f32 %v799_v46, %v575_v23  ;;  %v707_v61 = vadd.f32 %v675_v50, %v2137_v40  ;;  %v2164_v42 = vadd.f32 %v1943_v21, %v534_v30 }
 0x12a   : > { %v1452_v59 = vpack.c.bf16 %v815_v48, %v815_v48  ;;  %v2167_v31 = vadd.f32 %v1511_v51, %v1943_v21  ;;  %v2170_v3 = vadd.f32 %v1527_v52, %v1943_v21  ;;  %v723_v5 = vmul.f32 0.7978846, %v691_v60 }
 0x12b   : > { %v1684_v63 = vpop.eup %1683  ;;  %987 = vst.msk [vmem:[%s2028_s11 + $0x54] sm:$0xf] %vm965_vm3, %v1463_v54  ;;  %v1468_v0 = vpack.c.bf16 %v831_v55, %v831_v55  ;;  %v739_v47 = vmul.f32 0.7978846, %v707_v61  ;;  %v625_v6 = vmul.f32 %v593_v62, %v2153_v43  ;;  %v573_v35 = vmul.f32 0.5, %v2079_v10 }
 0x12c   : > { %976 = vst.msk [vmem:[%s2028_s11 + $0x28] sm:$0xf] %vm965_vm3, %v1452_v59  ;;  %v781_v4 = vadd.f32 1.0, %v1684_v63  ;;  %v560_v7 = vmul.f32 0.5, %v2097_v45  ;;  %v609_v8 = vmul.f32 0.044715, %v2164_v42  ;;  %1695 = vtanh.f32 %v723_v5  ;;  %v537_v45 = vpop.f32.mrf.mxu1 }
 0x12d   : > { %992 = vst.msk [vmem:[%s2028_s11 + $0x68] sm:$0xf] %vm965_vm3, %v1468_v0  ;;  %v596_v9 = vmul.f32 0.044715, %v2167_v31  ;;  %v1686_v1 = vpop.eup %1685  ;;  %v576_v14 = vmul.f32 0.5, %v2106_v15  ;;  %v657_v18 = vmul.f32 %v625_v6, %v2153_v43  ;;  %1697 = vtanh.f32 %v739_v47 }
 0x12e   : > { %v813_v13 = vmul.f32 %v781_v4, %v557_v57  ;;  %v797_v19 = vadd.f32 1.0, %v1686_v1  ;;  %v641_v22 = vmul.f32 %v609_v8, %v2164_v42  ;;  %v612_v24 = vmul.f32 0.044715, %v2170_v3 }
 0x12f   : > { %v628_v10 = vmul.f32 %v596_v9, %v2167_v31  ;;  %v689_v23 = vadd.f32 %v657_v18, %v2153_v43  ;;  %v2188_v25 = vadd.f32 %v1943_v21, %v473_v11  ;;  %v558_v27 = vmul.f32 0.5, %v2112_v16 }
 0x130   : > { %v1450_v58 = vpack.c.bf16 %v813_v13, %v813_v13  ;;  %v1688_v15 = vpop.eup %1687  ;;  %v829_v2 = vmul.f32 %v797_v19, %v573_v35  ;;  %v673_v53 = vmul.f32 %v641_v22, %v2164_v42  ;;  %v644_v30 = vmul.f32 %v612_v24, %v2170_v3 }
 0x131   : > { %v660_v28 = vmul.f32 %v628_v10, %v2167_v31  ;;  %v784_v29 = vadd.f32 1.0, %v1688_v15  ;;  %v721_v44 = vmul.f32 0.7978846, %v689_v23  ;;  %v2197_v17 = vadd.f32 %v1943_v21, %v537_v45 }
 0x132   : > { %974 = vst.msk [vmem:[%s2028_s11 + $0x20] sm:$0xf] %vm965_vm3, %v1450_v58  ;;  %v1466_v32 = vpack.c.bf16 %v829_v2, %v829_v2  ;;  %v705_v33 = vadd.f32 %v673_v53, %v2164_v42  ;;  %v594_v16 = vmul.f32 0.044715, %v2188_v25  ;;  %v574_v39 = vmul.f32 0.5, %v2115_v56 }
 0x133   : > { %v692_v26 = vadd.f32 %v660_v28, %v2167_v31  ;;  %v1690_v36 = vpop.eup %1689  ;;  %v816_v34 = vmul.f32 %v784_v29, %v560_v7  ;;  %1699 = vtanh.f32 %v721_v44  ;;  %v676_v20 = vmul.f32 %v644_v30, %v2170_v3 }
 0x134   : > { %v1692_v41 = vpop.eup %1691  ;;  %990 = vst.msk [vmem:[%s2028_s11 + $0x60] sm:$0xf] %vm965_vm3, %v1466_v32  ;;  %v800_v21 = vadd.f32 1.0, %v1690_v36  ;;  %v737_v38 = vmul.f32 0.7978846, %v705_v33  ;;  %v626_v37 = vmul.f32 %v594_v16, %v2188_v25  ;;  %v563_v7 = vmul.f32 0.5, %v2132_v12 }
 0x135   : > { %v724_v46 = vmul.f32 0.7978846, %v692_v26  ;;  %v1694_v48 = vpop.eup %1693  ;;  %v1453_v49 = vpack.c.bf16 %v816_v34, %v816_v34  ;;  %v782_v50 = vadd.f32 1.0, %v1692_v41  ;;  %v708_v51 = vadd.f32 %v676_v20, %v2170_v3 }
 0x136   : > { %v610_v52 = vmul.f32 0.044715, %v2197_v17  ;;  %v832_v56 = vmul.f32 %v800_v21, %v576_v14  ;;  %v798_v54 = vadd.f32 1.0, %v1694_v48  ;;  %1701 = vtanh.f32 %v737_v38 }
 0x137   : > { %v658_v55 = vmul.f32 %v626_v37, %v2188_v25  ;;  %977 = vst.msk [vmem:[%s2028_s11 + $0x2c] sm:$0xf] %vm965_vm3, %v1453_v49  ;;  %v814_v57 = vmul.f32 %v782_v50, %v558_v27  ;;  %1703 = vtanh.f32 %v724_v46  ;;  %v740_v59 = vmul.f32 0.7978846, %v708_v51 }
 0x138   : > { %v642_v60 = vmul.f32 %v610_v52, %v2197_v17  ;;  %v1469_v61 = vpack.c.bf16 %v832_v56, %v832_v56  ;;  %v830_v62 = vmul.f32 %v798_v54, %v574_v39  ;;  %v579_v11 = vmul.f32 0.5, %v2137_v40 }
 0x139   : > { %v690_v63 = vadd.f32 %v658_v55, %v2188_v25  ;;  %v1451_v0 = vpack.c.bf16 %v814_v57, %v814_v57  ;;  %1705 = vtanh.f32 %v740_v59  ;;  %v1696_v5 = vpop.eup %1695  ;;  %v561_v12 = vmul.f32 0.5, %v2153_v43 }
 0x13a   : > { %v674_v4 = vmul.f32 %v642_v60, %v2197_v17  ;;  %993 = vst.msk [vmem:[%s2028_s11 + $0x6c] sm:$0xf] %vm965_vm3, %v1469_v61  ;;  %v1467_v47 = vpack.c.bf16 %v830_v62, %v830_v62  ;;  %v1698_v35 = vpop.eup %1697  ;;  %v787_v8 = vadd.f32 1.0, %v1696_v5  ;;  %v577_v24 = vmul.f32 0.5, %v2164_v42 }
 0x13b   : > { %v722_v6 = vmul.f32 0.7978846, %v690_v63  ;;  %975 = vst.msk [vmem:[%s2028_s11 + $0x24] sm:$0xf] %vm965_vm3, %v1451_v0  ;;  %v803_v1 = vadd.f32 1.0, %v1698_v35  ;;  %v564_v27 = vmul.f32 0.5, %v2167_v31 }
 0x13c   : > { %v706_v9 = vadd.f32 %v674_v4, %v2197_v17  ;;  %991 = vst.msk [vmem:[%s2028_s11 + $0x64] sm:$0xf] %vm965_vm3, %v1467_v47  ;;  %v819_v13 = vmul.f32 %v787_v8, %v563_v7  ;;  %v580_v44 = vmul.f32 0.5, %v2170_v3  ;;  %v562_v31 = vmul.f32 0.5, %v2188_v25 }
 0x13d   : > { %1707 = vtanh.f32 %v722_v6  ;;  %v835_v18 = vmul.f32 %v803_v1, %v579_v11  ;;  %v578_v3 = vmul.f32 0.5, %v2197_v17 }
 0x13e   : > { %v738_v14 = vmul.f32 0.7978846, %v706_v9  ;;  %v1456_v19 = vpack.c.bf16 %v819_v13, %v819_v13 }
 0x13f   : > { %v1472_v10 = vpack.c.bf16 %v835_v18, %v835_v18 }
 0x140   : > { %1709 = vtanh.f32 %v738_v14  ;;  %v1700_v22 = vpop.eup %1699  ;;  %980 = vst.msk [vmem:[%s2028_s11 + $0x38] sm:$0xf] %vm965_vm3, %v1456_v19 }
 0x141   : > { %v785_v45 = vadd.f32 1.0, %v1700_v22  ;;  %996 = vst.msk [vmem:[%s2028_s11 + $0x78] sm:$0xf] %vm965_vm3, %v1472_v10 }
 0x143   : > { %v1702_v58 = vpop.eup %1701  ;;  %v817_v23 = vmul.f32 %v785_v45, %v561_v12 }
 0x144   : > { %v1704_v40 = vpop.eup %1703  ;;  %v801_v15 = vadd.f32 1.0, %v1702_v58 }
 0x145   : > { %v1454_v2 = vpack.c.bf16 %v817_v23, %v817_v23  ;;  %v788_v53 = vadd.f32 1.0, %v1704_v40 }
 0x146   : > { %v1706_v28 = vpop.eup %1705  ;;  %v833_v29 = vmul.f32 %v801_v15, %v577_v24 }
 0x147   : > { %978 = vst.msk [vmem:[%s2028_s11 + $0x30] sm:$0xf] %vm965_vm3, %v1454_v2  ;;  %v820_v43 = vmul.f32 %v788_v53, %v564_v27  ;;  %v804_v30 = vadd.f32 1.0, %v1706_v28 }
 0x148   : > { %v1470_v32 = vpack.c.bf16 %v833_v29, %v833_v29 }
 0x149   : > { %v1457_v26 = vpack.c.bf16 %v820_v43, %v820_v43  ;;  %v836_v42 = vmul.f32 %v804_v30, %v580_v44 }
 0x14a   : > { %v1708_v33 = vpop.eup %1707  ;;  %994 = vst.msk [vmem:[%s2028_s11 + $0x70] sm:$0xf] %vm965_vm3, %v1470_v32 }
 0x14b   : > { %v786_v16 = vadd.f32 1.0, %v1708_v33  ;;  %981 = vst.msk [vmem:[%s2028_s11 + $0x3c] sm:$0xf] %vm965_vm3, %v1457_v26  ;;  %v1473_v36 = vpack.c.bf16 %v836_v42, %v836_v42 }
 0x14d   : > { %v1710_v34 = vpop.eup %1709  ;;  %v818_v39 = vmul.f32 %v786_v16, %v562_v31  ;;  %997 = vst.msk [vmem:[%s2028_s11 + $0x7c] sm:$0xf] %vm965_vm3, %v1473_v36 }
 0x14e   : > { %v802_v20 = vadd.f32 1.0, %v1710_v34 }
 0x14f   : > { %v1455_v41 = vpack.c.bf16 %v818_v39, %v818_v39 }
 0x150   : > { %v834_v21 = vmul.f32 %v802_v20, %v578_v3  ;;  %1004 = sbr.rel (!%p1876_p4) target bundleno = 401 (0x191), region = 40 }
 0x151   : > { %979 = vst.msk [vmem:[%s2028_s11 + $0x34] sm:$0xf] %vm965_vm3, %v1455_v41 }
 0x152   : > { %v1471_v38 = vpack.c.bf16 %v834_v21, %v834_v21 }
 0x154   : > { %995 = vst.msk [vmem:[%s2028_s11 + $0x74] sm:$0xf] %vm965_vm3, %v1471_v38 }
 0x155   : > { %s2394_s12 = smov (!%p1007_p6, %s1006_s12), 32 }
 0x156   : > { %s1427_s22 = sshll.u32 %s2394_s12, 6 }
 0x157   : > { %p1430_p7 = scmp.eq.s32.totalorder %s1427_s22, 0 }
 0x158   : > { %s2259_s23 = sshrl.u32 (!%p1430_p7), %s2394_s12, 5 }
 0x159   : > { %1015 = sbr.rel (%p1430_p7) target bundleno = 401 (0x191), region = 44  ;;  %p1431_p4 = scmp.le.s32.totalorder (!%p1430_p7), %s2259_s23, 0 }
 0x15e   : > { %1297 = sbr.rel (%p1431_p4) target bundleno = 384 (0x180), region = 117  ;;  %s2387_s15 = smov (!%p1431_p4), %s2253_s21 }
 0x15f   : > { %s2388_s20 = smov (!%p1431_p4), %s2028_s11  ;;  %s2268_s24 = smov (!%p1431_p4), 0  }
 0x160   : > { %s2270_s25 = smov (!%p1431_p4), 0  }
 0x163 LB: >> { %v1032_v25 = vld [vmem:[%s1803_s20] sm:$0xf]  ;;  %v1034_v17 = vld [vmem:[%s1803_s20 + $0x4] sm:$0xf]  ;;  %v1036_v46 = vld [vmem:[%s1803_s20 + $0x8] sm:$0xf]  ;;  %s1811_s25 = sphi %s2270_s25, %s1026_s25   ;;  %s1807_s24 = sphi %s2268_s24, %s2389_s24   ;;  %s1803_s20 = sphi %s2388_s20, %s1101_s20   ;;  %s1799_s15 = sphi %s2387_s15, %s1102_s15  }
 0x164   : >> { %1033 = vst [vmem:[%s1799_s15] sm:$0xf] %v1032_v25  ;;  %1035 = vst [vmem:[%s1799_s15 + $0x4] sm:$0xf] %v1034_v17  ;;  %v1038_v37 = vld [vmem:[%s1803_s20 + $0xc] sm:$0xf]  ;;  %s1096_s26 = sadd.s32 1, %s1807_s24 }
 0x165   : >> { %1037 = vst [vmem:[%s1799_s15 + $0x8] sm:$0xf] %v1036_v46  ;;  %v1040_v48 = vld [vmem:[%s1803_s20 + $0x10] sm:$0xf]  ;;  %v1042_v49 = vld [vmem:[%s1803_s20 + $0x14] sm:$0xf]  ;;  %p1097_p8 = scmp.ge.s32.totalorder %s1096_s26, %s2259_s23 }
 0x166   : >> { %1039 = vst [vmem:[%s1799_s15 + $0xc] sm:$0xf] %v1038_v37  ;;  %1041 = vst [vmem:[%s1799_s15 + $0x10] sm:$0xf] %v1040_v48  ;;  %v1044_v50 = vld [vmem:[%s1803_s20 + $0x18] sm:$0xf] }
 0x167   : >> { %1043 = vst [vmem:[%s1799_s15 + $0x14] sm:$0xf] %v1042_v49  ;;  %v1046_v51 = vld [vmem:[%s1803_s20 + $0x1c] sm:$0xf]  ;;  %v1048_v52 = vld [vmem:[%s1803_s20 + $0x20] sm:$0xf] }
 0x168   : >> { %1045 = vst [vmem:[%s1799_s15 + $0x18] sm:$0xf] %v1044_v50  ;;  %1047 = vst [vmem:[%s1799_s15 + $0x1c] sm:$0xf] %v1046_v51  ;;  %v1050_v56 = vld [vmem:[%s1803_s20 + $0x24] sm:$0xf] }
 0x169   : >> { %1049 = vst [vmem:[%s1799_s15 + $0x20] sm:$0xf] %v1048_v52  ;;  %v1052_v54 = vld [vmem:[%s1803_s20 + $0x28] sm:$0xf]  ;;  %v1054_v55 = vld [vmem:[%s1803_s20 + $0x2c] sm:$0xf] }
 0x16a   : >> { %1051 = vst [vmem:[%s1799_s15 + $0x24] sm:$0xf] %v1050_v56  ;;  %1053 = vst [vmem:[%s1799_s15 + $0x28] sm:$0xf] %v1052_v54  ;;  %v1056_v57 = vld [vmem:[%s1803_s20 + $0x30] sm:$0xf] }
 0x16b   : >> { %1055 = vst [vmem:[%s1799_s15 + $0x2c] sm:$0xf] %v1054_v55  ;;  %v1058_v59 = vld [vmem:[%s1803_s20 + $0x34] sm:$0xf]  ;;  %v1060_v60 = vld [vmem:[%s1803_s20 + $0x38] sm:$0xf] }
 0x16c   : >> { %1057 = vst [vmem:[%s1799_s15 + $0x30] sm:$0xf] %v1056_v57  ;;  %1059 = vst [vmem:[%s1799_s15 + $0x34] sm:$0xf] %v1058_v59  ;;  %v1062_v61 = vld [vmem:[%s1803_s20 + $0x3c] sm:$0xf] }
 0x16d   : >> { %1061 = vst [vmem:[%s1799_s15 + $0x38] sm:$0xf] %v1060_v60  ;;  %v1064_v62 = vld [vmem:[%s1803_s20 + $0x40] sm:$0xf]  ;;  %v1066_v63 = vld [vmem:[%s1803_s20 + $0x44] sm:$0xf] }
 0x16e   : >> { %1063 = vst [vmem:[%s1799_s15 + $0x3c] sm:$0xf] %v1062_v61  ;;  %1065 = vst [vmem:[%s1799_s15 + $0x40] sm:$0xf] %v1064_v62  ;;  %v1068_v0 = vld [vmem:[%s1803_s20 + $0x48] sm:$0xf] }
 0x16f   : >> { %1067 = vst [vmem:[%s1799_s15 + $0x44] sm:$0xf] %v1066_v63  ;;  %v1070_v4 = vld [vmem:[%s1803_s20 + $0x4c] sm:$0xf]  ;;  %v1072_v5 = vld [vmem:[%s1803_s20 + $0x50] sm:$0xf] }
 0x170   : >> { %1069 = vst [vmem:[%s1799_s15 + $0x48] sm:$0xf] %v1068_v0  ;;  %1071 = vst [vmem:[%s1799_s15 + $0x4c] sm:$0xf] %v1070_v4  ;;  %v1074_v47 = vld [vmem:[%s1803_s20 + $0x54] sm:$0xf] }
 0x171   : >> { %1073 = vst [vmem:[%s1799_s15 + $0x50] sm:$0xf] %v1072_v5  ;;  %v1076_v6 = vld [vmem:[%s1803_s20 + $0x58] sm:$0xf]  ;;  %v1078_v35 = vld [vmem:[%s1803_s20 + $0x5c] sm:$0xf] }
 0x172   : >> { %1075 = vst [vmem:[%s1799_s15 + $0x54] sm:$0xf] %v1074_v47  ;;  %1077 = vst [vmem:[%s1799_s15 + $0x58] sm:$0xf] %v1076_v6  ;;  %v1080_v7 = vld [vmem:[%s1803_s20 + $0x60] sm:$0xf] }
 0x173   : >> { %1079 = vst [vmem:[%s1799_s15 + $0x5c] sm:$0xf] %v1078_v35  ;;  %v1082_v8 = vld [vmem:[%s1803_s20 + $0x64] sm:$0xf]  ;;  %v1084_v9 = vld [vmem:[%s1803_s20 + $0x68] sm:$0xf] }
 0x174   : >> { %1081 = vst [vmem:[%s1799_s15 + $0x60] sm:$0xf] %v1080_v7  ;;  %1083 = vst [vmem:[%s1799_s15 + $0x64] sm:$0xf] %v1082_v8  ;;  %v1086_v11 = vld [vmem:[%s1803_s20 + $0x6c] sm:$0xf] }
 0x175   : >> { %1085 = vst [vmem:[%s1799_s15 + $0x68] sm:$0xf] %v1084_v9  ;;  %v1088_v1 = vld [vmem:[%s1803_s20 + $0x70] sm:$0xf]  ;;  %v1090_v13 = vld [vmem:[%s1803_s20 + $0x74] sm:$0xf] }
 0x176   : >> { %1087 = vst [vmem:[%s1799_s15 + $0x6c] sm:$0xf] %v1086_v11  ;;  %1089 = vst [vmem:[%s1799_s15 + $0x70] sm:$0xf] %v1088_v1  ;;  %v1092_v14 = vld [vmem:[%s1803_s20 + $0x78] sm:$0xf] }
 0x177   : >> { %1091 = vst [vmem:[%s1799_s15 + $0x74] sm:$0xf] %v1090_v13  ;;  %v1094_v18 = vld [vmem:[%s1803_s20 + $0x7c] sm:$0xf]  ;;  %1093 = vst [vmem:[%s1799_s15 + $0x78] sm:$0xf] %v1092_v14 }
 0x178   : >> { %1095 = vst [vmem:[%s1799_s15 + $0x7c] sm:$0xf] %v1094_v18  ;;  %s2396_s26 = smov (%p1097_p8, %s1096_s26), 0  ;;  %s1026_s25 = sadd.s32 1, %s1811_s25  }
 0x179   : >> { %s1432_s27 = sshll.u32 %s2396_s26, 7  ;;  %p1025_p9 = scmp.ge.s32.totalorder %s1026_s25, %s2259_s23 }
 0x17a   : >> { %s1101_s20 = scalar_lea.vmem %s2028_s11, %s1432_s27 [#allocation4]   ;;  %s1102_s15 = scalar_lea.vmem %s2253_s21, %s1432_s27  }
 0x17b   : >> { %s2389_s24 = smov %s2396_s26  ;;  %1028 = sbr.rel (!%p1025_p9) target bundleno = 355 (0x163), region = 123 }
 0x180 PF: > { %s2363_s28 = sand.u32 31, %s2394_s12   ;;  %s1475_s29 = sshll.u32 %s2259_s23, 7 }
 0x181   : > { %s1107_s30 = scalar_lea.vmem %s2028_s11, %s1475_s29 [#allocation4]   ;;  %s1109_s4 = scalar_lea.vmem %s2253_s21, %s1475_s29  }
 0x182   : > { %p1437_p10 = scmp.le.s32.totalorder %s2363_s28, 0 }
 0x183   : > { %s1813_s5 = smov (!%p1437_p10), %s1109_s4   ;;  %s1817_s6 = smov (!%p1437_p10), %s1107_s30  }
 0x184   : > { %1311 = sbr.rel (%p1437_p10) target bundleno = 401 (0x191), region = 128  ;;  %s1821_s7 = smov (!%p1437_p10), 0  }
 0x185   : > { %s1825_s8 = smov (!%p1437_p10), 0  }
 0x189 LB: >> { %v1119_v19 = vld [vmem:[%s1819_s6] sm:$0xf]  ;;  %s1121_s9 = sadd.s32 1, %s1823_s7  ;;  %s1113_s8 = sadd.s32 1, %s1827_s8   ;;  %s1827_s8 = sphi %s1825_s8, %s1113_s8   ;;  %s1823_s7 = sphi %s1821_s7, %s1822_s7   ;;  %s1819_s6 = sphi %s1817_s6, %s1126_s6   ;;  %s1815_s5 = sphi %s1813_s5, %s1127_s5  }
 0x18a   : >> { %1120 = vst [vmem:[%s1815_s5] sm:$0xf] %v1119_v19  ;;  %p1122_p11 = scmp.ge.s32.totalorder %s1121_s9, %s2363_s28  ;;  %p1112_p12 = scmp.ge.s32.totalorder %s1113_s8, %s2363_s28 }
 0x18c   : >> { %s2398_s9 = smov (%p1122_p11, %s1121_s9), 0  ;;  %1115 = sbr.rel (!%p1112_p12) target bundleno = 393 (0x189), region = 134 }
 0x18d   : >> { %s1438_s10 = sshll.u32 %s2398_s9, 2  ;;  %s1822_s7 = smov %s2398_s9  }
 0x18e   : >> { %s1126_s6 = scalar_lea.vmem %s1107_s30, %s1438_s10 [#allocation4]   ;;  %s1127_s5 = scalar_lea.vmem %s1109_s4, %s1438_s10  }
 0x191 PF: > { %p11_p13 = scmp.ge.s32.totalorder %s1866_s16, 4   ;;  %s2390_s12 = smov %s1791_s13 }
 0x192   : > { %s2391_s13 = smov %s1874_s19  ;;  %s2392_s14 = smov %s1866_s16 }
 0x193   :  { %13 = sbr.rel (!%p11_p13) target bundleno = 2 (0x2), region = 145 }
 0x198   :  { %1251 = vsyncpa [#allocation3], 1 }
 0x199   :  { %1253 = vsyncpa [#allocation3 + $0x1], 1 }

// kernel: ae_conv_forward.11
= control target key start
LH: loop header
LB: loop body
LE: loop exit
PB: predicated region body
PF: predicated region fallthrough
CT: control target
= control target key end

     0   :  { %v924_v1 = vmov 0.0   ;;  %vm925_vm0 = vmmov 0   ;;  %vm292_vm1 = vcmask 261120   ;;  %vm660_vm2 = vcmask 519168   ;;  %s1247_s1 = inlined_call_operand.vmem [shape: bf16[288,64], index: 1, kind: input, shape index: {}]   ;;  %s1248_s0 = inlined_call_operand.vmem [shape: bf16[98,288], index: 0, kind: input, shape index: {}]   ;;  %s1249_s2 = inlined_call_operand.vmem [shape: f32[1,64], index: 2, kind: input, shape index: {}]   ;;  %s1250_s3 = inlined_call_operand.vmem [shape: bf16[98,64], index: 3, kind: output, shape index: {}]  }
   0x1   :  { %v853_v0 = vld [vmem:[%s1247_s1 + $0x78] sm:$0xff]   ;;  %819 = vmatprep.subr.bf16.mxu1 %v924_v1  ;;  %823 = vmatprep.mubr.msk.bf16.mxu1 %vm925_vm0, %v924_v1  ;;  %v855_v3 = vld [vmem:[%s1247_s1 + $0x70] sm:$0xff]   ;;  %v857_v5 = vld [vmem:[%s1247_s1 + $0x68] sm:$0xff]   ;;  %vm673_vm3 = vcmask 516096  }
   0x2   :  { %v854_v2 = vld [vmem:[%s1247_s1 + $0x38] sm:$0xff]   ;;  %752 = vmatprep.subr.bf16.mxu0 %v853_v0  ;;  %v856_v4 = vld [vmem:[%s1247_s1 + $0x30] sm:$0xff]   ;;  %v858_v6 = vld [vmem:[%s1247_s1 + $0x28] sm:$0xff]  }
   0x3   :  { %753 = vmatpush3.bf16.msra.mxu0 %v854_v2  ;;  %v859_v7 = vld [vmem:[%s1247_s1 + $0x60] sm:$0xff]   ;;  %v861_v9 = vld [vmem:[%s1247_s1 + $0x58] sm:$0xff]   ;;  %v867_v10 = vld [vmem:[%s1247_s1 + $0x88] sm:$0xff]  }
   0x4   :  { %754 = vmatprep.subr.bf16.mxu0 %v855_v3  ;;  %v860_v8 = vld [vmem:[%s1247_s1 + $0x20] sm:$0xff]   ;;  %v862_v11 = vld [vmem:[%s1247_s1 + $0x18] sm:$0xff]   ;;  %v863_v12 = vld [vmem:[%s1247_s1 + $0x50] sm:$0xff]   ;;  %820 = vmatpush3.bf16.msra.mxu1 %v867_v10 }
   0x5   :  { %v864_v13 = vld [vmem:[%s1247_s1 + $0x10] sm:$0xff]   ;;  %821 = vmatprep.subr.bf16.mxu1 %v924_v1  ;;  %v870_v14 = vld [vmem:[%s1247_s1 + $0x80] sm:$0xff]   ;;  %v865_v15 = vld [vmem:[%s1247_s1 + $0x48] sm:$0xff]  }
   0x6   :  { %v873_v16 = vld [vmem:[%s1248_s0 + $0x4] ss:$12 sps:$4 sm:$0xff]   ;;  %v874_v17 = vld [vmem:[%s1248_s0 + $0x8] ss:$12 sps:$4 sm:$0xff]   ;;  %v878_v21 = vld [vmem:[%s1248_s0 + $0x20] ss:$12 sps:$4 sm:$0xff]  }
   0x7   :  { %755 = vmatpush3.bf16.msra.mxu0 %v856_v4  ;;  %346 = vmatprep.mubr.bf16.mxu0 %v873_v16  ;;  %v866_v18 = vld [vmem:[%s1247_s1 + $0x8] sm:$0xff]   ;;  %v868_v19 = vld [vmem:[%s1247_s1 + $0x40] sm:$0xff]   ;;  %v886_v27 = vld [vmem:[%s1248_s0 + $0x50] ss:$12 sps:$4 sm:$0xff]  }
   0x8   :  { %756 = vmatprep.subr.bf16.mxu0 %v857_v5  ;;  %822 = vmatpush3.bf16.msra.mxu1 %v870_v14  ;;  %v869_v20 = vld [vmem:[%s1247_s1] sm:$0xff]   ;;  %v875_v23 = vld [vmem:[%s1248_s0 + $0x1c] ss:$12 sps:$4 sm:$0xff]   ;;  %v883_v29 = vld [vmem:[%s1248_s0 + $0x4c] ss:$12 sps:$4 sm:$0xff]  }
   0x9   :  { %v871_v22 = vld [vmem:[%s1248_s0] ss:$12 sps:$4 sm:$0xff]   ;;  %v882_v24 = vld [vmem:[%s1248_s0 + $0x38] ss:$12 sps:$4 sm:$0xff]   ;;  %v881_v28 = vld [vmem:[%s1248_s0 + $0x30] ss:$12 sps:$4 sm:$0xff]  }
   0xa   :  { %v877_v25 = vld [vmem:[%s1248_s0 + $0x18] ss:$12 sps:$4 sm:$0xff]   ;;  %v879_v26 = vld [vmem:[%s1248_s0 + $0x34] ss:$12 sps:$4 sm:$0xff]   ;;  %v891_v35 = vld [vmem:[%s1248_s0 + $0x7c] ss:$12 sps:$4 sm:$0xff]  }
   0xb   :  { %757 = vmatpush3.bf16.msra.mxu0 %v858_v6  ;;  %824 = vmatmul.mubr.msk.bf16.vlgmr.msra.gmra.mxu1 %vm292_vm1, %v874_v17  ;;  %v890_v30 = vld [vmem:[%s1248_s0 + $0x68] ss:$12 sps:$4 sm:$0xff]   ;;  %v887_v32 = vld [vmem:[%s1248_s0 + $0x64] ss:$12 sps:$4 sm:$0xff]   ;;  %v894_v33 = vld [vmem:[%s1248_s0 + $0x80] ss:$12 sps:$4 sm:$0xff]  }
   0xc   :  { %758 = vmatprep.subr.bf16.mxu0 %v859_v7  ;;  %827 = vmatprep.mubr.msk.bf16.mxu1 %vm925_vm0, %v924_v1  ;;  %v885_v31 = vld [vmem:[%s1248_s0 + $0x48] ss:$12 sps:$4 sm:$0xff]   ;;  %v889_v34 = vld [vmem:[%s1248_s0 + $0x60] ss:$12 sps:$4 sm:$0xff]   ;;  %v893_v38 = vld [vmem:[%s1248_s0 + $0x78] ss:$12 sps:$4 sm:$0xff]  }
   0xd   :  { %v897_v36 = vld [vmem:[%s1248_s0 + $0x98] ss:$0 sps:$4 sm:$0x11]   ;;  %v39_v37 = vld [vmem:[%s1248_s0 + $0x90] sm:$0x11] }
   0xe   :  { %v699_v39 = vcombine.high %v39_v37, %v39_v37  ;;  %v698_v40 = vcombine.low %v39_v37, %v39_v37  ;;  %v1086_v49 = vld [vmem:[%s1249_s2] ss:$0 sm:$0xff] }
   0xf   :  { %759 = vmatpush3.bf16.msra.mxu0 %v860_v8 }
  0x10   :  { %760 = vmatprep.subr.bf16.mxu0 %v861_v9 }
  0x13   :  { %761 = vmatpush3.bf16.msra.mxu0 %v862_v11  ;;  %828 = vmatmul.mubr.msk.bf16.gmra.mxu1 %vm292_vm1, %v878_v21 }
  0x14   :  { %762 = vmatprep.subr.bf16.mxu0 %v863_v12  ;;  %831 = vmatprep.mubr.msk.bf16.mxu1 %vm925_vm0, %v924_v1 }
  0x17   :  { %763 = vmatpush3.bf16.msra.mxu0 %v864_v13 }
  0x18   :  { %764 = vmatprep.subr.bf16.mxu0 %v865_v15 }
  0x1b   :  { %765 = vmatpush3.bf16.msra.mxu0 %v866_v18  ;;  %832 = vmatmul.mubr.msk.bf16.gmra.mxu1 %vm292_vm1, %v882_v24 }
  0x1c   :  { %766 = vmatprep.subr.bf16.mxu0 %v868_v19  ;;  %835 = vmatprep.mubr.msk.bf16.mxu1 %vm925_vm0, %v924_v1 }
  0x1f   :  { %767 = vmatpush3.bf16.msra.mxu0 %v869_v20 }
  0x22   :  { %347 = vmatmul.mubr.bf16.vlgmr.msra.gmra.mxu0 %v871_v22 }
  0x23   :  { %354 = vmatprep.mubr.bf16.mxu0 %v875_v23  ;;  %836 = vmatmul.mubr.msk.bf16.gmra.mxu1 %vm292_vm1, %v886_v27 }
  0x24   :  { %839 = vmatprep.mubr.msk.bf16.mxu1 %vm925_vm0, %v924_v1 }
  0x2a   :  { %355 = vmatmul.mubr.bf16.gmra.mxu0 %v877_v25 }
  0x2b   :  { %362 = vmatprep.mubr.bf16.mxu0 %v879_v26  ;;  %840 = vmatmul.mubr.msk.bf16.gmra.mxu1 %vm292_vm1, %v890_v30 }
  0x2c   :  { %843 = vmatprep.mubr.msk.bf16.mxu1 %vm925_vm0, %v924_v1 }
  0x32   :  { %363 = vmatmul.mubr.bf16.gmra.mxu0 %v881_v28 }
  0x33   :  { %370 = vmatprep.mubr.bf16.mxu0 %v883_v29  ;;  %844 = vmatmul.mubr.msk.bf16.gmra.mxu1 %vm292_vm1, %v894_v33 }
  0x34   :  { %847 = vmatprep.mubr.msk.bf16.mxu1 %vm925_vm0, %v924_v1 }
  0x3a   :  { %371 = vmatmul.mubr.bf16.gmra.mxu0 %v885_v31 }
  0x3b   :  { %378 = vmatprep.mubr.bf16.mxu0 %v887_v32  ;;  %848 = vmatmul.mubr.msk.bf16.gmra.mxu1 %vm292_vm1, %v897_v36 }
  0x42   :  { %379 = vmatmul.mubr.bf16.gmra.mxu0 %v889_v34 }
  0x43   :  { %386 = vmatprep.mubr.bf16.mxu0 %v891_v35 }
  0x4a   :  { %387 = vmatmul.mubr.bf16.gmra.mxu0 %v893_v38 }
  0x4b   :  { %394 = vmatprep.mubr.bf16.mxu0 %v699_v39 }
  0x52   :  { %395 = vmatmul.mubr.bf16.gmra.mxu0 %v698_v40 }
  0xcb   :  { %v436_v41 = vpop.f32.mrf.mxu1 }
  0xcd   :  { %v825_v42 = vpop.f32.mrf.mxu1 }
  0xcf   :  { %v439_v43 = vpop.f32.mrf.mxu1 }
  0xd1   :  { %v826_v44 = vpop.f32.mrf.mxu1 }
  0xd3   :  { %v444_v45 = vpop.f32.mrf.mxu1 }
  0xd5   :  { %v829_v46 = vpop.f32.mrf.mxu1 }
  0xd7   :  { %v447_v48 = vpop.f32.mrf.mxu1 }
  0xd9   :  { %v830_v52 = vpop.f32.mrf.mxu1 }
  0xdb   :  { %v452_v55 = vpop.f32.mrf.mxu1 }
  0xdd   :  { %v833_v59 = vpop.f32.mrf.mxu1 }
  0xdf   :  { %v455_v63 = vpop.f32.mrf.mxu1 }
  0xe1   :  { %v834_v4 = vpop.f32.mrf.mxu1 }
  0xe2   :  { %v768_v47 = vpop.f32.mrf.mxu0 }
  0xe3   :  { %v460_v9 = vpop.f32.mrf.mxu1 }
  0xe4   :  { %v769_v50 = vpop.f32.mrf.mxu0 }
  0xe5   :  { %v770_v51 = vadd.f32 %v769_v50, %v768_v47  ;;  %v837_v15 = vpop.f32.mrf.mxu1 }
  0xe6   :  { %v771_v53 = vpop.f32.mrf.mxu0 }
  0xe7   :  { %v349_v54 = vadd.f32 %v770_v51, %v1086_v49  ;;  %v1105_v20 = vpop.f32.mrf.mxu1 }
  0xe8   :  { %v772_v56 = vpop.f32.mrf.mxu0 }
  0xe9   :  { %v1089_v57 = vadd.f32 %v436_v41, %v349_v54  ;;  %v773_v58 = vadd.f32 %v772_v56, %v771_v53  ;;  %v838_v26 = vpop.f32.mrf.mxu1 }
  0xea   :  { %v774_v60 = vpop.f32.mrf.mxu0 }
  0xeb   :  { %v503_v61 = vmul.f32 0.044715, %v1089_v57  ;;  %v352_v62 = vadd.f32 %v773_v58, %v1086_v49  ;;  %v1114_v32 = vpop.f32.mrf.mxu1 }
  0xec   :  { %v775_v0 = vpop.f32.mrf.mxu0 }
  0xed   :  { %v516_v1 = vmul.f32 %v503_v61, %v1089_v57  ;;  %v1094_v2 = vadd.f32 %v439_v43, %v352_v62  ;;  %v776_v3 = vadd.f32 %v775_v0, %v774_v60  ;;  %v841_v38 = vpop.f32.mrf.mxu1 }
  0xee   :  { %v777_v5 = vpop.f32.mrf.mxu0 }
  0xef   :  { %v529_v6 = vmul.f32 %v516_v1, %v1089_v57  ;;  %v504_v7 = vmul.f32 0.044715, %v1094_v2  ;;  %v357_v8 = vadd.f32 %v776_v3, %v1086_v49  ;;  %v1123_v44 = vpop.f32.mrf.mxu1 }
  0xf0   :  { %v778_v10 = vpop.f32.mrf.mxu0 }
  0xf1   :  { %v542_v11 = vadd.f32 %v529_v6, %v1089_v57  ;;  %v517_v12 = vmul.f32 %v504_v7, %v1094_v2  ;;  %v1101_v13 = vadd.f32 %v444_v45, %v357_v8  ;;  %v779_v14 = vadd.f32 %v778_v10, %v777_v5  ;;  %v842_v51 = vpop.f32.mrf.mxu1 }
  0xf2   :  { %v780_v16 = vpop.f32.mrf.mxu0  ;;  %v490_v5 = vmul.f32 0.5, %v1089_v57  ;;  %v491_v57 = vmul.f32 0.5, %v1094_v2 }
  0xf3   :  { %v555_v17 = vmul.f32 0.7978846, %v542_v11  ;;  %v530_v18 = vmul.f32 %v517_v12, %v1094_v2  ;;  %v505_v19 = vmul.f32 0.044715, %v1101_v13  ;;  %v360_v21 = vadd.f32 %v779_v14, %v1086_v49  ;;  %v1133_v58 = vpop.f32.mrf.mxu1 }
  0xf4   :  { %v781_v22 = vpop.f32.mrf.mxu0 }
  0xf5   :  { %898 = vtanh.f32 %v555_v17  ;;  %v543_v23 = vadd.f32 %v530_v18, %v1094_v2  ;;  %v518_v24 = vmul.f32 %v505_v19, %v1101_v13  ;;  %v782_v25 = vadd.f32 %v781_v22, %v780_v16  ;;  %v845_v1 = vpop.f32.mrf.mxu1 }
  0xf6   :  { %v1110_v27 = vadd.f32 %v447_v48, %v360_v21  ;;  %v783_v28 = vpop.f32.mrf.mxu0 }
  0xf7   :  { %v556_v29 = vmul.f32 0.7978846, %v543_v23  ;;  %v531_v30 = vmul.f32 %v518_v24, %v1101_v13  ;;  %v365_v31 = vadd.f32 %v782_v25, %v1086_v49  ;;  %v1141_v10 = vpop.f32.mrf.mxu1 }
  0xf8   :  { %v506_v33 = vmul.f32 0.044715, %v1110_v27  ;;  %v784_v34 = vpop.f32.mrf.mxu0 }
  0xf9   :  { %900 = vtanh.f32 %v556_v29  ;;  %v544_v35 = vadd.f32 %v531_v30, %v1101_v13  ;;  %v1118_v36 = vadd.f32 %v452_v55, %v365_v31  ;;  %v785_v37 = vadd.f32 %v784_v34, %v783_v28  ;;  %v846_v17 = vpop.f32.mrf.mxu1 }
  0xfa   :  { %v519_v39 = vmul.f32 %v506_v33, %v1110_v27  ;;  %v786_v40 = vpop.f32.mrf.mxu0 }
  0xfb   :  { %v557_v41 = vmul.f32 0.7978846, %v544_v35  ;;  %v507_v42 = vmul.f32 0.044715, %v1118_v36  ;;  %v368_v43 = vadd.f32 %v785_v37, %v1086_v49  ;;  %v1152_v28 = vpop.f32.mrf.mxu1 }
  0xfc   :  { %v532_v45 = vmul.f32 %v519_v39, %v1110_v27  ;;  %v787_v46 = vpop.f32.mrf.mxu0 }
  0xfd   :  { %902 = vtanh.f32 %v557_v41  ;;  %v520_v47 = vmul.f32 %v507_v42, %v1118_v36  ;;  %v1127_v48 = vadd.f32 %v455_v63, %v368_v43  ;;  %v788_v50 = vadd.f32 %v787_v46, %v786_v40  ;;  %v849_v34 = vpop.f32.mrf.mxu1 }
  0xfe   :  { %v545_v52 = vadd.f32 %v532_v45, %v1110_v27  ;;  %v789_v53 = vpop.f32.mrf.mxu0  ;;  %v492_v41 = vmul.f32 0.5, %v1101_v13 }
  0xff   :  { %v533_v54 = vmul.f32 %v520_v47, %v1118_v36  ;;  %v508_v55 = vmul.f32 0.044715, %v1127_v48  ;;  %v373_v56 = vadd.f32 %v788_v50, %v1086_v49  ;;  %v487_v45 = vpop.f32.mrf.mxu1 }
 0x100   :  { %v558_v59 = vmul.f32 0.7978846, %v545_v52  ;;  %v790_v60 = vpop.f32.mrf.mxu0 }
 0x101   :  { %v546_v61 = vadd.f32 %v533_v54, %v1118_v36  ;;  %v521_v62 = vmul.f32 %v508_v55, %v1127_v48  ;;  %v1137_v63 = vadd.f32 %v460_v9, %v373_v56  ;;  %v791_v0 = vadd.f32 %v790_v60, %v789_v53  ;;  %v850_v13 = vpop.f32.mrf.mxu1 }
 0x102   :  { %v899_v3 = vpop.eup %898  ;;  %904 = vtanh.f32 %v558_v59  ;;  %v792_v4 = vpop.f32.mrf.mxu0 }
 0x103   :  { %v581_v6 = vadd.f32 1.0, %v899_v3  ;;  %v559_v7 = vmul.f32 0.7978846, %v546_v61  ;;  %v534_v8 = vmul.f32 %v521_v62, %v1127_v48  ;;  %v509_v11 = vmul.f32 0.044715, %v1137_v63 }
 0x104   :  { %v376_v12 = vadd.f32 %v791_v0, %v1086_v49  ;;  %v793_v14 = vpop.f32.mrf.mxu0  ;;  %v493_v0 = vmul.f32 0.5, %v1110_v27 }
 0x105   :  { %v594_v9 = vmul.f32 %v581_v6, %v490_v5  ;;  %906 = vtanh.f32 %v559_v7  ;;  %v547_v15 = vadd.f32 %v534_v8, %v1127_v48  ;;  %v794_v16 = vadd.f32 %v793_v14, %v792_v4 }
 0x106   :  { %v901_v18 = vpop.eup %900  ;;  %v522_v19 = vmul.f32 %v509_v11, %v1137_v63  ;;  %v1149_v21 = vadd.f32 %v1105_v20, %v376_v12  ;;  %v795_v22 = vpop.f32.mrf.mxu0  ;;  %v494_v14 = vmul.f32 0.5, %v1118_v36  ;;  %v495_v36 = vmul.f32 0.5, %v1127_v48 }
 0x107   :  { %v739_v23 = vpack.c.bf16 %v594_v9, %v594_v9  ;;  %v582_v24 = vadd.f32 1.0, %v901_v18  ;;  %v560_v25 = vmul.f32 0.7978846, %v547_v15  ;;  %v381_v26 = vadd.f32 %v794_v16, %v1086_v49 }
 0x108   :  { %v535_v29 = vmul.f32 %v522_v19, %v1137_v63  ;;  %v510_v30 = vmul.f32 0.044715, %v1149_v21  ;;  %v796_v31 = vpop.f32.mrf.mxu0 }
 0x109   :  { %661 = vst.msk [vmem:[%s1250_s3] sm:$0xf] %vm660_vm2, %v739_v23  ;;  %v595_v2 = vmul.f32 %v582_v24, %v491_v57  ;;  %908 = vtanh.f32 %v560_v25  ;;  %v1161_v20 = vadd.f32 %v1114_v32, %v381_v26  ;;  %v797_v33 = vadd.f32 %v796_v31, %v795_v22 }
 0x10a   :  { %v903_v35 = vpop.eup %902  ;;  %v548_v37 = vadd.f32 %v535_v29, %v1137_v63  ;;  %v523_v38 = vmul.f32 %v510_v30, %v1149_v21  ;;  %v798_v39 = vpop.f32.mrf.mxu0 }
 0x10b   :  { %v740_v40 = vpack.c.bf16 %v595_v2, %v595_v2  ;;  %v583_v42 = vadd.f32 1.0, %v903_v35  ;;  %v511_v43 = vmul.f32 0.044715, %v1161_v20  ;;  %v384_v32 = vadd.f32 %v797_v33, %v1086_v49 }
 0x10c   :  { %v561_v46 = vmul.f32 0.7978846, %v548_v37  ;;  %v536_v47 = vmul.f32 %v523_v38, %v1149_v21  ;;  %v799_v50 = vpop.f32.mrf.mxu0 }
 0x10d   :  { %662 = vst.msk [vmem:[%s1250_s3 + $0x4] sm:$0xf] %vm660_vm2, %v740_v40  ;;  %v596_v51 = vmul.f32 %v583_v42, %v492_v41  ;;  %v524_v52 = vmul.f32 %v511_v43, %v1161_v20  ;;  %v800_v53 = vadd.f32 %v799_v50, %v798_v39  ;;  %v1176_v55 = vadd.f32 %v1123_v44, %v384_v32 }
 0x10e   :  { %910 = vtanh.f32 %v561_v46  ;;  %v549_v54 = vadd.f32 %v536_v47, %v1149_v21  ;;  %v801_v56 = vpop.f32.mrf.mxu0 }
 0x10f   :  { %v905_v59 = vpop.eup %904  ;;  %v741_v60 = vpack.c.bf16 %v596_v51, %v596_v51  ;;  %v537_v61 = vmul.f32 %v524_v52, %v1161_v20  ;;  %v389_v62 = vadd.f32 %v800_v53, %v1086_v49  ;;  %v512_v4 = vmul.f32 0.044715, %v1176_v55 }
 0x110   :  { %v584_v1 = vadd.f32 1.0, %v905_v59  ;;  %v562_v3 = vmul.f32 0.7978846, %v549_v54  ;;  %v802_v5 = vpop.f32.mrf.mxu0  ;;  %v497_v53 = vmul.f32 0.5, %v1149_v21 }
 0x111   :  { %663 = vst.msk [vmem:[%s1250_s3 + $0x8] sm:$0xf] %vm660_vm2, %v741_v60  ;;  %v550_v44 = vadd.f32 %v537_v61, %v1161_v20  ;;  %v1188_v6 = vadd.f32 %v1133_v58, %v389_v62  ;;  %v803_v7 = vadd.f32 %v802_v5, %v801_v56  ;;  %v525_v27 = vmul.f32 %v512_v4, %v1176_v55 }
 0x112   :  { %v907_v8 = vpop.eup %906  ;;  %v597_v11 = vmul.f32 %v584_v1, %v493_v0  ;;  %912 = vtanh.f32 %v562_v3  ;;  %v804_v12 = vpop.f32.mrf.mxu0  ;;  %v498_v60 = vmul.f32 0.5, %v1161_v20  ;;  %v499_v4 = vmul.f32 0.5, %v1176_v55 }
 0x113   :  { %v585_v9 = vadd.f32 1.0, %v907_v8  ;;  %v563_v15 = vmul.f32 0.7978846, %v550_v44  ;;  %v513_v16 = vmul.f32 0.044715, %v1188_v6  ;;  %v538_v18 = vmul.f32 %v525_v27, %v1176_v55 }
 0x114   :  { %v742_v17 = vpack.c.bf16 %v597_v11, %v597_v11  ;;  %v392_v57 = vadd.f32 %v803_v7, %v1086_v49  ;;  %v805_v58 = vpop.f32.mrf.mxu0  ;;  %v500_v7 = vmul.f32 0.5, %v1188_v6 }
 0x115   :  { %v598_v19 = vmul.f32 %v585_v9, %v494_v14  ;;  %914 = vtanh.f32 %v563_v15  ;;  %v526_v22 = vmul.f32 %v513_v16, %v1188_v6  ;;  %v806_v23 = vadd.f32 %v805_v58, %v804_v12 }
 0x116   :  { %v909_v24 = vpop.eup %908  ;;  %664 = vst.msk [vmem:[%s1250_s3 + $0xc] sm:$0xf] %vm660_vm2, %v742_v17  ;;  %v551_v25 = vadd.f32 %v538_v18, %v1176_v55  ;;  %v480_v26 = vadd.f32 %v1141_v10, %v392_v57  ;;  %v807_v29 = vpop.f32.mrf.mxu0 }
 0x117   :  { %v743_v30 = vpack.c.bf16 %v598_v19, %v598_v19  ;;  %v586_v31 = vadd.f32 1.0, %v909_v24  ;;  %v539_v2 = vmul.f32 %v526_v22, %v1188_v6  ;;  %v397_v33 = vadd.f32 %v806_v23, %v1086_v49 }
 0x118   :  { %v564_v34 = vmul.f32 0.7978846, %v551_v25  ;;  %v514_v35 = vmul.f32 0.044715, %v480_v26  ;;  %v808_v37 = vpop.f32.mrf.mxu0  ;;  %v496_v49 = vmul.f32 0.5, %v1137_v63  ;;  %v501_v14 = vmul.f32 0.5, %v480_v26 }
 0x119   :  { %665 = vst.msk [vmem:[%s1250_s3 + $0x10] sm:$0xf] %vm660_vm2, %v743_v30  ;;  %v599_v48 = vmul.f32 %v586_v31, %v495_v36  ;;  %v552_v38 = vadd.f32 %v539_v2, %v1188_v6  ;;  %v485_v10 = vadd.f32 %v1152_v28, %v397_v33 }
 0x11a   :  { %916 = vtanh.f32 %v564_v34  ;;  %v527_v39 = vmul.f32 %v514_v35, %v480_v26 }
 0x11b   :  { %v911_v40 = vpop.eup %910  ;;  %v744_v41 = vpack.c.bf16 %v599_v48, %v599_v48  ;;  %v565_v42 = vmul.f32 0.7978846, %v552_v38  ;;  %v515_v43 = vmul.f32 0.044715, %v485_v10  ;;  %v502_v6 = vmul.f32 0.5, %v485_v10 }
 0x11c   :  { %v587_v45 = vadd.f32 1.0, %v911_v40  ;;  %v540_v46 = vmul.f32 %v527_v39, %v480_v26 }
 0x11d   :  { %666 = vst.msk [vmem:[%s1250_s3 + $0x14] sm:$0xf] %vm660_vm2, %v744_v41  ;;  %918 = vtanh.f32 %v565_v42  ;;  %v528_v47 = vmul.f32 %v515_v43, %v485_v10 }
 0x11e   :  { %v600_v32 = vmul.f32 %v587_v45, %v496_v49  ;;  %v553_v50 = vadd.f32 %v540_v46, %v480_v26 }
 0x11f   :  { %v913_v28 = vpop.eup %912  ;;  %v541_v51 = vmul.f32 %v528_v47, %v485_v10 }
 0x120   :  { %v745_v52 = vpack.c.bf16 %v600_v32, %v600_v32  ;;  %v588_v13 = vadd.f32 1.0, %v913_v28  ;;  %v566_v54 = vmul.f32 0.7978846, %v553_v50 }
 0x121   :  { %v554_v56 = vadd.f32 %v541_v51, %v485_v10 }
 0x122   :  { %v915_v63 = vpop.eup %914  ;;  %667 = vst.msk [vmem:[%s1250_s3 + $0x18] sm:$0xf] %vm660_vm2, %v745_v52  ;;  %v601_v59 = vmul.f32 %v588_v13, %v497_v53  ;;  %920 = vtanh.f32 %v566_v54 }
 0x123   :  { %v589_v61 = vadd.f32 1.0, %v915_v63  ;;  %v567_v62 = vmul.f32 0.7978846, %v554_v56 }
 0x124   :  { %v746_v0 = vpack.c.bf16 %v601_v59, %v601_v59 }
 0x125   :  { %v602_v1 = vmul.f32 %v589_v61, %v498_v60  ;;  %922 = vtanh.f32 %v567_v62 }
 0x126   :  { %668 = vst.msk [vmem:[%s1250_s3 + $0x1c] sm:$0xf] %vm660_vm2, %v746_v0 }
 0x127   :  { %v917_v21 = vpop.eup %916  ;;  %v747_v3 = vpack.c.bf16 %v602_v1, %v602_v1 }
 0x128   :  { %v590_v5 = vadd.f32 1.0, %v917_v21 }
 0x129   :  { %669 = vst.msk [vmem:[%s1250_s3 + $0x20] sm:$0xf] %vm660_vm2, %v747_v3 }
 0x12a   :  { %v919_v20 = vpop.eup %918  ;;  %v603_v44 = vmul.f32 %v590_v5, %v499_v4 }
 0x12b   :  { %v591_v8 = vadd.f32 1.0, %v919_v20 }
 0x12c   :  { %v748_v11 = vpack.c.bf16 %v603_v44, %v603_v44 }
 0x12d   :  { %v604_v27 = vmul.f32 %v591_v8, %v500_v7 }
 0x12e   :  { %670 = vst.msk [vmem:[%s1250_s3 + $0x24] sm:$0xf] %vm660_vm2, %v748_v11 }
 0x12f   :  { %v921_v12 = vpop.eup %920  ;;  %v749_v55 = vpack.c.bf16 %v604_v27, %v604_v27 }
 0x130   :  { %v592_v9 = vadd.f32 1.0, %v921_v12 }
 0x131   :  { %671 = vst.msk [vmem:[%s1250_s3 + $0x28] sm:$0xf] %vm660_vm2, %v749_v55 }
 0x132   :  { %v923_v15 = vpop.eup %922  ;;  %v605_v16 = vmul.f32 %v592_v9, %v501_v14 }
 0x133   :  { %v593_v17 = vadd.f32 1.0, %v923_v15 }
 0x134   :  { %v750_v18 = vpack.c.bf16 %v605_v16, %v605_v16 }
 0x135   :  { %v606_v57 = vmul.f32 %v593_v17, %v502_v6 }
 0x136   :  { %672 = vst.msk [vmem:[%s1250_s3 + $0x2c] sm:$0xf] %vm660_vm2, %v750_v18 }
 0x137   :  { %v751_v58 = vpack.c.bf16 %v606_v57, %v606_v57 }
 0x139   :  { %674 = vst.msk [vmem:[%s1250_s3 + $0x30] sm:$0x1] %vm673_vm3, %v751_v58 }

// kernel: ae_conv_forward.12
= control target key start
LH: loop header
LB: loop body
LE: loop exit
PB: predicated region body
PF: predicated region fallthrough
CT: control target
= control target key end

     0   :  { %vm372_vm0 = vcmask 523264   ;;  %s953_s1 = inlined_call_operand.vmem [shape: bf16[576,128], index: 1, kind: input, shape index: {}]   ;;  %s954_s0 = inlined_call_operand.vmem [shape: bf16[32,576], index: 0, kind: input, shape index: {}]   ;;  %s955_s2 = inlined_call_operand.vmem [shape: f32[1,128], index: 2, kind: input, shape index: {}]   ;;  %s956_s3 = inlined_call_operand.vmem [shape: bf16[32,128], index: 3, kind: output, shape index: {}]  }
   0x1   :  { %v728_v0 = vld [vmem:[%s953_s1 + $0x78] sm:$0xff]   ;;  %v732_v4 = vld [vmem:[%s953_s1 + $0x70] sm:$0xff]   ;;  %v736_v8 = vld [vmem:[%s953_s1 + $0x68] sm:$0xff]  }
   0x2   :  { %v729_v1 = vld [vmem:[%s953_s1 + $0xf8] sm:$0xff]   ;;  %654 = vmatprep.subr.bf16.mxu0 %v728_v0  ;;  %v733_v5 = vld [vmem:[%s953_s1 + $0xf0] sm:$0xff]   ;;  %v737_v9 = vld [vmem:[%s953_s1 + $0xe8] sm:$0xff]  }
   0x3   :  { %v730_v2 = vld [vmem:[%s953_s1 + $0x38] sm:$0xff]   ;;  %682 = vmatprep.subr.bf16.mxu1 %v729_v1  ;;  %v734_v6 = vld [vmem:[%s953_s1 + $0x30] sm:$0xff]   ;;  %v738_v10 = vld [vmem:[%s953_s1 + $0x28] sm:$0xff]  }
   0x4   :  { %v731_v3 = vld [vmem:[%s953_s1 + $0xb8] sm:$0xff]   ;;  %655 = vmatpush3.bf16.msra.mxu0 %v730_v2  ;;  %v735_v7 = vld [vmem:[%s953_s1 + $0xb0] sm:$0xff]   ;;  %v739_v11 = vld [vmem:[%s953_s1 + $0xa8] sm:$0xff]  }
   0x5   :  { %683 = vmatpush3.bf16.msra.mxu1 %v731_v3  ;;  %656 = vmatprep.subr.bf16.mxu0 %v732_v4  ;;  %v740_v12 = vld [vmem:[%s953_s1 + $0x60] sm:$0xff]   ;;  %v744_v16 = vld [vmem:[%s953_s1 + $0x58] sm:$0xff]   ;;  %v748_v20 = vld [vmem:[%s953_s1 + $0x50] sm:$0xff]  }
   0x6   :  { %684 = vmatprep.subr.bf16.mxu1 %v733_v5  ;;  %v741_v13 = vld [vmem:[%s953_s1 + $0xe0] sm:$0xff]   ;;  %v745_v17 = vld [vmem:[%s953_s1 + $0xd8] sm:$0xff]   ;;  %v749_v21 = vld [vmem:[%s953_s1 + $0xd0] sm:$0xff]  }
   0x7   :  { %v742_v14 = vld [vmem:[%s953_s1 + $0x20] sm:$0xff]   ;;  %v746_v18 = vld [vmem:[%s953_s1 + $0x18] sm:$0xff]   ;;  %v750_v22 = vld [vmem:[%s953_s1 + $0x10] sm:$0xff]  }
   0x8   :  { %657 = vmatpush3.bf16.msra.mxu0 %v734_v6  ;;  %v743_v15 = vld [vmem:[%s953_s1 + $0xa0] sm:$0xff]   ;;  %v747_v19 = vld [vmem:[%s953_s1 + $0x98] sm:$0xff]   ;;  %v751_v23 = vld [vmem:[%s953_s1 + $0x90] sm:$0xff]  }
   0x9   :  { %685 = vmatpush3.bf16.msra.mxu1 %v735_v7  ;;  %658 = vmatprep.subr.bf16.mxu0 %v736_v8  ;;  %v752_v24 = vld [vmem:[%s953_s1 + $0x48] sm:$0xff]   ;;  %v756_v28 = vld [vmem:[%s953_s1 + $0x40] sm:$0xff]   ;;  %v766_v36 = vld [vmem:[%s953_s1 + $0x118] sm:$0xff]  }
   0xa   :  { %686 = vmatprep.subr.bf16.mxu1 %v737_v9  ;;  %v753_v25 = vld [vmem:[%s953_s1 + $0xc8] sm:$0xff]   ;;  %v757_v29 = vld [vmem:[%s953_s1 + $0xc0] sm:$0xff]   ;;  %v767_v37 = vld [vmem:[%s953_s1 + $0x110] sm:$0xff]  }
   0xb   :  { %v754_v26 = vld [vmem:[%s953_s1 + $0x8] sm:$0xff]   ;;  %v758_v30 = vld [vmem:[%s953_s1] sm:$0xff]  }
   0xc   :  { %659 = vmatpush3.bf16.msra.mxu0 %v738_v10  ;;  %v755_v27 = vld [vmem:[%s953_s1 + $0x88] sm:$0xff]   ;;  %v759_v31 = vld [vmem:[%s953_s1 + $0x80] sm:$0xff]  }
   0xd   :  { %687 = vmatpush3.bf16.msra.mxu1 %v739_v11  ;;  %660 = vmatprep.subr.bf16.mxu0 %v740_v12  ;;  %v760_v32 = vld [vmem:[%s954_s0] ss:$20 sps:$4 sm:$0xff]   ;;  %v762_v33 = vld [vmem:[%s954_s0 + $0x4] ss:$20 sps:$4 sm:$0xff]   ;;  %v763_v34 = vld [vmem:[%s954_s0 + $0x8] ss:$20 sps:$4 sm:$0xff]  }
   0xe   :  { %688 = vmatprep.subr.bf16.mxu1 %v741_v13  ;;  %v765_v35 = vld [vmem:[%s954_s0 + $0xc] ss:$20 sps:$4 sm:$0xff]   ;;  %411 = vmatprep.mubr.bf16.mxu0 %v762_v33  ;;  %v770_v39 = vld [vmem:[%s954_s0 + $0x34] ss:$20 sps:$4 sm:$0xff]   ;;  %v773_v42 = vld [vmem:[%s954_s0 + $0x30] ss:$20 sps:$4 sm:$0xff]  }
   0xf   :  { %460 = vmatprep.mubr.bf16.mxu1 %v765_v35  ;;  %v768_v38 = vld [vmem:[%s954_s0 + $0x2c] ss:$20 sps:$4 sm:$0xff]   ;;  %v772_v40 = vld [vmem:[%s954_s0 + $0x28] ss:$20 sps:$4 sm:$0xff]   ;;  %v776_v43 = vld [vmem:[%s954_s0 + $0x10] ss:$20 sps:$4 sm:$0xff]  }
  0x10   :  { %661 = vmatpush3.bf16.msra.mxu0 %v742_v14  ;;  %v774_v41 = vld [vmem:[%s953_s1 + $0x108] sm:$0xff]   ;;  %v775_v44 = vld [vmem:[%s953_s1 + $0x100] sm:$0xff]  }
  0x11   :  { %689 = vmatpush3.bf16.msra.mxu1 %v743_v15  ;;  %662 = vmatprep.subr.bf16.mxu0 %v744_v16  ;;  %v777_v45 = vld [vmem:[%s954_s0 + $0x38] ss:$20 sps:$4 sm:$0xff]   ;;  %v586_v58 = vld [vmem:[%s955_s2] ss:$0 sm:$0xff] }
  0x12   :  { %690 = vmatprep.subr.bf16.mxu1 %v745_v17 }
  0x14   :  { %663 = vmatpush3.bf16.msra.mxu0 %v746_v18 }
  0x15   :  { %691 = vmatpush3.bf16.msra.mxu1 %v747_v19  ;;  %664 = vmatprep.subr.bf16.mxu0 %v748_v20 }
  0x16   :  { %692 = vmatprep.subr.bf16.mxu1 %v749_v21 }
  0x18   :  { %665 = vmatpush3.bf16.msra.mxu0 %v750_v22 }
  0x19   :  { %693 = vmatpush3.bf16.msra.mxu1 %v751_v23  ;;  %666 = vmatprep.subr.bf16.mxu0 %v752_v24 }
  0x1a   :  { %694 = vmatprep.subr.bf16.mxu1 %v753_v25 }
  0x1c   :  { %667 = vmatpush3.bf16.msra.mxu0 %v754_v26 }
  0x1d   :  { %695 = vmatpush3.bf16.msra.mxu1 %v755_v27  ;;  %668 = vmatprep.subr.bf16.mxu0 %v756_v28 }
  0x1e   :  { %696 = vmatprep.subr.bf16.mxu1 %v757_v29 }
  0x20   :  { %669 = vmatpush3.bf16.msra.mxu0 %v758_v30 }
  0x21   :  { %697 = vmatpush3.bf16.msra.mxu1 %v759_v31  ;;  %716 = vmatprep.subr.bf16.mxu0 %v766_v36 }
  0x23   :  { %412 = vmatmul.mubr.bf16.vlgmr.msra.gmra.mxu0 %v760_v32 }
  0x24   :  { %461 = vmatmul.mubr.bf16.vlgmr.msra.gmra.mxu1 %v763_v34  ;;  %717 = vmatpush3.bf16.msra.mxu0 %v766_v36 }
  0x25   :  { %718 = vmatprep.subr.bf16.mxu0 %v767_v37  ;;  %419 = vmatprep.mubr.bf16.mxu0 %v768_v38 }
  0x26   :  { %468 = vmatprep.mubr.bf16.mxu1 %v770_v39 }
  0x28   :  { %719 = vmatpush3.bf16.msra.mxu0 %v767_v37 }
  0x29   :  { %720 = vmatprep.subr.bf16.mxu0 %v774_v41 }
  0x2b   :  { %420 = vmatmul.mubr.bf16.gmra.mxu0 %v772_v40 }
  0x2c   :  { %469 = vmatmul.mubr.bf16.gmra.mxu1 %v773_v42  ;;  %724 = vmatprep.mubr.msk.bf16.mxu0 %vm372_vm0, %v776_v43 }
  0x2d   :  { %721 = vmatpush3.bf16.msra.mxu0 %v774_v41 }
  0x2e   :  { %722 = vmatprep.subr.bf16.mxu0 %v775_v44 }
  0x31   :  { %723 = vmatpush3.bf16.msra.mxu0 %v775_v44 }
  0x34   :  { %725 = vmatmul.mubr.msk.bf16.vlgmr.msra.gmra.mxu0 %vm372_vm0, %v777_v45 }
  0xe3   :  { %v670_v46 = vpop.f32.mrf.mxu0 }
  0xe4   :  { %v698_v47 = vpop.f32.mrf.mxu1 }
  0xe5   :  { %v671_v48 = vpop.f32.mrf.mxu0 }
  0xe6   :  { %v699_v49 = vpop.f32.mrf.mxu1  ;;  %v672_v56 = vadd.f32 %v671_v48, %v670_v46 }
  0xe7   :  { %v673_v50 = vpop.f32.mrf.mxu0  ;;  %v700_v2 = vadd.f32 %v699_v49, %v698_v47 }
  0xe8   :  { %v701_v51 = vpop.f32.mrf.mxu1  ;;  %v414_v1 = vadd.f32 %v672_v56, %v586_v58 }
  0xe9   :  { %v674_v52 = vpop.f32.mrf.mxu0 }
  0xea   :  { %v702_v53 = vpop.f32.mrf.mxu1  ;;  %v675_v4 = vadd.f32 %v674_v52, %v673_v50  ;;  %v463_v12 = vadd.f32 %v700_v2, %v414_v1 }
  0xeb   :  { %v676_v54 = vpop.f32.mrf.mxu0  ;;  %v703_v18 = vadd.f32 %v702_v53, %v701_v51 }
  0xec   :  { %v704_v55 = vpop.f32.mrf.mxu1  ;;  %v417_v13 = vadd.f32 %v675_v4, %v586_v58 }
  0xed   :  { %v677_v57 = vpop.f32.mrf.mxu0 }
  0xee   :  { %v678_v59 = vadd.f32 %v677_v57, %v676_v54  ;;  %v705_v60 = vpop.f32.mrf.mxu1  ;;  %v466_v23 = vadd.f32 %v703_v18, %v417_v13 }
  0xef   :  { %v706_v61 = vadd.f32 %v705_v60, %v704_v55  ;;  %v679_v62 = vpop.f32.mrf.mxu0 }
  0xf0   :  { %v422_v63 = vadd.f32 %v678_v59, %v586_v58  ;;  %v707_v0 = vpop.f32.mrf.mxu1 }
  0xf1   :  { %v680_v3 = vpop.f32.mrf.mxu0 }
  0xf2   :  { %v681_v5 = vadd.f32 %v680_v3, %v679_v62  ;;  %v708_v6 = vpop.f32.mrf.mxu1  ;;  %v471_v7 = vadd.f32 %v706_v61, %v422_v63 }
  0xf3   :  { %v709_v9 = vadd.f32 %v708_v6, %v707_v0 }
  0xf4   :  { %v425_v8 = vadd.f32 %v681_v5, %v586_v58  ;;  %v726_v10 = vpop.f32.mrf.mxu0 }
  0xf5   :  { %v520_v11 = vadd.f32 %v726_v10, %v471_v7 }
  0xf6   :  { %v511_v14 = vpop.f32.mrf.mxu0  ;;  %v474_v15 = vadd.f32 %v709_v9, %v425_v8 }
  0xf7   :  { %v532_v16 = vmul.f32 0.044715, %v520_v11  ;;  %v512_v17 = vadd.f32 %v511_v14, %v463_v12  ;;  %v528_v47 = vmul.f32 0.5, %v520_v11 }
  0xf8   :  { %v727_v19 = vpop.f32.mrf.mxu0 }
  0xf9   :  { %v536_v20 = vmul.f32 %v532_v16, %v520_v11  ;;  %v530_v21 = vmul.f32 0.044715, %v512_v17  ;;  %v523_v22 = vadd.f32 %v727_v19, %v474_v15  ;;  %v526_v54 = vmul.f32 0.5, %v512_v17 }
  0xfa   :  { %v514_v24 = vpop.f32.mrf.mxu0 }
  0xfb   :  { %v540_v25 = vmul.f32 %v536_v20, %v520_v11  ;;  %v534_v26 = vmul.f32 %v530_v21, %v512_v17  ;;  %v533_v27 = vmul.f32 0.044715, %v523_v22  ;;  %v515_v28 = vadd.f32 %v514_v24, %v466_v23 }
  0xfc   :  { %v529_v48 = vmul.f32 0.5, %v523_v22 }
  0xfd   :  { %v544_v29 = vadd.f32 %v540_v25, %v520_v11  ;;  %v538_v30 = vmul.f32 %v534_v26, %v512_v17  ;;  %v537_v31 = vmul.f32 %v533_v27, %v523_v22  ;;  %v531_v32 = vmul.f32 0.044715, %v515_v28 }
  0xfe   :  { %v527_v55 = vmul.f32 0.5, %v515_v28 }
  0xff   :  { %v548_v33 = vmul.f32 0.7978846, %v544_v29  ;;  %v542_v34 = vadd.f32 %v538_v30, %v512_v17  ;;  %v541_v35 = vmul.f32 %v537_v31, %v523_v22  ;;  %v535_v36 = vmul.f32 %v531_v32, %v515_v28 }
 0x101   :  { %778 = vtanh.f32 %v548_v33  ;;  %v546_v37 = vmul.f32 0.7978846, %v542_v34  ;;  %v545_v38 = vadd.f32 %v541_v35, %v523_v22  ;;  %v539_v39 = vmul.f32 %v535_v36, %v515_v28 }
 0x103   :  { %v549_v40 = vmul.f32 0.7978846, %v545_v38  ;;  %780 = vtanh.f32 %v546_v37  ;;  %v543_v41 = vadd.f32 %v539_v39, %v515_v28 }
 0x105   :  { %782 = vtanh.f32 %v549_v40  ;;  %v547_v42 = vmul.f32 0.7978846, %v543_v41 }
 0x107   :  { %784 = vtanh.f32 %v547_v42 }
 0x10e   :  { %v779_v43 = vpop.eup %778 }
 0x10f   :  { %v556_v45 = vadd.f32 1.0, %v779_v43 }
 0x110   :  { %v781_v44 = vpop.eup %780 }
 0x111   :  { %v554_v50 = vadd.f32 1.0, %v781_v44  ;;  %v560_v52 = vmul.f32 %v556_v45, %v528_v47 }
 0x112   :  { %v783_v46 = vpop.eup %782 }
 0x113   :  { %v557_v49 = vadd.f32 1.0, %v783_v46  ;;  %v558_v58 = vmul.f32 %v554_v50, %v526_v54 }
 0x114   :  { %v785_v51 = vpop.eup %784 }
 0x115   :  { %v561_v53 = vmul.f32 %v557_v49, %v529_v48  ;;  %v555_v56 = vadd.f32 1.0, %v785_v51 }
 0x117   :  { %v651_v57 = vpack.c.bf16 %v561_v53, %v560_v52  ;;  %v559_v59 = vmul.f32 %v555_v56, %v527_v55 }
 0x119   :  { %653 = vst [vmem:[%s956_s3 + $0x8] sm:$0xff] %v651_v57   ;;  %v646_v60 = vpack.c.bf16 %v559_v59, %v558_v58 }
 0x11b   :  { %647 = vst [vmem:[%s956_s3] sm:$0xff] %v646_v60  }

// kernel: ae_conv_forward.13
= control target key start
LH: loop header
LB: loop body
LE: loop exit
PB: predicated region body
PF: predicated region fallthrough
CT: control target
= control target key end

     0   :  { %s2035_s1 = inlined_call_operand.vmem [shape: bf16[1152,256], index: 1, kind: input, shape index: {}]   ;;  %s2036_s0 = inlined_call_operand.vmem [shape: bf16[8,1152], index: 0, kind: input, shape index: {}]   ;;  %s2037_s2 = inlined_call_operand.vmem [shape: f32[1,256], index: 2, kind: input, shape index: {}]   ;;  %s2038_s3 = inlined_call_operand.vmem [shape: bf16[8,256], index: 3, kind: output, shape index: {}]  }
   0x1   :  { %v1320_v0 = vld [vmem:[%s2035_s1 + $0x74] ss:$8 sps:$4 sm:$0xff]   ;;  %v1322_v1 = vld [vmem:[%s2035_s1 + $0x70] ss:$8 sps:$4 sm:$0xff]   ;;  %v1326_v4 = vld [vmem:[%s2035_s1 + $0x64] ss:$8 sps:$4 sm:$0xff]  }
   0x2   :  { %928 = vmatprep.subr.bf16.mxu0 %v1320_v0  ;;  %v1323_v2 = vld [vmem:[%s2035_s1 + $0x174] ss:$8 sps:$4 sm:$0xff]   ;;  %v1325_v3 = vld [vmem:[%s2035_s1 + $0x170] ss:$8 sps:$4 sm:$0xff]   ;;  %v1328_v5 = vld [vmem:[%s2035_s1 + $0x60] ss:$8 sps:$4 sm:$0xff]  }
   0x3   :  { %929 = vmatpush1.bf16.msra.mxu0 %v1322_v1  ;;  %969 = vmatprep.subr.bf16.mxu1 %v1323_v2  ;;  %v1329_v6 = vld [vmem:[%s2035_s1 + $0x164] ss:$8 sps:$4 sm:$0xff]   ;;  %v1331_v7 = vld [vmem:[%s2035_s1 + $0x160] ss:$8 sps:$4 sm:$0xff]   ;;  %v1332_v8 = vld [vmem:[%s2035_s1 + $0x54] ss:$8 sps:$4 sm:$0xff]  }
   0x4   :  { %970 = vmatpush1.bf16.msra.mxu1 %v1325_v3  ;;  %930 = vmatprep.subr.bf16.mxu0 %v1326_v4  ;;  %v1334_v9 = vld [vmem:[%s2035_s1 + $0x50] ss:$8 sps:$4 sm:$0xff]   ;;  %v1335_v10 = vld [vmem:[%s2035_s1 + $0x154] ss:$8 sps:$4 sm:$0xff]   ;;  %v1338_v11 = vld [vmem:[%s2035_s1 + $0x44] ss:$8 sps:$4 sm:$0xff]  }
   0x5   :  { %971 = vmatprep.subr.bf16.mxu1 %v1329_v6  ;;  %v1337_v12 = vld [vmem:[%s2035_s1 + $0x150] ss:$8 sps:$4 sm:$0xff]   ;;  %v1341_v13 = vld [vmem:[%s2035_s1 + $0x144] ss:$8 sps:$4 sm:$0xff]   ;;  %v1340_v14 = vld [vmem:[%s2035_s1 + $0x40] ss:$8 sps:$4 sm:$0xff]  }
   0x6   :  { %v1344_v15 = vld [vmem:[%s2035_s1 + $0x34] ss:$8 sps:$4 sm:$0xff]   ;;  %v1343_v16 = vld [vmem:[%s2035_s1 + $0x140] ss:$8 sps:$4 sm:$0xff]   ;;  %v1346_v18 = vld [vmem:[%s2035_s1 + $0x30] ss:$8 sps:$4 sm:$0xff]  }
   0x7   :  { %931 = vmatpush1.bf16.msra.mxu0 %v1328_v5  ;;  %v1347_v17 = vld [vmem:[%s2035_s1 + $0x134] ss:$8 sps:$4 sm:$0xff]   ;;  %v1350_v19 = vld [vmem:[%s2035_s1 + $0x24] ss:$8 sps:$4 sm:$0xff]   ;;  %v1349_v20 = vld [vmem:[%s2035_s1 + $0x130] ss:$8 sps:$4 sm:$0xff]  }
   0x8   :  { %932 = vmatprep.subr.bf16.mxu0 %v1332_v8  ;;  %972 = vmatpush1.bf16.msra.mxu1 %v1331_v7  ;;  %v1353_v21 = vld [vmem:[%s2035_s1 + $0x124] ss:$8 sps:$4 sm:$0xff]   ;;  %v1352_v22 = vld [vmem:[%s2035_s1 + $0x20] ss:$8 sps:$4 sm:$0xff]   ;;  %v1356_v23 = vld [vmem:[%s2035_s1 + $0x14] ss:$8 sps:$4 sm:$0xff]  }
   0x9   :  { %973 = vmatprep.subr.bf16.mxu1 %v1335_v10  ;;  %v1355_v24 = vld [vmem:[%s2035_s1 + $0x120] ss:$8 sps:$4 sm:$0xff]   ;;  %v1359_v25 = vld [vmem:[%s2035_s1 + $0x114] ss:$8 sps:$4 sm:$0xff]   ;;  %v1358_v26 = vld [vmem:[%s2035_s1 + $0x10] ss:$8 sps:$4 sm:$0xff]  }
   0xa   :  { %v1362_v27 = vld [vmem:[%s2035_s1 + $0x4] ss:$8 sps:$4 sm:$0xff]   ;;  %v1361_v28 = vld [vmem:[%s2035_s1 + $0x110] ss:$8 sps:$4 sm:$0xff]   ;;  %v1364_v30 = vld [vmem:[%s2035_s1] ss:$8 sps:$4 sm:$0xff]  }
   0xb   :  { %933 = vmatpush1.bf16.msra.mxu0 %v1334_v9  ;;  %v1365_v29 = vld [vmem:[%s2035_s1 + $0x104] ss:$8 sps:$4 sm:$0xff]   ;;  %v1368_v31 = vld [vmem:[%s2035_s1 + $0xf4] ss:$8 sps:$4 sm:$0xff]   ;;  %v1367_v32 = vld [vmem:[%s2035_s1 + $0x100] ss:$8 sps:$4 sm:$0xff]  }
   0xc   :  { %934 = vmatprep.subr.bf16.mxu0 %v1338_v11  ;;  %974 = vmatpush1.bf16.msra.mxu1 %v1337_v12  ;;  %v1371_v33 = vld [vmem:[%s2035_s1 + $0x1f4] ss:$8 sps:$4 sm:$0xff]   ;;  %v1370_v34 = vld [vmem:[%s2035_s1 + $0xf0] ss:$8 sps:$4 sm:$0xff]   ;;  %v1374_v35 = vld [vmem:[%s2035_s1 + $0xe4] ss:$8 sps:$4 sm:$0xff]  }
   0xd   :  { %975 = vmatprep.subr.bf16.mxu1 %v1341_v13  ;;  %v1373_v36 = vld [vmem:[%s2035_s1 + $0x1f0] ss:$8 sps:$4 sm:$0xff]   ;;  %v1377_v37 = vld [vmem:[%s2035_s1 + $0x1e4] ss:$8 sps:$4 sm:$0xff]   ;;  %v1376_v38 = vld [vmem:[%s2035_s1 + $0xe0] ss:$8 sps:$4 sm:$0xff]  }
   0xe   :  { %v1380_v39 = vld [vmem:[%s2035_s1 + $0xd4] ss:$8 sps:$4 sm:$0xff]   ;;  %v1379_v40 = vld [vmem:[%s2035_s1 + $0x1e0] ss:$8 sps:$4 sm:$0xff]   ;;  %v1382_v42 = vld [vmem:[%s2035_s1 + $0xd0] ss:$8 sps:$4 sm:$0xff]  }
   0xf   :  { %935 = vmatpush1.bf16.msra.mxu0 %v1340_v14  ;;  %v1383_v41 = vld [vmem:[%s2035_s1 + $0x1d4] ss:$8 sps:$4 sm:$0xff]   ;;  %v1386_v43 = vld [vmem:[%s2035_s1 + $0xc4] ss:$8 sps:$4 sm:$0xff]   ;;  %v1385_v44 = vld [vmem:[%s2035_s1 + $0x1d0] ss:$8 sps:$4 sm:$0xff]  }
  0x10   :  { %936 = vmatprep.subr.bf16.mxu0 %v1344_v15  ;;  %976 = vmatpush1.bf16.msra.mxu1 %v1343_v16  ;;  %v1389_v45 = vld [vmem:[%s2035_s1 + $0x1c4] ss:$8 sps:$4 sm:$0xff]   ;;  %v1388_v47 = vld [vmem:[%s2035_s1 + $0xc0] ss:$8 sps:$4 sm:$0xff]   ;;  %v1392_v49 = vld [vmem:[%s2035_s1 + $0xb4] ss:$8 sps:$4 sm:$0xff]  }
  0x11   :  { %977 = vmatprep.subr.bf16.mxu1 %v1347_v17  ;;  %v15_v46 = vld [vmem:[%s2036_s0] sm:$0xff]  ;;  %v16_v50 = vld [vmem:[%s2036_s0 + $0x8] sm:$0xff]  ;;  %v1395_v53 = vld [vmem:[%s2035_s1 + $0x1b4] ss:$8 sps:$4 sm:$0xff]  }
  0x12   :  { %v1165_v48 = vcombine.high %v15_v46, %v15_v46  ;;  %v1391_v51 = vld [vmem:[%s2035_s1 + $0x1c0] ss:$8 sps:$4 sm:$0xff]   ;;  %v1167_v52 = vcombine.high %v16_v50, %v16_v50  ;;  %v1394_v54 = vld [vmem:[%s2035_s1 + $0xb0] ss:$8 sps:$4 sm:$0xff]   ;;  %v1398_v55 = vld [vmem:[%s2035_s1 + $0xa4] ss:$8 sps:$4 sm:$0xff]   ;;  %v1164_v5 = vcombine.low %v15_v46, %v15_v46  ;;  %v1166_v8 = vcombine.low %v16_v50, %v16_v50 }
  0x13   :  { %937 = vmatpush1.bf16.msra.mxu0 %v1346_v18  ;;  %v1397_v56 = vld [vmem:[%s2035_s1 + $0x1b0] ss:$8 sps:$4 sm:$0xff]   ;;  %v1401_v57 = vld [vmem:[%s2035_s1 + $0x1a4] ss:$8 sps:$4 sm:$0xff]   ;;  %v1400_v58 = vld [vmem:[%s2035_s1 + $0xa0] ss:$8 sps:$4 sm:$0xff]  }
  0x14   :  { %938 = vmatprep.subr.bf16.mxu0 %v1350_v19  ;;  %978 = vmatpush1.bf16.msra.mxu1 %v1349_v20  ;;  %v1404_v59 = vld [vmem:[%s2035_s1 + $0x94] ss:$8 sps:$4 sm:$0xff]   ;;  %v1403_v60 = vld [vmem:[%s2035_s1 + $0x1a0] ss:$8 sps:$4 sm:$0xff]   ;;  %v1406_v62 = vld [vmem:[%s2035_s1 + $0x90] ss:$8 sps:$4 sm:$0xff]  }
  0x15   :  { %979 = vmatprep.subr.bf16.mxu1 %v1353_v21  ;;  %960 = vmatprep.mubr.bf16.mxu0 %v1165_v48  ;;  %v1407_v61 = vld [vmem:[%s2035_s1 + $0x194] ss:$8 sps:$4 sm:$0xff]   ;;  %v1410_v63 = vld [vmem:[%s2035_s1 + $0x84] ss:$8 sps:$4 sm:$0xff]   ;;  %v1409_v0 = vld [vmem:[%s2035_s1 + $0x190] ss:$8 sps:$4 sm:$0xff]  }
  0x16   :  { %1001 = vmatprep.mubr.bf16.mxu1 %v1167_v52  ;;  %v1413_v1 = vld [vmem:[%s2035_s1 + $0x184] ss:$8 sps:$4 sm:$0xff]   ;;  %v1412_v2 = vld [vmem:[%s2035_s1 + $0x80] ss:$8 sps:$4 sm:$0xff]   ;;  %v1420_v3 = vld [vmem:[%s2035_s1 + $0x274] ss:$8 sps:$4 sm:$0xff]  }
  0x17   :  { %939 = vmatpush1.bf16.msra.mxu0 %v1352_v22  ;;  %v1417_v4 = vld [vmem:[%s2035_s1 + $0x180] ss:$8 sps:$4 sm:$0xff]   ;;  %v1425_v6 = vld [vmem:[%s2035_s1 + $0x374] ss:$8 sps:$4 sm:$0xff]   ;;  %v1418_v7 = vld [vmem:[%s2035_s1 + $0x270] ss:$8 sps:$4 sm:$0xff]  }
  0x18   :  { %940 = vmatprep.subr.bf16.mxu0 %v1356_v23  ;;  %980 = vmatpush1.bf16.msra.mxu1 %v1355_v24  ;;  %v1428_v9 = vld [vmem:[%s2035_s1 + $0x264] ss:$8 sps:$4 sm:$0xff]   ;;  %v1423_v10 = vld [vmem:[%s2035_s1 + $0x370] ss:$8 sps:$4 sm:$0xff]   ;;  %v1426_v12 = vld [vmem:[%s2035_s1 + $0x260] ss:$8 sps:$4 sm:$0xff]  }
  0x19   :  { %981 = vmatprep.subr.bf16.mxu1 %v1359_v25  ;;  %v1431_v11 = vld [vmem:[%s2035_s1 + $0x364] ss:$8 sps:$4 sm:$0xff]   ;;  %v1434_v13 = vld [vmem:[%s2035_s1 + $0x254] ss:$8 sps:$4 sm:$0xff]   ;;  %v1429_v14 = vld [vmem:[%s2035_s1 + $0x360] ss:$8 sps:$4 sm:$0xff]  }
  0x1a   :  { %v1437_v15 = vld [vmem:[%s2035_s1 + $0x354] ss:$8 sps:$4 sm:$0xff]   ;;  %v1432_v16 = vld [vmem:[%s2035_s1 + $0x250] ss:$8 sps:$4 sm:$0xff]   ;;  %v1440_v17 = vld [vmem:[%s2035_s1 + $0x244] ss:$8 sps:$4 sm:$0xff]  }
  0x1b   :  { %941 = vmatpush1.bf16.msra.mxu0 %v1358_v26  ;;  %v1435_v18 = vld [vmem:[%s2035_s1 + $0x350] ss:$8 sps:$4 sm:$0xff]   ;;  %v1443_v19 = vld [vmem:[%s2035_s1 + $0x344] ss:$8 sps:$4 sm:$0xff]   ;;  %v1438_v20 = vld [vmem:[%s2035_s1 + $0x240] ss:$8 sps:$4 sm:$0xff]  }
  0x1c   :  { %942 = vmatprep.subr.bf16.mxu0 %v1362_v27  ;;  %982 = vmatpush1.bf16.msra.mxu1 %v1361_v28  ;;  %v1446_v21 = vld [vmem:[%s2035_s1 + $0x234] ss:$8 sps:$4 sm:$0xff]   ;;  %v1441_v22 = vld [vmem:[%s2035_s1 + $0x340] ss:$8 sps:$4 sm:$0xff]   ;;  %v1444_v24 = vld [vmem:[%s2035_s1 + $0x230] ss:$8 sps:$4 sm:$0xff]  }
  0x1d   :  { %983 = vmatprep.subr.bf16.mxu1 %v1365_v29  ;;  %v1449_v23 = vld [vmem:[%s2035_s1 + $0x334] ss:$8 sps:$4 sm:$0xff]   ;;  %v1452_v25 = vld [vmem:[%s2035_s1 + $0x224] ss:$8 sps:$4 sm:$0xff]   ;;  %v1447_v26 = vld [vmem:[%s2035_s1 + $0x330] ss:$8 sps:$4 sm:$0xff]  }
  0x1e   :  { %v1455_v27 = vld [vmem:[%s2035_s1 + $0x324] ss:$8 sps:$4 sm:$0xff]   ;;  %v1450_v28 = vld [vmem:[%s2035_s1 + $0x220] ss:$8 sps:$4 sm:$0xff]   ;;  %v1458_v29 = vld [vmem:[%s2035_s1 + $0x214] ss:$8 sps:$4 sm:$0xff]  }
  0x1f   :  { %943 = vmatpush1.bf16.msra.mxu0 %v1364_v30  ;;  %v1453_v30 = vld [vmem:[%s2035_s1 + $0x320] ss:$8 sps:$4 sm:$0xff]   ;;  %v1471_v46 = vld [vmem:[%s2035_s1 + $0x3f0] ss:$8 sps:$4 sm:$0xff]  }
  0x20   :  { %944 = vmatprep.subr.bf16.mxu0 %v1368_v31  ;;  %984 = vmatpush1.bf16.msra.mxu1 %v1367_v32  ;;  %v1461_v31 = vld [vmem:[%s2035_s1 + $0x314] ss:$8 sps:$4 sm:$0xff]   ;;  %v1474_v48 = vld [vmem:[%s2035_s1 + $0x2e0] ss:$8 sps:$4 sm:$0xff]   ;;  %v1480_v52 = vld [vmem:[%s2035_s1 + $0x2d0] ss:$8 sps:$4 sm:$0xff]  }
  0x21   :  { %985 = vmatprep.subr.bf16.mxu1 %v1371_v33  ;;  %v1849_v32 = vld [vmem:[%s2036_s0 + $0x10] sm:$0xff]  ;;  %v1477_v50 = vld [vmem:[%s2035_s1 + $0x3e0] ss:$8 sps:$4 sm:$0xff]  }
  0x22   :  { %v1456_v33 = vld [vmem:[%s2035_s1 + $0x210] ss:$8 sps:$4 sm:$0xff]  }
  0x23   :  { %945 = vmatpush2.bf16.msra.mxu0 %v1370_v34  ;;  %v1169_v34 = vcombine.high %v1849_v32, %v1849_v32 }
  0x24   :  { %946 = vmatprep.subr.bf16.mxu0 %v1374_v35  ;;  %986 = vmatpush2.bf16.msra.mxu1 %v1373_v36  ;;  %v1859_v35 = vld [vmem:[%s2036_s0 + $0x18] sm:$0xff]  ;;  %v1464_v36 = vld [vmem:[%s2035_s1 + $0x204] ss:$8 sps:$4 sm:$0xff]  }
  0x25   :  { %987 = vmatprep.subr.bf16.mxu1 %v1377_v37  ;;  %v1171_v37 = vcombine.high %v1859_v35, %v1859_v35 }
  0x27   :  { %947 = vmatpush2.bf16.msra.mxu0 %v1376_v38  ;;  %v1459_v38 = vld [vmem:[%s2035_s1 + $0x310] ss:$8 sps:$4 sm:$0xff]  }
  0x28   :  { %948 = vmatprep.subr.bf16.mxu0 %v1380_v39  ;;  %988 = vmatpush2.bf16.msra.mxu1 %v1379_v40  ;;  %v1467_v39 = vld [vmem:[%s2035_s1 + $0x304] ss:$8 sps:$4 sm:$0xff]   ;;  %v1462_v40 = vld [vmem:[%s2035_s1 + $0x200] ss:$8 sps:$4 sm:$0xff]  }
  0x29   :  { %989 = vmatprep.subr.bf16.mxu1 %v1383_v41  ;;  %v1470_v41 = vld [vmem:[%s2035_s1 + $0x2f4] ss:$8 sps:$4 sm:$0xff]  }
  0x2b   :  { %949 = vmatpush2.bf16.msra.mxu0 %v1382_v42  ;;  %v1465_v42 = vld [vmem:[%s2035_s1 + $0x300] ss:$8 sps:$4 sm:$0xff]  }
  0x2c   :  { %950 = vmatprep.subr.bf16.mxu0 %v1386_v43  ;;  %990 = vmatpush2.bf16.msra.mxu1 %v1385_v44  ;;  %v1473_v43 = vld [vmem:[%s2035_s1 + $0x3f4] ss:$8 sps:$4 sm:$0xff]   ;;  %v1468_v44 = vld [vmem:[%s2035_s1 + $0x2f0] ss:$8 sps:$4 sm:$0xff]  }
  0x2d   :  { %991 = vmatprep.subr.bf16.mxu1 %v1389_v45  ;;  %v1476_v45 = vld [vmem:[%s2035_s1 + $0x2e4] ss:$8 sps:$4 sm:$0xff]  }
  0x2f   :  { %951 = vmatpush2.bf16.msra.mxu0 %v1388_v47  ;;  %v1479_v47 = vld [vmem:[%s2035_s1 + $0x3e4] ss:$8 sps:$4 sm:$0xff]  }
  0x30   :  { %952 = vmatprep.subr.bf16.mxu0 %v1392_v49  ;;  %992 = vmatpush2.bf16.msra.mxu1 %v1391_v51  ;;  %v1482_v49 = vld [vmem:[%s2035_s1 + $0x2d4] ss:$8 sps:$4 sm:$0xff]  }
  0x31   :  { %993 = vmatprep.subr.bf16.mxu1 %v1395_v53  ;;  %v1485_v51 = vld [vmem:[%s2035_s1 + $0x3d4] ss:$8 sps:$4 sm:$0xff]   ;;  %v1488_v53 = vld [vmem:[%s2035_s1 + $0x2c4] ss:$8 sps:$4 sm:$0xff]  }
  0x33   :  { %953 = vmatpush2.bf16.msra.mxu0 %v1394_v54  ;;  %v1483_v54 = vld [vmem:[%s2035_s1 + $0x3d0] ss:$8 sps:$4 sm:$0xff]  }
  0x34   :  { %954 = vmatprep.subr.bf16.mxu0 %v1398_v55  ;;  %994 = vmatpush2.bf16.msra.mxu1 %v1397_v56  ;;  %v1491_v55 = vld [vmem:[%s2035_s1 + $0x3c4] ss:$8 sps:$4 sm:$0xff]   ;;  %v1486_v56 = vld [vmem:[%s2035_s1 + $0x2c0] ss:$8 sps:$4 sm:$0xff]  }
  0x35   :  { %995 = vmatprep.subr.bf16.mxu1 %v1401_v57  ;;  %v1494_v57 = vld [vmem:[%s2035_s1 + $0x2b4] ss:$8 sps:$4 sm:$0xff]  }
  0x37   :  { %955 = vmatpush2.bf16.msra.mxu0 %v1400_v58  ;;  %v1489_v58 = vld [vmem:[%s2035_s1 + $0x3c0] ss:$8 sps:$4 sm:$0xff]  }
  0x38   :  { %956 = vmatprep.subr.bf16.mxu0 %v1404_v59  ;;  %996 = vmatpush2.bf16.msra.mxu1 %v1403_v60  ;;  %v1497_v59 = vld [vmem:[%s2035_s1 + $0x3b4] ss:$8 sps:$4 sm:$0xff]   ;;  %v1492_v60 = vld [vmem:[%s2035_s1 + $0x2b0] ss:$8 sps:$4 sm:$0xff]  }
  0x39   :  { %997 = vmatprep.subr.bf16.mxu1 %v1407_v61  ;;  %v1500_v61 = vld [vmem:[%s2035_s1 + $0x2a4] ss:$8 sps:$4 sm:$0xff]  }
  0x3b   :  { %957 = vmatpush2.bf16.msra.mxu0 %v1406_v62  ;;  %v1495_v62 = vld [vmem:[%s2035_s1 + $0x3b0] ss:$8 sps:$4 sm:$0xff]  }
  0x3c   :  { %958 = vmatprep.subr.bf16.mxu0 %v1410_v63  ;;  %998 = vmatpush2.bf16.msra.mxu1 %v1409_v0  ;;  %v1503_v63 = vld [vmem:[%s2035_s1 + $0x3a4] ss:$8 sps:$4 sm:$0xff]   ;;  %v1498_v0 = vld [vmem:[%s2035_s1 + $0x2a0] ss:$8 sps:$4 sm:$0xff]  }
  0x3d   :  { %999 = vmatprep.subr.bf16.mxu1 %v1413_v1  ;;  %v1506_v1 = vld [vmem:[%s2035_s1 + $0x294] ss:$8 sps:$4 sm:$0xff]  }
  0x3f   :  { %959 = vmatpush2.bf16.msra.mxu0 %v1412_v2  ;;  %v1501_v2 = vld [vmem:[%s2035_s1 + $0x3a0] ss:$8 sps:$4 sm:$0xff]  }
  0x40   :  { %1010 = vmatprep.subr.bf16.mxu0 %v1420_v3  ;;  %1000 = vmatpush2.bf16.msra.mxu1 %v1417_v4  ;;  %v1509_v3 = vld [vmem:[%s2035_s1 + $0x394] ss:$8 sps:$4 sm:$0xff]   ;;  %v1504_v4 = vld [vmem:[%s2035_s1 + $0x290] ss:$8 sps:$4 sm:$0xff]  }
  0x41   :  { %1051 = vmatprep.subr.bf16.mxu1 %v1425_v6  ;;  %v1507_v6 = vld [vmem:[%s2035_s1 + $0x390] ss:$8 sps:$4 sm:$0xff]  }
  0x42   :  { %961 = vmatmul.mubr.bf16.vlgmr.msra.gmra.mxu0 %v1164_v5  ;;  %v1512_v5 = vld [vmem:[%s2035_s1 + $0x284] ss:$8 sps:$4 sm:$0xff]  }
  0x43   :  { %1011 = vmatpush1.bf16.msra.mxu0 %v1418_v7  ;;  %1002 = vmatmul.mubr.bf16.vlgmr.msra.gmra.mxu1 %v1166_v8  ;;  %v1515_v7 = vld [vmem:[%s2035_s1 + $0x384] ss:$8 sps:$4 sm:$0xff]   ;;  %v1510_v8 = vld [vmem:[%s2035_s1 + $0x280] ss:$8 sps:$4 sm:$0xff]  }
  0x44   :  { %1012 = vmatprep.subr.bf16.mxu0 %v1428_v9  ;;  %1052 = vmatpush1.bf16.msra.mxu1 %v1423_v10  ;;  %v1520_v9 = vld [vmem:[%s2035_s1 + $0x474] ss:$8 sps:$4 sm:$0xff]   ;;  %v1513_v10 = vld [vmem:[%s2035_s1 + $0x380] ss:$8 sps:$4 sm:$0xff]  }
  0x45   :  { %1053 = vmatprep.subr.bf16.mxu1 %v1431_v11  ;;  %1042 = vmatprep.mubr.bf16.mxu0 %v1169_v34  ;;  %v1168_v11 = vcombine.low %v1849_v32, %v1849_v32 }
  0x46   :  { %1083 = vmatprep.mubr.bf16.mxu1 %v1171_v37 }
  0x47   :  { %1013 = vmatpush1.bf16.msra.mxu0 %v1426_v12  ;;  %v1518_v12 = vld [vmem:[%s2035_s1 + $0x470] ss:$8 sps:$4 sm:$0xff]  }
  0x48   :  { %1014 = vmatprep.subr.bf16.mxu0 %v1434_v13  ;;  %1054 = vmatpush1.bf16.msra.mxu1 %v1429_v14  ;;  %v1170_v13 = vcombine.low %v1859_v35, %v1859_v35  ;;  %v1525_v14 = vld [vmem:[%s2035_s1 + $0x464] ss:$8 sps:$4 sm:$0xff]  }
  0x49   :  { %1055 = vmatprep.subr.bf16.mxu1 %v1437_v15  ;;  %v1523_v15 = vld [vmem:[%s2035_s1 + $0x460] ss:$8 sps:$4 sm:$0xff]  }
  0x4b   :  { %1015 = vmatpush1.bf16.msra.mxu0 %v1432_v16  ;;  %v1549_v16 = vmov 0  }
  0x4c   :  { %1016 = vmatprep.subr.bf16.mxu0 %v1440_v17  ;;  %1056 = vmatpush1.bf16.msra.mxu1 %v1435_v18  ;;  %v1528_v17 = vld [vmem:[%s2035_s1 + $0x454] ss:$8 sps:$4 sm:$0xff]   ;;  %v1526_v18 = vld [vmem:[%s2035_s1 + $0x450] ss:$8 sps:$4 sm:$0xff]  }
  0x4d   :  { %1057 = vmatprep.subr.bf16.mxu1 %v1443_v19  ;;  %v1531_v19 = vld [vmem:[%s2035_s1 + $0x444] ss:$8 sps:$4 sm:$0xff]  }
  0x4f   :  { %1017 = vmatpush1.bf16.msra.mxu0 %v1438_v20  ;;  %v1529_v20 = vld [vmem:[%s2035_s1 + $0x440] ss:$8 sps:$4 sm:$0xff]  }
  0x50   :  { %1018 = vmatprep.subr.bf16.mxu0 %v1446_v21  ;;  %1058 = vmatpush1.bf16.msra.mxu1 %v1441_v22  ;;  %v1534_v21 = vld [vmem:[%s2035_s1 + $0x434] ss:$8 sps:$4 sm:$0xff]   ;;  %v1532_v22 = vld [vmem:[%s2035_s1 + $0x430] ss:$8 sps:$4 sm:$0xff]  }
  0x51   :  { %1059 = vmatprep.subr.bf16.mxu1 %v1449_v23  ;;  %v1537_v23 = vld [vmem:[%s2035_s1 + $0x424] ss:$8 sps:$4 sm:$0xff]  }
  0x53   :  { %1019 = vmatpush1.bf16.msra.mxu0 %v1444_v24  ;;  %v1535_v24 = vld [vmem:[%s2035_s1 + $0x420] ss:$8 sps:$4 sm:$0xff]  }
  0x54   :  { %1020 = vmatprep.subr.bf16.mxu0 %v1452_v25  ;;  %1060 = vmatpush1.bf16.msra.mxu1 %v1447_v26  ;;  %v1540_v25 = vld [vmem:[%s2035_s1 + $0x414] ss:$8 sps:$4 sm:$0xff]   ;;  %v1538_v26 = vld [vmem:[%s2035_s1 + $0x410] ss:$8 sps:$4 sm:$0xff]  }
  0x55   :  { %1061 = vmatprep.subr.bf16.mxu1 %v1455_v27  ;;  %v1543_v27 = vld [vmem:[%s2035_s1 + $0x404] ss:$8 sps:$4 sm:$0xff]  }
  0x57   :  { %1021 = vmatpush1.bf16.msra.mxu0 %v1450_v28  ;;  %v1541_v28 = vld [vmem:[%s2035_s1 + $0x400] ss:$8 sps:$4 sm:$0xff]  }
  0x58   :  { %1022 = vmatprep.subr.bf16.mxu0 %v1458_v29  ;;  %1062 = vmatpush1.bf16.msra.mxu1 %v1453_v30  ;;  %v1544_v29 = vld [vmem:[%s2036_s0 + $0x20] ss:$0 sps:$4 sm:$0xff]   ;;  %v166_v30 = vlaneseq }
  0x59   :  { %1063 = vmatprep.subr.bf16.mxu1 %v1461_v31 }
  0x5a   :  { %v167_v31 = vshrl.u32 %v166_v30, 7 }
  0x5b   :  { %1023 = vmatpush1.bf16.msra.mxu0 %v1456_v33  ;;  %v164_v33 = vld [vmem:[%s2037_s2] sm:$0x3] }
  0x5c   :  { %1024 = vmatprep.subr.bf16.mxu0 %v1464_v36  ;;  %1064 = vmatpush1.bf16.msra.mxu1 %v1459_v38  ;;  %v168_v32 = vsub.s32 0, %v167_v31  ;;  %v172_v34 = vsub.s32 1, %v167_v31 }
  0x5d   :  { %1065 = vmatprep.subr.bf16.mxu1 %v1467_v39 }
  0x5e   :  { %v169_v35 = vrot.slane %v164_v33, %v168_v32  ;;  %v173_v36 = vrot.slane %v164_v33, %v172_v34 }
  0x5f   :  { %1025 = vmatpush1.bf16.msra.mxu0 %v1462_v40 }
  0x60   :  { %1026 = vmatprep.subr.bf16.mxu0 %v1470_v41  ;;  %1066 = vmatpush1.bf16.msra.mxu1 %v1465_v42 }
  0x61   :  { %1067 = vmatprep.subr.bf16.mxu1 %v1473_v43 }
  0x63   :  { %1027 = vmatpush2.bf16.msra.mxu0 %v1468_v44 }
  0x64   :  { %1028 = vmatprep.subr.bf16.mxu0 %v1476_v45  ;;  %1068 = vmatpush2.bf16.msra.mxu1 %v1471_v46 }
  0x65   :  { %1069 = vmatprep.subr.bf16.mxu1 %v1479_v47 }
  0x67   :  { %1029 = vmatpush2.bf16.msra.mxu0 %v1474_v48 }
  0x68   :  { %1030 = vmatprep.subr.bf16.mxu0 %v1482_v49  ;;  %1070 = vmatpush2.bf16.msra.mxu1 %v1477_v50 }
  0x69   :  { %1071 = vmatprep.subr.bf16.mxu1 %v1485_v51 }
  0x6b   :  { %1031 = vmatpush2.bf16.msra.mxu0 %v1480_v52 }
  0x6c   :  { %1032 = vmatprep.subr.bf16.mxu0 %v1488_v53  ;;  %1072 = vmatpush2.bf16.msra.mxu1 %v1483_v54 }
  0x6d   :  { %1073 = vmatprep.subr.bf16.mxu1 %v1491_v55 }
  0x6f   :  { %1033 = vmatpush2.bf16.msra.mxu0 %v1486_v56 }
  0x70   :  { %1034 = vmatprep.subr.bf16.mxu0 %v1494_v57  ;;  %1074 = vmatpush2.bf16.msra.mxu1 %v1489_v58 }
  0x71   :  { %1075 = vmatprep.subr.bf16.mxu1 %v1497_v59 }
  0x73   :  { %1035 = vmatpush2.bf16.msra.mxu0 %v1492_v60 }
  0x74   :  { %1036 = vmatprep.subr.bf16.mxu0 %v1500_v61  ;;  %1076 = vmatpush2.bf16.msra.mxu1 %v1495_v62 }
  0x75   :  { %1077 = vmatprep.subr.bf16.mxu1 %v1503_v63 }
  0x77   :  { %1037 = vmatpush2.bf16.msra.mxu0 %v1498_v0 }
  0x78   :  { %1038 = vmatprep.subr.bf16.mxu0 %v1506_v1  ;;  %1078 = vmatpush2.bf16.msra.mxu1 %v1501_v2 }
  0x79   :  { %1079 = vmatprep.subr.bf16.mxu1 %v1509_v3 }
  0x7b   :  { %1039 = vmatpush2.bf16.msra.mxu0 %v1504_v4 }
  0x7c   :  { %1040 = vmatprep.subr.bf16.mxu0 %v1512_v5  ;;  %1080 = vmatpush2.bf16.msra.mxu1 %v1507_v6 }
  0x7d   :  { %1081 = vmatprep.subr.bf16.mxu1 %v1515_v7 }
  0x7f   :  { %1041 = vmatpush2.bf16.msra.mxu0 %v1510_v8 }
  0x80   :  { %1092 = vmatprep.subr.bf16.mxu0 %v1520_v9  ;;  %1082 = vmatpush2.bf16.msra.mxu1 %v1513_v10 }
  0x82   :  { %1043 = vmatmul.mubr.bf16.vlgmr.msra.gmra.mxu0 %v1168_v11 }
  0x83   :  { %1093 = vmatpush1.bf16.msra.mxu0 %v1518_v12  ;;  %1124 = vmatprep.mubr.bf16.mxu0 %v1549_v16 }
  0x84   :  { %1084 = vmatmul.mubr.bf16.vlgmr.msra.gmra.mxu1 %v1170_v13  ;;  %1094 = vmatprep.subr.bf16.mxu0 %v1525_v14 }
  0x87   :  { %1095 = vmatpush1.bf16.msra.mxu0 %v1523_v15 }
  0x88   :  { %1096 = vmatprep.subr.bf16.mxu0 %v1528_v17 }
  0x8b   :  { %1097 = vmatpush1.bf16.msra.mxu0 %v1526_v18 }
  0x8c   :  { %1098 = vmatprep.subr.bf16.mxu0 %v1531_v19 }
  0x8f   :  { %1099 = vmatpush1.bf16.msra.mxu0 %v1529_v20 }
  0x90   :  { %1100 = vmatprep.subr.bf16.mxu0 %v1534_v21 }
  0x93   :  { %1101 = vmatpush1.bf16.msra.mxu0 %v1532_v22 }
  0x94   :  { %1102 = vmatprep.subr.bf16.mxu0 %v1537_v23 }
  0x97   :  { %1103 = vmatpush1.bf16.msra.mxu0 %v1535_v24 }
  0x98   :  { %1104 = vmatprep.subr.bf16.mxu0 %v1540_v25 }
  0x9b   :  { %1105 = vmatpush1.bf16.msra.mxu0 %v1538_v26 }
  0x9c   :  { %1106 = vmatprep.subr.bf16.mxu0 %v1543_v27 }
  0x9f   :  { %1107 = vmatpush1.bf16.msra.mxu0 %v1541_v28 }
  0xa2   :  { %1125 = vmatmul.mubr.bf16.vlgmr.msra.gmra.mxu0 %v1544_v29 }
 0x102   :  { %v962_v37 = vpop.f32.mrf.mxu0 }
 0x103   :  { %v963_v38 = vadd.f32 %v962_v37, %v169_v35  ;;  %v1003_v40 = vpop.f32.mrf.mxu1 }
 0x104   :  { %v964_v39 = vpop.f32.mrf.mxu0 }
 0x105   :  { %v965_v41 = vadd.f32 %v964_v39, %v173_v36  ;;  %v1004_v42 = vadd.f32 %v1003_v40, %v963_v38  ;;  %v1005_v44 = vpop.f32.mrf.mxu1 }
 0x106   :  { %v966_v43 = vpop.f32.mrf.mxu0 }
 0x107   :  { %v1006_v45 = vadd.f32 %v1005_v44, %v965_v41  ;;  %v1007_v47 = vpop.f32.mrf.mxu1 }
 0x108   :  { %v967_v46 = vpop.f32.mrf.mxu0 }
 0x109   :  { %v1008_v48 = vpop.f32.mrf.mxu1 }
 0x142   :  { %v1044_v49 = vpop.f32.mrf.mxu0 }
 0x143   :  { %v1045_v57 = vadd.f32 %v1044_v49, %v1004_v42 }
 0x144   :  { %v1046_v50 = vpop.f32.mrf.mxu0  ;;  %v1085_v51 = vpop.f32.mrf.mxu1 }
 0x145   :  { %v1047_v58 = vadd.f32 %v1046_v50, %v1006_v45  ;;  %v1086_v59 = vadd.f32 %v1085_v51, %v1045_v57 }
 0x146   :  { %v1048_v52 = vpop.f32.mrf.mxu0  ;;  %v1087_v53 = vpop.f32.mrf.mxu1 }
 0x147   :  { %v1088_v61 = vadd.f32 %v1087_v53, %v1047_v58 }
 0x148   :  { %v1049_v54 = vpop.f32.mrf.mxu0  ;;  %v1089_v55 = vpop.f32.mrf.mxu1 }
 0x14a   :  { %v1090_v56 = vpop.f32.mrf.mxu1 }
 0x162   :  { %v1126_v60 = vpop.f32.mrf.mxu0 }
 0x163   :  { %v1127_v62 = vadd.f32 %v1126_v60, %v1086_v59 }
 0x164   :  { %v1128_v63 = vpop.f32.mrf.mxu0 }
 0x165   :  { %v1135_v0 = vmul.f32 0.044715, %v1127_v62  ;;  %v1129_v1 = vadd.f32 %v1128_v63, %v1088_v61  ;;  %v1133_v16 = vmul.f32 0.5, %v1127_v62 }
 0x166   :  { %v1130_v2 = vpop.f32.mrf.mxu0 }
 0x167   :  { %v1137_v3 = vmul.f32 %v1135_v0, %v1127_v62  ;;  %v1136_v4 = vmul.f32 0.044715, %v1129_v1  ;;  %v1134_v17 = vmul.f32 0.5, %v1129_v1 }
 0x168   :  { %v1131_v5 = vpop.f32.mrf.mxu0 }
 0x169   :  { %v1139_v6 = vmul.f32 %v1137_v3, %v1127_v62  ;;  %v1138_v7 = vmul.f32 %v1136_v4, %v1129_v1 }
 0x16b   :  { %v1141_v8 = vadd.f32 %v1139_v6, %v1127_v62  ;;  %v1140_v9 = vmul.f32 %v1138_v7, %v1129_v1 }
 0x16d   :  { %v1143_v10 = vmul.f32 0.7978846, %v1141_v8  ;;  %v1142_v11 = vadd.f32 %v1140_v9, %v1129_v1 }
 0x16f   :  { %1545 = vtanh.f32 %v1143_v10  ;;  %v1144_v12 = vmul.f32 0.7978846, %v1142_v11 }
 0x171   :  { %1547 = vtanh.f32 %v1144_v12 }
 0x17c   :  { %v1546_v13 = vpop.eup %1545 }
 0x17d   :  { %v1147_v14 = vadd.f32 1.0, %v1546_v13 }
 0x17e   :  { %v1548_v15 = vpop.eup %1547 }
 0x17f   :  { %v1148_v18 = vadd.f32 1.0, %v1548_v15  ;;  %v1149_v19 = vmul.f32 %v1147_v14, %v1133_v16 }
 0x181   :  { %v1150_v20 = vmul.f32 %v1148_v18, %v1134_v17 }
 0x183   :  { %v1318_v21 = vpack.c.bf16 %v1150_v20, %v1149_v19 }
 0x185   :  { %1159 = vst [vmem:[%s2038_s3] sm:$0xff] %v1318_v21 }

// kernel: ae_conv_forward.14
= control target key start
LH: loop header
LB: loop body
LE: loop exit
PB: predicated region body
PF: predicated region fallthrough
CT: control target
= control target key end

     0   :  { %v1438_v22 = vmov 1966171168   ;;  %v162_v24 = vlaneseq  ;;  %vm857_vm0 = vcmask 1040384   ;;  %vm853_vm1 = vcmask 15360   ;;  %s1763_s1 = inlined_call_operand.vmem [shape: bf16[1024,2], index: 1, kind: input, shape index: {}]   ;;  %s1764_s0 = inlined_call_operand.vmem [shape: bf16[2,1024], index: 0, kind: input, shape index: {}]   ;;  %s1765_s3 = inlined_call_operand.vmem [shape: bf16[2,1024], index: 3, kind: input, shape index: {}]   ;;  %s1766_s2 = inlined_call_operand.vmem [shape: f32[1,2], index: 2, kind: input, shape index: {}]   ;;  %s1767_s4 = inlined_call_operand.vmem [shape: f32[1,1024], index: 4, kind: input, shape index: {}]   ;;  %s1768_s5 = inlined_call_operand.vmem [shape: bf16[2,1024], index: 5, kind: output, shape index: {}]  }
   0x1   :  { %v1356_v0 = vld [vmem:[%s1763_s1 + $0x78] sm:$0xff]   ;;  %v1360_v4 = vld [vmem:[%s1763_s1 + $0x70] sm:$0xff]   ;;  %v1364_v8 = vld [vmem:[%s1763_s1 + $0x68] sm:$0xff]   ;;  %v160_v23 = vunpack.c.l.s4 %v1438_v22 }
   0x2   :  { %v1357_v1 = vld [vmem:[%s1763_s1 + $0xf8] sm:$0xff]   ;;  %1266 = vmatprep.subr.bf16.mxu0 %v1356_v0  ;;  %v1361_v5 = vld [vmem:[%s1763_s1 + $0xf0] sm:$0xff]   ;;  %v1365_v9 = vld [vmem:[%s1763_s1 + $0xe8] sm:$0xff]   ;;  %v1548_v30 = vshrl.u32 %v162_v24, 7 }
   0x3   :  { %v1358_v2 = vld [vmem:[%s1763_s1 + $0x38] sm:$0xff]   ;;  %1288 = vmatprep.subr.bf16.mxu1 %v1357_v1  ;;  %v1362_v6 = vld [vmem:[%s1763_s1 + $0x30] sm:$0xff]   ;;  %v1366_v10 = vld [vmem:[%s1763_s1 + $0x28] sm:$0xff]   ;;  %v161_v29 = vunpack.c.0.s8 %v160_v23 }
   0x4   :  { %v1359_v3 = vld [vmem:[%s1763_s1 + $0xb8] sm:$0xff]   ;;  %1267 = vmatpush3.bf16.msra.mxu0 %v1358_v2  ;;  %v1363_v7 = vld [vmem:[%s1763_s1 + $0xb0] sm:$0xff]   ;;  %v1367_v11 = vld [vmem:[%s1763_s1 + $0xa8] sm:$0xff]  }
   0x5   :  { %1289 = vmatpush3.bf16.msra.mxu1 %v1359_v3  ;;  %1268 = vmatprep.subr.bf16.mxu0 %v1360_v4  ;;  %v1368_v12 = vld [vmem:[%s1763_s1 + $0x60] sm:$0xff]   ;;  %v1372_v16 = vld [vmem:[%s1763_s1 + $0x58] sm:$0xff]   ;;  %v1376_v20 = vld [vmem:[%s1763_s1 + $0x50] sm:$0xff]   ;;  %v1563_v35 = vsub.s32 %v161_v29, %v1548_v30 }
   0x6   :  { %1290 = vmatprep.subr.bf16.mxu1 %v1361_v5  ;;  %v1369_v13 = vld [vmem:[%s1763_s1 + $0xe0] sm:$0xff]   ;;  %v1373_v17 = vld [vmem:[%s1763_s1 + $0xd8] sm:$0xff]   ;;  %v1377_v21 = vld [vmem:[%s1763_s1 + $0xd0] sm:$0xff]  }
   0x7   :  { %v1370_v14 = vld [vmem:[%s1763_s1 + $0x20] sm:$0xff]   ;;  %v1374_v18 = vld [vmem:[%s1763_s1 + $0x18] sm:$0xff]   ;;  %v1378_v25 = vld [vmem:[%s1763_s1 + $0x10] sm:$0xff]  }
   0x8   :  { %1269 = vmatpush3.bf16.msra.mxu0 %v1362_v6  ;;  %v1371_v15 = vld [vmem:[%s1763_s1 + $0xa0] sm:$0xff]   ;;  %v1375_v19 = vld [vmem:[%s1763_s1 + $0x98] sm:$0xff]   ;;  %v1379_v26 = vld [vmem:[%s1763_s1 + $0x90] sm:$0xff]  }
   0x9   :  { %1291 = vmatpush3.bf16.msra.mxu1 %v1363_v7  ;;  %1270 = vmatprep.subr.bf16.mxu0 %v1364_v8  ;;  %v1380_v27 = vld [vmem:[%s1763_s1 + $0x48] sm:$0xff]   ;;  %v1384_v33 = vld [vmem:[%s1763_s1 + $0x40] sm:$0xff]   ;;  %v1389_v41 = vld [vmem:[%s1763_s1 + $0x178] sm:$0xff]  }
   0xa   :  { %1292 = vmatprep.subr.bf16.mxu1 %v1365_v9  ;;  %v1381_v28 = vld [vmem:[%s1763_s1 + $0xc8] sm:$0xff]   ;;  %v1385_v34 = vld [vmem:[%s1763_s1 + $0xc0] sm:$0xff]   ;;  %v1390_v42 = vld [vmem:[%s1763_s1 + $0x1f8] sm:$0xff]  }
   0xb   :  { %v1382_v31 = vld [vmem:[%s1763_s1 + $0x8] sm:$0xff]   ;;  %v1386_v36 = vld [vmem:[%s1763_s1] sm:$0xff]   ;;  %v1391_v47 = vld [vmem:[%s1763_s1 + $0x138] sm:$0xff]  }
   0xc   :  { %1271 = vmatpush3.bf16.msra.mxu0 %v1366_v10  ;;  %v1383_v32 = vld [vmem:[%s1763_s1 + $0x88] sm:$0xff]   ;;  %v1387_v37 = vld [vmem:[%s1763_s1 + $0x80] sm:$0xff]   ;;  %v1393_v50 = vld [vmem:[%s1763_s1 + $0x170] sm:$0xff]  }
   0xd   :  { %1293 = vmatpush3.bf16.msra.mxu1 %v1367_v11  ;;  %1272 = vmatprep.subr.bf16.mxu0 %v1368_v12  ;;  %v21_v38 = vld [vmem:[%s1764_s0] sm:$0xff]  ;;  %v1392_v52 = vld [vmem:[%s1763_s1 + $0x1b8] sm:$0xff]   ;;  %v1394_v54 = vld [vmem:[%s1763_s1 + $0x1f0] sm:$0xff]  }
   0xe   :  { %1294 = vmatprep.subr.bf16.mxu1 %v1369_v13  ;;  %v158_v39 = vcombine.high %v21_v38, %v21_v38  ;;  %v165_v40 = vrot.slane %v21_v38, %v1563_v35  ;;  %v1395_v55 = vld [vmem:[%s1763_s1 + $0x130] sm:$0xff]   ;;  %v1397_v57 = vld [vmem:[%s1763_s1 + $0x168] sm:$0xff]   ;;  %v1401_v61 = vld [vmem:[%s1763_s1 + $0x160] sm:$0xff]  }
   0xf   :  { %v1396_v58 = vld [vmem:[%s1763_s1 + $0x1b0] sm:$0xff]   ;;  %v1398_v59 = vld [vmem:[%s1763_s1 + $0x1e8] sm:$0xff]   ;;  %v1402_v63 = vld [vmem:[%s1763_s1 + $0x1e0] sm:$0xff]  }
  0x10   :  { %1273 = vmatpush3.bf16.msra.mxu0 %v1370_v14  ;;  %v173_v43 = vcombine.high %v165_v40, %v165_v40  ;;  %v181_v44 = vrot.slane %v165_v40, %v1563_v35  ;;  %v1583_v45 = vrot.slane %v158_v39, %v1563_v35  ;;  %v1399_v60 = vld [vmem:[%s1763_s1 + $0x128] sm:$0xff]   ;;  %v1403_v0 = vld [vmem:[%s1763_s1 + $0x120] sm:$0xff]   ;;  %v1405_v1 = vld [vmem:[%s1763_s1 + $0x158] sm:$0xff]  }
  0x11   :  { %1295 = vmatpush3.bf16.msra.mxu1 %v1371_v15  ;;  %1274 = vmatprep.subr.bf16.mxu0 %v1372_v16  ;;  %v1400_v62 = vld [vmem:[%s1763_s1 + $0x1a8] sm:$0xff]   ;;  %v1404_v2 = vld [vmem:[%s1763_s1 + $0x1a0] sm:$0xff]   ;;  %v1406_v3 = vld [vmem:[%s1763_s1 + $0x1d8] sm:$0xff]  }
  0x12   :  { %1296 = vmatprep.subr.bf16.mxu1 %v1373_v17  ;;  %v195_v46 = vrot.slane %v173_v43, %v1563_v35  ;;  %v174_v48 = vcombine.high %v1583_v45, %v1583_v45  ;;  %v203_v49 = vcombine.high %v181_v44, %v181_v44  ;;  %v1407_v4 = vld [vmem:[%s1763_s1 + $0x118] sm:$0xff]   ;;  %v1409_v5 = vld [vmem:[%s1763_s1 + $0x150] sm:$0xff]   ;;  %v1413_v9 = vld [vmem:[%s1763_s1 + $0x148] sm:$0xff]   ;;  %v188_v17 = vrot.slane %v1583_v45, %v1563_v35 }
  0x13   :  { %v1408_v6 = vld [vmem:[%s1763_s1 + $0x198] sm:$0xff]   ;;  %v1410_v7 = vld [vmem:[%s1763_s1 + $0x1d0] sm:$0xff]   ;;  %v1414_v11 = vld [vmem:[%s1763_s1 + $0x1c8] sm:$0xff]  }
  0x14   :  { %1275 = vmatpush3.bf16.msra.mxu0 %v1374_v18  ;;  %631 = vmatprep.mubr.bf16.mxu0 %v195_v46  ;;  %v205_v51 = vcombine.high %v195_v46, %v195_v46  ;;  %v202_v53 = vrot.slane %v174_v48, %v1563_v35  ;;  %v1411_v8 = vld [vmem:[%s1763_s1 + $0x110] sm:$0xff]   ;;  %v1415_v12 = vld [vmem:[%s1763_s1 + $0x108] sm:$0xff]   ;;  %v1417_v13 = vld [vmem:[%s1763_s1 + $0x140] sm:$0xff]  }
  0x15   :  { %1297 = vmatpush3.bf16.msra.mxu1 %v1375_v19  ;;  %1276 = vmatprep.subr.bf16.mxu0 %v1376_v20  ;;  %v1412_v10 = vld [vmem:[%s1763_s1 + $0x190] sm:$0xff]   ;;  %v1416_v14 = vld [vmem:[%s1763_s1 + $0x188] sm:$0xff]   ;;  %v1418_v15 = vld [vmem:[%s1763_s1 + $0x1c0] sm:$0xff]   ;;  %v204_v19 = vcombine.high %v188_v17, %v188_v17 }
  0x16   :  { %1298 = vmatprep.subr.bf16.mxu1 %v1377_v21  ;;  %671 = vmatprep.mubr.bf16.mxu1 %v205_v51  ;;  %v206_v56 = vcombine.high %v202_v53, %v202_v53  ;;  %v1419_v16 = vld [vmem:[%s1763_s1 + $0x100] sm:$0xff]  }
  0x17   :  { %v1420_v18 = vld [vmem:[%s1763_s1 + $0x180] sm:$0xff]  }
  0x18   :  { %1277 = vmatpush3.bf16.msra.mxu0 %v1378_v25  ;;  %v760_v20 = vld [vmem:[%s1765_s3] sm:$0xff] }
  0x19   :  { %1299 = vmatpush3.bf16.msra.mxu1 %v1379_v26  ;;  %1278 = vmatprep.subr.bf16.mxu0 %v1380_v27  ;;  %v811_v21 = vrot.slane %v760_v20, %v1563_v35  ;;  %v804_v27 = vcombine.high %v760_v20, %v760_v20 }
  0x1a   :  { %1300 = vmatprep.subr.bf16.mxu1 %v1381_v28 }
  0x1b   :  { %v819_v22 = vcombine.high %v811_v21, %v811_v21  ;;  %v827_v24 = vrot.slane %v811_v21, %v1563_v35 }
  0x1c   :  { %1279 = vmatpush3.bf16.msra.mxu0 %v1382_v31  ;;  %v818_v31 = vrot.slane %v804_v27, %v1563_v35  ;;  %v793_v27 = vsub.s32 7, %v1548_v30 }
  0x1d   :  { %1301 = vmatpush3.bf16.msra.mxu1 %v1383_v32  ;;  %1280 = vmatprep.subr.bf16.mxu0 %v1384_v33  ;;  %v841_v23 = vrot.slane %v819_v22, %v1563_v35  ;;  %v849_v26 = vcombine.high %v827_v24, %v827_v24  ;;  %v859_v28 = vsel %vm857_vm0, %v827_v24, 0  ;;  %v1439_v32 = vmov 0  }
  0x1e   :  { %1302 = vmatprep.subr.bf16.mxu1 %v1385_v34  ;;  %v820_v33 = vcombine.high %v818_v31, %v818_v31  ;;  %v834_v34 = vrot.slane %v818_v31, %v1563_v35 }
  0x1f   :  { %v851_v25 = vcombine.high %v841_v23, %v841_v23  ;;  %v865_v29 = vsel %vm857_vm0, %v849_v26, 0  ;;  %v785_v26 = vsub.s32 5, %v1548_v30 }
  0x20   :  { %1281 = vmatpush3.bf16.msra.mxu0 %v1386_v36  ;;  %v848_v36 = vrot.slane %v820_v33, %v1563_v35  ;;  %v850_v38 = vcombine.high %v834_v34, %v834_v34 }
  0x21   :  { %1303 = vmatpush3.bf16.msra.mxu1 %v1387_v37  ;;  %1310 = vmatprep.subr.bf16.mxu0 %v1389_v41  ;;  %v871_v37 = vsel %vm857_vm0, %v834_v34, 0 }
  0x22   :  { %1332 = vmatprep.subr.bf16.mxu1 %v1390_v42  ;;  %v852_v39 = vcombine.high %v848_v36, %v848_v36  ;;  %v877_v40 = vsel %vm857_vm0, %v850_v38, 0 }
  0x23   :  { %632 = vmatmul.mubr.bf16.vlgmr.msra.gmra.mxu0 %v181_v44 }
  0x24   :  { %1311 = vmatpush3.bf16.msra.mxu0 %v1391_v47  ;;  %672 = vmatmul.mubr.bf16.vlgmr.msra.gmra.mxu1 %v203_v49 }
  0x25   :  { %1312 = vmatprep.subr.bf16.mxu0 %v1393_v50  ;;  %1333 = vmatpush3.bf16.msra.mxu1 %v1392_v52  ;;  %v1189_v50 = vld [vmem:[%s1766_s2] ss:$0 sm:$0xff] }
  0x26   :  { %711 = vmatprep.mubr.bf16.mxu0 %v202_v53  ;;  %1334 = vmatprep.subr.bf16.mxu1 %v1394_v54 }
  0x27   :  { %751 = vmatprep.mubr.bf16.mxu1 %v206_v56 }
  0x28   :  { %1313 = vmatpush3.bf16.msra.mxu0 %v1395_v55 }
  0x29   :  { %1314 = vmatprep.subr.bf16.mxu0 %v1397_v57  ;;  %1335 = vmatpush3.bf16.msra.mxu1 %v1396_v58 }
  0x2a   :  { %1336 = vmatprep.subr.bf16.mxu1 %v1398_v59 }
  0x2c   :  { %1315 = vmatpush3.bf16.msra.mxu0 %v1399_v60 }
  0x2d   :  { %1316 = vmatprep.subr.bf16.mxu0 %v1401_v61  ;;  %1337 = vmatpush3.bf16.msra.mxu1 %v1400_v62 }
  0x2e   :  { %1338 = vmatprep.subr.bf16.mxu1 %v1402_v63 }
  0x30   :  { %1317 = vmatpush3.bf16.msra.mxu0 %v1403_v0 }
  0x31   :  { %1318 = vmatprep.subr.bf16.mxu0 %v1405_v1  ;;  %1339 = vmatpush3.bf16.msra.mxu1 %v1404_v2 }
  0x32   :  { %1340 = vmatprep.subr.bf16.mxu1 %v1406_v3  ;;  %v765_v3 = vsub.s32 0, %v1548_v30 }
  0x34   :  { %1319 = vmatpush3.bf16.msra.mxu0 %v1407_v4  ;;  %v773_v4 = vsub.s32 2, %v1548_v30 }
  0x35   :  { %1320 = vmatprep.subr.bf16.mxu0 %v1409_v5  ;;  %1341 = vmatpush3.bf16.msra.mxu1 %v1408_v6  ;;  %v761_v5 = vld [vmem:[%s1767_s4] sm:$0xff]  ;;  %v769_v6 = vsub.s32 1, %v1548_v30 }
  0x36   :  { %1342 = vmatprep.subr.bf16.mxu1 %v1410_v7  ;;  %v777_v7 = vsub.s32 3, %v1548_v30 }
  0x38   :  { %1321 = vmatpush3.bf16.msra.mxu0 %v1411_v8  ;;  %v766_v8 = vrot.slane %v761_v5, %v765_v3 }
  0x39   :  { %1322 = vmatprep.subr.bf16.mxu0 %v1413_v9  ;;  %1343 = vmatpush3.bf16.msra.mxu1 %v1412_v10  ;;  %v774_v9 = vrot.slane %v761_v5, %v773_v4 }
  0x3a   :  { %1344 = vmatprep.subr.bf16.mxu1 %v1414_v11 }
  0x3c   :  { %1323 = vmatpush3.bf16.msra.mxu0 %v1415_v12  ;;  %v770_v12 = vrot.slane %v761_v5, %v769_v6 }
  0x3d   :  { %1324 = vmatprep.subr.bf16.mxu0 %v1417_v13  ;;  %1345 = vmatpush3.bf16.msra.mxu1 %v1416_v14  ;;  %v778_v13 = vrot.slane %v761_v5, %v777_v7 }
  0x3e   :  { %1346 = vmatprep.subr.bf16.mxu1 %v1418_v15 }
  0x40   :  { %1325 = vmatpush3.bf16.msra.mxu0 %v1419_v16  ;;  %v781_v16 = vsub.s32 4, %v1548_v30 }
  0x41   :  { %1347 = vmatpush3.bf16.msra.mxu1 %v1420_v18  ;;  %1254 = vmatprep.subr.msk.bf16.mxu0 %vm857_vm0, %v841_v23 }
  0x42   :  { %1256 = vmatprep.subr.msk.bf16.mxu1 %vm857_vm0, %v851_v25  ;;  %v782_v31 = vrot.slane %v761_v5, %v781_v16 }
  0x43   :  { %712 = vmatmul.mubr.bf16.vlgmr.msra.gmra.mxu0 %v188_v17  ;;  %v789_v17 = vsub.s32 6, %v1548_v30 }
  0x44   :  { %752 = vmatmul.mubr.bf16.vlgmr.msra.gmra.mxu1 %v204_v19  ;;  %897 = vmatpush1.bf16.msra.mxu0 %v859_v28 }
  0x45   :  { %938 = vmatpush1.bf16.msra.mxu1 %v865_v29  ;;  %914 = vmatprep.mubr.bf16.mxu0 %v1439_v32 }
  0x46   :  { %955 = vmatprep.mubr.bf16.mxu1 %v1439_v32  ;;  %1258 = vmatprep.subr.msk.bf16.mxu0 %vm857_vm0, %v848_v36 }
  0x47   :  { %1260 = vmatprep.subr.msk.bf16.mxu1 %vm857_vm0, %v852_v39 }
  0xe3   :  { %v1282_v41 = vpop.f32.mrf.mxu0 }
  0xe4   :  { %v1304_v42 = vpop.f32.mrf.mxu1 }
  0xe5   :  { %v1283_v43 = vpop.f32.mrf.mxu0 }
  0xe6   :  { %v1305_v44 = vpop.f32.mrf.mxu1  ;;  %v1284_v49 = vadd.f32 %v1283_v43, %v1282_v41  ;;  %v786_v43 = vrot.slane %v761_v5, %v785_v26 }
  0xe7   :  { %v1285_v45 = vpop.f32.mrf.mxu0  ;;  %v1306_v52 = vadd.f32 %v1305_v44, %v1304_v42  ;;  %v794_v44 = vrot.slane %v761_v5, %v793_v27 }
  0xe8   :  { %v1307_v46 = vpop.f32.mrf.mxu1  ;;  %v634_v51 = vadd.f32 %v1284_v49, %v1189_v50 }
  0xe9   :  { %v1286_v47 = vpop.f32.mrf.mxu0 }
  0xea   :  { %v1308_v48 = vpop.f32.mrf.mxu1  ;;  %v674_v56 = vadd.f32 %v1306_v52, %v634_v51 }
 0x103   :  { %v1326_v53 = vpop.f32.mrf.mxu0 }
 0x104   :  { %v1348_v54 = vpop.f32.mrf.mxu1 }
 0x105   :  { %v1327_v55 = vpop.f32.mrf.mxu0 }
 0x106   :  { %v1328_v57 = vadd.f32 %v1327_v55, %v1326_v53  ;;  %v1349_v58 = vpop.f32.mrf.mxu1 }
 0x107   :  { %v1329_v59 = vpop.f32.mrf.mxu0  ;;  %v1350_v61 = vadd.f32 %v1349_v58, %v1348_v54 }
 0x108   :  { %v714_v60 = vadd.f32 %v1328_v57, %v674_v56  ;;  %v1351_v62 = vpop.f32.mrf.mxu1 }
 0x109   :  { %v1330_v63 = vpop.f32.mrf.mxu0 }
 0x10a   :  { %v754_v0 = vadd.f32 %v1350_v61, %v714_v60  ;;  %v1352_v1 = vpop.f32.mrf.mxu1 }
 0x10c   :  { %v759_v2 = vpack.c.bf16 %v754_v0, %v754_v0 }
 0x10e   :  { %1255 = vmatmul.mubr.msk.bf16.vlgmr.msra.gmra.mxu0 %vm853_vm1, %v759_v2  ;;  %1257 = vmatmul.mubr.msk.bf16.vlgmr.msra.gmra.mxu1 %vm853_vm1, %v759_v2 }
 0x10f   :  { %979 = vmatpush1.bf16.msra.mxu0 %v871_v37  ;;  %1020 = vmatpush1.bf16.msra.mxu1 %v877_v40 }
 0x110   :  { %996 = vmatprep.mubr.bf16.mxu0 %v1439_v32  ;;  %1037 = vmatprep.mubr.bf16.mxu1 %v1439_v32  ;;  %v790_v32 = vrot.slane %v761_v5, %v789_v17 }
 0x116   :  { %1259 = vmatmul.mubr.msk.bf16.vlgmr.msra.gmra.mxu0 %vm853_vm1, %v759_v2  ;;  %1261 = vmatmul.mubr.msk.bf16.vlgmr.msra.gmra.mxu1 %vm853_vm1, %v759_v2 }
 0x1ce   :  { %v916_v10 = vpop.f32.mrf.mxu0  ;;  %v957_v11 = vpop.f32.mrf.mxu1 }
 0x1cf   :  { %v1708_v14 = vadd.f32 %v916_v10, %v766_v8  ;;  %v1710_v15 = vadd.f32 %v957_v11, %v774_v9 }
 0x1d0   :  { %v918_v18 = vpop.f32.mrf.mxu0  ;;  %v959_v19 = vpop.f32.mrf.mxu1 }
 0x1d1   :  { %v1054_v20 = vmul.f32 0.044715, %v1708_v14  ;;  %v1056_v21 = vmul.f32 0.044715, %v1710_v15  ;;  %v1716_v22 = vadd.f32 %v918_v18, %v770_v12  ;;  %v1718_v23 = vadd.f32 %v959_v19, %v778_v13 }
 0x1d2   :  { %v920_v24 = vpop.f32.mrf.mxu0  ;;  %v961_v25 = vpop.f32.mrf.mxu1 }
 0x1d3   :  { %v1062_v28 = vmul.f32 %v1054_v20, %v1708_v14  ;;  %v1064_v29 = vmul.f32 %v1056_v21, %v1710_v15  ;;  %v1055_v33 = vmul.f32 0.044715, %v1716_v22  ;;  %v1057_v34 = vmul.f32 0.044715, %v1718_v23 }
 0x1d4   :  { %v921_v36 = vpop.f32.mrf.mxu0  ;;  %v962_v37 = vpop.f32.mrf.mxu1 }
 0x1d5   :  { %v1070_v38 = vmul.f32 %v1062_v28, %v1708_v14  ;;  %v1072_v39 = vmul.f32 %v1064_v29, %v1710_v15  ;;  %v1063_v40 = vmul.f32 %v1055_v33, %v1716_v22  ;;  %v1065_v30 = vmul.f32 %v1057_v34, %v1718_v23 }
 0x1d6   :  { %v998_v41 = vpop.f32.mrf.mxu0  ;;  %v1039_v42 = vpop.f32.mrf.mxu1  ;;  %v1047_v34 = vmul.f32 0.5, %v1716_v22  ;;  %v1049_v36 = vmul.f32 0.5, %v1718_v23  ;;  %v1046_v37 = vmul.f32 0.5, %v1708_v14 }
 0x1d7   :  { %v1078_v45 = vadd.f32 %v1070_v38, %v1708_v14  ;;  %v1080_v46 = vadd.f32 %v1072_v39, %v1710_v15  ;;  %v1732_v47 = vadd.f32 %v998_v41, %v782_v31  ;;  %v1734_v48 = vadd.f32 %v1039_v42, %v790_v32 }
 0x1d8   :  { %v1071_v49 = vmul.f32 %v1063_v40, %v1716_v22  ;;  %v1073_v50 = vmul.f32 %v1065_v30, %v1718_v23  ;;  %v1000_v51 = vpop.f32.mrf.mxu0  ;;  %v1041_v52 = vpop.f32.mrf.mxu1  ;;  %v1048_v38 = vmul.f32 0.5, %v1710_v15 }
 0x1d9   :  { %v1086_v53 = vmul.f32 0.7978846, %v1078_v45  ;;  %v1088_v54 = vmul.f32 0.7978846, %v1080_v46  ;;  %v1058_v57 = vmul.f32 0.044715, %v1732_v47  ;;  %v1001_v61 = vadd.f32 %v1000_v51, %v786_v43 }
 0x1da   :  { %v1079_v55 = vadd.f32 %v1071_v49, %v1716_v22  ;;  %v1081_v56 = vadd.f32 %v1073_v50, %v1718_v23  ;;  %v1060_v58 = vmul.f32 0.044715, %v1734_v48  ;;  %v1002_v59 = vpop.f32.mrf.mxu0  ;;  %v1043_v60 = vpop.f32.mrf.mxu1  ;;  %v1042_v62 = vadd.f32 %v1041_v52, %v794_v44 }
 0x1db   :  { %1422 = vtanh.f32 %v1086_v53  ;;  %v1066_v1 = vmul.f32 %v1058_v57, %v1732_v47  ;;  %v1059_v5 = vmul.f32 0.044715, %v1001_v61  ;;  %v1050_v22 = vmul.f32 0.5, %v1732_v47 }
 0x1dc   :  { %v1087_v63 = vmul.f32 0.7978846, %v1079_v55  ;;  %v1089_v0 = vmul.f32 0.7978846, %v1081_v56  ;;  %v1003_v2 = vpop.f32.mrf.mxu0  ;;  %v1044_v3 = vpop.f32.mrf.mxu1  ;;  %1424 = vtanh.f32 %v1088_v54  ;;  %v1068_v4 = vmul.f32 %v1060_v58, %v1734_v48 }
 0x1dd   :  { %v1074_v6 = vmul.f32 %v1066_v1, %v1732_v47  ;;  %v1061_v7 = vmul.f32 0.044715, %v1042_v62  ;;  %v1067_v9 = vmul.f32 %v1059_v5, %v1001_v61  ;;  %v1051_v52 = vmul.f32 0.5, %v1001_v61 }
 0x1de   :  { %1426 = vtanh.f32 %v1087_v63  ;;  %v1076_v8 = vmul.f32 %v1068_v4, %v1734_v48  ;;  %v1052_v14 = vmul.f32 0.5, %v1734_v48  ;;  %v1053_v53 = vmul.f32 0.5, %v1042_v62 }
 0x1df   :  { %1428 = vtanh.f32 %v1089_v0  ;;  %v1082_v10 = vadd.f32 %v1074_v6, %v1732_v47  ;;  %v1069_v11 = vmul.f32 %v1061_v7, %v1042_v62  ;;  %v1075_v13 = vmul.f32 %v1067_v9, %v1001_v61 }
 0x1e0   :  { %v1084_v12 = vadd.f32 %v1076_v8, %v1734_v48 }
 0x1e1   :  { %v1090_v16 = vmul.f32 0.7978846, %v1082_v10  ;;  %v1077_v17 = vmul.f32 %v1069_v11, %v1042_v62  ;;  %v1083_v19 = vadd.f32 %v1075_v13, %v1001_v61 }
 0x1e2   :  { %v1092_v18 = vmul.f32 0.7978846, %v1084_v12 }
 0x1e3   :  { %1430 = vtanh.f32 %v1090_v16  ;;  %v1085_v20 = vadd.f32 %v1077_v17, %v1042_v62  ;;  %v1091_v21 = vmul.f32 0.7978846, %v1083_v19 }
 0x1e4   :  { %1432 = vtanh.f32 %v1092_v18 }
 0x1e5   :  { %v1093_v24 = vmul.f32 0.7978846, %v1085_v20  ;;  %1434 = vtanh.f32 %v1091_v21 }
 0x1e7   :  { %1436 = vtanh.f32 %v1093_v24 }
 0x1e8   :  { %v1423_v25 = vpop.eup %1422 }
 0x1e9   :  { %v1425_v26 = vpop.eup %1424  ;;  %v1102_v32 = vadd.f32 1.0, %v1423_v25 }
 0x1ea   :  { %v1104_v33 = vadd.f32 1.0, %v1425_v26 }
 0x1eb   :  { %v1427_v27 = vpop.eup %1426  ;;  %v1110_v42 = vmul.f32 %v1102_v32, %v1046_v37 }
 0x1ec   :  { %v1429_v28 = vpop.eup %1428  ;;  %v1103_v29 = vadd.f32 1.0, %v1427_v27  ;;  %v1112_v43 = vmul.f32 %v1104_v33, %v1048_v38 }
 0x1ed   :  { %v1105_v31 = vadd.f32 1.0, %v1429_v28 }
 0x1ee   :  { %v1111_v39 = vmul.f32 %v1103_v29, %v1047_v34 }
 0x1ef   :  { %v1113_v40 = vmul.f32 %v1105_v31, %v1049_v36 }
 0x1f0   :  { %v1431_v30 = vpop.eup %1430  ;;  %v1262_v46 = vpack.c.bf16 %v1111_v39, %v1110_v42 }
 0x1f1   :  { %v1433_v41 = vpop.eup %1432  ;;  %v1106_v44 = vadd.f32 1.0, %v1431_v30  ;;  %v1263_v49 = vpack.c.bf16 %v1113_v40, %v1112_v43 }
 0x1f2   :  { %v1435_v45 = vpop.eup %1434  ;;  %v1108_v50 = vadd.f32 1.0, %v1433_v41  ;;  %v1144_v56 = vrot.slane %v1262_v46, %v1563_v35 }
 0x1f3   :  { %v1107_v23 = vadd.f32 1.0, %v1435_v45  ;;  %v1114_v54 = vmul.f32 %v1106_v44, %v1050_v22  ;;  %v1151_v57 = vrot.slane %v1263_v49, %v1563_v35 }
 0x1f4   :  { %v1437_v51 = vpop.eup %1436  ;;  %v1116_v58 = vmul.f32 %v1108_v50, %v1052_v14 }
 0x1f5   :  { %v1109_v15 = vadd.f32 1.0, %v1437_v51  ;;  %v1115_v55 = vmul.f32 %v1107_v23, %v1051_v52  ;;  %v1166_v1 = vcombine.low %v1144_v56, %v1151_v57 }
 0x1f7   :  { %v1117_v59 = vmul.f32 %v1109_v15, %v1053_v53  ;;  %v1264_v60 = vpack.c.bf16 %v1115_v55, %v1114_v54  ;;  %v1174_v48 = vrot.slane %v1166_v1, %v1563_v35 }
 0x1f9   :  { %v1265_v63 = vpack.c.bf16 %v1117_v59, %v1116_v58  ;;  %v1158_v0 = vrot.slane %v1264_v60, %v1563_v35 }
 0x1fb   :  { %v1165_v47 = vrot.slane %v1265_v63, %v1563_v35 }
 0x1fd   :  { %v1167_v61 = vcombine.low %v1158_v0, %v1165_v47 }
 0x1ff   :  { %v1181_v62 = vrot.slane %v1167_v61, %v1563_v35 }
 0x201   :  { %v1182_v2 = vcombine.low %v1174_v48, %v1181_v62 }
 0x203   :  { %1184 = vst [vmem:[%s1768_s5] sm:$0xff] %v1182_v2 }

// kernel: tile.23
= control target key start
LH: loop header
LB: loop body
LE: loop exit
PB: predicated region body
PF: predicated region fallthrough
CT: control target
= control target key end

     0   :  { %s22_s0 = inlined_call_operand.vmem [shape: f32[128], index: 0, kind: input, shape index: {}]   ;;  %s23_s1 = inlined_call_operand.vmem [shape: f32[4,128], index: 1, kind: output, shape index: {}]  }
   0x1   :  { %v4_v0 = vld [vmem:[%s22_s0] ss:$0 sm:$0xff] }
   0x2   :  { %5 = vst [vmem:[%s23_s1] sm:$0xf] %v4_v0 }

// kernel: ae_conv_forward.15
= control target key start
LH: loop header
LB: loop body
LE: loop exit
PB: predicated region body
PF: predicated region fallthrough
CT: control target
= control target key end

     0   :  { %s3511_s1 = inlined_call_operand.vmem [shape: bf16[1024,512], index: 1, kind: input, shape index: {}]   ;;  %s3512_s0 = inlined_call_operand.vmem [shape: bf16[8,1024], index: 0, kind: input, shape index: {}]   ;;  %s3513_s2 = inlined_call_operand.vmem [shape: f32[1,512], index: 2, kind: input, shape index: {}]   ;;  %s3514_s3 = inlined_call_operand.vmem [shape: bf16[8,512], index: 3, kind: output, shape index: {}]  }
   0x1   :  { %v2258_v0 = vld [vmem:[%s3511_s1 + $0xe4] ss:$16 sps:$4 sm:$0xff]   ;;  %v2262_v2 = vld [vmem:[%s3511_s1 + $0xe0] ss:$16 sps:$4 sm:$0xff]   ;;  %v15_v48 = vld [vmem:[%s3512_s0 + $0x8] sm:$0xff] }
   0x2   :  { %v2260_v1 = vld [vmem:[%s3511_s1 + $0x2e4] ss:$16 sps:$4 sm:$0xff]   ;;  %1604 = vmatprep.subr.bf16.mxu0 %v2258_v0  ;;  %v2263_v3 = vld [vmem:[%s3511_s1 + $0x2e0] ss:$16 sps:$4 sm:$0xff]   ;;  %v2830_v51 = vcombine.high %v15_v48, %v15_v48 }
   0x3   :  { %1645 = vmatprep.subr.bf16.mxu1 %v2260_v1  ;;  %v2264_v4 = vld [vmem:[%s3511_s1 + $0xc4] ss:$16 sps:$4 sm:$0xff]   ;;  %1605 = vmatpush1.bf16.msra.mxu0 %v2262_v2  ;;  %v2268_v6 = vld [vmem:[%s3511_s1 + $0xc0] ss:$16 sps:$4 sm:$0xff]  }
   0x4   :  { %1646 = vmatpush1.bf16.msra.mxu1 %v2263_v3  ;;  %v2266_v5 = vld [vmem:[%s3511_s1 + $0x2c4] ss:$16 sps:$4 sm:$0xff]   ;;  %1606 = vmatprep.subr.bf16.mxu0 %v2264_v4  ;;  %v2269_v7 = vld [vmem:[%s3511_s1 + $0x2c0] ss:$16 sps:$4 sm:$0xff]  }
   0x5   :  { %1647 = vmatprep.subr.bf16.mxu1 %v2266_v5  ;;  %v2270_v8 = vld [vmem:[%s3511_s1 + $0xa4] ss:$16 sps:$4 sm:$0xff]   ;;  %v2274_v10 = vld [vmem:[%s3511_s1 + $0xa0] ss:$16 sps:$4 sm:$0xff]   ;;  %1677 = vmatprep.mubr.bf16.mxu1 %v2830_v51 }
   0x6   :  { %v2272_v9 = vld [vmem:[%s3511_s1 + $0x2a4] ss:$16 sps:$4 sm:$0xff]   ;;  %v2275_v11 = vld [vmem:[%s3511_s1 + $0x2a0] ss:$16 sps:$4 sm:$0xff]  }
   0x7   :  { %1607 = vmatpush1.bf16.msra.mxu0 %v2268_v6  ;;  %v2276_v12 = vld [vmem:[%s3511_s1 + $0x84] ss:$16 sps:$4 sm:$0xff]   ;;  %v2280_v14 = vld [vmem:[%s3511_s1 + $0x80] ss:$16 sps:$4 sm:$0xff]  }
   0x8   :  { %1648 = vmatpush1.bf16.msra.mxu1 %v2269_v7  ;;  %1608 = vmatprep.subr.bf16.mxu0 %v2270_v8  ;;  %v2278_v13 = vld [vmem:[%s3511_s1 + $0x284] ss:$16 sps:$4 sm:$0xff]   ;;  %v2281_v15 = vld [vmem:[%s3511_s1 + $0x280] ss:$16 sps:$4 sm:$0xff]   ;;  %v2890_v7 = vcombine.low %v15_v48, %v15_v48 }
   0x9   :  { %1649 = vmatprep.subr.bf16.mxu1 %v2272_v9  ;;  %v2282_v16 = vld [vmem:[%s3511_s1 + $0x64] ss:$16 sps:$4 sm:$0xff]   ;;  %v2286_v18 = vld [vmem:[%s3511_s1 + $0x60] ss:$16 sps:$4 sm:$0xff]  }
   0xa   :  { %v2284_v17 = vld [vmem:[%s3511_s1 + $0x264] ss:$16 sps:$4 sm:$0xff]   ;;  %v2287_v19 = vld [vmem:[%s3511_s1 + $0x260] ss:$16 sps:$4 sm:$0xff]  }
   0xb   :  { %1609 = vmatpush1.bf16.msra.mxu0 %v2274_v10  ;;  %v2288_v20 = vld [vmem:[%s3511_s1 + $0x44] ss:$16 sps:$4 sm:$0xff]   ;;  %v2292_v22 = vld [vmem:[%s3511_s1 + $0x40] ss:$16 sps:$4 sm:$0xff]  }
   0xc   :  { %1650 = vmatpush1.bf16.msra.mxu1 %v2275_v11  ;;  %1610 = vmatprep.subr.bf16.mxu0 %v2276_v12  ;;  %v2290_v21 = vld [vmem:[%s3511_s1 + $0x244] ss:$16 sps:$4 sm:$0xff]   ;;  %v2293_v23 = vld [vmem:[%s3511_s1 + $0x240] ss:$16 sps:$4 sm:$0xff]  }
   0xd   :  { %1651 = vmatprep.subr.bf16.mxu1 %v2278_v13  ;;  %v2294_v24 = vld [vmem:[%s3511_s1 + $0x24] ss:$16 sps:$4 sm:$0xff]   ;;  %v2298_v26 = vld [vmem:[%s3511_s1 + $0x20] ss:$16 sps:$4 sm:$0xff]  }
   0xe   :  { %v2296_v25 = vld [vmem:[%s3511_s1 + $0x224] ss:$16 sps:$4 sm:$0xff]   ;;  %v2299_v27 = vld [vmem:[%s3511_s1 + $0x220] ss:$16 sps:$4 sm:$0xff]  }
   0xf   :  { %1611 = vmatpush1.bf16.msra.mxu0 %v2280_v14  ;;  %v2300_v28 = vld [vmem:[%s3511_s1 + $0x4] ss:$16 sps:$4 sm:$0xff]   ;;  %v2304_v30 = vld [vmem:[%s3511_s1] ss:$16 sps:$4 sm:$0xff]  }
  0x10   :  { %1652 = vmatpush1.bf16.msra.mxu1 %v2281_v15  ;;  %1612 = vmatprep.subr.bf16.mxu0 %v2282_v16  ;;  %v2302_v29 = vld [vmem:[%s3511_s1 + $0x204] ss:$16 sps:$4 sm:$0xff]   ;;  %v2305_v31 = vld [vmem:[%s3511_s1 + $0x200] ss:$16 sps:$4 sm:$0xff]  }
  0x11   :  { %1653 = vmatprep.subr.bf16.mxu1 %v2284_v17  ;;  %v2306_v32 = vld [vmem:[%s3511_s1 + $0x1e4] ss:$16 sps:$4 sm:$0xff]   ;;  %v2310_v34 = vld [vmem:[%s3511_s1 + $0x1e0] ss:$16 sps:$4 sm:$0xff]  }
  0x12   :  { %v2308_v33 = vld [vmem:[%s3511_s1 + $0x3e4] ss:$16 sps:$4 sm:$0xff]   ;;  %v2311_v35 = vld [vmem:[%s3511_s1 + $0x3e0] ss:$16 sps:$4 sm:$0xff]  }
  0x13   :  { %1613 = vmatpush1.bf16.msra.mxu0 %v2286_v18  ;;  %v2312_v36 = vld [vmem:[%s3511_s1 + $0x1c4] ss:$16 sps:$4 sm:$0xff]   ;;  %v2316_v38 = vld [vmem:[%s3511_s1 + $0x1c0] ss:$16 sps:$4 sm:$0xff]  }
  0x14   :  { %1654 = vmatpush1.bf16.msra.mxu1 %v2287_v19  ;;  %1614 = vmatprep.subr.bf16.mxu0 %v2288_v20  ;;  %v2314_v37 = vld [vmem:[%s3511_s1 + $0x3c4] ss:$16 sps:$4 sm:$0xff]   ;;  %v2317_v39 = vld [vmem:[%s3511_s1 + $0x3c0] ss:$16 sps:$4 sm:$0xff]  }
  0x15   :  { %1655 = vmatprep.subr.bf16.mxu1 %v2290_v21  ;;  %v2318_v40 = vld [vmem:[%s3511_s1 + $0x1a4] ss:$16 sps:$4 sm:$0xff]   ;;  %v2322_v42 = vld [vmem:[%s3511_s1 + $0x1a0] ss:$16 sps:$4 sm:$0xff]  }
  0x16   :  { %v2320_v41 = vld [vmem:[%s3511_s1 + $0x3a4] ss:$16 sps:$4 sm:$0xff]   ;;  %v2323_v43 = vld [vmem:[%s3511_s1 + $0x3a0] ss:$16 sps:$4 sm:$0xff]  }
  0x17   :  { %1615 = vmatpush1.bf16.msra.mxu0 %v2292_v22  ;;  %v2324_v44 = vld [vmem:[%s3511_s1 + $0x184] ss:$16 sps:$4 sm:$0xff]   ;;  %v2328_v49 = vld [vmem:[%s3511_s1 + $0x180] ss:$16 sps:$4 sm:$0xff]  }
  0x18   :  { %1656 = vmatpush1.bf16.msra.mxu1 %v2293_v23  ;;  %1616 = vmatprep.subr.bf16.mxu0 %v2294_v24  ;;  %v2326_v45 = vld [vmem:[%s3511_s1 + $0x384] ss:$16 sps:$4 sm:$0xff]   ;;  %v2329_v50 = vld [vmem:[%s3511_s1 + $0x380] ss:$16 sps:$4 sm:$0xff]  }
  0x19   :  { %1657 = vmatprep.subr.bf16.mxu1 %v2296_v25  ;;  %v14_v46 = vld [vmem:[%s3512_s0] sm:$0xff] }
  0x1a   :  { %v2819_v47 = vcombine.high %v14_v46, %v14_v46  ;;  %v2330_v52 = vld [vmem:[%s3511_s1 + $0x164] ss:$16 sps:$4 sm:$0xff]   ;;  %v2334_v54 = vld [vmem:[%s3511_s1 + $0x160] ss:$16 sps:$4 sm:$0xff]   ;;  %v2888_v6 = vcombine.low %v14_v46, %v14_v46 }
  0x1b   :  { %1617 = vmatpush1.bf16.msra.mxu0 %v2298_v26  ;;  %v2332_v53 = vld [vmem:[%s3511_s1 + $0x364] ss:$16 sps:$4 sm:$0xff]   ;;  %v2335_v55 = vld [vmem:[%s3511_s1 + $0x360] ss:$16 sps:$4 sm:$0xff]  }
  0x1c   :  { %1658 = vmatpush1.bf16.msra.mxu1 %v2299_v27  ;;  %1618 = vmatprep.subr.bf16.mxu0 %v2300_v28  ;;  %v2336_v56 = vld [vmem:[%s3511_s1 + $0x144] ss:$16 sps:$4 sm:$0xff]   ;;  %v2340_v58 = vld [vmem:[%s3511_s1 + $0x140] ss:$16 sps:$4 sm:$0xff]  }
  0x1d   :  { %1659 = vmatprep.subr.bf16.mxu1 %v2302_v29  ;;  %1636 = vmatprep.mubr.bf16.mxu0 %v2819_v47  ;;  %v2338_v57 = vld [vmem:[%s3511_s1 + $0x344] ss:$16 sps:$4 sm:$0xff]   ;;  %v2341_v59 = vld [vmem:[%s3511_s1 + $0x340] ss:$16 sps:$4 sm:$0xff]  }
  0x1e   :  { %v2342_v60 = vld [vmem:[%s3511_s1 + $0x124] ss:$16 sps:$4 sm:$0xff]   ;;  %v2346_v62 = vld [vmem:[%s3511_s1 + $0x120] ss:$16 sps:$4 sm:$0xff]  }
  0x1f   :  { %1619 = vmatpush1.bf16.msra.mxu0 %v2304_v30  ;;  %v2344_v61 = vld [vmem:[%s3511_s1 + $0x324] ss:$16 sps:$4 sm:$0xff]   ;;  %v2347_v63 = vld [vmem:[%s3511_s1 + $0x320] ss:$16 sps:$4 sm:$0xff]  }
  0x20   :  { %1660 = vmatpush1.bf16.msra.mxu1 %v2305_v31  ;;  %1620 = vmatprep.subr.bf16.mxu0 %v2306_v32  ;;  %v2348_v0 = vld [vmem:[%s3511_s1 + $0x104] ss:$16 sps:$4 sm:$0xff]   ;;  %v2352_v2 = vld [vmem:[%s3511_s1 + $0x100] ss:$16 sps:$4 sm:$0xff]  }
  0x21   :  { %1661 = vmatprep.subr.bf16.mxu1 %v2308_v33  ;;  %v2350_v1 = vld [vmem:[%s3511_s1 + $0x304] ss:$16 sps:$4 sm:$0xff]   ;;  %v2353_v3 = vld [vmem:[%s3511_s1 + $0x300] ss:$16 sps:$4 sm:$0xff]   ;;  %v2974_v33 = vld [vmem:[%s3512_s0 + $0x18] sm:$0xff] }
  0x22   :  { %v2360_v4 = vld [vmem:[%s3511_s1 + $0x4e4] ss:$16 sps:$4 sm:$0xff]   ;;  %v2358_v8 = vld [vmem:[%s3511_s1 + $0x4e0] ss:$16 sps:$4 sm:$0xff]  }
  0x23   :  { %1621 = vmatpush2.bf16.msra.mxu0 %v2310_v34  ;;  %v2363_v5 = vld [vmem:[%s3511_s1 + $0x6e4] ss:$16 sps:$4 sm:$0xff]   ;;  %v2361_v9 = vld [vmem:[%s3511_s1 + $0x6e0] ss:$16 sps:$4 sm:$0xff]  }
  0x24   :  { %1662 = vmatpush2.bf16.msra.mxu1 %v2311_v35  ;;  %1622 = vmatprep.subr.bf16.mxu0 %v2312_v36  ;;  %v2366_v10 = vld [vmem:[%s3511_s1 + $0x4c4] ss:$16 sps:$4 sm:$0xff]   ;;  %v2364_v12 = vld [vmem:[%s3511_s1 + $0x4c0] ss:$16 sps:$4 sm:$0xff]  }
  0x25   :  { %1663 = vmatprep.subr.bf16.mxu1 %v2314_v37  ;;  %v2369_v11 = vld [vmem:[%s3511_s1 + $0x6c4] ss:$16 sps:$4 sm:$0xff]   ;;  %v2367_v13 = vld [vmem:[%s3511_s1 + $0x6c0] ss:$16 sps:$4 sm:$0xff]   ;;  %v2988_v37 = vcombine.high %v2974_v33, %v2974_v33 }
  0x26   :  { %v2372_v14 = vld [vmem:[%s3511_s1 + $0x4a4] ss:$16 sps:$4 sm:$0xff]   ;;  %v2370_v16 = vld [vmem:[%s3511_s1 + $0x4a0] ss:$16 sps:$4 sm:$0xff]  }
  0x27   :  { %1623 = vmatpush2.bf16.msra.mxu0 %v2316_v38  ;;  %v2375_v15 = vld [vmem:[%s3511_s1 + $0x6a4] ss:$16 sps:$4 sm:$0xff]   ;;  %v2373_v17 = vld [vmem:[%s3511_s1 + $0x6a0] ss:$16 sps:$4 sm:$0xff]  }
  0x28   :  { %1664 = vmatpush2.bf16.msra.mxu1 %v2317_v39  ;;  %1624 = vmatprep.subr.bf16.mxu0 %v2318_v40  ;;  %v2378_v18 = vld [vmem:[%s3511_s1 + $0x484] ss:$16 sps:$4 sm:$0xff]   ;;  %v2376_v20 = vld [vmem:[%s3511_s1 + $0x480] ss:$16 sps:$4 sm:$0xff]  }
  0x29   :  { %1665 = vmatprep.subr.bf16.mxu1 %v2320_v41  ;;  %v2381_v19 = vld [vmem:[%s3511_s1 + $0x684] ss:$16 sps:$4 sm:$0xff]   ;;  %v2379_v21 = vld [vmem:[%s3511_s1 + $0x680] ss:$16 sps:$4 sm:$0xff]  }
  0x2a   :  { %v2384_v22 = vld [vmem:[%s3511_s1 + $0x464] ss:$16 sps:$4 sm:$0xff]   ;;  %v2382_v24 = vld [vmem:[%s3511_s1 + $0x460] ss:$16 sps:$4 sm:$0xff]  }
  0x2b   :  { %1625 = vmatpush2.bf16.msra.mxu0 %v2322_v42  ;;  %v2387_v23 = vld [vmem:[%s3511_s1 + $0x664] ss:$16 sps:$4 sm:$0xff]   ;;  %v2385_v25 = vld [vmem:[%s3511_s1 + $0x660] ss:$16 sps:$4 sm:$0xff]  }
  0x2c   :  { %1666 = vmatpush2.bf16.msra.mxu1 %v2323_v43  ;;  %1626 = vmatprep.subr.bf16.mxu0 %v2324_v44  ;;  %v2390_v26 = vld [vmem:[%s3511_s1 + $0x444] ss:$16 sps:$4 sm:$0xff]   ;;  %v2388_v28 = vld [vmem:[%s3511_s1 + $0x440] ss:$16 sps:$4 sm:$0xff]  }
  0x2d   :  { %1667 = vmatprep.subr.bf16.mxu1 %v2326_v45  ;;  %v2393_v27 = vld [vmem:[%s3511_s1 + $0x644] ss:$16 sps:$4 sm:$0xff]   ;;  %v2391_v29 = vld [vmem:[%s3511_s1 + $0x640] ss:$16 sps:$4 sm:$0xff]  }
  0x2e   :  { %v2396_v30 = vld [vmem:[%s3511_s1 + $0x424] ss:$16 sps:$4 sm:$0xff]   ;;  %v2394_v34 = vld [vmem:[%s3511_s1 + $0x420] ss:$16 sps:$4 sm:$0xff]  }
  0x2f   :  { %1627 = vmatpush2.bf16.msra.mxu0 %v2328_v49  ;;  %v2399_v31 = vld [vmem:[%s3511_s1 + $0x624] ss:$16 sps:$4 sm:$0xff]   ;;  %v2397_v35 = vld [vmem:[%s3511_s1 + $0x620] ss:$16 sps:$4 sm:$0xff]  }
  0x30   :  { %1668 = vmatpush2.bf16.msra.mxu1 %v2329_v50  ;;  %1628 = vmatprep.subr.bf16.mxu0 %v2330_v52  ;;  %v2969_v32 = vld [vmem:[%s3512_s0 + $0x10] sm:$0xff] }
  0x31   :  { %1669 = vmatprep.subr.bf16.mxu1 %v2332_v53  ;;  %v2984_v36 = vcombine.high %v2969_v32, %v2969_v32  ;;  %v2402_v38 = vld [vmem:[%s3511_s1 + $0x404] ss:$16 sps:$4 sm:$0xff]   ;;  %v2400_v40 = vld [vmem:[%s3511_s1 + $0x400] ss:$16 sps:$4 sm:$0xff]  }
  0x32   :  { %v2405_v39 = vld [vmem:[%s3511_s1 + $0x604] ss:$16 sps:$4 sm:$0xff]   ;;  %v2403_v41 = vld [vmem:[%s3511_s1 + $0x600] ss:$16 sps:$4 sm:$0xff]  }
  0x33   :  { %1629 = vmatpush2.bf16.msra.mxu0 %v2334_v54  ;;  %v2408_v42 = vld [vmem:[%s3511_s1 + $0x5e4] ss:$16 sps:$4 sm:$0xff]   ;;  %v2406_v44 = vld [vmem:[%s3511_s1 + $0x5e0] ss:$16 sps:$4 sm:$0xff]  }
  0x34   :  { %1670 = vmatpush2.bf16.msra.mxu1 %v2335_v55  ;;  %1630 = vmatprep.subr.bf16.mxu0 %v2336_v56  ;;  %v2411_v43 = vld [vmem:[%s3511_s1 + $0x7e4] ss:$16 sps:$4 sm:$0xff]   ;;  %v2409_v45 = vld [vmem:[%s3511_s1 + $0x7e0] ss:$16 sps:$4 sm:$0xff]  }
  0x35   :  { %1671 = vmatprep.subr.bf16.mxu1 %v2338_v57  ;;  %v2414_v46 = vld [vmem:[%s3511_s1 + $0x5c4] ss:$16 sps:$4 sm:$0xff]   ;;  %v2412_v49 = vld [vmem:[%s3511_s1 + $0x5c0] ss:$16 sps:$4 sm:$0xff]  }
  0x36   :  { %v2417_v48 = vld [vmem:[%s3511_s1 + $0x7c4] ss:$16 sps:$4 sm:$0xff]   ;;  %v2415_v50 = vld [vmem:[%s3511_s1 + $0x7c0] ss:$16 sps:$4 sm:$0xff]  }
  0x37   :  { %1631 = vmatpush2.bf16.msra.mxu0 %v2340_v58  ;;  %v2420_v52 = vld [vmem:[%s3511_s1 + $0x5a4] ss:$16 sps:$4 sm:$0xff]   ;;  %v2418_v54 = vld [vmem:[%s3511_s1 + $0x5a0] ss:$16 sps:$4 sm:$0xff]  }
  0x38   :  { %1672 = vmatpush2.bf16.msra.mxu1 %v2341_v59  ;;  %1632 = vmatprep.subr.bf16.mxu0 %v2342_v60  ;;  %v2423_v53 = vld [vmem:[%s3511_s1 + $0x7a4] ss:$16 sps:$4 sm:$0xff]   ;;  %v2421_v55 = vld [vmem:[%s3511_s1 + $0x7a0] ss:$16 sps:$4 sm:$0xff]  }
  0x39   :  { %1673 = vmatprep.subr.bf16.mxu1 %v2344_v61  ;;  %v2426_v56 = vld [vmem:[%s3511_s1 + $0x584] ss:$16 sps:$4 sm:$0xff]   ;;  %v2424_v58 = vld [vmem:[%s3511_s1 + $0x580] ss:$16 sps:$4 sm:$0xff]  }
  0x3a   :  { %v2429_v57 = vld [vmem:[%s3511_s1 + $0x784] ss:$16 sps:$4 sm:$0xff]   ;;  %v2427_v59 = vld [vmem:[%s3511_s1 + $0x780] ss:$16 sps:$4 sm:$0xff]  }
  0x3b   :  { %1633 = vmatpush2.bf16.msra.mxu0 %v2346_v62  ;;  %v2432_v60 = vld [vmem:[%s3511_s1 + $0x564] ss:$16 sps:$4 sm:$0xff]   ;;  %v2430_v62 = vld [vmem:[%s3511_s1 + $0x560] ss:$16 sps:$4 sm:$0xff]  }
  0x3c   :  { %1674 = vmatpush2.bf16.msra.mxu1 %v2347_v63  ;;  %1634 = vmatprep.subr.bf16.mxu0 %v2348_v0  ;;  %v2435_v61 = vld [vmem:[%s3511_s1 + $0x764] ss:$16 sps:$4 sm:$0xff]   ;;  %v2433_v63 = vld [vmem:[%s3511_s1 + $0x760] ss:$16 sps:$4 sm:$0xff]  }
  0x3d   :  { %1675 = vmatprep.subr.bf16.mxu1 %v2350_v1  ;;  %v2438_v0 = vld [vmem:[%s3511_s1 + $0x544] ss:$16 sps:$4 sm:$0xff]  }
  0x3e   :  { %v2441_v1 = vld [vmem:[%s3511_s1 + $0x744] ss:$16 sps:$4 sm:$0xff]  }
  0x3f   :  { %1635 = vmatpush2.bf16.msra.mxu0 %v2352_v2  ;;  %v2436_v2 = vld [vmem:[%s3511_s1 + $0x540] ss:$16 sps:$4 sm:$0xff]  }
  0x40   :  { %1676 = vmatpush2.bf16.msra.mxu1 %v2353_v3  ;;  %1686 = vmatprep.subr.bf16.mxu0 %v2360_v4  ;;  %v2439_v3 = vld [vmem:[%s3511_s1 + $0x740] ss:$16 sps:$4 sm:$0xff]   ;;  %v2444_v4 = vld [vmem:[%s3511_s1 + $0x524] ss:$16 sps:$4 sm:$0xff]  }
  0x41   :  { %1727 = vmatprep.subr.bf16.mxu1 %v2363_v5  ;;  %v2447_v5 = vld [vmem:[%s3511_s1 + $0x724] ss:$16 sps:$4 sm:$0xff]  }
  0x42   :  { %1637 = vmatmul.mubr.bf16.vlgmr.msra.gmra.mxu0 %v2888_v6 }
  0x43   :  { %1678 = vmatmul.mubr.bf16.vlgmr.msra.gmra.mxu1 %v2890_v7  ;;  %1687 = vmatpush1.bf16.msra.mxu0 %v2358_v8  ;;  %v2442_v8 = vld [vmem:[%s3511_s1 + $0x520] ss:$16 sps:$4 sm:$0xff]  }
  0x44   :  { %1728 = vmatpush1.bf16.msra.mxu1 %v2361_v9  ;;  %1688 = vmatprep.subr.bf16.mxu0 %v2366_v10  ;;  %v2445_v9 = vld [vmem:[%s3511_s1 + $0x720] ss:$16 sps:$4 sm:$0xff]   ;;  %v2450_v10 = vld [vmem:[%s3511_s1 + $0x504] ss:$16 sps:$4 sm:$0xff]  }
  0x45   :  { %1729 = vmatprep.subr.bf16.mxu1 %v2369_v11  ;;  %1718 = vmatprep.mubr.bf16.mxu0 %v2984_v36  ;;  %v2453_v11 = vld [vmem:[%s3511_s1 + $0x704] ss:$16 sps:$4 sm:$0xff]  }
  0x46   :  { %1759 = vmatprep.mubr.bf16.mxu1 %v2988_v37 }
  0x47   :  { %1689 = vmatpush1.bf16.msra.mxu0 %v2364_v12  ;;  %v2448_v12 = vld [vmem:[%s3511_s1 + $0x500] ss:$16 sps:$4 sm:$0xff]  }
  0x48   :  { %1730 = vmatpush1.bf16.msra.mxu1 %v2367_v13  ;;  %1690 = vmatprep.subr.bf16.mxu0 %v2372_v14  ;;  %v2451_v13 = vld [vmem:[%s3511_s1 + $0x700] ss:$16 sps:$4 sm:$0xff]   ;;  %v2460_v14 = vld [vmem:[%s3511_s1 + $0xec] ss:$16 sps:$4 sm:$0xff]  }
  0x49   :  { %1731 = vmatprep.subr.bf16.mxu1 %v2375_v15  ;;  %v2463_v15 = vld [vmem:[%s3511_s1 + $0x2ec] ss:$16 sps:$4 sm:$0xff]  }
  0x4b   :  { %1691 = vmatpush1.bf16.msra.mxu0 %v2370_v16  ;;  %v3108_v16 = vcombine.low %v2969_v32, %v2969_v32  ;;  %v2482_v32 = vld [vmem:[%s3511_s1 + $0x68] ss:$16 sps:$4 sm:$0xff]  }
  0x4c   :  { %1732 = vmatpush1.bf16.msra.mxu1 %v2373_v17  ;;  %1692 = vmatprep.subr.bf16.mxu0 %v2378_v18  ;;  %v3112_v17 = vcombine.low %v2974_v33, %v2974_v33  ;;  %v2458_v18 = vld [vmem:[%s3511_s1 + $0xe8] ss:$16 sps:$4 sm:$0xff]  }
  0x4d   :  { %1733 = vmatprep.subr.bf16.mxu1 %v2381_v19  ;;  %v2461_v19 = vld [vmem:[%s3511_s1 + $0x2e8] ss:$16 sps:$4 sm:$0xff]  }
  0x4e   :  { %v2485_v33 = vld [vmem:[%s3511_s1 + $0x268] ss:$16 sps:$4 sm:$0xff]  }
  0x4f   :  { %1693 = vmatpush1.bf16.msra.mxu0 %v2376_v20  ;;  %v2466_v20 = vld [vmem:[%s3511_s1 + $0xcc] ss:$16 sps:$4 sm:$0xff]  }
  0x50   :  { %1734 = vmatpush1.bf16.msra.mxu1 %v2379_v21  ;;  %1694 = vmatprep.subr.bf16.mxu0 %v2384_v22  ;;  %v2469_v21 = vld [vmem:[%s3511_s1 + $0x2cc] ss:$16 sps:$4 sm:$0xff]   ;;  %v2464_v22 = vld [vmem:[%s3511_s1 + $0xc8] ss:$16 sps:$4 sm:$0xff]  }
  0x51   :  { %1735 = vmatprep.subr.bf16.mxu1 %v2387_v23  ;;  %v2467_v23 = vld [vmem:[%s3511_s1 + $0x2c8] ss:$16 sps:$4 sm:$0xff]  }
  0x53   :  { %1695 = vmatpush1.bf16.msra.mxu0 %v2382_v24  ;;  %v2472_v24 = vld [vmem:[%s3511_s1 + $0xac] ss:$16 sps:$4 sm:$0xff]  }
  0x54   :  { %1736 = vmatpush1.bf16.msra.mxu1 %v2385_v25  ;;  %1696 = vmatprep.subr.bf16.mxu0 %v2390_v26  ;;  %v2475_v25 = vld [vmem:[%s3511_s1 + $0x2ac] ss:$16 sps:$4 sm:$0xff]   ;;  %v2470_v26 = vld [vmem:[%s3511_s1 + $0xa8] ss:$16 sps:$4 sm:$0xff]  }
  0x55   :  { %1737 = vmatprep.subr.bf16.mxu1 %v2393_v27  ;;  %v2473_v27 = vld [vmem:[%s3511_s1 + $0x2a8] ss:$16 sps:$4 sm:$0xff]  }
  0x57   :  { %1697 = vmatpush1.bf16.msra.mxu0 %v2388_v28  ;;  %v2478_v28 = vld [vmem:[%s3511_s1 + $0x8c] ss:$16 sps:$4 sm:$0xff]  }
  0x58   :  { %1738 = vmatpush1.bf16.msra.mxu1 %v2391_v29  ;;  %1698 = vmatprep.subr.bf16.mxu0 %v2396_v30  ;;  %v2479_v29 = vld [vmem:[%s3511_s1 + $0x288] ss:$16 sps:$4 sm:$0xff]   ;;  %v2484_v30 = vld [vmem:[%s3511_s1 + $0x6c] ss:$16 sps:$4 sm:$0xff]  }
  0x59   :  { %1739 = vmatprep.subr.bf16.mxu1 %v2399_v31  ;;  %v2487_v31 = vld [vmem:[%s3511_s1 + $0x26c] ss:$16 sps:$4 sm:$0xff]  }
  0x5b   :  { %1699 = vmatpush1.bf16.msra.mxu0 %v2394_v34  ;;  %v2490_v34 = vld [vmem:[%s3511_s1 + $0x4c] ss:$16 sps:$4 sm:$0xff]  }
  0x5c   :  { %1740 = vmatpush1.bf16.msra.mxu1 %v2397_v35  ;;  %1700 = vmatprep.subr.bf16.mxu0 %v2402_v38  ;;  %v2493_v35 = vld [vmem:[%s3511_s1 + $0x24c] ss:$16 sps:$4 sm:$0xff]   ;;  %v2488_v38 = vld [vmem:[%s3511_s1 + $0x48] ss:$16 sps:$4 sm:$0xff]  }
  0x5d   :  { %1741 = vmatprep.subr.bf16.mxu1 %v2405_v39  ;;  %v2491_v39 = vld [vmem:[%s3511_s1 + $0x248] ss:$16 sps:$4 sm:$0xff]  }
  0x5f   :  { %1701 = vmatpush1.bf16.msra.mxu0 %v2400_v40  ;;  %v2496_v40 = vld [vmem:[%s3511_s1 + $0x2c] ss:$16 sps:$4 sm:$0xff]  }
  0x60   :  { %1742 = vmatpush1.bf16.msra.mxu1 %v2403_v41  ;;  %1702 = vmatprep.subr.bf16.mxu0 %v2408_v42  ;;  %v2499_v41 = vld [vmem:[%s3511_s1 + $0x22c] ss:$16 sps:$4 sm:$0xff]   ;;  %v2494_v42 = vld [vmem:[%s3511_s1 + $0x28] ss:$16 sps:$4 sm:$0xff]  }
  0x61   :  { %1743 = vmatprep.subr.bf16.mxu1 %v2411_v43  ;;  %v2497_v43 = vld [vmem:[%s3511_s1 + $0x228] ss:$16 sps:$4 sm:$0xff]  }
  0x63   :  { %1703 = vmatpush2.bf16.msra.mxu0 %v2406_v44  ;;  %v2502_v44 = vld [vmem:[%s3511_s1 + $0xc] ss:$16 sps:$4 sm:$0xff]  }
  0x64   :  { %1744 = vmatpush2.bf16.msra.mxu1 %v2409_v45  ;;  %1704 = vmatprep.subr.bf16.mxu0 %v2414_v46  ;;  %v2505_v45 = vld [vmem:[%s3511_s1 + $0x20c] ss:$16 sps:$4 sm:$0xff]   ;;  %v2500_v46 = vld [vmem:[%s3511_s1 + $0x8] ss:$16 sps:$4 sm:$0xff]  }
  0x65   :  { %1745 = vmatprep.subr.bf16.mxu1 %v2417_v48  ;;  %v2503_v48 = vld [vmem:[%s3511_s1 + $0x208] ss:$16 sps:$4 sm:$0xff]  }
  0x67   :  { %1705 = vmatpush2.bf16.msra.mxu0 %v2412_v49  ;;  %v2508_v49 = vld [vmem:[%s3511_s1 + $0x1ec] ss:$16 sps:$4 sm:$0xff]  }
  0x68   :  { %1746 = vmatpush2.bf16.msra.mxu1 %v2415_v50  ;;  %1706 = vmatprep.subr.bf16.mxu0 %v2420_v52  ;;  %v2511_v50 = vld [vmem:[%s3511_s1 + $0x3ec] ss:$16 sps:$4 sm:$0xff]   ;;  %v2506_v52 = vld [vmem:[%s3511_s1 + $0x1e8] ss:$16 sps:$4 sm:$0xff]  }
  0x69   :  { %1747 = vmatprep.subr.bf16.mxu1 %v2423_v53  ;;  %v2509_v53 = vld [vmem:[%s3511_s1 + $0x3e8] ss:$16 sps:$4 sm:$0xff]  }
  0x6b   :  { %1707 = vmatpush2.bf16.msra.mxu0 %v2418_v54  ;;  %v2514_v54 = vld [vmem:[%s3511_s1 + $0x1cc] ss:$16 sps:$4 sm:$0xff]  }
  0x6c   :  { %1748 = vmatpush2.bf16.msra.mxu1 %v2421_v55  ;;  %1708 = vmatprep.subr.bf16.mxu0 %v2426_v56  ;;  %v2517_v55 = vld [vmem:[%s3511_s1 + $0x3cc] ss:$16 sps:$4 sm:$0xff]   ;;  %v2512_v56 = vld [vmem:[%s3511_s1 + $0x1c8] ss:$16 sps:$4 sm:$0xff]  }
  0x6d   :  { %1749 = vmatprep.subr.bf16.mxu1 %v2429_v57  ;;  %v2515_v57 = vld [vmem:[%s3511_s1 + $0x3c8] ss:$16 sps:$4 sm:$0xff]  }
  0x6f   :  { %1709 = vmatpush2.bf16.msra.mxu0 %v2424_v58  ;;  %v2520_v58 = vld [vmem:[%s3511_s1 + $0x1ac] ss:$16 sps:$4 sm:$0xff]  }
  0x70   :  { %1750 = vmatpush2.bf16.msra.mxu1 %v2427_v59  ;;  %1710 = vmatprep.subr.bf16.mxu0 %v2432_v60  ;;  %v2523_v59 = vld [vmem:[%s3511_s1 + $0x3ac] ss:$16 sps:$4 sm:$0xff]   ;;  %v2518_v60 = vld [vmem:[%s3511_s1 + $0x1a8] ss:$16 sps:$4 sm:$0xff]  }
  0x71   :  { %1751 = vmatprep.subr.bf16.mxu1 %v2435_v61  ;;  %v2521_v61 = vld [vmem:[%s3511_s1 + $0x3a8] ss:$16 sps:$4 sm:$0xff]  }
  0x73   :  { %1711 = vmatpush2.bf16.msra.mxu0 %v2430_v62  ;;  %v2526_v62 = vld [vmem:[%s3511_s1 + $0x18c] ss:$16 sps:$4 sm:$0xff]  }
  0x74   :  { %1752 = vmatpush2.bf16.msra.mxu1 %v2433_v63  ;;  %1712 = vmatprep.subr.bf16.mxu0 %v2438_v0  ;;  %v2529_v63 = vld [vmem:[%s3511_s1 + $0x38c] ss:$16 sps:$4 sm:$0xff]   ;;  %v2524_v0 = vld [vmem:[%s3511_s1 + $0x188] ss:$16 sps:$4 sm:$0xff]  }
  0x75   :  { %1753 = vmatprep.subr.bf16.mxu1 %v2441_v1  ;;  %v2527_v1 = vld [vmem:[%s3511_s1 + $0x388] ss:$16 sps:$4 sm:$0xff]  }
  0x77   :  { %1713 = vmatpush2.bf16.msra.mxu0 %v2436_v2  ;;  %v2532_v2 = vld [vmem:[%s3511_s1 + $0x16c] ss:$16 sps:$4 sm:$0xff]  }
  0x78   :  { %1754 = vmatpush2.bf16.msra.mxu1 %v2439_v3  ;;  %1714 = vmatprep.subr.bf16.mxu0 %v2444_v4  ;;  %v2535_v3 = vld [vmem:[%s3511_s1 + $0x36c] ss:$16 sps:$4 sm:$0xff]   ;;  %v2530_v4 = vld [vmem:[%s3511_s1 + $0x168] ss:$16 sps:$4 sm:$0xff]  }
  0x79   :  { %1755 = vmatprep.subr.bf16.mxu1 %v2447_v5  ;;  %v2533_v5 = vld [vmem:[%s3511_s1 + $0x368] ss:$16 sps:$4 sm:$0xff]  }
  0x7b   :  { %1715 = vmatpush2.bf16.msra.mxu0 %v2442_v8  ;;  %v2538_v8 = vld [vmem:[%s3511_s1 + $0x14c] ss:$16 sps:$4 sm:$0xff]  }
  0x7c   :  { %1756 = vmatpush2.bf16.msra.mxu1 %v2445_v9  ;;  %1716 = vmatprep.subr.bf16.mxu0 %v2450_v10  ;;  %v2541_v9 = vld [vmem:[%s3511_s1 + $0x34c] ss:$16 sps:$4 sm:$0xff]   ;;  %v2536_v10 = vld [vmem:[%s3511_s1 + $0x148] ss:$16 sps:$4 sm:$0xff]  }
  0x7d   :  { %1757 = vmatprep.subr.bf16.mxu1 %v2453_v11  ;;  %v2539_v11 = vld [vmem:[%s3511_s1 + $0x348] ss:$16 sps:$4 sm:$0xff]  }
  0x7f   :  { %1717 = vmatpush2.bf16.msra.mxu0 %v2448_v12  ;;  %v2544_v12 = vld [vmem:[%s3511_s1 + $0x12c] ss:$16 sps:$4 sm:$0xff]  }
  0x80   :  { %1758 = vmatpush2.bf16.msra.mxu1 %v2451_v13  ;;  %1768 = vmatprep.subr.bf16.mxu0 %v2460_v14  ;;  %v2547_v13 = vld [vmem:[%s3511_s1 + $0x32c] ss:$16 sps:$4 sm:$0xff]   ;;  %v2542_v14 = vld [vmem:[%s3511_s1 + $0x128] ss:$16 sps:$4 sm:$0xff]  }
  0x81   :  { %1809 = vmatprep.subr.bf16.mxu1 %v2463_v15  ;;  %v2545_v15 = vld [vmem:[%s3511_s1 + $0x328] ss:$16 sps:$4 sm:$0xff]  }
  0x82   :  { %1719 = vmatmul.mubr.bf16.vlgmr.msra.gmra.mxu0 %v3108_v16 }
  0x83   :  { %1760 = vmatmul.mubr.bf16.vlgmr.msra.gmra.mxu1 %v3112_v17  ;;  %1769 = vmatpush1.bf16.msra.mxu0 %v2458_v18  ;;  %v2550_v18 = vld [vmem:[%s3511_s1 + $0x10c] ss:$16 sps:$4 sm:$0xff]  }
  0x84   :  { %1810 = vmatpush1.bf16.msra.mxu1 %v2461_v19  ;;  %1770 = vmatprep.subr.bf16.mxu0 %v2466_v20  ;;  %v2553_v19 = vld [vmem:[%s3511_s1 + $0x30c] ss:$16 sps:$4 sm:$0xff]   ;;  %v2548_v20 = vld [vmem:[%s3511_s1 + $0x108] ss:$16 sps:$4 sm:$0xff]  }
  0x85   :  { %1811 = vmatprep.subr.bf16.mxu1 %v2469_v21  ;;  %1800 = vmatprep.mubr.bf16.mxu0 %v2819_v47  ;;  %v2481_v47 = vld [vmem:[%s3511_s1 + $0x28c] ss:$16 sps:$4 sm:$0xff]   ;;  %v2551_v21 = vld [vmem:[%s3511_s1 + $0x308] ss:$16 sps:$4 sm:$0xff]  }
  0x86   :  { %1841 = vmatprep.mubr.bf16.mxu1 %v2830_v51  ;;  %v2476_v51 = vld [vmem:[%s3511_s1 + $0x88] ss:$16 sps:$4 sm:$0xff]  }
  0x87   :  { %1771 = vmatpush1.bf16.msra.mxu0 %v2464_v22  ;;  %v2556_v22 = vld [vmem:[%s3511_s1 + $0x4ec] ss:$16 sps:$4 sm:$0xff]  }
  0x88   :  { %1812 = vmatpush1.bf16.msra.mxu1 %v2467_v23  ;;  %1772 = vmatprep.subr.bf16.mxu0 %v2472_v24  ;;  %v2559_v23 = vld [vmem:[%s3511_s1 + $0x6ec] ss:$16 sps:$4 sm:$0xff]   ;;  %v2554_v24 = vld [vmem:[%s3511_s1 + $0x4e8] ss:$16 sps:$4 sm:$0xff]  }
  0x89   :  { %1813 = vmatprep.subr.bf16.mxu1 %v2475_v25  ;;  %v2557_v25 = vld [vmem:[%s3511_s1 + $0x6e8] ss:$16 sps:$4 sm:$0xff]  }
  0x8b   :  { %1773 = vmatpush1.bf16.msra.mxu0 %v2470_v26  ;;  %v2562_v26 = vld [vmem:[%s3511_s1 + $0x4cc] ss:$16 sps:$4 sm:$0xff]  }
  0x8c   :  { %1814 = vmatpush1.bf16.msra.mxu1 %v2473_v27  ;;  %1774 = vmatprep.subr.bf16.mxu0 %v2478_v28  ;;  %v2565_v27 = vld [vmem:[%s3511_s1 + $0x6cc] ss:$16 sps:$4 sm:$0xff]   ;;  %v2560_v28 = vld [vmem:[%s3511_s1 + $0x4c8] ss:$16 sps:$4 sm:$0xff]  }
  0x8d   :  { %1815 = vmatprep.subr.bf16.mxu1 %v2481_v47  ;;  %v2563_v47 = vld [vmem:[%s3511_s1 + $0x6c8] ss:$16 sps:$4 sm:$0xff]  }
  0x8f   :  { %1775 = vmatpush1.bf16.msra.mxu0 %v2476_v51  ;;  %v2568_v51 = vld [vmem:[%s3511_s1 + $0x4ac] ss:$16 sps:$4 sm:$0xff]  }
  0x90   :  { %1816 = vmatpush1.bf16.msra.mxu1 %v2479_v29  ;;  %1776 = vmatprep.subr.bf16.mxu0 %v2484_v30  ;;  %v2569_v29 = vld [vmem:[%s3511_s1 + $0x6a8] ss:$16 sps:$4 sm:$0xff]   ;;  %v2574_v30 = vld [vmem:[%s3511_s1 + $0x48c] ss:$16 sps:$4 sm:$0xff]  }
  0x91   :  { %1817 = vmatprep.subr.bf16.mxu1 %v2487_v31  ;;  %v2575_v31 = vld [vmem:[%s3511_s1 + $0x688] ss:$16 sps:$4 sm:$0xff]  }
  0x93   :  { %1777 = vmatpush1.bf16.msra.mxu0 %v2482_v32  ;;  %v2580_v32 = vld [vmem:[%s3511_s1 + $0x46c] ss:$16 sps:$4 sm:$0xff]  }
  0x94   :  { %1818 = vmatpush1.bf16.msra.mxu1 %v2485_v33  ;;  %1778 = vmatprep.subr.bf16.mxu0 %v2490_v34  ;;  %v2583_v33 = vld [vmem:[%s3511_s1 + $0x66c] ss:$16 sps:$4 sm:$0xff]   ;;  %v2578_v34 = vld [vmem:[%s3511_s1 + $0x468] ss:$16 sps:$4 sm:$0xff]  }
  0x95   :  { %1819 = vmatprep.subr.bf16.mxu1 %v2493_v35  ;;  %v2581_v35 = vld [vmem:[%s3511_s1 + $0x668] ss:$16 sps:$4 sm:$0xff]  }
  0x97   :  { %1779 = vmatpush1.bf16.msra.mxu0 %v2488_v38  ;;  %v2586_v38 = vld [vmem:[%s3511_s1 + $0x44c] ss:$16 sps:$4 sm:$0xff]  }
  0x98   :  { %1820 = vmatpush1.bf16.msra.mxu1 %v2491_v39  ;;  %1780 = vmatprep.subr.bf16.mxu0 %v2496_v40  ;;  %v2589_v39 = vld [vmem:[%s3511_s1 + $0x64c] ss:$16 sps:$4 sm:$0xff]   ;;  %v2584_v40 = vld [vmem:[%s3511_s1 + $0x448] ss:$16 sps:$4 sm:$0xff]  }
  0x99   :  { %1821 = vmatprep.subr.bf16.mxu1 %v2499_v41  ;;  %v2587_v41 = vld [vmem:[%s3511_s1 + $0x648] ss:$16 sps:$4 sm:$0xff]  }
  0x9b   :  { %1781 = vmatpush1.bf16.msra.mxu0 %v2494_v42  ;;  %v2592_v42 = vld [vmem:[%s3511_s1 + $0x42c] ss:$16 sps:$4 sm:$0xff]  }
  0x9c   :  { %1822 = vmatpush1.bf16.msra.mxu1 %v2497_v43  ;;  %1782 = vmatprep.subr.bf16.mxu0 %v2502_v44  ;;  %v2595_v43 = vld [vmem:[%s3511_s1 + $0x62c] ss:$16 sps:$4 sm:$0xff]   ;;  %v2590_v44 = vld [vmem:[%s3511_s1 + $0x428] ss:$16 sps:$4 sm:$0xff]  }
  0x9d   :  { %1823 = vmatprep.subr.bf16.mxu1 %v2505_v45  ;;  %v2593_v45 = vld [vmem:[%s3511_s1 + $0x628] ss:$16 sps:$4 sm:$0xff]  }
  0x9f   :  { %1783 = vmatpush1.bf16.msra.mxu0 %v2500_v46  ;;  %v2598_v46 = vld [vmem:[%s3511_s1 + $0x40c] ss:$16 sps:$4 sm:$0xff]  }
  0xa0   :  { %1824 = vmatpush1.bf16.msra.mxu1 %v2503_v48  ;;  %1784 = vmatprep.subr.bf16.mxu0 %v2508_v49  ;;  %v2601_v48 = vld [vmem:[%s3511_s1 + $0x60c] ss:$16 sps:$4 sm:$0xff]   ;;  %v2596_v49 = vld [vmem:[%s3511_s1 + $0x408] ss:$16 sps:$4 sm:$0xff]  }
  0xa1   :  { %1825 = vmatprep.subr.bf16.mxu1 %v2511_v50  ;;  %v2599_v50 = vld [vmem:[%s3511_s1 + $0x608] ss:$16 sps:$4 sm:$0xff]  }
  0xa3   :  { %1785 = vmatpush2.bf16.msra.mxu0 %v2506_v52  ;;  %v2604_v52 = vld [vmem:[%s3511_s1 + $0x5ec] ss:$16 sps:$4 sm:$0xff]  }
  0xa4   :  { %1826 = vmatpush2.bf16.msra.mxu1 %v2509_v53  ;;  %1786 = vmatprep.subr.bf16.mxu0 %v2514_v54  ;;  %v2607_v53 = vld [vmem:[%s3511_s1 + $0x7ec] ss:$16 sps:$4 sm:$0xff]   ;;  %v2602_v54 = vld [vmem:[%s3511_s1 + $0x5e8] ss:$16 sps:$4 sm:$0xff]  }
  0xa5   :  { %1827 = vmatprep.subr.bf16.mxu1 %v2517_v55  ;;  %v2605_v55 = vld [vmem:[%s3511_s1 + $0x7e8] ss:$16 sps:$4 sm:$0xff]  }
  0xa7   :  { %1787 = vmatpush2.bf16.msra.mxu0 %v2512_v56  ;;  %v2610_v56 = vld [vmem:[%s3511_s1 + $0x5cc] ss:$16 sps:$4 sm:$0xff]  }
  0xa8   :  { %1828 = vmatpush2.bf16.msra.mxu1 %v2515_v57  ;;  %1788 = vmatprep.subr.bf16.mxu0 %v2520_v58  ;;  %v2613_v57 = vld [vmem:[%s3511_s1 + $0x7cc] ss:$16 sps:$4 sm:$0xff]   ;;  %v2608_v58 = vld [vmem:[%s3511_s1 + $0x5c8] ss:$16 sps:$4 sm:$0xff]  }
  0xa9   :  { %1829 = vmatprep.subr.bf16.mxu1 %v2523_v59  ;;  %v2611_v59 = vld [vmem:[%s3511_s1 + $0x7c8] ss:$16 sps:$4 sm:$0xff]  }
  0xab   :  { %1789 = vmatpush2.bf16.msra.mxu0 %v2518_v60  ;;  %v2616_v60 = vld [vmem:[%s3511_s1 + $0x5ac] ss:$16 sps:$4 sm:$0xff]  }
  0xac   :  { %1830 = vmatpush2.bf16.msra.mxu1 %v2521_v61  ;;  %1790 = vmatprep.subr.bf16.mxu0 %v2526_v62  ;;  %v2619_v61 = vld [vmem:[%s3511_s1 + $0x7ac] ss:$16 sps:$4 sm:$0xff]   ;;  %v2614_v62 = vld [vmem:[%s3511_s1 + $0x5a8] ss:$16 sps:$4 sm:$0xff]  }
  0xad   :  { %1831 = vmatprep.subr.bf16.mxu1 %v2529_v63  ;;  %v2617_v63 = vld [vmem:[%s3511_s1 + $0x7a8] ss:$16 sps:$4 sm:$0xff]  }
  0xaf   :  { %1791 = vmatpush2.bf16.msra.mxu0 %v2524_v0  ;;  %v2622_v0 = vld [vmem:[%s3511_s1 + $0x58c] ss:$16 sps:$4 sm:$0xff]  }
  0xb0   :  { %1832 = vmatpush2.bf16.msra.mxu1 %v2527_v1  ;;  %1792 = vmatprep.subr.bf16.mxu0 %v2532_v2  ;;  %v2625_v1 = vld [vmem:[%s3511_s1 + $0x78c] ss:$16 sps:$4 sm:$0xff]   ;;  %v2620_v2 = vld [vmem:[%s3511_s1 + $0x588] ss:$16 sps:$4 sm:$0xff]  }
  0xb1   :  { %1833 = vmatprep.subr.bf16.mxu1 %v2535_v3  ;;  %v2623_v3 = vld [vmem:[%s3511_s1 + $0x788] ss:$16 sps:$4 sm:$0xff]  }
  0xb3   :  { %1793 = vmatpush2.bf16.msra.mxu0 %v2530_v4  ;;  %v2628_v4 = vld [vmem:[%s3511_s1 + $0x56c] ss:$16 sps:$4 sm:$0xff]  }
  0xb4   :  { %1834 = vmatpush2.bf16.msra.mxu1 %v2533_v5  ;;  %1794 = vmatprep.subr.bf16.mxu0 %v2538_v8  ;;  %v2631_v5 = vld [vmem:[%s3511_s1 + $0x76c] ss:$16 sps:$4 sm:$0xff]   ;;  %v2626_v8 = vld [vmem:[%s3511_s1 + $0x568] ss:$16 sps:$4 sm:$0xff]  }
  0xb5   :  { %1835 = vmatprep.subr.bf16.mxu1 %v2541_v9  ;;  %v2629_v9 = vld [vmem:[%s3511_s1 + $0x768] ss:$16 sps:$4 sm:$0xff]  }
  0xb7   :  { %1795 = vmatpush2.bf16.msra.mxu0 %v2536_v10  ;;  %v2634_v10 = vld [vmem:[%s3511_s1 + $0x54c] ss:$16 sps:$4 sm:$0xff]  }
  0xb8   :  { %1836 = vmatpush2.bf16.msra.mxu1 %v2539_v11  ;;  %1796 = vmatprep.subr.bf16.mxu0 %v2544_v12  ;;  %v2637_v11 = vld [vmem:[%s3511_s1 + $0x74c] ss:$16 sps:$4 sm:$0xff]   ;;  %v2632_v12 = vld [vmem:[%s3511_s1 + $0x548] ss:$16 sps:$4 sm:$0xff]  }
  0xb9   :  { %1837 = vmatprep.subr.bf16.mxu1 %v2547_v13  ;;  %v2635_v13 = vld [vmem:[%s3511_s1 + $0x748] ss:$16 sps:$4 sm:$0xff]  }
  0xbb   :  { %1797 = vmatpush2.bf16.msra.mxu0 %v2542_v14  ;;  %v2640_v14 = vld [vmem:[%s3511_s1 + $0x52c] ss:$16 sps:$4 sm:$0xff]  }
  0xbc   :  { %1838 = vmatpush2.bf16.msra.mxu1 %v2545_v15  ;;  %1798 = vmatprep.subr.bf16.mxu0 %v2550_v18  ;;  %v2643_v15 = vld [vmem:[%s3511_s1 + $0x72c] ss:$16 sps:$4 sm:$0xff]   ;;  %v2638_v18 = vld [vmem:[%s3511_s1 + $0x528] ss:$16 sps:$4 sm:$0xff]  }
  0xbd   :  { %1839 = vmatprep.subr.bf16.mxu1 %v2553_v19  ;;  %v2641_v19 = vld [vmem:[%s3511_s1 + $0x728] ss:$16 sps:$4 sm:$0xff]  }
  0xbf   :  { %1799 = vmatpush2.bf16.msra.mxu0 %v2548_v20  ;;  %v2646_v20 = vld [vmem:[%s3511_s1 + $0x50c] ss:$16 sps:$4 sm:$0xff]  }
  0xc0   :  { %1840 = vmatpush2.bf16.msra.mxu1 %v2551_v21  ;;  %1850 = vmatprep.subr.bf16.mxu0 %v2556_v22  ;;  %v2649_v21 = vld [vmem:[%s3511_s1 + $0x70c] ss:$16 sps:$4 sm:$0xff]   ;;  %v2644_v22 = vld [vmem:[%s3511_s1 + $0x508] ss:$16 sps:$4 sm:$0xff]  }
  0xc1   :  { %1891 = vmatprep.subr.bf16.mxu1 %v2559_v23  ;;  %v2647_v23 = vld [vmem:[%s3511_s1 + $0x708] ss:$16 sps:$4 sm:$0xff]  }
  0xc2   :  { %1801 = vmatmul.mubr.bf16.vlgmr.msra.gmra.mxu0 %v2888_v6  ;;  %v2571_v6 = vld [vmem:[%s3511_s1 + $0x6ac] ss:$16 sps:$4 sm:$0xff]  }
  0xc3   :  { %1842 = vmatmul.mubr.bf16.vlgmr.msra.gmra.mxu1 %v2890_v7  ;;  %1851 = vmatpush1.bf16.msra.mxu0 %v2554_v24  ;;  %v2566_v7 = vld [vmem:[%s3511_s1 + $0x4a8] ss:$16 sps:$4 sm:$0xff]  }
  0xc4   :  { %1892 = vmatpush1.bf16.msra.mxu1 %v2557_v25  ;;  %1852 = vmatprep.subr.bf16.mxu0 %v2562_v26 }
  0xc5   :  { %1893 = vmatprep.subr.bf16.mxu1 %v2565_v27  ;;  %1882 = vmatprep.mubr.bf16.mxu0 %v2984_v36  ;;  %v2577_v36 = vld [vmem:[%s3511_s1 + $0x68c] ss:$16 sps:$4 sm:$0xff]  }
  0xc6   :  { %1923 = vmatprep.mubr.bf16.mxu1 %v2988_v37  ;;  %v2572_v37 = vld [vmem:[%s3511_s1 + $0x488] ss:$16 sps:$4 sm:$0xff]  }
  0xc7   :  { %1853 = vmatpush1.bf16.msra.mxu0 %v2560_v28 }
  0xc8   :  { %1894 = vmatpush1.bf16.msra.mxu1 %v2563_v47  ;;  %1854 = vmatprep.subr.bf16.mxu0 %v2568_v51 }
  0xc9   :  { %1895 = vmatprep.subr.bf16.mxu1 %v2571_v6 }
  0xcb   :  { %1855 = vmatpush1.bf16.msra.mxu0 %v2566_v7  ;;  %v276_v7 = vlaneseq }
  0xcc   :  { %1896 = vmatpush1.bf16.msra.mxu1 %v2569_v29  ;;  %1856 = vmatprep.subr.bf16.mxu0 %v2574_v30 }
  0xcd   :  { %1897 = vmatprep.subr.bf16.mxu1 %v2577_v36  ;;  %v277_v29 = vshrl.u32 %v276_v7, 7  ;;  %v274_v36 = vld [vmem:[%s3513_s2] sm:$0xf] }
  0xcf   :  { %1857 = vmatpush1.bf16.msra.mxu0 %v2572_v37  ;;  %v278_v30 = vsub.s32 0, %v277_v29  ;;  %v282_v37 = vsub.s32 1, %v277_v29 }
  0xd0   :  { %1898 = vmatpush1.bf16.msra.mxu1 %v2575_v31  ;;  %1858 = vmatprep.subr.bf16.mxu0 %v2580_v32 }
  0xd1   :  { %1899 = vmatprep.subr.bf16.mxu1 %v2583_v33  ;;  %v279_v31 = vrot.slane %v274_v36, %v278_v30  ;;  %v283_v32 = vrot.slane %v274_v36, %v282_v37 }
  0xd3   :  { %1859 = vmatpush1.bf16.msra.mxu0 %v2578_v34 }
  0xd4   :  { %1900 = vmatpush1.bf16.msra.mxu1 %v2581_v35  ;;  %1860 = vmatprep.subr.bf16.mxu0 %v2586_v38 }
  0xd5   :  { %1901 = vmatprep.subr.bf16.mxu1 %v2589_v39 }
  0xd7   :  { %1861 = vmatpush1.bf16.msra.mxu0 %v2584_v40 }
  0xd8   :  { %1902 = vmatpush1.bf16.msra.mxu1 %v2587_v41  ;;  %1862 = vmatprep.subr.bf16.mxu0 %v2592_v42 }
  0xd9   :  { %1903 = vmatprep.subr.bf16.mxu1 %v2595_v43 }
  0xdb   :  { %1863 = vmatpush1.bf16.msra.mxu0 %v2590_v44 }
  0xdc   :  { %1904 = vmatpush1.bf16.msra.mxu1 %v2593_v45  ;;  %1864 = vmatprep.subr.bf16.mxu0 %v2598_v46 }
  0xdd   :  { %1905 = vmatprep.subr.bf16.mxu1 %v2601_v48 }
  0xdf   :  { %1865 = vmatpush1.bf16.msra.mxu0 %v2596_v49 }
  0xe0   :  { %1906 = vmatpush1.bf16.msra.mxu1 %v2599_v50  ;;  %1866 = vmatprep.subr.bf16.mxu0 %v2604_v52 }
  0xe1   :  { %1907 = vmatprep.subr.bf16.mxu1 %v2607_v53 }
  0xe3   :  { %1867 = vmatpush2.bf16.msra.mxu0 %v2602_v54 }
  0xe4   :  { %1908 = vmatpush2.bf16.msra.mxu1 %v2605_v55  ;;  %1868 = vmatprep.subr.bf16.mxu0 %v2610_v56 }
  0xe5   :  { %1909 = vmatprep.subr.bf16.mxu1 %v2613_v57 }
  0xe7   :  { %1869 = vmatpush2.bf16.msra.mxu0 %v2608_v58 }
  0xe8   :  { %1910 = vmatpush2.bf16.msra.mxu1 %v2611_v59  ;;  %1870 = vmatprep.subr.bf16.mxu0 %v2616_v60 }
  0xe9   :  { %1911 = vmatprep.subr.bf16.mxu1 %v2619_v61 }
  0xeb   :  { %1871 = vmatpush2.bf16.msra.mxu0 %v2614_v62 }
  0xec   :  { %1912 = vmatpush2.bf16.msra.mxu1 %v2617_v63  ;;  %1872 = vmatprep.subr.bf16.mxu0 %v2622_v0 }
  0xed   :  { %1913 = vmatprep.subr.bf16.mxu1 %v2625_v1 }
  0xef   :  { %1873 = vmatpush2.bf16.msra.mxu0 %v2620_v2 }
  0xf0   :  { %1914 = vmatpush2.bf16.msra.mxu1 %v2623_v3  ;;  %1874 = vmatprep.subr.bf16.mxu0 %v2628_v4 }
  0xf1   :  { %1915 = vmatprep.subr.bf16.mxu1 %v2631_v5 }
  0xf3   :  { %1875 = vmatpush2.bf16.msra.mxu0 %v2626_v8 }
  0xf4   :  { %1916 = vmatpush2.bf16.msra.mxu1 %v2629_v9  ;;  %1876 = vmatprep.subr.bf16.mxu0 %v2634_v10 }
  0xf5   :  { %1917 = vmatprep.subr.bf16.mxu1 %v2637_v11 }
  0xf7   :  { %1877 = vmatpush2.bf16.msra.mxu0 %v2632_v12 }
  0xf8   :  { %1918 = vmatpush2.bf16.msra.mxu1 %v2635_v13  ;;  %1878 = vmatprep.subr.bf16.mxu0 %v2640_v14 }
  0xf9   :  { %1919 = vmatprep.subr.bf16.mxu1 %v2643_v15 }
  0xfb   :  { %1879 = vmatpush2.bf16.msra.mxu0 %v2638_v18  ;;  %v286_v18 = vsub.s32 2, %v277_v29 }
  0xfc   :  { %1920 = vmatpush2.bf16.msra.mxu1 %v2641_v19  ;;  %1880 = vmatprep.subr.bf16.mxu0 %v2646_v20  ;;  %v290_v19 = vsub.s32 3, %v277_v29 }
  0xfd   :  { %1921 = vmatprep.subr.bf16.mxu1 %v2649_v21  ;;  %v287_v20 = vrot.slane %v274_v36, %v286_v18 }
  0xfe   :  { %v291_v21 = vrot.slane %v274_v36, %v290_v19 }
  0xff   :  { %1881 = vmatpush2.bf16.msra.mxu0 %v2644_v22 }
 0x100   :  { %1922 = vmatpush2.bf16.msra.mxu1 %v2647_v23 }
 0x102   :  { %v1638_v24 = vpop.f32.mrf.mxu0  ;;  %1883 = vmatmul.mubr.bf16.vlgmr.msra.gmra.mxu0 %v3108_v16 }
 0x103   :  { %v1679_v25 = vpop.f32.mrf.mxu1  ;;  %1924 = vmatmul.mubr.bf16.vlgmr.msra.gmra.mxu1 %v3112_v17  ;;  %v1639_v33 = vadd.f32 %v1638_v24, %v279_v31 }
 0x104   :  { %v1640_v26 = vpop.f32.mrf.mxu0 }
 0x105   :  { %v1681_v27 = vpop.f32.mrf.mxu1  ;;  %v1641_v16 = vadd.f32 %v1640_v26, %v283_v32  ;;  %v1680_v34 = vadd.f32 %v1679_v25, %v1639_v33 }
 0x106   :  { %v1642_v28 = vpop.f32.mrf.mxu0 }
 0x107   :  { %v1683_v47 = vpop.f32.mrf.mxu1  ;;  %v1682_v38 = vadd.f32 %v1681_v27, %v1641_v16 }
 0x108   :  { %v1643_v51 = vpop.f32.mrf.mxu0 }
 0x109   :  { %v1684_v6 = vpop.f32.mrf.mxu1 }
 0x142   :  { %v1720_v17 = vpop.f32.mrf.mxu0 }
 0x143   :  { %v1761_v35 = vpop.f32.mrf.mxu1  ;;  %v1721_v39 = vadd.f32 %v1720_v17, %v1680_v34 }
 0x144   :  { %v1722_v40 = vpop.f32.mrf.mxu0 }
 0x145   :  { %v1763_v41 = vpop.f32.mrf.mxu1  ;;  %v1762_v42 = vadd.f32 %v1761_v35, %v1721_v39  ;;  %v1723_v43 = vadd.f32 %v1722_v40, %v1682_v38 }
 0x146   :  { %v1724_v44 = vpop.f32.mrf.mxu0 }
 0x147   :  { %v1765_v45 = vpop.f32.mrf.mxu1  ;;  %v1936_v46 = vmul.f32 0.044715, %v1762_v42  ;;  %v1764_v48 = vadd.f32 %v1763_v41, %v1723_v43  ;;  %v1932_v0 = vmul.f32 0.5, %v1762_v42 }
 0x148   :  { %v1725_v49 = vpop.f32.mrf.mxu0 }
 0x149   :  { %v1766_v50 = vpop.f32.mrf.mxu1  ;;  %v1940_v52 = vmul.f32 %v1936_v46, %v1762_v42  ;;  %v1937_v53 = vmul.f32 0.044715, %v1764_v48  ;;  %v1933_v1 = vmul.f32 0.5, %v1764_v48 }
 0x14b   :  { %v1944_v54 = vmul.f32 %v1940_v52, %v1762_v42  ;;  %v1941_v55 = vmul.f32 %v1937_v53, %v1764_v48 }
 0x14d   :  { %v1948_v56 = vadd.f32 %v1944_v54, %v1762_v42  ;;  %v1945_v57 = vmul.f32 %v1941_v55, %v1764_v48 }
 0x14f   :  { %v1952_v58 = vmul.f32 0.7978846, %v1948_v56  ;;  %v1949_v59 = vadd.f32 %v1945_v57, %v1764_v48 }
 0x151   :  { %2650 = vtanh.f32 %v1952_v58  ;;  %v1953_v60 = vmul.f32 0.7978846, %v1949_v59 }
 0x153   :  { %2652 = vtanh.f32 %v1953_v60 }
 0x15e   :  { %v2651_v61 = vpop.eup %2650 }
 0x15f   :  { %v1960_v62 = vadd.f32 1.0, %v2651_v61 }
 0x160   :  { %v2653_v63 = vpop.eup %2652 }
 0x161   :  { %v1961_v2 = vadd.f32 1.0, %v2653_v63  ;;  %v1964_v3 = vmul.f32 %v1960_v62, %v1932_v0 }
 0x163   :  { %v1965_v4 = vmul.f32 %v1961_v2, %v1933_v1 }
 0x165   :  { %v2256_v5 = vpack.c.bf16 %v1965_v4, %v1964_v3 }
 0x167   :  { %1984 = vst [vmem:[%s3514_s3] sm:$0xff] %v2256_v5 }
 0x182   :  { %v1802_v8 = vpop.f32.mrf.mxu0 }
 0x183   :  { %v1843_v9 = vpop.f32.mrf.mxu1  ;;  %v1803_v22 = vadd.f32 %v1802_v8, %v287_v20 }
 0x184   :  { %v1804_v10 = vpop.f32.mrf.mxu0 }
 0x185   :  { %v1845_v11 = vpop.f32.mrf.mxu1  ;;  %v1805_v23 = vadd.f32 %v1804_v10, %v291_v21  ;;  %v1844_v24 = vadd.f32 %v1843_v9, %v1803_v22 }
 0x186   :  { %v1806_v12 = vpop.f32.mrf.mxu0 }
 0x187   :  { %v1847_v13 = vpop.f32.mrf.mxu1  ;;  %v1846_v27 = vadd.f32 %v1845_v11, %v1805_v23 }
 0x188   :  { %v1807_v14 = vpop.f32.mrf.mxu0 }
 0x189   :  { %v1848_v15 = vpop.f32.mrf.mxu1 }
 0x1c2   :  { %v1884_v25 = vpop.f32.mrf.mxu0 }
 0x1c3   :  { %v1925_v26 = vpop.f32.mrf.mxu1  ;;  %v1885_v28 = vadd.f32 %v1884_v25, %v1844_v24 }
 0x1c4   :  { %v1886_v47 = vpop.f32.mrf.mxu0 }
 0x1c5   :  { %v1927_v51 = vpop.f32.mrf.mxu1  ;;  %v1926_v6 = vadd.f32 %v1925_v26, %v1885_v28  ;;  %v1887_v7 = vadd.f32 %v1886_v47, %v1846_v27 }
 0x1c6   :  { %v1888_v30 = vpop.f32.mrf.mxu0 }
 0x1c7   :  { %v1929_v37 = vpop.f32.mrf.mxu1  ;;  %v1938_v31 = vmul.f32 0.044715, %v1926_v6  ;;  %v1928_v32 = vadd.f32 %v1927_v51, %v1887_v7  ;;  %v1934_v45 = vmul.f32 0.5, %v1926_v6 }
 0x1c8   :  { %v1889_v33 = vpop.f32.mrf.mxu0 }
 0x1c9   :  { %v1930_v16 = vpop.f32.mrf.mxu1  ;;  %v1942_v29 = vmul.f32 %v1938_v31, %v1926_v6  ;;  %v1939_v34 = vmul.f32 0.044715, %v1928_v32  ;;  %v1935_v46 = vmul.f32 0.5, %v1928_v32 }
 0x1cb   :  { %v1946_v36 = vmul.f32 %v1942_v29, %v1926_v6  ;;  %v1943_v17 = vmul.f32 %v1939_v34, %v1928_v32 }
 0x1cd   :  { %v1950_v35 = vadd.f32 %v1946_v36, %v1926_v6  ;;  %v1947_v38 = vmul.f32 %v1943_v17, %v1928_v32 }
 0x1cf   :  { %v1954_v39 = vmul.f32 0.7978846, %v1950_v35  ;;  %v1951_v40 = vadd.f32 %v1947_v38, %v1928_v32 }
 0x1d1   :  { %2654 = vtanh.f32 %v1954_v39  ;;  %v1955_v41 = vmul.f32 0.7978846, %v1951_v40 }
 0x1d3   :  { %2656 = vtanh.f32 %v1955_v41 }
 0x1de   :  { %v2655_v42 = vpop.eup %2654 }
 0x1df   :  { %v1962_v43 = vadd.f32 1.0, %v2655_v42 }
 0x1e0   :  { %v2657_v44 = vpop.eup %2656 }
 0x1e1   :  { %v1963_v48 = vadd.f32 1.0, %v2657_v44  ;;  %v1966_v49 = vmul.f32 %v1962_v43, %v1934_v45 }
 0x1e3   :  { %v1967_v50 = vmul.f32 %v1963_v48, %v1935_v46 }
 0x1e5   :  { %v2257_v52 = vpack.c.bf16 %v1967_v50, %v1966_v49 }
 0x1e7   :  { %1985 = vst [vmem:[%s3514_s3 + $0x8] sm:$0xff] %v2257_v52 }

// kernel: tile.28
= control target key start
LH: loop header
LB: loop body
LE: loop exit
PB: predicated region body
PF: predicated region fallthrough
CT: control target
= control target key end

     0   :  { %s22_s0 = inlined_call_operand.vmem [shape: f32[64], index: 0, kind: input, shape index: {}]   ;;  %s23_s1 = inlined_call_operand.vmem [shape: f32[4,64], index: 1, kind: output, shape index: {}]  }
   0x1   :  { %v4_v0 = vld [vmem:[%s22_s0] ss:$0 sm:$0xff] }
   0x2   :  { %5 = vst [vmem:[%s23_s1] sm:$0xf] %v4_v0 }

// kernel: tile.29
= control target key start
LH: loop header
LB: loop body
LE: loop exit
PB: predicated region body
PF: predicated region fallthrough
CT: control target
= control target key end

     0   :  { %s7_s8 = smov 3  ;;  %vm9_vm0 = vcmask 523264   ;;  %s34_s9 = smov 64   ;;  %vm16_vm1 = vcmask 1048064   ;;  %s54_s0 = inlined_call_operand.vmem [shape: f32[4,64], index: 0, kind: input, shape index: {}]   ;;  %s55_s1 = inlined_call_operand.vmem [shape: f32[1,256], index: 1, kind: output, shape index: {}]  }
   0x1   :  { %v5_v0 = vld [vmem:[%s54_s0] sm:$0xf]  ;;  %s12_s0 = smov 3 }
   0x2   :  { %6 = vst [vmem:[#allocation1] sm:$0xf] %v5_v0 }
   0x9   :  { %v13_v1 = vld [vmem:[#allocation1 + $0x1] ss:$2 sm:%s12_s0]   ;;  %v8_v2 = vld [vmem:[#allocation1] ss:$2 sm:%s7_s8]  }
   0xa   :  { %14 = vrot.lane.b32.xlu0 %v13_v1, %s34_s9  ;;  %10 = vst.msk [vmem:[#allocation0] ss:$8 sm:$0x3] %vm9_vm0, %v8_v2  }
  0x7c   :  { %v15_v3 = vpop.permute.xlu0 %14  }
  0x7d   :  { %17 = vst.msk [vmem:[#allocation0] ss:$8 sm:$0x3] %vm16_vm1, %v15_v3  }
  0x84   :  { %v22_v4 = vld [vmem:[#allocation0] sm:$0x1]  ;;  %v27_v5 = vld [vmem:[#allocation0 + $0x8] sm:$0x1] }
  0x85   :  { %25 = vst [vmem:[%s55_s1] sm:$0x1] %v22_v4  ;;  %32 = vst [vmem:[%s55_s1 + $0x1] sm:$0x1] %v27_v5 }

// kernel: ae_conv_forward.16
= control target key start
LH: loop header
LB: loop body
LE: loop exit
PB: predicated region body
PF: predicated region fallthrough
CT: control target
= control target key end

     0   :  { %s1172_s1 = inlined_call_operand.vmem [shape: bf16[512,256], index: 1, kind: input, shape index: {}]   ;;  %s1173_s0 = inlined_call_operand.vmem [shape: bf16[32,512], index: 0, kind: input, shape index: {}]   ;;  %s1174_s2 = inlined_call_operand.vmem [shape: f32[1,256], index: 2, kind: input, shape index: {}]   ;;  %s1175_s3 = inlined_call_operand.vmem [shape: bf16[32,256], index: 3, kind: output, shape index: {}]  }
   0x1   :  { %v748_v0 = vld [vmem:[%s1172_s1 + $0x74] ss:$8 sps:$4 sm:$0xff]   ;;  %v752_v2 = vld [vmem:[%s1172_s1 + $0x70] ss:$8 sps:$4 sm:$0xff]   ;;  %v754_v4 = vld [vmem:[%s1172_s1 + $0x64] ss:$8 sps:$4 sm:$0xff]  }
   0x2   :  { %v750_v1 = vld [vmem:[%s1172_s1 + $0x174] ss:$8 sps:$4 sm:$0xff]   ;;  %458 = vmatprep.subr.bf16.mxu0 %v748_v0  ;;  %v753_v3 = vld [vmem:[%s1172_s1 + $0x170] ss:$8 sps:$4 sm:$0xff]   ;;  %v756_v5 = vld [vmem:[%s1172_s1 + $0x164] ss:$8 sps:$4 sm:$0xff]  }
   0x3   :  { %511 = vmatprep.subr.bf16.mxu1 %v750_v1  ;;  %459 = vmatpush1.bf16.msra.mxu0 %v752_v2  ;;  %v758_v6 = vld [vmem:[%s1172_s1 + $0x60] ss:$8 sps:$4 sm:$0xff]   ;;  %v760_v8 = vld [vmem:[%s1172_s1 + $0x54] ss:$8 sps:$4 sm:$0xff]   ;;  %v764_v10 = vld [vmem:[%s1172_s1 + $0x50] ss:$8 sps:$4 sm:$0xff]  }
   0x4   :  { %512 = vmatpush1.bf16.msra.mxu1 %v753_v3  ;;  %460 = vmatprep.subr.bf16.mxu0 %v754_v4  ;;  %v759_v7 = vld [vmem:[%s1172_s1 + $0x160] ss:$8 sps:$4 sm:$0xff]   ;;  %v762_v9 = vld [vmem:[%s1172_s1 + $0x154] ss:$8 sps:$4 sm:$0xff]   ;;  %v765_v11 = vld [vmem:[%s1172_s1 + $0x150] ss:$8 sps:$4 sm:$0xff]  }
   0x5   :  { %513 = vmatprep.subr.bf16.mxu1 %v756_v5  ;;  %v766_v12 = vld [vmem:[%s1172_s1 + $0x44] ss:$8 sps:$4 sm:$0xff]   ;;  %v770_v14 = vld [vmem:[%s1172_s1 + $0x40] ss:$8 sps:$4 sm:$0xff]   ;;  %v772_v16 = vld [vmem:[%s1172_s1 + $0x34] ss:$8 sps:$4 sm:$0xff]  }
   0x6   :  { %v768_v13 = vld [vmem:[%s1172_s1 + $0x144] ss:$8 sps:$4 sm:$0xff]   ;;  %v771_v15 = vld [vmem:[%s1172_s1 + $0x140] ss:$8 sps:$4 sm:$0xff]   ;;  %v774_v17 = vld [vmem:[%s1172_s1 + $0x134] ss:$8 sps:$4 sm:$0xff]  }
   0x7   :  { %461 = vmatpush1.bf16.msra.mxu0 %v758_v6  ;;  %v776_v18 = vld [vmem:[%s1172_s1 + $0x30] ss:$8 sps:$4 sm:$0xff]   ;;  %v778_v20 = vld [vmem:[%s1172_s1 + $0x24] ss:$8 sps:$4 sm:$0xff]   ;;  %v782_v22 = vld [vmem:[%s1172_s1 + $0x20] ss:$8 sps:$4 sm:$0xff]  }
   0x8   :  { %514 = vmatpush1.bf16.msra.mxu1 %v759_v7  ;;  %462 = vmatprep.subr.bf16.mxu0 %v760_v8  ;;  %v777_v19 = vld [vmem:[%s1172_s1 + $0x130] ss:$8 sps:$4 sm:$0xff]   ;;  %v780_v21 = vld [vmem:[%s1172_s1 + $0x124] ss:$8 sps:$4 sm:$0xff]   ;;  %v783_v23 = vld [vmem:[%s1172_s1 + $0x120] ss:$8 sps:$4 sm:$0xff]   ;;  %v88_v8 = vlaneseq }
   0x9   :  { %515 = vmatprep.subr.bf16.mxu1 %v762_v9  ;;  %v784_v24 = vld [vmem:[%s1172_s1 + $0x14] ss:$8 sps:$4 sm:$0xff]   ;;  %v788_v26 = vld [vmem:[%s1172_s1 + $0x10] ss:$8 sps:$4 sm:$0xff]   ;;  %v790_v28 = vld [vmem:[%s1172_s1 + $0x4] ss:$8 sps:$4 sm:$0xff]  }
   0xa   :  { %v786_v25 = vld [vmem:[%s1172_s1 + $0x114] ss:$8 sps:$4 sm:$0xff]   ;;  %v789_v27 = vld [vmem:[%s1172_s1 + $0x110] ss:$8 sps:$4 sm:$0xff]   ;;  %v792_v29 = vld [vmem:[%s1172_s1 + $0x104] ss:$8 sps:$4 sm:$0xff]  }
   0xb   :  { %463 = vmatpush1.bf16.msra.mxu0 %v764_v10  ;;  %v794_v30 = vld [vmem:[%s1172_s1] ss:$8 sps:$4 sm:$0xff]   ;;  %v796_v32 = vld [vmem:[%s1172_s1 + $0xf4] ss:$8 sps:$4 sm:$0xff]   ;;  %v800_v34 = vld [vmem:[%s1172_s1 + $0xf0] ss:$8 sps:$4 sm:$0xff]  }
   0xc   :  { %516 = vmatpush1.bf16.msra.mxu1 %v765_v11  ;;  %464 = vmatprep.subr.bf16.mxu0 %v766_v12  ;;  %v795_v31 = vld [vmem:[%s1172_s1 + $0x100] ss:$8 sps:$4 sm:$0xff]   ;;  %v798_v33 = vld [vmem:[%s1172_s1 + $0x1f4] ss:$8 sps:$4 sm:$0xff]   ;;  %v801_v35 = vld [vmem:[%s1172_s1 + $0x1f0] ss:$8 sps:$4 sm:$0xff]  }
   0xd   :  { %517 = vmatprep.subr.bf16.mxu1 %v768_v13  ;;  %v802_v36 = vld [vmem:[%s1172_s1 + $0xe4] ss:$8 sps:$4 sm:$0xff]   ;;  %v806_v38 = vld [vmem:[%s1172_s1 + $0xe0] ss:$8 sps:$4 sm:$0xff]   ;;  %v808_v40 = vld [vmem:[%s1172_s1 + $0xd4] ss:$8 sps:$4 sm:$0xff]  }
   0xe   :  { %v804_v37 = vld [vmem:[%s1172_s1 + $0x1e4] ss:$8 sps:$4 sm:$0xff]   ;;  %v807_v39 = vld [vmem:[%s1172_s1 + $0x1e0] ss:$8 sps:$4 sm:$0xff]   ;;  %v810_v41 = vld [vmem:[%s1172_s1 + $0x1d4] ss:$8 sps:$4 sm:$0xff]  }
   0xf   :  { %465 = vmatpush1.bf16.msra.mxu0 %v770_v14  ;;  %v812_v42 = vld [vmem:[%s1172_s1 + $0xd0] ss:$8 sps:$4 sm:$0xff]   ;;  %v814_v44 = vld [vmem:[%s1172_s1 + $0xc4] ss:$8 sps:$4 sm:$0xff]   ;;  %v818_v46 = vld [vmem:[%s1172_s1 + $0xc0] ss:$8 sps:$4 sm:$0xff]  }
  0x10   :  { %518 = vmatpush1.bf16.msra.mxu1 %v771_v15  ;;  %466 = vmatprep.subr.bf16.mxu0 %v772_v16  ;;  %v813_v43 = vld [vmem:[%s1172_s1 + $0x1d0] ss:$8 sps:$4 sm:$0xff]   ;;  %v816_v45 = vld [vmem:[%s1172_s1 + $0x1c4] ss:$8 sps:$4 sm:$0xff]   ;;  %v819_v47 = vld [vmem:[%s1172_s1 + $0x1c0] ss:$8 sps:$4 sm:$0xff]  }
  0x11   :  { %519 = vmatprep.subr.bf16.mxu1 %v774_v17  ;;  %v820_v48 = vld [vmem:[%s1172_s1 + $0xb4] ss:$8 sps:$4 sm:$0xff]   ;;  %v824_v52 = vld [vmem:[%s1172_s1 + $0xb0] ss:$8 sps:$4 sm:$0xff]   ;;  %v826_v54 = vld [vmem:[%s1172_s1 + $0xa4] ss:$8 sps:$4 sm:$0xff]  }
  0x12   :  { %v846_v49 = vld [vmem:[%s1173_s0 + $0x4] ss:$16 sps:$4 sm:$0xff]   ;;  %v849_v51 = vld [vmem:[%s1173_s0 + $0xc] ss:$16 sps:$4 sm:$0xff]   ;;  %v825_v53 = vld [vmem:[%s1172_s1 + $0x1b0] ss:$8 sps:$4 sm:$0xff]  }
  0x13   :  { %467 = vmatpush1.bf16.msra.mxu0 %v776_v18  ;;  %v822_v50 = vld [vmem:[%s1172_s1 + $0x1b4] ss:$8 sps:$4 sm:$0xff]   ;;  %490 = vmatprep.mubr.bf16.mxu0 %v846_v49  ;;  %v828_v55 = vld [vmem:[%s1172_s1 + $0x1a4] ss:$8 sps:$4 sm:$0xff]   ;;  %v830_v56 = vld [vmem:[%s1172_s1 + $0xa0] ss:$8 sps:$4 sm:$0xff]  }
  0x14   :  { %520 = vmatpush1.bf16.msra.mxu1 %v777_v19  ;;  %468 = vmatprep.subr.bf16.mxu0 %v778_v20  ;;  %v831_v57 = vld [vmem:[%s1172_s1 + $0x1a0] ss:$8 sps:$4 sm:$0xff]   ;;  %v832_v58 = vld [vmem:[%s1172_s1 + $0x94] ss:$8 sps:$4 sm:$0xff]   ;;  %v836_v60 = vld [vmem:[%s1172_s1 + $0x90] ss:$8 sps:$4 sm:$0xff]  }
  0x15   :  { %521 = vmatprep.subr.bf16.mxu1 %v780_v21  ;;  %543 = vmatprep.mubr.bf16.mxu1 %v849_v51  ;;  %v834_v59 = vld [vmem:[%s1172_s1 + $0x194] ss:$8 sps:$4 sm:$0xff]   ;;  %v837_v61 = vld [vmem:[%s1172_s1 + $0x190] ss:$8 sps:$4 sm:$0xff]   ;;  %v838_v62 = vld [vmem:[%s1172_s1 + $0x84] ss:$8 sps:$4 sm:$0xff]  }
  0x16   :  { %v840_v63 = vld [vmem:[%s1172_s1 + $0x184] ss:$8 sps:$4 sm:$0xff]   ;;  %v842_v0 = vld [vmem:[%s1172_s1 + $0x80] ss:$8 sps:$4 sm:$0xff]   ;;  %v89_v9 = vshrl.u32 %v88_v8, 7 }
  0x17   :  { %469 = vmatpush1.bf16.msra.mxu0 %v782_v22  ;;  %v843_v1 = vld [vmem:[%s1172_s1 + $0x180] ss:$8 sps:$4 sm:$0xff]   ;;  %v850_v4 = vld [vmem:[%s1173_s0 + $0x24] ss:$16 sps:$4 sm:$0xff]   ;;  %v852_v5 = vld [vmem:[%s1173_s0 + $0x2c] ss:$16 sps:$4 sm:$0xff]  }
  0x18   :  { %522 = vmatpush1.bf16.msra.mxu1 %v783_v23  ;;  %470 = vmatprep.subr.bf16.mxu0 %v784_v24  ;;  %v844_v2 = vld [vmem:[%s1173_s0] ss:$16 sps:$4 sm:$0xff]   ;;  %v847_v3 = vld [vmem:[%s1173_s0 + $0x8] ss:$16 sps:$4 sm:$0xff]   ;;  %v90_v10 = vsub.s32 0, %v89_v9  ;;  %v94_v12 = vsub.s32 1, %v89_v9 }
  0x19   :  { %523 = vmatprep.subr.bf16.mxu1 %v786_v25  ;;  %v854_v6 = vld [vmem:[%s1173_s0 + $0x20] ss:$16 sps:$4 sm:$0xff]   ;;  %v855_v7 = vld [vmem:[%s1173_s0 + $0x28] ss:$16 sps:$4 sm:$0xff]  }
  0x1a   :  { %v86_v11 = vld [vmem:[%s1174_s2] sm:$0x3] }
  0x1b   :  { %471 = vmatpush1.bf16.msra.mxu0 %v788_v26  ;;  %v91_v13 = vrot.slane %v86_v11, %v90_v10  ;;  %v95_v14 = vrot.slane %v86_v11, %v94_v12 }
  0x1c   :  { %524 = vmatpush1.bf16.msra.mxu1 %v789_v27  ;;  %472 = vmatprep.subr.bf16.mxu0 %v790_v28 }
  0x1d   :  { %525 = vmatprep.subr.bf16.mxu1 %v792_v29 }
  0x1f   :  { %473 = vmatpush1.bf16.msra.mxu0 %v794_v30 }
  0x20   :  { %526 = vmatpush1.bf16.msra.mxu1 %v795_v31  ;;  %474 = vmatprep.subr.bf16.mxu0 %v796_v32 }
  0x21   :  { %527 = vmatprep.subr.bf16.mxu1 %v798_v33 }
  0x23   :  { %475 = vmatpush2.bf16.msra.mxu0 %v800_v34 }
  0x24   :  { %528 = vmatpush2.bf16.msra.mxu1 %v801_v35  ;;  %476 = vmatprep.subr.bf16.mxu0 %v802_v36 }
  0x25   :  { %529 = vmatprep.subr.bf16.mxu1 %v804_v37 }
  0x27   :  { %477 = vmatpush2.bf16.msra.mxu0 %v806_v38 }
  0x28   :  { %530 = vmatpush2.bf16.msra.mxu1 %v807_v39  ;;  %478 = vmatprep.subr.bf16.mxu0 %v808_v40 }
  0x29   :  { %531 = vmatprep.subr.bf16.mxu1 %v810_v41 }
  0x2b   :  { %479 = vmatpush2.bf16.msra.mxu0 %v812_v42 }
  0x2c   :  { %532 = vmatpush2.bf16.msra.mxu1 %v813_v43  ;;  %480 = vmatprep.subr.bf16.mxu0 %v814_v44 }
  0x2d   :  { %533 = vmatprep.subr.bf16.mxu1 %v816_v45 }
  0x2f   :  { %481 = vmatpush2.bf16.msra.mxu0 %v818_v46 }
  0x30   :  { %534 = vmatpush2.bf16.msra.mxu1 %v819_v47  ;;  %482 = vmatprep.subr.bf16.mxu0 %v820_v48 }
  0x31   :  { %535 = vmatprep.subr.bf16.mxu1 %v822_v50 }
  0x33   :  { %483 = vmatpush2.bf16.msra.mxu0 %v824_v52 }
  0x34   :  { %536 = vmatpush2.bf16.msra.mxu1 %v825_v53  ;;  %484 = vmatprep.subr.bf16.mxu0 %v826_v54 }
  0x35   :  { %537 = vmatprep.subr.bf16.mxu1 %v828_v55 }
  0x37   :  { %485 = vmatpush2.bf16.msra.mxu0 %v830_v56 }
  0x38   :  { %538 = vmatpush2.bf16.msra.mxu1 %v831_v57  ;;  %486 = vmatprep.subr.bf16.mxu0 %v832_v58 }
  0x39   :  { %539 = vmatprep.subr.bf16.mxu1 %v834_v59 }
  0x3b   :  { %487 = vmatpush2.bf16.msra.mxu0 %v836_v60 }
  0x3c   :  { %540 = vmatpush2.bf16.msra.mxu1 %v837_v61  ;;  %488 = vmatprep.subr.bf16.mxu0 %v838_v62 }
  0x3d   :  { %541 = vmatprep.subr.bf16.mxu1 %v840_v63 }
  0x3f   :  { %489 = vmatpush2.bf16.msra.mxu0 %v842_v0 }
  0x40   :  { %542 = vmatpush2.bf16.msra.mxu1 %v843_v1 }
  0x42   :  { %491 = vmatmul.mubr.bf16.vlgmr.msra.gmra.mxu0 %v844_v2 }
  0x43   :  { %544 = vmatmul.mubr.bf16.vlgmr.msra.gmra.mxu1 %v847_v3  ;;  %500 = vmatprep.mubr.bf16.mxu0 %v850_v4 }
  0x44   :  { %553 = vmatprep.mubr.bf16.mxu1 %v852_v5 }
  0x4a   :  { %501 = vmatmul.mubr.bf16.gmra.mxu0 %v854_v6 }
  0x4b   :  { %554 = vmatmul.mubr.bf16.gmra.mxu1 %v855_v7 }
 0x102   :  { %v492_v15 = vpop.f32.mrf.mxu0 }
 0x103   :  { %v545_v16 = vpop.f32.mrf.mxu1  ;;  %v493_v17 = vadd.f32 %v492_v15, %v91_v13 }
 0x104   :  { %v494_v18 = vpop.f32.mrf.mxu0 }
 0x105   :  { %v547_v19 = vpop.f32.mrf.mxu1  ;;  %v1111_v20 = vadd.f32 %v545_v16, %v493_v17  ;;  %v495_v21 = vadd.f32 %v494_v18, %v95_v14 }
 0x106   :  { %v496_v22 = vpop.f32.mrf.mxu0 }
 0x107   :  { %v549_v23 = vpop.f32.mrf.mxu1  ;;  %v572_v24 = vmul.f32 0.044715, %v1111_v20  ;;  %v1114_v25 = vadd.f32 %v547_v19, %v495_v21  ;;  %v497_v26 = vadd.f32 %v496_v22, %v91_v13 }
 0x108   :  { %v498_v27 = vpop.f32.mrf.mxu0 }
 0x109   :  { %v551_v28 = vpop.f32.mrf.mxu1  ;;  %v580_v29 = vmul.f32 %v572_v24, %v1111_v20  ;;  %v573_v30 = vmul.f32 0.044715, %v1114_v25  ;;  %v1118_v31 = vadd.f32 %v549_v23, %v497_v26  ;;  %v499_v32 = vadd.f32 %v498_v27, %v95_v14 }
 0x10a   :  { %v502_v33 = vpop.f32.mrf.mxu0 }
 0x10b   :  { %v555_v34 = vpop.f32.mrf.mxu1  ;;  %v588_v35 = vmul.f32 %v580_v29, %v1111_v20  ;;  %v581_v36 = vmul.f32 %v573_v30, %v1114_v25  ;;  %v574_v37 = vmul.f32 0.044715, %v1118_v31  ;;  %v1123_v38 = vadd.f32 %v551_v28, %v499_v32 }
 0x10c   :  { %v503_v39 = vadd.f32 %v502_v33, %v91_v13  ;;  %v504_v40 = vpop.f32.mrf.mxu0  ;;  %v564_v28 = vmul.f32 0.5, %v1111_v20  ;;  %v565_v29 = vmul.f32 0.5, %v1114_v25 }
 0x10d   :  { %v557_v41 = vpop.f32.mrf.mxu1  ;;  %v596_v42 = vadd.f32 %v588_v35, %v1111_v20  ;;  %v589_v43 = vmul.f32 %v581_v36, %v1114_v25  ;;  %v582_v44 = vmul.f32 %v574_v37, %v1118_v31  ;;  %v505_v45 = vadd.f32 %v504_v40, %v95_v14 }
 0x10e   :  { %v575_v46 = vmul.f32 0.044715, %v1123_v38  ;;  %v1129_v47 = vadd.f32 %v555_v34, %v503_v39  ;;  %v506_v48 = vpop.f32.mrf.mxu0  ;;  %v566_v39 = vmul.f32 0.5, %v1118_v31  ;;  %v567_v40 = vmul.f32 0.5, %v1123_v38 }
 0x10f   :  { %v604_v49 = vmul.f32 0.7978846, %v596_v42  ;;  %v597_v50 = vadd.f32 %v589_v43, %v1114_v25  ;;  %v590_v51 = vmul.f32 %v582_v44, %v1118_v31  ;;  %v1133_v52 = vadd.f32 %v557_v41, %v505_v45  ;;  %v559_v56 = vpop.f32.mrf.mxu1 }
 0x110   :  { %v583_v53 = vmul.f32 %v575_v46, %v1123_v38  ;;  %v576_v54 = vmul.f32 0.044715, %v1129_v47  ;;  %v507_v55 = vadd.f32 %v506_v48, %v91_v13  ;;  %v508_v57 = vpop.f32.mrf.mxu0  ;;  %v568_v46 = vmul.f32 0.5, %v1129_v47 }
 0x111   :  { %856 = vtanh.f32 %v604_v49  ;;  %v605_v58 = vmul.f32 0.7978846, %v597_v50  ;;  %v598_v59 = vadd.f32 %v590_v51, %v1118_v31  ;;  %v577_v62 = vmul.f32 0.044715, %v1133_v52  ;;  %v561_v5 = vpop.f32.mrf.mxu1 }
 0x112   :  { %v591_v60 = vmul.f32 %v583_v53, %v1123_v38  ;;  %v584_v61 = vmul.f32 %v576_v54, %v1129_v47  ;;  %v1141_v63 = vadd.f32 %v559_v56, %v507_v55  ;;  %v509_v1 = vadd.f32 %v508_v57, %v95_v14 }
 0x113   :  { %858 = vtanh.f32 %v605_v58  ;;  %v606_v0 = vmul.f32 0.7978846, %v598_v59  ;;  %v585_v4 = vmul.f32 %v577_v62, %v1133_v52  ;;  %v569_v48 = vmul.f32 0.5, %v1133_v52 }
 0x114   :  { %v599_v2 = vadd.f32 %v591_v60, %v1123_v38  ;;  %v592_v3 = vmul.f32 %v584_v61, %v1129_v47  ;;  %v578_v6 = vmul.f32 0.044715, %v1141_v63  ;;  %v562_v7 = vadd.f32 %v561_v5, %v509_v1 }
 0x115   :  { %860 = vtanh.f32 %v606_v0  ;;  %v593_v10 = vmul.f32 %v585_v4, %v1133_v52  ;;  %v570_v55 = vmul.f32 0.5, %v1141_v63 }
 0x116   :  { %v607_v8 = vmul.f32 0.7978846, %v599_v2  ;;  %v600_v9 = vadd.f32 %v592_v3, %v1129_v47  ;;  %v586_v11 = vmul.f32 %v578_v6, %v1141_v63  ;;  %v579_v12 = vmul.f32 0.044715, %v562_v7 }
 0x117   :  { %v601_v14 = vadd.f32 %v593_v10, %v1133_v52  ;;  %v571_v56 = vmul.f32 0.5, %v562_v7 }
 0x118   :  { %862 = vtanh.f32 %v607_v8  ;;  %v608_v13 = vmul.f32 0.7978846, %v600_v9  ;;  %v594_v15 = vmul.f32 %v586_v11, %v1141_v63  ;;  %v587_v16 = vmul.f32 %v579_v12, %v562_v7 }
 0x119   :  { %v609_v17 = vmul.f32 0.7978846, %v601_v14 }
 0x11a   :  { %864 = vtanh.f32 %v608_v13  ;;  %v602_v18 = vadd.f32 %v594_v15, %v1141_v63  ;;  %v595_v19 = vmul.f32 %v587_v16, %v562_v7 }
 0x11b   :  { %866 = vtanh.f32 %v609_v17 }
 0x11c   :  { %v610_v21 = vmul.f32 0.7978846, %v602_v18  ;;  %v603_v22 = vadd.f32 %v595_v19, %v562_v7 }
 0x11e   :  { %v857_v23 = vpop.eup %856  ;;  %868 = vtanh.f32 %v610_v21  ;;  %v611_v26 = vmul.f32 0.7978846, %v603_v22 }
 0x11f   :  { %v620_v24 = vadd.f32 1.0, %v857_v23 }
 0x120   :  { %v859_v27 = vpop.eup %858  ;;  %870 = vtanh.f32 %v611_v26 }
 0x121   :  { %v621_v30 = vadd.f32 1.0, %v859_v27  ;;  %v628_v33 = vmul.f32 %v620_v24, %v564_v28 }
 0x122   :  { %v861_v32 = vpop.eup %860 }
 0x123   :  { %v629_v34 = vmul.f32 %v621_v30, %v565_v29  ;;  %v622_v35 = vadd.f32 1.0, %v861_v32 }
 0x125   :  { %v863_v36 = vpop.eup %862  ;;  %v744_v37 = vpack.c.bf16 %v629_v34, %v628_v33  ;;  %v630_v20 = vmul.f32 %v622_v35, %v566_v39 }
 0x126   :  { %v623_v41 = vadd.f32 1.0, %v863_v36 }
 0x127   :  { %v865_v42 = vpop.eup %864  ;;  %660 = vst [vmem:[%s1175_s3] sm:$0xff] %v744_v37 }
 0x128   :  { %v631_v25 = vmul.f32 %v623_v41, %v567_v40  ;;  %v624_v43 = vadd.f32 1.0, %v865_v42  ;;  %v867_v44 = vpop.eup %866 }
 0x129   :  { %v625_v49 = vadd.f32 1.0, %v867_v44 }
 0x12a   :  { %v745_v45 = vpack.c.bf16 %v631_v25, %v630_v20  ;;  %v632_v31 = vmul.f32 %v624_v43, %v568_v46 }
 0x12b   :  { %v869_v50 = vpop.eup %868  ;;  %v633_v38 = vmul.f32 %v625_v49, %v569_v48 }
 0x12c   :  { %661 = vst [vmem:[%s1175_s3 + $0x8] sm:$0xff] %v745_v45  ;;  %v626_v51 = vadd.f32 1.0, %v869_v50 }
 0x12d   :  { %v871_v53 = vpop.eup %870  ;;  %v746_v54 = vpack.c.bf16 %v633_v38, %v632_v31 }
 0x12e   :  { %v627_v57 = vadd.f32 1.0, %v871_v53  ;;  %v634_v47 = vmul.f32 %v626_v51, %v570_v55 }
 0x12f   :  { %662 = vst [vmem:[%s1175_s3 + $0x10] sm:$0xff] %v746_v54 }
 0x130   :  { %v635_v52 = vmul.f32 %v627_v57, %v571_v56 }
 0x132   :  { %v747_v58 = vpack.c.bf16 %v635_v52, %v634_v47 }
 0x134   :  { %663 = vst [vmem:[%s1175_s3 + $0x18] sm:$0xff] %v747_v58 }

// kernel: tile.33
= control target key start
LH: loop header
LB: loop body
LE: loop exit
PB: predicated region body
PF: predicated region fallthrough
CT: control target
= control target key end

     0   :  { %s22_s0 = inlined_call_operand.vmem [shape: f32[32], index: 0, kind: input, shape index: {}]   ;;  %s23_s1 = inlined_call_operand.vmem [shape: f32[4,32], index: 1, kind: output, shape index: {}]  }
   0x1   :  { %v4_v0 = vld [vmem:[%s22_s0] ss:$0 sm:$0xff] }
   0x2   :  { %5 = vst [vmem:[%s23_s1] sm:$0xf] %v4_v0 }

// kernel: tile.34
= control target key start
LH: loop header
LB: loop body
LE: loop exit
PB: predicated region body
PF: predicated region fallthrough
CT: control target
= control target key end

     0   :  { %vm8_vm0 = vcmask 261120   ;;  %s40_s8 = smov 32   ;;  %s41_s9 = smov 64   ;;  %vm14_vm1 = vcmask 1048320   ;;  %vm20_vm2 = vcmask 785920   ;;  %vm26_vm3 = vcmask 523520   ;;  %s58_s0 = inlined_call_operand.vmem [shape: f32[4,32], index: 0, kind: input, shape index: {}]   ;;  %s59_s1 = inlined_call_operand.vmem [shape: f32[1,128], index: 1, kind: output, shape index: {}]  }
   0x1   :  { %v5_v0 = vld [vmem:[%s58_s0] sm:$0xf]  ;;  %s39_s0 = smov 96  }
   0x2   :  { %6 = vst [vmem:[#allocation1] sm:$0xf] %v5_v0 }
   0x9   :  { %v11_v1 = vld [vmem:[#allocation1 + $0x3] sm:$0x1]   ;;  %v23_v2 = vld [vmem:[#allocation1 + $0x1] sm:$0x1]   ;;  %v7_v3 = vld [vmem:[#allocation1] sm:$0x1]  }
   0xa   :  { %12 = vrot.lane.b32.xlu0 %v11_v1, %s39_s0  ;;  %24 = vrot.lane.b32.xlu1 %v23_v2, %s40_s8  ;;  %v17_v4 = vld [vmem:[#allocation1 + $0x2] sm:$0x1]   ;;  %9 = vst.msk [vmem:[#allocation0] sm:$0x1] %vm8_vm0, %v7_v3  }
   0xe   :  { %18 = vrot.lane.b32.xlu0 %v17_v4, %s41_s9 }
  0x7c   :  { %v13_v5 = vpop.permute.xlu0 %12   ;;  %v25_v6 = vpop.permute.xlu1 %24  }
  0x7d   :  { %15 = vst.msk [vmem:[#allocation0] sm:$0x1] %vm14_vm1, %v13_v5  }
  0x80   :  { %v19_v7 = vpop.permute.xlu0 %18  }
  0x81   :  { %21 = vst.msk [vmem:[#allocation0] sm:$0x1] %vm20_vm2, %v19_v7  }
  0x82   :  { %27 = vst.msk [vmem:[#allocation0] sm:$0x1] %vm26_vm3, %v25_v6  }
  0x89   :  { %v32_v8 = vld [vmem:[#allocation0] sm:$0x1] }
  0x8a   :  { %35 = vst [vmem:[%s59_s1] sm:$0x1] %v32_v8 }

// kernel: ae_conv_forward.17
= control target key start
LH: loop header
LB: loop body
LE: loop exit
PB: predicated region body
PF: predicated region fallthrough
CT: control target
= control target key end

     0   :  { %s970_s1 = inlined_call_operand.vmem [shape: bf16[256,128], index: 1, kind: input, shape index: {}]   ;;  %s971_s0 = inlined_call_operand.vmem [shape: bf16[98,256], index: 0, kind: input, shape index: {}]   ;;  %s972_s2 = inlined_call_operand.vmem [shape: f32[1,128], index: 2, kind: input, shape index: {}]   ;;  %s973_s3 = inlined_call_operand.vmem [shape: bf16[98,128], index: 3, kind: output, shape index: {}]  }
   0x1   :  { %v671_v0 = vld [vmem:[%s970_s1 + $0x78] sm:$0xff]   ;;  %v673_v2 = vld [vmem:[%s970_s1 + $0x70] sm:$0xff]   ;;  %v675_v4 = vld [vmem:[%s970_s1 + $0x68] sm:$0xff]  }
   0x2   :  { %v672_v1 = vld [vmem:[%s970_s1 + $0x38] sm:$0xff]   ;;  %597 = vmatprep.subr.bf16.mxu0 %v671_v0  ;;  %655 = vmatprep.subr.bf16.mxu1 %v671_v0  ;;  %v674_v3 = vld [vmem:[%s970_s1 + $0x30] sm:$0xff]   ;;  %v676_v5 = vld [vmem:[%s970_s1 + $0x28] sm:$0xff]  }
   0x3   :  { %598 = vmatpush3.bf16.msra.mxu0 %v672_v1  ;;  %663 = vmatpush3.bf16.msra.mxu1 %v672_v1  ;;  %v677_v6 = vld [vmem:[%s970_s1 + $0x60] sm:$0xff]   ;;  %v679_v8 = vld [vmem:[%s970_s1 + $0x58] sm:$0xff]   ;;  %v681_v10 = vld [vmem:[%s970_s1 + $0x50] sm:$0xff]  }
   0x4   :  { %599 = vmatprep.subr.bf16.mxu0 %v673_v2  ;;  %656 = vmatprep.subr.bf16.mxu1 %v673_v2  ;;  %v678_v7 = vld [vmem:[%s970_s1 + $0x20] sm:$0xff]   ;;  %v680_v9 = vld [vmem:[%s970_s1 + $0x18] sm:$0xff]   ;;  %v682_v13 = vld [vmem:[%s970_s1 + $0x10] sm:$0xff]  }
   0x5   :  { %v689_v11 = vld [vmem:[%s971_s0 + $0x4] ss:$8 sps:$4 sm:$0xff]   ;;  %v687_v18 = vld [vmem:[%s971_s0] ss:$8 sps:$4 sm:$0xff]   ;;  %v693_v20 = vld [vmem:[%s971_s0 + $0x14] ss:$8 sps:$4 sm:$0xff]  }
   0x6   :  { %v692_v12 = vld [vmem:[%s971_s0 + $0x44] ss:$8 sps:$4 sm:$0xff]   ;;  %262 = vmatprep.mubr.bf16.mxu0 %v689_v11  ;;  %v690_v19 = vld [vmem:[%s971_s0 + $0x40] ss:$8 sps:$4 sm:$0xff]   ;;  %v695_v21 = vld [vmem:[%s971_s0 + $0x54] ss:$8 sps:$4 sm:$0xff]  }
   0x7   :  { %600 = vmatpush3.bf16.msra.mxu0 %v674_v3  ;;  %664 = vmatpush3.bf16.msra.mxu1 %v674_v3  ;;  %v683_v14 = vld [vmem:[%s970_s1 + $0x48] sm:$0xff]   ;;  %v685_v16 = vld [vmem:[%s970_s1 + $0x40] sm:$0xff]   ;;  %v697_v23 = vld [vmem:[%s971_s0 + $0x10] ss:$8 sps:$4 sm:$0xff]  }
   0x8   :  { %601 = vmatprep.subr.bf16.mxu0 %v675_v4  ;;  %657 = vmatprep.subr.bf16.mxu1 %v675_v4  ;;  %v684_v15 = vld [vmem:[%s970_s1 + $0x8] sm:$0xff]   ;;  %v686_v17 = vld [vmem:[%s970_s1] sm:$0xff]   ;;  %v698_v24 = vld [vmem:[%s971_s0 + $0x50] ss:$8 sps:$4 sm:$0xff]  }
   0x9   :  { %294 = vmatprep.mubr.bf16.mxu1 %v692_v12  ;;  %v27_v22 = vld [vmem:[%s971_s0 + $0x60] sm:$0x11]  ;;  %v704_v29 = vld [vmem:[%s971_s0 + $0x34] ss:$8 sps:$4 sm:$0xff]   ;;  %v706_v30 = vld [vmem:[%s971_s0 + $0x30] ss:$8 sps:$4 sm:$0xff]  }
   0xa   :  { %v699_v25 = vld [vmem:[%s971_s0 + $0x24] ss:$8 sps:$4 sm:$0xff]   ;;  %v519_v26 = vcombine.high %v27_v22, %v27_v22  ;;  %v702_v27 = vld [vmem:[%s971_s0 + $0x20] ss:$8 sps:$4 sm:$0xff]   ;;  %v518_v28 = vcombine.low %v27_v22, %v27_v22 }
   0xb   :  { %602 = vmatpush3.bf16.msra.mxu0 %v676_v5  ;;  %665 = vmatpush3.bf16.msra.mxu1 %v676_v5  ;;  %v843_v33 = vld [vmem:[%s972_s2] ss:$0 sm:$0xff] }
   0xc   :  { %603 = vmatprep.subr.bf16.mxu0 %v677_v6  ;;  %658 = vmatprep.subr.bf16.mxu1 %v677_v6 }
   0xf   :  { %604 = vmatpush3.bf16.msra.mxu0 %v678_v7  ;;  %666 = vmatpush3.bf16.msra.mxu1 %v678_v7 }
  0x10   :  { %605 = vmatprep.subr.bf16.mxu0 %v679_v8  ;;  %659 = vmatprep.subr.bf16.mxu1 %v679_v8 }
  0x13   :  { %606 = vmatpush3.bf16.msra.mxu0 %v680_v9  ;;  %667 = vmatpush3.bf16.msra.mxu1 %v680_v9 }
  0x14   :  { %607 = vmatprep.subr.bf16.mxu0 %v681_v10  ;;  %660 = vmatprep.subr.bf16.mxu1 %v681_v10 }
  0x17   :  { %608 = vmatpush3.bf16.msra.mxu0 %v682_v13  ;;  %668 = vmatpush3.bf16.msra.mxu1 %v682_v13 }
  0x18   :  { %609 = vmatprep.subr.bf16.mxu0 %v683_v14  ;;  %661 = vmatprep.subr.bf16.mxu1 %v683_v14 }
  0x1b   :  { %610 = vmatpush3.bf16.msra.mxu0 %v684_v15  ;;  %669 = vmatpush3.bf16.msra.mxu1 %v684_v15 }
  0x1c   :  { %611 = vmatprep.subr.bf16.mxu0 %v685_v16  ;;  %662 = vmatprep.subr.bf16.mxu1 %v685_v16 }
  0x1f   :  { %612 = vmatpush3.bf16.msra.mxu0 %v686_v17  ;;  %670 = vmatpush3.bf16.msra.mxu1 %v686_v17 }
  0x22   :  { %263 = vmatmul.mubr.bf16.vlgmr.msra.gmra.mxu0 %v687_v18  ;;  %295 = vmatmul.mubr.bf16.vlgmr.msra.gmra.mxu1 %v690_v19 }
  0x23   :  { %270 = vmatprep.mubr.bf16.mxu0 %v693_v20  ;;  %302 = vmatprep.mubr.bf16.mxu1 %v695_v21 }
  0x2a   :  { %271 = vmatmul.mubr.bf16.gmra.mxu0 %v697_v23  ;;  %303 = vmatmul.mubr.bf16.gmra.mxu1 %v698_v24 }
  0x2b   :  { %278 = vmatprep.mubr.bf16.mxu0 %v699_v25  ;;  %310 = vmatprep.mubr.bf16.mxu1 %v519_v26 }
  0x32   :  { %279 = vmatmul.mubr.bf16.gmra.mxu0 %v702_v27  ;;  %311 = vmatmul.mubr.bf16.gmra.mxu1 %v518_v28 }
  0x33   :  { %286 = vmatprep.mubr.bf16.mxu0 %v704_v29 }
  0x3a   :  { %287 = vmatmul.mubr.bf16.gmra.mxu0 %v706_v30 }
  0xe2   :  { %v613_v31 = vpop.f32.mrf.mxu0  ;;  %v637_v32 = vpop.f32.mrf.mxu1 }
  0xe4   :  { %v614_v34 = vpop.f32.mrf.mxu0  ;;  %v638_v35 = vpop.f32.mrf.mxu1 }
  0xe5   :  { %v615_v36 = vadd.f32 %v614_v34, %v613_v31  ;;  %v639_v37 = vadd.f32 %v638_v35, %v637_v32 }
  0xe6   :  { %v616_v38 = vpop.f32.mrf.mxu0  ;;  %v640_v39 = vpop.f32.mrf.mxu1 }
  0xe7   :  { %v846_v40 = vadd.f32 %v615_v36, %v843_v33  ;;  %v849_v41 = vadd.f32 %v639_v37, %v843_v33 }
  0xe8   :  { %v617_v42 = vpop.f32.mrf.mxu0  ;;  %v641_v43 = vpop.f32.mrf.mxu1 }
  0xe9   :  { %v331_v44 = vmul.f32 0.044715, %v846_v40  ;;  %v339_v45 = vmul.f32 0.044715, %v849_v41  ;;  %v618_v46 = vadd.f32 %v617_v42, %v616_v38  ;;  %v642_v47 = vadd.f32 %v641_v43, %v640_v39 }
  0xea   :  { %v619_v48 = vpop.f32.mrf.mxu0  ;;  %v643_v49 = vpop.f32.mrf.mxu1 }
  0xeb   :  { %v344_v50 = vmul.f32 %v331_v44, %v846_v40  ;;  %v352_v51 = vmul.f32 %v339_v45, %v849_v41  ;;  %v856_v52 = vadd.f32 %v618_v46, %v843_v33  ;;  %v859_v53 = vadd.f32 %v642_v47, %v843_v33 }
  0xec   :  { %v620_v54 = vpop.f32.mrf.mxu0  ;;  %v644_v55 = vpop.f32.mrf.mxu1 }
  0xed   :  { %v357_v56 = vmul.f32 %v344_v50, %v846_v40  ;;  %v365_v57 = vmul.f32 %v352_v51, %v849_v41  ;;  %v621_v58 = vadd.f32 %v620_v54, %v619_v48  ;;  %v645_v59 = vadd.f32 %v644_v55, %v643_v49 }
  0xee   :  { %v332_v60 = vmul.f32 0.044715, %v856_v52  ;;  %v340_v61 = vmul.f32 0.044715, %v859_v53  ;;  %v622_v62 = vpop.f32.mrf.mxu0  ;;  %v646_v63 = vpop.f32.mrf.mxu1 }
  0xef   :  { %v370_v0 = vadd.f32 %v357_v56, %v846_v40  ;;  %v378_v1 = vadd.f32 %v365_v57, %v849_v41  ;;  %v868_v2 = vadd.f32 %v621_v58, %v843_v33  ;;  %v871_v3 = vadd.f32 %v645_v59, %v843_v33 }
  0xf0   :  { %v345_v4 = vmul.f32 %v332_v60, %v856_v52  ;;  %v353_v5 = vmul.f32 %v340_v61, %v859_v53  ;;  %v623_v6 = vpop.f32.mrf.mxu0  ;;  %v647_v7 = vpop.f32.mrf.mxu1 }
  0xf1   :  { %v383_v8 = vmul.f32 0.7978846, %v370_v0  ;;  %v391_v9 = vmul.f32 0.7978846, %v378_v1  ;;  %v333_v12 = vmul.f32 0.044715, %v868_v2  ;;  %v624_v16 = vadd.f32 %v623_v6, %v622_v62 }
  0xf2   :  { %v358_v10 = vmul.f32 %v345_v4, %v856_v52  ;;  %v366_v11 = vmul.f32 %v353_v5, %v859_v53  ;;  %v341_v13 = vmul.f32 0.044715, %v871_v3  ;;  %v625_v14 = vpop.f32.mrf.mxu0  ;;  %v649_v15 = vpop.f32.mrf.mxu1  ;;  %v648_v17 = vadd.f32 %v647_v7, %v646_v63 }
  0xf3   :  { %707 = vtanh.f32 %v383_v8  ;;  %v346_v20 = vmul.f32 %v333_v12, %v868_v2  ;;  %v884_v24 = vadd.f32 %v624_v16, %v843_v33 }
  0xf4   :  { %709 = vtanh.f32 %v391_v9  ;;  %v371_v18 = vadd.f32 %v358_v10, %v856_v52  ;;  %v379_v19 = vadd.f32 %v366_v11, %v859_v53  ;;  %v626_v21 = vpop.f32.mrf.mxu0  ;;  %v650_v22 = vpop.f32.mrf.mxu1  ;;  %v354_v23 = vmul.f32 %v341_v13, %v871_v3 }
  0xf5   :  { %v887_v25 = vadd.f32 %v648_v17, %v843_v33  ;;  %v627_v26 = vadd.f32 %v626_v21, %v625_v14  ;;  %v359_v29 = vmul.f32 %v346_v20, %v868_v2  ;;  %v651_v30 = vadd.f32 %v650_v22, %v649_v15 }
  0xf6   :  { %v384_v27 = vmul.f32 0.7978846, %v371_v18  ;;  %v392_v28 = vmul.f32 0.7978846, %v379_v19  ;;  %v628_v31 = vpop.f32.mrf.mxu0  ;;  %v652_v32 = vpop.f32.mrf.mxu1  ;;  %v367_v34 = vmul.f32 %v354_v23, %v871_v3  ;;  %v334_v35 = vmul.f32 0.044715, %v884_v24 }
  0xf7   :  { %v372_v36 = vadd.f32 %v359_v29, %v868_v2  ;;  %v342_v37 = vmul.f32 0.044715, %v887_v25  ;;  %v895_v38 = vadd.f32 %v627_v26, %v843_v33  ;;  %v900_v45 = vadd.f32 %v651_v30, %v843_v33 }
  0xf8   :  { %711 = vtanh.f32 %v384_v27  ;;  %v629_v39 = vpop.f32.mrf.mxu0  ;;  %v653_v42 = vpop.f32.mrf.mxu1  ;;  %v380_v43 = vadd.f32 %v367_v34, %v871_v3  ;;  %v347_v44 = vmul.f32 %v334_v35, %v884_v24  ;;  %v318_v19 = vmul.f32 0.5, %v846_v40 }
  0xf9   :  { %713 = vtanh.f32 %v392_v28  ;;  %v385_v46 = vmul.f32 0.7978846, %v372_v36  ;;  %v355_v47 = vmul.f32 %v342_v37, %v887_v25  ;;  %v335_v48 = vmul.f32 0.044715, %v895_v38 }
  0xfa   :  { %v631_v49 = vpop.f32.mrf.mxu0  ;;  %v393_v50 = vmul.f32 0.7978846, %v380_v43  ;;  %v360_v51 = vmul.f32 %v347_v44, %v884_v24  ;;  %v343_v54 = vmul.f32 0.044715, %v900_v45  ;;  %v630_v57 = vadd.f32 %v629_v39, %v628_v31 }
  0xfb   :  { %v368_v55 = vmul.f32 %v355_v47, %v887_v25  ;;  %v348_v56 = vmul.f32 %v335_v48, %v895_v38  ;;  %715 = vtanh.f32 %v385_v46  ;;  %v326_v21 = vmul.f32 0.5, %v849_v41 }
  0xfc   :  { %v632_v58 = vpop.f32.mrf.mxu0  ;;  %v373_v59 = vadd.f32 %v360_v51, %v884_v24  ;;  %v356_v60 = vmul.f32 %v343_v54, %v900_v45  ;;  %717 = vtanh.f32 %v393_v50  ;;  %v913_v0 = vadd.f32 %v630_v57, %v843_v33 }
  0xfd   :  { %v633_v61 = vadd.f32 %v632_v58, %v631_v49  ;;  %v381_v62 = vadd.f32 %v368_v55, %v887_v25  ;;  %v361_v63 = vmul.f32 %v348_v56, %v895_v38  ;;  %v319_v30 = vmul.f32 0.5, %v856_v52 }
  0xfe   :  { %v634_v1 = vpop.f32.mrf.mxu0  ;;  %v386_v4 = vmul.f32 0.7978846, %v373_v59  ;;  %v369_v5 = vmul.f32 %v356_v60, %v900_v45  ;;  %v336_v10 = vmul.f32 0.044715, %v913_v0  ;;  %v327_v32 = vmul.f32 0.5, %v859_v53 }
  0xff   :  { %v917_v6 = vadd.f32 %v633_v61, %v843_v33  ;;  %v394_v8 = vmul.f32 0.7978846, %v381_v62  ;;  %v374_v9 = vadd.f32 %v361_v63, %v895_v38  ;;  %v320_v57 = vmul.f32 0.5, %v868_v2 }
 0x100   :  { %v708_v7 = vpop.eup %707  ;;  %v635_v11 = vpop.f32.mrf.mxu0  ;;  %719 = vtanh.f32 %v386_v4  ;;  %v382_v13 = vadd.f32 %v369_v5, %v900_v45  ;;  %v349_v15 = vmul.f32 %v336_v10, %v913_v0  ;;  %v321_v58 = vmul.f32 0.5, %v884_v24 }
 0x101   :  { %v710_v12 = vpop.eup %709  ;;  %721 = vtanh.f32 %v394_v8  ;;  %v387_v14 = vmul.f32 0.7978846, %v374_v9  ;;  %v337_v17 = vmul.f32 0.044715, %v917_v6  ;;  %v636_v18 = vadd.f32 %v635_v11, %v634_v1 }
 0x102   :  { %v395_v16 = vmul.f32 0.7978846, %v382_v13  ;;  %v409_v20 = vadd.f32 1.0, %v708_v7  ;;  %v362_v22 = vmul.f32 %v349_v15, %v913_v0  ;;  %v417_v26 = vadd.f32 1.0, %v710_v12 }
 0x103   :  { %v350_v27 = vmul.f32 %v337_v17, %v917_v6  ;;  %v929_v28 = vadd.f32 %v636_v18, %v843_v33  ;;  %v328_v61 = vmul.f32 0.5, %v871_v3  ;;  %v329_v62 = vmul.f32 0.5, %v887_v25 }
 0x104   :  { %723 = vtanh.f32 %v395_v16  ;;  %v375_v40 = vadd.f32 %v362_v22, %v913_v0  ;;  %v422_v36 = vmul.f32 %v409_v20, %v318_v19  ;;  %v430_v42 = vmul.f32 %v417_v26, %v326_v21 }
 0x105   :  { %v712_v23 = vpop.eup %711  ;;  %725 = vtanh.f32 %v387_v14  ;;  %v363_v34 = vmul.f32 %v350_v27, %v917_v6  ;;  %v338_v35 = vmul.f32 0.044715, %v929_v28  ;;  %v330_v11 = vmul.f32 0.5, %v900_v45 }
 0x106   :  { %v714_v29 = vpop.eup %713  ;;  %v410_v31 = vadd.f32 1.0, %v712_v23  ;;  %v388_v39 = vmul.f32 0.7978846, %v375_v40  ;;  %v322_v14 = vmul.f32 0.5, %v895_v38  ;;  %v323_v15 = vmul.f32 0.5, %v913_v0 }
 0x107   :  { %v418_v41 = vadd.f32 1.0, %v714_v29  ;;  %v376_v43 = vadd.f32 %v363_v34, %v917_v6  ;;  %v351_v52 = vmul.f32 %v338_v35, %v929_v28  ;;  %v324_v22 = vmul.f32 0.5, %v917_v6 }
 0x108   :  { %v423_v37 = vmul.f32 %v410_v31, %v319_v30  ;;  %v716_v44 = vpop.eup %715  ;;  %727 = vtanh.f32 %v388_v39  ;;  %v325_v38 = vmul.f32 0.5, %v929_v28 }
 0x109   :  { %v431_v33 = vmul.f32 %v418_v41, %v327_v32  ;;  %v718_v47 = vpop.eup %717  ;;  %v389_v53 = vmul.f32 0.7978846, %v376_v43  ;;  %v364_v49 = vmul.f32 %v351_v52, %v929_v28  ;;  %v411_v50 = vadd.f32 1.0, %v716_v44 }
 0x10a   :  { %v565_v46 = vpack.c.bf16 %v423_v37, %v422_v36  ;;  %v419_v55 = vadd.f32 1.0, %v718_v47 }
 0x10b   :  { %v585_v48 = vpack.c.bf16 %v431_v33, %v430_v42  ;;  %729 = vtanh.f32 %v389_v53  ;;  %v377_v51 = vadd.f32 %v364_v49, %v929_v28  ;;  %v424_v1 = vmul.f32 %v411_v50, %v320_v57 }
 0x10c   :  { %566 = vst [vmem:[%s973_s3] sm:$0xff] %v565_v46   ;;  %v432_v7 = vmul.f32 %v419_v55, %v328_v61 }
 0x10d   :  { %595 = vst [vmem:[%s973_s3 + $0x20] sm:$0xff] %v585_v48   ;;  %v720_v54 = vpop.eup %719  ;;  %v390_v60 = vmul.f32 0.7978846, %v377_v51 }
 0x10e   :  { %v722_v56 = vpop.eup %721  ;;  %v412_v59 = vadd.f32 1.0, %v720_v54 }
 0x10f   :  { %v420_v63 = vadd.f32 1.0, %v722_v56  ;;  %731 = vtanh.f32 %v390_v60 }
 0x110   :  { %v425_v4 = vmul.f32 %v412_v59, %v321_v58 }
 0x111   :  { %v724_v5 = vpop.eup %723  ;;  %v433_v8 = vmul.f32 %v420_v63, %v329_v62 }
 0x112   :  { %v726_v9 = vpop.eup %725  ;;  %v570_v10 = vpack.c.bf16 %v425_v4, %v424_v1  ;;  %v421_v2 = vadd.f32 1.0, %v724_v5 }
 0x113   :  { %v590_v12 = vpack.c.bf16 %v433_v8, %v432_v7  ;;  %v413_v24 = vadd.f32 1.0, %v726_v9 }
 0x114   :  { %592 = vst [vmem:[%s973_s3 + $0x8] sm:$0xff] %v570_v10   ;;  %v434_v3 = vmul.f32 %v421_v2, %v330_v11 }
 0x115   :  { %596 = vst [vmem:[%s973_s3 + $0x28] sm:$0xff] %v590_v12   ;;  %v728_v25 = vpop.eup %727  ;;  %v426_v17 = vmul.f32 %v413_v24, %v322_v14 }
 0x116   :  { %v561_v13 = vpack.c.bf16 %v434_v3, %v434_v3  ;;  %v414_v16 = vadd.f32 1.0, %v728_v25 }
 0x118   :  { %500 = vst [vmem:[%s973_s3 + $0x30] sm:$0x1] %v561_v13  ;;  %v730_v45 = vpop.eup %729  ;;  %v427_v18 = vmul.f32 %v414_v16, %v323_v15 }
 0x119   :  { %v415_v20 = vadd.f32 1.0, %v730_v45 }
 0x11a   :  { %v575_v19 = vpack.c.bf16 %v427_v18, %v426_v17 }
 0x11b   :  { %v428_v23 = vmul.f32 %v415_v20, %v324_v22 }
 0x11c   :  { %v732_v21 = vpop.eup %731  ;;  %593 = vst [vmem:[%s973_s3 + $0x10] sm:$0xff] %v575_v19  }
 0x11d   :  { %v416_v0 = vadd.f32 1.0, %v732_v21 }
 0x11f   :  { %v429_v26 = vmul.f32 %v416_v0, %v325_v38 }
 0x121   :  { %v580_v27 = vpack.c.bf16 %v429_v26, %v428_v23 }
 0x123   :  { %594 = vst [vmem:[%s973_s3 + $0x18] sm:$0xff] %v580_v27  }

// kernel: ae_conv_forward.18
= control target key start
LH: loop header
LB: loop body
LE: loop exit
PB: predicated region body
PF: predicated region fallthrough
CT: control target
= control target key end

     0   :  { %s1924_s12 = smov 0   ;;  %s1926_s13 = smov 0   ;;  %s2436_s0 = inlined_call_operand.vmem [shape: bf16[392,128], index: 0, kind: input, shape index: {}]   ;;  %s2437_s1 = inlined_call_operand.vmem [shape: bf16[128,128], index: 1, kind: input, shape index: {}]   ;;  %s2438_s2 = inlined_call_operand.vmem [shape: f32[1,128], index: 2, kind: input, shape index: {}]   ;;  %s2439_s3 = inlined_call_operand.vmem [shape: bf16[392,128], index: 3, kind: output, shape index: {}]  }
   0x1   :  { %s1928_s14 = smov 0  }
   0x2 LB: > { %s1937_s15 = sadd.s32 4294967295, %s1870_s14   ;;  %s1939_s16 = sadd.s32 1, %s1870_s14   ;;  %s1870_s14 = sphi %s1928_s14, %s2446_s14   ;;  %s1866_s13 = sphi %s1926_s13, %s2445_s13   ;;  %s1862_s12 = sphi %s1924_s12, %s2444_s12  }
   0x3   : > { %s85_s17 = ssub.s32 %s1870_s14, %s1939_s16  ;;  %s88_s18 = sadd.s32 1, %s1866_s13 }
   0x4   : > { %p86_p0 = scmp.eq.s32.totalorder %s85_s17, 0  ;;  %p98_p1 = scmp.ne.s32.totalorder %s1866_s13, %s1862_s12 }
   0x5   : > { %p99_p2 = scmp.eq.s32.totalorder %s1937_s15, 1  ;;  %p1344_p3 = scmp.ge.s32.totalorder %s1870_s14, 1 }
   0x6   : > { %s1947_s19 = scalar_select %p86_p0, %s1866_s13, %s88_s18  }
   0x7   : > { %p1949_p4 = por %p99_p2, %p98_p1  ;;  %p146_p5 = scmp.lt.s32.totalorder %s1870_s14, 3 }
   0x9   : > { %p147_p6 = pnand %p1344_p3, %p146_p5 }
   0xa   : > { %s1957_s23 = sshll.u32 (!%p147_p6), %s1937_s15, 5  ;;  %s170_s25 = sand.u32 (!%p147_p6), 1, %s1862_s12  }
   0xb   : > { %150 = sbr.rel (%p147_p6) target bundleno = 405 (0x195), region = 32  ;;  %p178_p7 = scmp.lt.s32.totalorder (!%p147_p6), %s1957_s23, 48 }
   0xc   : > { %s1345_s12 = sshll.u32 (!%p147_p6), %s170_s25, 7 }
  0x10   : > { %v1728_v0 = vld [vmem:[%s2437_s1 + $0x38] sm:$0xff]   ;;  %v1729_v1 = vld [vmem:[%s2437_s1 + $0x30] sm:$0xff]   ;;  %s179_s26 = scalar_select %p178_p7, %s1957_s23, 48  ;;  %v1730_v2 = vld [vmem:[%s2437_s1 + $0x28] sm:$0xff]  }
  0x11   : > { %1576 = vmatprep.subr.bf16.mxu0 %v1728_v0  ;;  %1624 = vmatprep.subr.bf16.mxu1 %v1728_v0  ;;  %v1731_v3 = vld [vmem:[%s2437_s1 + $0x20] sm:$0xff]   ;;  %v1732_v6 = vld [vmem:[%s2437_s1 + $0x18] sm:$0xff]   ;;  %v1733_v7 = vld [vmem:[%s2437_s1 + $0x10] sm:$0xff]   ;;  %s1009_s27 = ssub.s32 (%p1949_p4), 49, %s1957_s23  ;;  %s1454_s28 = sshll.u32 (%p1949_p4), %s1937_s15, 7 }
  0x12   : > { %1577 = vmatpush3.bf16.msra.mxu0 %v1728_v0  ;;  %1632 = vmatpush3.bf16.msra.mxu1 %v1728_v0  ;;  %s1347_s29 = sshll.u32 %s179_s26, 2  ;;  %v1734_v8 = vld [vmem:[%s2437_s1 + $0x8] sm:$0xff]   ;;  %v1735_v9 = vld [vmem:[%s2437_s1] sm:$0xff]   ;;  %s2143_s26 = scalar_lea.vmem [#allocation2], %s1345_s12  }
  0x13   : > { %1578 = vmatprep.subr.bf16.mxu0 %v1729_v1  ;;  %1625 = vmatprep.subr.bf16.mxu1 %v1729_v1  ;;  %s1970_s5 = scalar_lea.vmem %s2436_s0, %s1347_s29  ;;  %v2006_v24 = vld [vmem:[%s2438_s2] ss:$0 sm:$0xff]  ;;  %p1010_p8 = scmp.lt.s32.totalorder (%p1949_p4), %s1009_s27, 32 }
  0x14   : > { %v1736_v4 = vld [vmem:[%s1970_s5] sm:$0xff]   ;;  %v1738_v10 = vld [vmem:[%s1970_s5 + $0x8] sm:$0xff]   ;;  %v1740_v12 = vld [vmem:[%s1970_s5 + $0x10] sm:$0xff]   ;;  %s2308_s4 = scalar_lea.vmem (%p1949_p4), %s2439_s3, %s1454_s28  }
  0x15   : > { %v1737_v5 = vld [vmem:[%s1970_s5 + $0x40] sm:$0xff]   ;;  %1592 = vmatprep.mubr.bf16.mxu0 %v1736_v4  ;;  %v1739_v11 = vld [vmem:[%s1970_s5 + $0x48] sm:$0xff]   ;;  %v1741_v13 = vld [vmem:[%s1970_s5 + $0x50] sm:$0xff]  }
  0x16   : > { %1579 = vmatpush3.bf16.msra.mxu0 %v1729_v1  ;;  %1633 = vmatpush3.bf16.msra.mxu1 %v1729_v1  ;;  %v1742_v14 = vld [vmem:[%s1970_s5 + $0x18] sm:$0xff]   ;;  %v1744_v16 = vld [vmem:[%s1970_s5 + $0x20] sm:$0xff]   ;;  %v1746_v18 = vld [vmem:[%s1970_s5 + $0x28] sm:$0xff]  }
  0x17   : > { %1580 = vmatprep.subr.bf16.mxu0 %v1730_v2  ;;  %1626 = vmatprep.subr.bf16.mxu1 %v1730_v2  ;;  %v1743_v15 = vld [vmem:[%s1970_s5 + $0x58] sm:$0xff]   ;;  %v1745_v17 = vld [vmem:[%s1970_s5 + $0x60] sm:$0xff]   ;;  %v1747_v19 = vld [vmem:[%s1970_s5 + $0x68] sm:$0xff]  }
  0x18   : > { %1608 = vmatprep.mubr.bf16.mxu1 %v1737_v5  ;;  %v1748_v20 = vld [vmem:[%s1970_s5 + $0x30] sm:$0xff]   ;;  %v1750_v22 = vld [vmem:[%s1970_s5 + $0x38] sm:$0xff]  }
  0x19   : > { %v1749_v21 = vld [vmem:[%s1970_s5 + $0x70] sm:$0xff]   ;;  %v1751_v23 = vld [vmem:[%s1970_s5 + $0x78] sm:$0xff]  }
  0x1a   : > { %1581 = vmatpush3.bf16.msra.mxu0 %v1730_v2  ;;  %1634 = vmatpush3.bf16.msra.mxu1 %v1730_v2 }
  0x1b   : > { %1582 = vmatprep.subr.bf16.mxu0 %v1731_v3  ;;  %1627 = vmatprep.subr.bf16.mxu1 %v1731_v3 }
  0x1e   : > { %1583 = vmatpush3.bf16.msra.mxu0 %v1731_v3  ;;  %1635 = vmatpush3.bf16.msra.mxu1 %v1731_v3 }
  0x1f   : > { %1584 = vmatprep.subr.bf16.mxu0 %v1732_v6  ;;  %1628 = vmatprep.subr.bf16.mxu1 %v1732_v6 }
  0x22   : > { %1585 = vmatpush3.bf16.msra.mxu0 %v1732_v6  ;;  %1636 = vmatpush3.bf16.msra.mxu1 %v1732_v6 }
  0x23   : > { %1586 = vmatprep.subr.bf16.mxu0 %v1733_v7  ;;  %1629 = vmatprep.subr.bf16.mxu1 %v1733_v7 }
  0x26   : > { %1587 = vmatpush3.bf16.msra.mxu0 %v1733_v7  ;;  %1637 = vmatpush3.bf16.msra.mxu1 %v1733_v7 }
  0x27   : > { %1588 = vmatprep.subr.bf16.mxu0 %v1734_v8  ;;  %1630 = vmatprep.subr.bf16.mxu1 %v1734_v8 }
  0x2a   : > { %1589 = vmatpush3.bf16.msra.mxu0 %v1734_v8  ;;  %1638 = vmatpush3.bf16.msra.mxu1 %v1734_v8 }
  0x2b   : > { %1590 = vmatprep.subr.bf16.mxu0 %v1735_v9  ;;  %1631 = vmatprep.subr.bf16.mxu1 %v1735_v9 }
  0x2e   : > { %1591 = vmatpush3.bf16.msra.mxu0 %v1735_v9  ;;  %1639 = vmatpush3.bf16.msra.mxu1 %v1735_v9 }
  0x31   : > { %1593 = vmatmul.mubr.bf16.vlgmr.msra.gmra.mxu0 %v1738_v10  ;;  %1609 = vmatmul.mubr.bf16.vlgmr.msra.gmra.mxu1 %v1739_v11 }
  0x32   : > { %1596 = vmatprep.mubr.bf16.mxu0 %v1740_v12  ;;  %1612 = vmatprep.mubr.bf16.mxu1 %v1741_v13 }
  0x39   : > { %1597 = vmatmul.mubr.bf16.gmra.mxu0 %v1742_v14  ;;  %1613 = vmatmul.mubr.bf16.gmra.mxu1 %v1743_v15 }
  0x3a   : > { %1600 = vmatprep.mubr.bf16.mxu0 %v1744_v16  ;;  %1616 = vmatprep.mubr.bf16.mxu1 %v1745_v17 }
  0x41   : > { %1601 = vmatmul.mubr.bf16.gmra.mxu0 %v1746_v18  ;;  %1617 = vmatmul.mubr.bf16.gmra.mxu1 %v1747_v19 }
  0x42   : > { %1604 = vmatprep.mubr.bf16.mxu0 %v1748_v20  ;;  %1620 = vmatprep.mubr.bf16.mxu1 %v1749_v21 }
  0x49   : > { %1605 = vmatmul.mubr.bf16.gmra.mxu0 %v1750_v22  ;;  %1621 = vmatmul.mubr.bf16.gmra.mxu1 %v1751_v23 }
  0xf1   : > { %v1594_v25 = vpop.f32.mrf.mxu0  ;;  %v1610_v26 = vpop.f32.mrf.mxu1 }
  0xf2   : > { %v2009_v27 = vadd.f32 %v1594_v25, %v2006_v24  ;;  %v2012_v28 = vadd.f32 %v1610_v26, %v2006_v24 }
  0xf3   : > { %v426_v29 = vpop.f32.mrf.mxu0  ;;  %v490_v30 = vpop.f32.mrf.mxu1 }
  0xf4   : > { %v587_v31 = vmul.f32 0.044715, %v2009_v27  ;;  %v603_v32 = vmul.f32 0.044715, %v2012_v28  ;;  %v2017_v33 = vadd.f32 %v2006_v24, %v426_v29  ;;  %v2020_v34 = vadd.f32 %v2006_v24, %v490_v30 }
  0xf5   : > { %v1595_v35 = vpop.f32.mrf.mxu0  ;;  %v1611_v36 = vpop.f32.mrf.mxu1  ;;  %v555_v25 = vmul.f32 0.5, %v2009_v27 }
  0xf6   : > { %v619_v37 = vmul.f32 %v587_v31, %v2009_v27  ;;  %v635_v38 = vmul.f32 %v603_v32, %v2012_v28  ;;  %v2025_v39 = vadd.f32 %v1595_v35, %v2006_v24  ;;  %v2028_v40 = vadd.f32 %v1611_v36, %v2006_v24 }
  0xf7   : > { %v585_v41 = vmul.f32 0.044715, %v2017_v33  ;;  %v601_v42 = vmul.f32 0.044715, %v2020_v34  ;;  %v429_v43 = vpop.f32.mrf.mxu0  ;;  %v493_v44 = vpop.f32.mrf.mxu1 }
  0xf8   : > { %v651_v45 = vmul.f32 %v619_v37, %v2009_v27  ;;  %v667_v46 = vmul.f32 %v635_v38, %v2012_v28  ;;  %v588_v47 = vmul.f32 0.044715, %v2025_v39  ;;  %v604_v50 = vmul.f32 0.044715, %v2028_v40 }
  0xf9   : > { %v617_v48 = vmul.f32 %v585_v41, %v2017_v33  ;;  %v633_v49 = vmul.f32 %v601_v42, %v2020_v34  ;;  %v2042_v54 = vadd.f32 %v2006_v24, %v429_v43  ;;  %v1598_v55 = vpop.f32.mrf.mxu0  ;;  %v2048_v59 = vadd.f32 %v2006_v24, %v493_v44  ;;  %v1614_v60 = vpop.f32.mrf.mxu1 }
  0xfa   : > { %v683_v51 = vadd.f32 %v651_v45, %v2009_v27  ;;  %v699_v52 = vadd.f32 %v667_v46, %v2012_v28  ;;  %v620_v53 = vmul.f32 %v588_v47, %v2025_v39  ;;  %v636_v58 = vmul.f32 %v604_v50, %v2028_v40 }
  0xfb   : > { %v649_v56 = vmul.f32 %v617_v48, %v2017_v33  ;;  %v665_v57 = vmul.f32 %v633_v49, %v2020_v34  ;;  %v586_v3 = vmul.f32 0.044715, %v2042_v54  ;;  %v602_v5 = vmul.f32 0.044715, %v2048_v59  ;;  %v442_v6 = vpop.f32.mrf.mxu0  ;;  %v506_v10 = vpop.f32.mrf.mxu1 }
  0xfc   : > { %v715_v61 = vmul.f32 0.7978846, %v683_v51  ;;  %v731_v62 = vmul.f32 0.7978846, %v699_v52  ;;  %v652_v63 = vmul.f32 %v620_v53, %v2025_v39  ;;  %v668_v2 = vmul.f32 %v636_v58, %v2028_v40 }
  0xfd   : > { %v681_v0 = vadd.f32 %v649_v56, %v2017_v33  ;;  %v697_v1 = vadd.f32 %v665_v57, %v2020_v34  ;;  %v618_v12 = vmul.f32 %v586_v3, %v2042_v54  ;;  %v634_v13 = vmul.f32 %v602_v5, %v2048_v59  ;;  %v1599_v22 = vpop.f32.mrf.mxu0  ;;  %v1615_v23 = vpop.f32.mrf.mxu1 }
  0xfe   : > { %1752 = vtanh.f32 %v715_v61  ;;  %v684_v4 = vadd.f32 %v652_v63, %v2025_v39  ;;  %v700_v9 = vadd.f32 %v668_v2, %v2028_v40  ;;  %v2061_v14 = vadd.f32 %v1598_v55, %v2006_v24 }
  0xff   : > { %1754 = vtanh.f32 %v731_v62  ;;  %v713_v7 = vmul.f32 0.7978846, %v681_v0  ;;  %v729_v8 = vmul.f32 0.7978846, %v697_v1  ;;  %v2064_v16 = vadd.f32 %v1614_v60, %v2006_v24  ;;  %v445_v53 = vpop.f32.mrf.mxu0 }
 0x100   : > { %v716_v11 = vmul.f32 0.7978846, %v684_v4  ;;  %v732_v15 = vmul.f32 0.7978846, %v700_v9  ;;  %v2067_v17 = vadd.f32 %v2006_v24, %v442_v6  ;;  %v650_v18 = vmul.f32 %v618_v12, %v2042_v54 }
 0x101   : > { %1756 = vtanh.f32 %v713_v7  ;;  %v666_v19 = vmul.f32 %v634_v13, %v2048_v59  ;;  %v591_v20 = vmul.f32 0.044715, %v2061_v14  ;;  %v607_v21 = vmul.f32 0.044715, %v2064_v16 }
 0x102   : > { %1758 = vtanh.f32 %v729_v8  ;;  %v682_v26 = vadd.f32 %v650_v18, %v2042_v54  ;;  %v589_v32 = vmul.f32 0.044715, %v2067_v17  ;;  %v2080_v35 = vadd.f32 %v2006_v24, %v506_v10  ;;  %v1602_v8 = vpop.f32.mrf.mxu0 }
 0x103   : > { %1760 = vtanh.f32 %v716_v11  ;;  %v698_v29 = vadd.f32 %v666_v19, %v2048_v59  ;;  %v623_v30 = vmul.f32 %v591_v20, %v2061_v14  ;;  %v639_v31 = vmul.f32 %v607_v21, %v2064_v16 }
 0x104   : > { %1762 = vtanh.f32 %v732_v15  ;;  %v714_v36 = vmul.f32 0.7978846, %v682_v26  ;;  %v2083_v38 = vadd.f32 %v1599_v22, %v2006_v24  ;;  %v2086_v27 = vadd.f32 %v1615_v23, %v2006_v24 }
 0x105   : > { %v730_v37 = vmul.f32 0.7978846, %v698_v29  ;;  %v571_v41 = vmul.f32 0.5, %v2012_v28  ;;  %v655_v42 = vmul.f32 %v623_v30, %v2061_v14  ;;  %v671_v43 = vmul.f32 %v639_v31, %v2064_v16  ;;  %v458_v31 = vpop.f32.mrf.mxu0 }
 0x106   : > { %v621_v44 = vmul.f32 %v589_v32, %v2067_v17  ;;  %v2093_v45 = vmul.f32 0.5, %v2017_v33  ;;  %1764 = vtanh.f32 %v714_v36  ;;  %v605_v46 = vmul.f32 0.044715, %v2080_v35 }
 0x107   : > { %v592_v47 = vmul.f32 0.044715, %v2083_v38  ;;  %1766 = vtanh.f32 %v730_v37  ;;  %v687_v48 = vadd.f32 %v655_v42, %v2061_v14  ;;  %v703_v49 = vadd.f32 %v671_v43, %v2064_v16 }
 0x108   : > { %v653_v28 = vmul.f32 %v621_v44, %v2067_v17  ;;  %v2101_v50 = vmul.f32 0.5, %v2020_v34  ;;  %v637_v51 = vmul.f32 %v605_v46, %v2080_v35  ;;  %v608_v52 = vmul.f32 0.044715, %v2086_v27 }
 0x109   : > { %v624_v33 = vmul.f32 %v592_v47, %v2083_v38  ;;  %v556_v56 = vmul.f32 0.5, %v2025_v39  ;;  %v719_v57 = vmul.f32 0.7978846, %v687_v48  ;;  %v735_v58 = vmul.f32 0.7978846, %v703_v49  ;;  %v509_v39 = vpop.f32.mrf.mxu1 }
 0x10a   : > { %v685_v60 = vadd.f32 %v653_v28, %v2067_v17  ;;  %v669_v34 = vmul.f32 %v637_v51, %v2080_v35  ;;  %v640_v0 = vmul.f32 %v608_v52, %v2086_v27  ;;  %v572_v2 = vmul.f32 0.5, %v2028_v40 }
 0x10b   : > { %v1753_v55 = vpop.eup %1752  ;;  %v656_v63 = vmul.f32 %v624_v33, %v2083_v38  ;;  %1768 = vtanh.f32 %v719_v57  ;;  %v2113_v3 = vadd.f32 %v2006_v24, %v445_v53  ;;  %v554_v10 = vmul.f32 0.5, %v2042_v54  ;;  %v1618_v26 = vpop.f32.mrf.mxu1 }
 0x10c   : > { %v1755_v61 = vpop.eup %1754  ;;  %v779_v62 = vadd.f32 1.0, %v1753_v55  ;;  %1770 = vtanh.f32 %v735_v58  ;;  %v717_v5 = vmul.f32 0.7978846, %v685_v60  ;;  %v701_v6 = vadd.f32 %v669_v34, %v2080_v35 }
 0x10d   : > { %v795_v1 = vadd.f32 1.0, %v1755_v61  ;;  %v688_v7 = vadd.f32 %v656_v63, %v2083_v38  ;;  %v570_v11 = vmul.f32 0.5, %v2048_v59  ;;  %v2121_v40 = vmul.f32 0.5, %v2061_v14 }
 0x10e   : > { %v1757_v4 = vpop.eup %1756  ;;  %v672_v12 = vmul.f32 %v640_v0, %v2086_v27  ;;  %v811_v15 = vmul.f32 %v779_v62, %v555_v25  ;;  %v2125_v20 = vadd.f32 %v2006_v24, %v509_v39  ;;  %v590_v59 = vmul.f32 0.044715, %v2113_v3 }
 0x10f   : > { %v1759_v9 = vpop.eup %1758  ;;  %v827_v18 = vmul.f32 %v795_v1, %v571_v41  ;;  %v720_v19 = vmul.f32 0.7978846, %v688_v7  ;;  %v777_v22 = vadd.f32 1.0, %v1757_v4  ;;  %1772 = vtanh.f32 %v717_v5 }
 0x110   : > { %v1761_v13 = vpop.eup %1760  ;;  %v704_v54 = vadd.f32 %v672_v12, %v2086_v27  ;;  %v793_v14 = vadd.f32 1.0, %v1759_v9  ;;  %v733_v30 = vmul.f32 0.7978846, %v701_v6  ;;  %v622_v36 = vmul.f32 %v590_v59, %v2113_v3  ;;  %v1603_v12 = vpop.f32.mrf.mxu0 }
 0x111   : > { %v1763_v21 = vpop.eup %1762  ;;  %v780_v23 = vadd.f32 1.0, %v1761_v13  ;;  %1774 = vtanh.f32 %v720_v19  ;;  %v606_v41 = vmul.f32 0.044715, %v2125_v20  ;;  %v2132_v42 = vadd.f32 %v1602_v8, %v2006_v24 }
 0x112   : > { %v796_v29 = vadd.f32 1.0, %v1763_v21  ;;  %v736_v32 = vmul.f32 0.7978846, %v704_v54  ;;  %v2135_v43 = vadd.f32 %v1618_v26, %v2006_v24  ;;  %v654_v47 = vmul.f32 %v622_v36, %v2113_v3 }
 0x113   : > { %v812_v25 = vmul.f32 %v780_v23, %v556_v56  ;;  %v1765_v44 = vpop.eup %1764  ;;  %v2139_v48 = vadd.f32 %v2006_v24, %v458_v31  ;;  %v638_v33 = vmul.f32 %v606_v41, %v2125_v20  ;;  %v809_v52 = vmul.f32 %v777_v22, %v2093_v45  ;;  %v522_v45 = vpop.f32.mrf.mxu1 }
 0x114   : > { %v828_v37 = vmul.f32 %v796_v29, %v572_v2  ;;  %1776 = vtanh.f32 %v736_v32  ;;  %v1767_v49 = vpop.eup %1766  ;;  %v778_v51 = vadd.f32 1.0, %v1765_v44  ;;  %v686_v55 = vadd.f32 %v654_v47, %v2113_v3  ;;  %v461_v41 = vpop.f32.mrf.mxu0 }
 0x115   : > { %v1465_v46 = vpack.c.bf16 %v812_v25, %v811_v15  ;;  %1778 = vtanh.f32 %v733_v30  ;;  %v794_v53 = vadd.f32 1.0, %v1767_v49  ;;  %v595_v56 = vmul.f32 0.044715, %v2132_v42  ;;  %v1619_v21 = vpop.f32.mrf.mxu1 }
 0x116   : > { %v1505_v28 = vpack.c.bf16 %v828_v37, %v827_v18  ;;  %v825_v57 = vmul.f32 %v793_v14, %v2101_v50  ;;  %v810_v58 = vmul.f32 %v778_v51, %v554_v10  ;;  %v670_v60 = vmul.f32 %v638_v33, %v2125_v20 }
 0x117   : > { %1537 = vst [vmem:[%s2143_s26 + $0x8] sm:$0xff] %v1465_v46   ;;  %v611_v61 = vmul.f32 0.044715, %v2135_v43  ;;  %v826_v62 = vmul.f32 %v794_v53, %v570_v11  ;;  %v718_v34 = vmul.f32 0.7978846, %v686_v55  ;;  %v627_v63 = vmul.f32 %v595_v56, %v2132_v42  ;;  %v525_v49 = vpop.f32.mrf.mxu1 }
 0x118   : > { %1545 = vst [vmem:[%s2143_s26 + $0x48] sm:$0xff] %v1505_v28   ;;  %v593_v0 = vmul.f32 0.044715, %v2139_v48  ;;  %v1769_v1 = vpop.eup %1768  ;;  %v1460_v2 = vpack.c.bf16 %v810_v58, %v809_v52  ;;  %v575_v39 = vmul.f32 0.5, %v2064_v16  ;;  %v702_v50 = vadd.f32 %v670_v60, %v2125_v20 }
 0x119   : > { %v643_v4 = vmul.f32 %v611_v61, %v2135_v43  ;;  %v1771_v5 = vpop.eup %1770  ;;  %v1500_v6 = vpack.c.bf16 %v826_v62, %v825_v57  ;;  %1780 = vtanh.f32 %v718_v34  ;;  %v659_v7 = vmul.f32 %v627_v63, %v2132_v42  ;;  %v1606_v61 = vpop.f32.mrf.mxu0 }
 0x11a   : > { %v2159_v8 = vadd.f32 %v2006_v24, %v522_v45  ;;  %1461 = vst [vmem:[%s2143_s26] sm:$0xff] %v1460_v2   ;;  %v557_v9 = vmul.f32 0.5, %v2067_v17  ;;  %v734_v10 = vmul.f32 0.7978846, %v702_v50  ;;  %v625_v16 = vmul.f32 %v593_v0, %v2139_v48  ;;  %v1622_v0 = vpop.f32.mrf.mxu1 }
 0x11b   : > { %v675_v11 = vmul.f32 %v643_v4, %v2135_v43  ;;  %1544 = vst [vmem:[%s2143_s26 + $0x40] sm:$0xff] %v1500_v6   ;;  %v783_v13 = vadd.f32 1.0, %v1769_v1  ;;  %v2167_v15 = vmul.f32 0.5, %v2080_v35  ;;  %v560_v18 = vmul.f32 0.5, %v2083_v38 }
 0x11c   : > { %v691_v19 = vadd.f32 %v659_v7, %v2132_v42  ;;  %v799_v22 = vadd.f32 1.0, %v1771_v5  ;;  %1782 = vtanh.f32 %v734_v10  ;;  %v657_v23 = vmul.f32 %v625_v16, %v2139_v48  ;;  %v1773_v54 = vpop.eup %1772 }
 0x11d   : > { %v707_v17 = vadd.f32 %v675_v11, %v2135_v43  ;;  %v576_v59 = vmul.f32 0.5, %v2086_v27  ;;  %v609_v14 = vmul.f32 0.044715, %v2159_v8  ;;  %v2176_v35 = vadd.f32 %v1603_v12, %v2006_v24 }
 0x11e   : > { %v723_v26 = vmul.f32 0.7978846, %v691_v19  ;;  %v1775_v29 = vpop.eup %1774  ;;  %v558_v38 = vmul.f32 0.5, %v2113_v3  ;;  %v689_v31 = vadd.f32 %v657_v23, %v2139_v48  ;;  %v2181_v25 = vadd.f32 %v1619_v21, %v2006_v24 }
 0x11f   : > { %v739_v30 = vmul.f32 0.7978846, %v707_v17  ;;  %v815_v32 = vmul.f32 %v783_v13, %v2121_v40  ;;  %v784_v36 = vadd.f32 1.0, %v1775_v29  ;;  %v574_v27 = vmul.f32 0.5, %v2125_v20 }
 0x120   : > { %v641_v37 = vmul.f32 %v609_v14, %v2159_v8  ;;  %v831_v46 = vmul.f32 %v799_v22, %v575_v39  ;;  %v781_v47 = vadd.f32 1.0, %v1773_v54  ;;  %1784 = vtanh.f32 %v723_v26  ;;  %v474_v54 = vpop.f32.mrf.mxu0 }
 0x121   : > { %v1777_v44 = vpop.eup %1776  ;;  %v596_v3 = vmul.f32 0.044715, %v2176_v35  ;;  %v816_v51 = vmul.f32 %v784_v36, %v560_v18  ;;  %1786 = vtanh.f32 %v739_v30  ;;  %v721_v40 = vmul.f32 0.7978846, %v689_v31 }
 0x122   : > { %v1779_v28 = vpop.eup %1778  ;;  %v800_v33 = vadd.f32 1.0, %v1777_v44  ;;  %v673_v52 = vmul.f32 %v641_v37, %v2159_v8  ;;  %v612_v53 = vmul.f32 0.044715, %v2181_v25  ;;  %v2191_v55 = vadd.f32 %v2006_v24, %v461_v41 }
 0x123   : > { %v628_v20 = vmul.f32 %v596_v3, %v2176_v35  ;;  %v1475_v56 = vpack.c.bf16 %v816_v51, %v815_v32  ;;  %v2195_v60 = vadd.f32 %v2006_v24, %v525_v49  ;;  %v797_v45 = vadd.f32 1.0, %v1779_v28 }
 0x124   : > { %v832_v57 = vmul.f32 %v800_v33, %v576_v59  ;;  %v705_v58 = vadd.f32 %v673_v52, %v2159_v8  ;;  %v644_v34 = vmul.f32 %v612_v53, %v2181_v25  ;;  %v594_v63 = vmul.f32 0.044715, %v2191_v55 }
 0x125   : > { %v660_v62 = vmul.f32 %v628_v20, %v2176_v35  ;;  %v813_v1 = vmul.f32 %v781_v47, %v557_v9  ;;  %1539 = vst [vmem:[%s2143_s26 + $0x18] sm:$0xff] %v1475_v56   ;;  %v610_v50 = vmul.f32 0.044715, %v2195_v60  ;;  %v2206_v10 = vadd.f32 %v1606_v61, %v2006_v24 }
 0x126   : > { %v1515_v2 = vpack.c.bf16 %v832_v57, %v831_v46  ;;  %v737_v39 = vmul.f32 0.7978846, %v705_v58  ;;  %v1781_v4 = vpop.eup %1780  ;;  %v676_v6 = vmul.f32 %v644_v34, %v2181_v25  ;;  %v626_v7 = vmul.f32 %v594_v63, %v2191_v55 }
 0x127   : > { %v692_v5 = vadd.f32 %v660_v62, %v2176_v35  ;;  %v782_v11 = vadd.f32 1.0, %v1781_v4  ;;  %1788 = vtanh.f32 %v721_v40  ;;  %v642_v9 = vmul.f32 %v610_v50, %v2195_v60 }
 0x128   : > { %1547 = vst [vmem:[%s2143_s26 + $0x58] sm:$0xff] %v1515_v2   ;;  %v2211_v16 = vadd.f32 %v1622_v0, %v2006_v24  ;;  %v829_v12 = vmul.f32 %v797_v45, %v2167_v15  ;;  %v708_v18 = vadd.f32 %v676_v6, %v2181_v25  ;;  %v658_v19 = vmul.f32 %v626_v7, %v2191_v55  ;;  %v538_v15 = vpop.f32.mrf.mxu1 }
 0x129   : > { %v724_v13 = vmul.f32 0.7978846, %v692_v5  ;;  %v1783_v21 = vpop.eup %1782  ;;  %v814_v22 = vmul.f32 %v782_v11, %v558_v38  ;;  %1790 = vtanh.f32 %v737_v39  ;;  %v674_v17 = vmul.f32 %v642_v9, %v2195_v60 }
 0x12a   : > { %v599_v23 = vmul.f32 0.044715, %v2206_v10  ;;  %v798_v59 = vadd.f32 1.0, %v1783_v21  ;;  %v740_v26 = vmul.f32 0.7978846, %v708_v18  ;;  %v690_v14 = vadd.f32 %v658_v19, %v2191_v55  ;;  %v1623_v33 = vpop.f32.mrf.mxu1 }
 0x12b   : > { %1792 = vtanh.f32 %v724_v13  ;;  %v1470_v29 = vpack.c.bf16 %v814_v22, %v813_v1  ;;  %v706_v30 = vadd.f32 %v674_v17, %v2195_v60  ;;  %v615_v38 = vmul.f32 0.044715, %v2211_v16 }
 0x12c   : > { %v631_v31 = vmul.f32 %v599_v23, %v2206_v10  ;;  %v830_v32 = vmul.f32 %v798_v59, %v574_v27  ;;  %1794 = vtanh.f32 %v740_v26  ;;  %v722_v36 = vmul.f32 0.7978846, %v690_v14  ;;  %v1607_v27 = vpop.f32.mrf.mxu0  ;;  %v541_v50 = vpop.f32.mrf.mxu1 }
 0x12d   : > { %v2223_v37 = vadd.f32 %v2006_v24, %v474_v54  ;;  %v1785_v41 = vpop.eup %1784  ;;  %1538 = vst [vmem:[%s2143_s26 + $0x10] sm:$0xff] %v1470_v29   ;;  %v738_v44 = vmul.f32 0.7978846, %v706_v30  ;;  %v647_v47 = vmul.f32 %v615_v38, %v2211_v16  ;;  %v563_v28 = vmul.f32 0.5, %v2132_v42 }
 0x12e   : > { %v663_v46 = vmul.f32 %v631_v31, %v2206_v10  ;;  %v1787_v3 = vpop.eup %1786  ;;  %v1510_v49 = vpack.c.bf16 %v830_v32, %v829_v12  ;;  %v579_v51 = vmul.f32 0.5, %v2135_v43  ;;  %1796 = vtanh.f32 %v722_v36  ;;  %v477_v63 = vpop.f32.mrf.mxu0 }
 0x12f   : > { %v2231_v52 = vmul.f32 0.5, %v2139_v48  ;;  %1798 = vtanh.f32 %v738_v44  ;;  %v679_v20 = vmul.f32 %v647_v47, %v2211_v16  ;;  %v787_v53 = vadd.f32 1.0, %v1785_v41 }
 0x130   : > { %v695_v40 = vadd.f32 %v663_v46, %v2206_v10  ;;  %1546 = vst [vmem:[%s2143_s26 + $0x50] sm:$0xff] %v1510_v49   ;;  %v2237_v56 = vmul.f32 0.5, %v2159_v8  ;;  %v597_v42 = vmul.f32 0.044715, %v2223_v37  ;;  %v2241_v43 = vadd.f32 %v2006_v24, %v538_v15 }
 0x131   : > { %v803_v57 = vadd.f32 1.0, %v1787_v3  ;;  %v711_v58 = vadd.f32 %v679_v20, %v2211_v16  ;;  %v2245_v48 = vadd.f32 %v1607_v27, %v2006_v24  ;;  %v2248_v61 = vadd.f32 %v1623_v33, %v2006_v24 }
 0x132   : > { %v564_v45 = vmul.f32 0.5, %v2176_v35  ;;  %v580_v62 = vmul.f32 0.5, %v2181_v25  ;;  %v629_v8 = vmul.f32 %v597_v42, %v2223_v37  ;;  %v613_v34 = vmul.f32 0.044715, %v2241_v43 }
 0x133   : > { %v562_v0 = vmul.f32 0.5, %v2191_v55  ;;  %v578_v1 = vmul.f32 0.5, %v2195_v60  ;;  %v727_v2 = vmul.f32 0.7978846, %v695_v40  ;;  %v600_v39 = vmul.f32 0.044715, %v2245_v48 }
 0x134   : > { %v1789_v4 = vpop.eup %1788  ;;  %v819_v5 = vmul.f32 %v787_v53, %v563_v28  ;;  %v661_v6 = vmul.f32 %v629_v8, %v2223_v37  ;;  %v645_v35 = vmul.f32 %v613_v34, %v2241_v43  ;;  %v616_v25 = vmul.f32 0.044715, %v2248_v61 }
 0x135   : > { %v835_v7 = vmul.f32 %v803_v57, %v579_v51  ;;  %v743_v11 = vmul.f32 0.7978846, %v711_v58  ;;  %v632_v9 = vmul.f32 %v600_v39, %v2245_v48  ;;  %v2262_v55 = vadd.f32 %v2006_v24, %v477_v63 }
 0x136   : > { %v1791_v60 = vpop.eup %1790  ;;  %v693_v12 = vadd.f32 %v661_v6, %v2223_v37  ;;  %v677_v13 = vmul.f32 %v645_v35, %v2241_v43  ;;  %v648_v18 = vmul.f32 %v616_v25, %v2248_v61  ;;  %v2268_v19 = vadd.f32 %v2006_v24, %v541_v50 }
 0x137   : > { %v785_v22 = vadd.f32 1.0, %v1789_v4  ;;  %1800 = vtanh.f32 %v727_v2  ;;  %v664_v17 = vmul.f32 %v632_v9, %v2245_v48  ;;  %v598_v23 = vmul.f32 0.044715, %v2262_v55 }
 0x138   : > { %v1793_v21 = vpop.eup %1792  ;;  %v725_v59 = vmul.f32 0.7978846, %v693_v12  ;;  %v709_v26 = vadd.f32 %v677_v13, %v2241_v43  ;;  %v680_v14 = vmul.f32 %v648_v18, %v2248_v61  ;;  %1802 = vtanh.f32 %v743_v11 }
 0x139   : > { %v788_v54 = vadd.f32 1.0, %v1793_v21  ;;  %v1795_v15 = vpop.eup %1794  ;;  %v696_v29 = vadd.f32 %v664_v17, %v2245_v48  ;;  %v630_v24 = vmul.f32 %v598_v23, %v2262_v55  ;;  %v614_v30 = vmul.f32 0.044715, %v2268_v19 }
 0x13a   : > { %v801_v31 = vadd.f32 1.0, %v1791_v60  ;;  %v804_v32 = vadd.f32 1.0, %v1795_v15  ;;  %1804 = vtanh.f32 %v725_v59  ;;  %v712_v44 = vadd.f32 %v680_v14, %v2248_v61 }
 0x13b   : > { %v820_v38 = vmul.f32 %v788_v54, %v564_v45  ;;  %v1797_v36 = vpop.eup %1796  ;;  %v728_v41 = vmul.f32 0.7978846, %v696_v29  ;;  %v662_v46 = vmul.f32 %v630_v24, %v2262_v55  ;;  %v646_v47 = vmul.f32 %v614_v30, %v2268_v19 }
 0x13c   : > { %v1799_v3 = vpop.eup %1798  ;;  %v836_v28 = vmul.f32 %v804_v32, %v580_v62  ;;  %v786_v51 = vadd.f32 1.0, %v1797_v36  ;;  %v741_v27 = vmul.f32 0.7978846, %v709_v26  ;;  %v744_v40 = vmul.f32 0.7978846, %v712_v44 }
 0x13d   : > { %v1485_v49 = vpack.c.bf16 %v820_v38, %v819_v5  ;;  %v802_v33 = vadd.f32 1.0, %v1799_v3  ;;  %1806 = vtanh.f32 %v728_v41  ;;  %v694_v20 = vadd.f32 %v662_v46, %v2262_v55 }
 0x13e   : > { %v817_v53 = vmul.f32 %v785_v22, %v2231_v52  ;;  %v1525_v42 = vpack.c.bf16 %v836_v28, %v835_v7  ;;  %v818_v57 = vmul.f32 %v786_v51, %v562_v0  ;;  %v678_v58 = vmul.f32 %v646_v47, %v2268_v19 }
 0x13f   : > { %1541 = vst [vmem:[%s2143_s26 + $0x28] sm:$0xff] %v1485_v49   ;;  %v833_v45 = vmul.f32 %v801_v31, %v2237_v56  ;;  %v834_v62 = vmul.f32 %v802_v33, %v578_v1  ;;  %1808 = vtanh.f32 %v744_v40  ;;  %v726_v8 = vmul.f32 0.7978846, %v694_v20 }
 0x140   : > { %1549 = vst [vmem:[%s2143_s26 + $0x68] sm:$0xff] %v1525_v42   ;;  %v1480_v34 = vpack.c.bf16 %v818_v57, %v817_v53  ;;  %1810 = vtanh.f32 %v741_v27  ;;  %v710_v63 = vadd.f32 %v678_v58, %v2268_v19  ;;  %v567_v56 = vmul.f32 0.5, %v2206_v10 }
 0x141   : > { %v1520_v2 = vpack.c.bf16 %v834_v62, %v833_v45  ;;  %1812 = vtanh.f32 %v726_v8  ;;  %v568_v6 = vmul.f32 0.5, %v2245_v48  ;;  %v583_v7 = vmul.f32 0.5, %v2211_v16 }
 0x142   : > { %1540 = vst [vmem:[%s2143_s26 + $0x20] sm:$0xff] %v1480_v34   ;;  %v742_v52 = vmul.f32 0.7978846, %v710_v63  ;;  %v584_v11 = vmul.f32 0.5, %v2248_v61  ;;  %v565_v22 = vmul.f32 0.5, %v2223_v37  ;;  %v566_v10 = vmul.f32 0.5, %v2262_v55 }
 0x143   : > { %1548 = vst [vmem:[%s2143_s26 + $0x60] sm:$0xff] %v1520_v2   ;;  %v581_v15 = vmul.f32 0.5, %v2241_v43  ;;  %v582_v29 = vmul.f32 0.5, %v2268_v19 }
 0x144   : > { %v1801_v39 = vpop.eup %1800  ;;  %1814 = vtanh.f32 %v742_v52 }
 0x145   : > { %v1803_v0 = vpop.eup %1802  ;;  %v791_v4 = vadd.f32 1.0, %v1801_v39 }
 0x146   : > { %v807_v1 = vadd.f32 1.0, %v1803_v0 }
 0x147   : > { %v1805_v50 = vpop.eup %1804  ;;  %v823_v60 = vmul.f32 %v791_v4, %v567_v56 }
 0x148   : > { %v789_v12 = vadd.f32 1.0, %v1805_v50  ;;  %v839_v17 = vmul.f32 %v807_v1, %v583_v7 }
 0x14a   : > { %v1807_v5 = vpop.eup %1806  ;;  %v821_v59 = vmul.f32 %v789_v12, %v565_v22 }
 0x14b   : > { %v792_v35 = vadd.f32 1.0, %v1807_v5 }
 0x14c   : > { %v1809_v25 = vpop.eup %1808 }
 0x14d   : > { %v1811_v9 = vpop.eup %1810  ;;  %v824_v13 = vmul.f32 %v792_v35, %v568_v6  ;;  %v808_v18 = vadd.f32 1.0, %v1809_v25 }
 0x14e   : > { %v1813_v21 = vpop.eup %1812  ;;  %v805_v16 = vadd.f32 1.0, %v1811_v9 }
 0x14f   : > { %v1495_v48 = vpack.c.bf16 %v824_v13, %v823_v60  ;;  %v840_v23 = vmul.f32 %v808_v18, %v584_v11  ;;  %v790_v54 = vadd.f32 1.0, %v1813_v21 }
 0x150   : > { %v837_v55 = vmul.f32 %v805_v16, %v581_v15 }
 0x151   : > { %v1815_v61 = vpop.eup %1814  ;;  %1543 = vst [vmem:[%s2143_s26 + $0x38] sm:$0xff] %v1495_v48   ;;  %v1535_v26 = vpack.c.bf16 %v840_v23, %v839_v17  ;;  %v822_v14 = vmul.f32 %v790_v54, %v566_v10 }
 0x152   : > { %v806_v24 = vadd.f32 1.0, %v1815_v61 }
 0x153   : > { %1551 = vst [vmem:[%s2143_s26 + $0x78] sm:$0xff] %v1535_v26   ;;  %v1490_v37 = vpack.c.bf16 %v822_v14, %v821_v59 }
 0x154   : > { %v838_v30 = vmul.f32 %v806_v24, %v582_v29  ;;  %1007 = sbr.rel (!%p1949_p4) target bundleno = 405 (0x195), region = 36 }
 0x155   : > { %1542 = vst [vmem:[%s2143_s26 + $0x30] sm:$0xff] %v1490_v37  }
 0x156   : > { %v1530_v31 = vpack.c.bf16 %v838_v30, %v837_v55 }
 0x158   : > { %1550 = vst [vmem:[%s2143_s26 + $0x70] sm:$0xff] %v1530_v31  }
 0x159   : > { %s2448_s27 = smov (!%p1010_p8, %s1009_s27), 32 }
 0x15a   : > { %s1407_s5 = sshll.u32 %s2448_s27, 6 }
 0x15b   : > { %p1410_p9 = scmp.eq.s32.totalorder %s1407_s5, 0 }
 0x15c   : > { %s2314_s6 = sshrl.u32 (!%p1410_p9), %s2448_s27, 5 }
 0x15d   : > { %1018 = sbr.rel (%p1410_p9) target bundleno = 405 (0x195), region = 40  ;;  %p1411_p10 = scmp.le.s32.totalorder (!%p1410_p9), %s2314_s6, 0 }
 0x162   : > { %1297 = sbr.rel (%p1411_p10) target bundleno = 388 (0x184), region = 112  ;;  %s2441_s15 = smov (!%p1411_p10), %s2308_s4 }
 0x163   : > { %s2442_s20 = smov (!%p1411_p10), %s2143_s26  ;;  %s2323_s23 = smov (!%p1411_p10), 0  }
 0x164   : > { %s2325_s7 = smov (!%p1411_p10), 0  }
 0x167 LB: >> { %v1035_v43 = vld [vmem:[%s1878_s20] sm:$0xf]  ;;  %v1037_v19 = vld [vmem:[%s1878_s20 + $0x4] sm:$0xf]  ;;  %v1039_v38 = vld [vmem:[%s1878_s20 + $0x8] sm:$0xf]  ;;  %s1886_s7 = sphi %s2325_s7, %s1029_s7   ;;  %s1882_s23 = sphi %s2323_s23, %s2443_s23   ;;  %s1878_s20 = sphi %s2442_s20, %s1104_s20   ;;  %s1874_s15 = sphi %s2441_s15, %s1105_s15  }
 0x168   : >> { %1036 = vst [vmem:[%s1874_s15] sm:$0xf] %v1035_v43  ;;  %1038 = vst [vmem:[%s1874_s15 + $0x4] sm:$0xf] %v1037_v19  ;;  %v1041_v32 = vld [vmem:[%s1878_s20 + $0xc] sm:$0xf]  ;;  %s1099_s8 = sadd.s32 1, %s1882_s23 }
 0x169   : >> { %1040 = vst [vmem:[%s1874_s15 + $0x8] sm:$0xf] %v1039_v38  ;;  %v1043_v36 = vld [vmem:[%s1878_s20 + $0x10] sm:$0xf]  ;;  %v1045_v41 = vld [vmem:[%s1878_s20 + $0x14] sm:$0xf]  ;;  %p1100_p11 = scmp.ge.s32.totalorder %s1099_s8, %s2314_s6 }
 0x16a   : >> { %1042 = vst [vmem:[%s1874_s15 + $0xc] sm:$0xf] %v1041_v32  ;;  %1044 = vst [vmem:[%s1874_s15 + $0x10] sm:$0xf] %v1043_v36  ;;  %v1047_v44 = vld [vmem:[%s1878_s20 + $0x18] sm:$0xf] }
 0x16b   : >> { %1046 = vst [vmem:[%s1874_s15 + $0x14] sm:$0xf] %v1045_v41  ;;  %v1049_v46 = vld [vmem:[%s1878_s20 + $0x1c] sm:$0xf]  ;;  %v1051_v47 = vld [vmem:[%s1878_s20 + $0x20] sm:$0xf] }
 0x16c   : >> { %1048 = vst [vmem:[%s1874_s15 + $0x18] sm:$0xf] %v1047_v44  ;;  %1050 = vst [vmem:[%s1874_s15 + $0x1c] sm:$0xf] %v1049_v46  ;;  %v1053_v3 = vld [vmem:[%s1878_s20 + $0x24] sm:$0xf] }
 0x16d   : >> { %1052 = vst [vmem:[%s1874_s15 + $0x20] sm:$0xf] %v1051_v47  ;;  %v1055_v49 = vld [vmem:[%s1878_s20 + $0x28] sm:$0xf]  ;;  %v1057_v28 = vld [vmem:[%s1878_s20 + $0x2c] sm:$0xf] }
 0x16e   : >> { %1054 = vst [vmem:[%s1874_s15 + $0x24] sm:$0xf] %v1053_v3  ;;  %1056 = vst [vmem:[%s1874_s15 + $0x28] sm:$0xf] %v1055_v49  ;;  %v1059_v51 = vld [vmem:[%s1878_s20 + $0x30] sm:$0xf] }
 0x16f   : >> { %1058 = vst [vmem:[%s1874_s15 + $0x2c] sm:$0xf] %v1057_v28  ;;  %v1061_v27 = vld [vmem:[%s1878_s20 + $0x34] sm:$0xf]  ;;  %v1063_v33 = vld [vmem:[%s1878_s20 + $0x38] sm:$0xf] }
 0x170   : >> { %1060 = vst [vmem:[%s1874_s15 + $0x30] sm:$0xf] %v1059_v51  ;;  %1062 = vst [vmem:[%s1874_s15 + $0x34] sm:$0xf] %v1061_v27  ;;  %v1065_v40 = vld [vmem:[%s1878_s20 + $0x3c] sm:$0xf] }
 0x171   : >> { %1064 = vst [vmem:[%s1874_s15 + $0x38] sm:$0xf] %v1063_v33  ;;  %v1067_v20 = vld [vmem:[%s1878_s20 + $0x40] sm:$0xf]  ;;  %v1069_v53 = vld [vmem:[%s1878_s20 + $0x44] sm:$0xf] }
 0x172   : >> { %1066 = vst [vmem:[%s1874_s15 + $0x3c] sm:$0xf] %v1065_v40  ;;  %1068 = vst [vmem:[%s1874_s15 + $0x40] sm:$0xf] %v1067_v20  ;;  %v1071_v42 = vld [vmem:[%s1878_s20 + $0x48] sm:$0xf] }
 0x173   : >> { %1070 = vst [vmem:[%s1874_s15 + $0x44] sm:$0xf] %v1069_v53  ;;  %v1073_v57 = vld [vmem:[%s1878_s20 + $0x4c] sm:$0xf]  ;;  %v1075_v58 = vld [vmem:[%s1878_s20 + $0x50] sm:$0xf] }
 0x174   : >> { %1072 = vst [vmem:[%s1874_s15 + $0x48] sm:$0xf] %v1071_v42  ;;  %1074 = vst [vmem:[%s1874_s15 + $0x4c] sm:$0xf] %v1073_v57  ;;  %v1077_v45 = vld [vmem:[%s1878_s20 + $0x54] sm:$0xf] }
 0x175   : >> { %1076 = vst [vmem:[%s1874_s15 + $0x50] sm:$0xf] %v1075_v58  ;;  %v1079_v62 = vld [vmem:[%s1878_s20 + $0x58] sm:$0xf]  ;;  %v1081_v8 = vld [vmem:[%s1878_s20 + $0x5c] sm:$0xf] }
 0x176   : >> { %1078 = vst [vmem:[%s1874_s15 + $0x54] sm:$0xf] %v1077_v45  ;;  %1080 = vst [vmem:[%s1874_s15 + $0x58] sm:$0xf] %v1079_v62  ;;  %v1083_v34 = vld [vmem:[%s1878_s20 + $0x60] sm:$0xf] }
 0x177   : >> { %1082 = vst [vmem:[%s1874_s15 + $0x5c] sm:$0xf] %v1081_v8  ;;  %v1085_v63 = vld [vmem:[%s1878_s20 + $0x64] sm:$0xf]  ;;  %v1087_v2 = vld [vmem:[%s1878_s20 + $0x68] sm:$0xf] }
 0x178   : >> { %1084 = vst [vmem:[%s1874_s15 + $0x60] sm:$0xf] %v1083_v34  ;;  %1086 = vst [vmem:[%s1874_s15 + $0x64] sm:$0xf] %v1085_v63  ;;  %v1089_v52 = vld [vmem:[%s1878_s20 + $0x6c] sm:$0xf] }
 0x179   : >> { %1088 = vst [vmem:[%s1874_s15 + $0x68] sm:$0xf] %v1087_v2  ;;  %v1091_v39 = vld [vmem:[%s1878_s20 + $0x70] sm:$0xf]  ;;  %v1093_v0 = vld [vmem:[%s1878_s20 + $0x74] sm:$0xf] }
 0x17a   : >> { %1090 = vst [vmem:[%s1874_s15 + $0x6c] sm:$0xf] %v1089_v52  ;;  %1092 = vst [vmem:[%s1874_s15 + $0x70] sm:$0xf] %v1091_v39  ;;  %v1095_v50 = vld [vmem:[%s1878_s20 + $0x78] sm:$0xf] }
 0x17b   : >> { %1094 = vst [vmem:[%s1874_s15 + $0x74] sm:$0xf] %v1093_v0  ;;  %v1097_v4 = vld [vmem:[%s1878_s20 + $0x7c] sm:$0xf]  ;;  %1096 = vst [vmem:[%s1874_s15 + $0x78] sm:$0xf] %v1095_v50 }
 0x17c   : >> { %1098 = vst [vmem:[%s1874_s15 + $0x7c] sm:$0xf] %v1097_v4  ;;  %s2450_s8 = smov (%p1100_p11, %s1099_s8), 0  ;;  %s1029_s7 = sadd.s32 1, %s1886_s7  }
 0x17d   : >> { %s1412_s9 = sshll.u32 %s2450_s8, 7  ;;  %p1028_p12 = scmp.ge.s32.totalorder %s1029_s7, %s2314_s6 }
 0x17e   : >> { %s1104_s20 = scalar_lea.vmem %s2143_s26, %s1412_s9 [#allocation2]   ;;  %s1105_s15 = scalar_lea.vmem %s2308_s4, %s1412_s9  }
 0x17f   : >> { %s2443_s23 = smov %s2450_s8  ;;  %1031 = sbr.rel (!%p1028_p12) target bundleno = 359 (0x167), region = 118 }
 0x184 PF: > { %s2418_s10 = sand.u32 31, %s2448_s27   ;;  %s1455_s11 = sshll.u32 %s2314_s6, 7 }
 0x185   : > { %s1110_s14 = scalar_lea.vmem %s2143_s26, %s1455_s11 [#allocation2]   ;;  %s1112_s17 = scalar_lea.vmem %s2308_s4, %s1455_s11  }
 0x186   : > { %p1417_p13 = scmp.le.s32.totalorder %s2418_s10, 0 }
 0x187   : > { %s1888_s18 = smov (!%p1417_p13), %s1112_s17   ;;  %s1892_s21 = smov (!%p1417_p13), %s1110_s14  }
 0x188   : > { %1311 = sbr.rel (%p1417_p13) target bundleno = 405 (0x195), region = 123  ;;  %s1896_s22 = smov (!%p1417_p13), 0  }
 0x189   : > { %s1900_s24 = smov (!%p1417_p13), 0  }
 0x18d LB: >> { %v1122_v5 = vld [vmem:[%s1894_s21] sm:$0xf]  ;;  %s1124_s25 = sadd.s32 1, %s1898_s22  ;;  %s1116_s24 = sadd.s32 1, %s1902_s24   ;;  %s1902_s24 = sphi %s1900_s24, %s1116_s24   ;;  %s1898_s22 = sphi %s1896_s22, %s1897_s22   ;;  %s1894_s21 = sphi %s1892_s21, %s1129_s21   ;;  %s1890_s18 = sphi %s1888_s18, %s1130_s18  }
 0x18e   : >> { %1123 = vst [vmem:[%s1890_s18] sm:$0xf] %v1122_v5  ;;  %p1125_p0 = scmp.ge.s32.totalorder %s1124_s25, %s2418_s10  ;;  %p1115_p1 = scmp.ge.s32.totalorder %s1116_s24, %s2418_s10 }
 0x190   : >> { %s2452_s25 = smov (%p1125_p0, %s1124_s25), 0  ;;  %1118 = sbr.rel (!%p1115_p1) target bundleno = 397 (0x18d), region = 129 }
 0x191   : >> { %s1418_s12 = sshll.u32 %s2452_s25, 2  ;;  %s1897_s22 = smov %s2452_s25  }
 0x192   : >> { %s1129_s21 = scalar_lea.vmem %s1110_s14, %s1418_s12 [#allocation2]   ;;  %s1130_s18 = scalar_lea.vmem %s1112_s17, %s1418_s12  }
 0x195 PF: > { %p10_p2 = scmp.ge.s32.totalorder %s1939_s16, 4   ;;  %s2444_s12 = smov %s1866_s13 }
 0x196   : > { %s2445_s13 = smov %s1947_s19  ;;  %s2446_s14 = smov %s1939_s16 }
 0x197   :  { %12 = sbr.rel (!%p10_p2) target bundleno = 2 (0x2), region = 140 }

// kernel: ae_conv_forward.19
= control target key start
LH: loop header
LB: loop body
LE: loop exit
PB: predicated region body
PF: predicated region fallthrough
CT: control target
= control target key end

     0   :  { %s2773_s0 = inlined_call_operand.vmem [shape: bf16[1568,288], index: 0, kind: input, shape index: {}]   ;;  %s2774_s1 = inlined_call_operand.vmem [shape: bf16[288,1], index: 1, kind: input, shape index: {}]   ;;  %s2775_s2 = inlined_call_operand.<no memory space> [shape: f32[1,1], index: 2, kind: input, shape index: {}]   ;;  %s2776_s3 = inlined_call_operand.vmem [shape: f32[1568,1], index: 3, kind: output, shape index: {}]  }
   0x1   :  { %v8_v0 = vstv %s2775_s2 }
   0x2   :  { %9 = vst [vmem:[#allocation2] sm:$0x1] %v8_v0 }
   0x3   :  { %s2328_s14 = smov 0   ;;  %s2330_s15 = smov 0  }
   0x4   :  { %s2332_s16 = smov 0  }
   0x5 LB: > { %s2341_s2 = sadd.s32 4294967295, %s2271_s16   ;;  %s2343_s17 = sadd.s32 1, %s2271_s16   ;;  %s2271_s16 = sphi %s2332_s16, %s2785_s16   ;;  %s2267_s15 = sphi %s2330_s15, %s2784_s15   ;;  %s2263_s14 = sphi %s2328_s14, %s2783_s14  }
   0x6   : > { %s87_s18 = ssub.s32 %s2271_s16, %s2343_s17  ;;  %s90_s19 = sadd.s32 1, %s2267_s15 }
   0x7   : > { %p88_p0 = scmp.eq.s32.totalorder %s87_s18, 0  ;;  %p100_p1 = scmp.ne.s32.totalorder %s2267_s15, %s2263_s14 }
   0x8   : > { %p101_p2 = scmp.eq.s32.totalorder %s2341_s2, 6  ;;  %p1597_p3 = scmp.ge.s32.totalorder %s2271_s16, 1 }
   0x9   : > { %s2351_s20 = scalar_select %p88_p0, %s2267_s15, %s90_s19  }
   0xa   : > { %p2353_p4 = por %p101_p2, %p100_p1  ;;  %p151_p5 = scmp.lt.s32.totalorder %s2271_s16, 8 }
   0xc   : > { %p152_p6 = pnand %p1597_p3, %p151_p5 }
   0xd   : > { %s2361_s24 = sshll.u32 (!%p152_p6), %s2341_s2, 5  ;;  %s177_s19 = sand.u32 (!%p152_p6), 1, %s2263_s14  }
   0xe   : > { %155 = sbr.rel (%p152_p6) target bundleno = 426 (0x1aa), region = 32  ;;  %p186_p7 = scmp.lt.s32.totalorder (!%p152_p6), %s2361_s24, 195 }
   0xf   : > { %s1598_s22 = sshll.u32 (!%p152_p6), %s177_s19, 8 }
  0x10   : > { %s2526_s14 = scalar_lea.vmem (!%p152_p6), [#allocation3], %s1598_s22  }
  0x13   : > { %v2007_v1 = vld [vmem:[%s2774_s1 + $0x78] sm:$0xff]   ;;  %v2009_v3 = vld [vmem:[%s2774_s1 + $0x70] sm:$0xff]   ;;  %v2011_v5 = vld [vmem:[%s2774_s1 + $0x68] sm:$0xff]   ;;  %s187_s6 = scalar_select %p186_p7, %s2361_s24, 195  ;;  %vm658_vm0 = vcmask 261120   ;;  %vm1221_vm1 = vcmask 7168  }
  0x14   : > { %v2008_v2 = vld [vmem:[%s2774_s1 + $0x38] sm:$0xff]   ;;  %1736 = vmatprep.subr.bf16.mxu0 %v2007_v1  ;;  %1902 = vmatprep.subr.bf16.mxu1 %v2007_v1  ;;  %v2010_v4 = vld [vmem:[%s2774_s1 + $0x30] sm:$0xff]   ;;  %v2012_v6 = vld [vmem:[%s2774_s1 + $0x28] sm:$0xff]   ;;  %s1733_s25 = sshll.u32 (%p2353_p4), %s2341_s2, 8 }
  0x15   : > { %1737 = vmatpush3.bf16.msra.mxu0 %v2008_v2  ;;  %1910 = vmatpush3.bf16.msra.mxu1 %v2008_v2  ;;  %v2013_v7 = vld [vmem:[%s2774_s1 + $0x60] sm:$0xff]   ;;  %s1918_s11 = smul.u32 12, %s187_s6  ;;  %v2015_v9 = vld [vmem:[%s2774_s1 + $0x58] sm:$0xff]   ;;  %v2017_v11 = vld [vmem:[%s2774_s1 + $0x50] sm:$0xff]   ;;  %s2641_s28 = scalar_lea.vmem (%p2353_p4), %s2776_s3, %s1733_s25  }
  0x16   : > { %1738 = vmatprep.subr.bf16.mxu0 %v2009_v3  ;;  %1903 = vmatprep.subr.bf16.mxu1 %v2009_v3  ;;  %v2014_v8 = vld [vmem:[%s2774_s1 + $0x20] sm:$0xff]   ;;  %v2016_v10 = vld [vmem:[%s2774_s1 + $0x18] sm:$0xff]   ;;  %v2018_v14 = vld [vmem:[%s2774_s1 + $0x10] sm:$0xff]  }
  0x17   : > { %s2392_s23 = scalar_lea.vmem %s2773_s0, %s1918_s11  ;;  %v2019_v15 = vld [vmem:[%s2774_s1 + $0x48] sm:$0xff]   ;;  %v2021_v17 = vld [vmem:[%s2774_s1 + $0x40] sm:$0xff]  }
  0x18   : > { %v2025_v12 = vld [vmem:[%s2392_s23 + $0x4] ss:$12 sps:$4 sm:$0xff]   ;;  %v2020_v16 = vld [vmem:[%s2774_s1 + $0x8] sm:$0xff]   ;;  %v2036_v27 = vld [vmem:[%s2392_s23 + $0x34] ss:$12 sps:$4 sm:$0xff]  }
  0x19   : > { %1739 = vmatpush3.bf16.msra.mxu0 %v2010_v4  ;;  %1911 = vmatpush3.bf16.msra.mxu1 %v2010_v4  ;;  %v2028_v13 = vld [vmem:[%s2392_s23 + $0x124] ss:$12 sps:$4 sm:$0xff]   ;;  %v2029_v19 = vld [vmem:[%s2774_s1 + $0x88] sm:$0xff]   ;;  %v2038_v28 = vld [vmem:[%s2392_s23 + $0x154] ss:$12 sps:$4 sm:$0xff]  }
  0x1a   : > { %1740 = vmatprep.subr.bf16.mxu0 %v2011_v5  ;;  %1904 = vmatprep.subr.bf16.mxu1 %v2011_v5  ;;  %v2022_v18 = vld [vmem:[%s2774_s1] sm:$0xff]   ;;  %v2030_v22 = vld [vmem:[%s2392_s23 + $0x1c] ss:$12 sps:$4 sm:$0xff]   ;;  %v2043_v31 = vld [vmem:[%s2392_s23 + $0x4c] ss:$12 sps:$4 sm:$0xff]  }
  0x1b   : > { %739 = vmatprep.mubr.bf16.mxu0 %v2025_v12  ;;  %835 = vmatprep.mubr.bf16.mxu1 %v2028_v13  ;;  %v2023_v20 = vld [vmem:[%s2392_s23] ss:$12 sps:$4 sm:$0xff]   ;;  %v2032_v23 = vld [vmem:[%s2392_s23 + $0x13c] ss:$12 sps:$4 sm:$0xff]   ;;  %v2034_v25 = vld [vmem:[%s2392_s23 + $0x18] ss:$12 sps:$4 sm:$0xff]  }
  0x1c   : > { %v2026_v21 = vld [vmem:[%s2392_s23 + $0x120] ss:$12 sps:$4 sm:$0xff]   ;;  %v2035_v26 = vld [vmem:[%s2392_s23 + $0x138] ss:$12 sps:$4 sm:$0xff]   ;;  %v2040_v29 = vld [vmem:[%s2392_s23 + $0x30] ss:$12 sps:$4 sm:$0xff]  }
  0x1d   : > { %1741 = vmatpush3.bf16.msra.mxu0 %v2012_v6  ;;  %1912 = vmatpush3.bf16.msra.mxu1 %v2012_v6  ;;  %v2042_v24 = vld [vmem:[%s2774_s1 + $0x80] sm:$0xff]   ;;  %v2041_v30 = vld [vmem:[%s2392_s23 + $0x150] ss:$12 sps:$4 sm:$0xff]   ;;  %v2045_v32 = vld [vmem:[%s2392_s23 + $0x16c] ss:$12 sps:$4 sm:$0xff]  }
  0x1e   : > { %1742 = vmatprep.subr.bf16.mxu0 %v2013_v7  ;;  %1905 = vmatprep.subr.bf16.mxu1 %v2013_v7  ;;  %v2047_v33 = vld [vmem:[%s2392_s23 + $0x48] ss:$12 sps:$4 sm:$0xff]   ;;  %v2049_v35 = vld [vmem:[%s2392_s23 + $0x64] ss:$12 sps:$4 sm:$0xff]   ;;  %v2052_v37 = vld [vmem:[%s2392_s23 + $0x60] ss:$12 sps:$4 sm:$0xff]  }
  0x1f   : > { %v2048_v34 = vld [vmem:[%s2392_s23 + $0x168] ss:$12 sps:$4 sm:$0xff]   ;;  %v2053_v38 = vld [vmem:[%s2392_s23 + $0x20] ss:$12 sps:$4 sm:$0xff]   ;;  %v2056_v40 = vld [vmem:[%s2392_s23 + $0x38] ss:$12 sps:$4 sm:$0xff]  }
  0x20   : > { %v2051_v36 = vld [vmem:[%s2392_s23 + $0x8] ss:$12 sps:$4 sm:$0xff]   ;;  %v2057_v41 = vld [vmem:[%s2392_s23 + $0x78] ss:$12 sps:$4 sm:$0xff]   ;;  %v2058_v42 = vld [vmem:[%s2392_s23 + $0x50] ss:$12 sps:$4 sm:$0xff]  }
  0x21   : > { %1743 = vmatpush3.bf16.msra.mxu0 %v2014_v8  ;;  %1913 = vmatpush3.bf16.msra.mxu1 %v2014_v8  ;;  %v2054_v39 = vld [vmem:[%s2392_s23 + $0x7c] ss:$12 sps:$4 sm:$0xff]   ;;  %v2059_v43 = vld [vmem:[%s2392_s23 + $0x94] ss:$12 sps:$4 sm:$0xff]   ;;  %v2064_v47 = vld [vmem:[%s2392_s23 + $0xac] ss:$12 sps:$4 sm:$0xff]  }
  0x22   : > { %1744 = vmatprep.subr.bf16.mxu0 %v2015_v9  ;;  %1906 = vmatprep.subr.bf16.mxu1 %v2015_v9  ;;  %v2061_v44 = vld [vmem:[%s2392_s23 + $0x68] ss:$12 sps:$4 sm:$0xff]   ;;  %v2062_v45 = vld [vmem:[%s2392_s23 + $0x90] ss:$12 sps:$4 sm:$0xff]   ;;  %v2063_v46 = vld [vmem:[%s2392_s23 + $0x80] ss:$12 sps:$4 sm:$0xff]  }
  0x23   : > { %v2066_v48 = vld [vmem:[%s2392_s23 + $0x98] ss:$12 sps:$4 sm:$0xff]   ;;  %v2067_v49 = vld [vmem:[%s2392_s23 + $0xa8] ss:$12 sps:$4 sm:$0xff]   ;;  %v2068_v50 = vld [vmem:[%s2392_s23 + $0xb0] ss:$12 sps:$4 sm:$0xff]  }
  0x24   : > { %v2069_v51 = vld [vmem:[%s2392_s23 + $0xc4] ss:$12 sps:$4 sm:$0xff]   ;;  %v2071_v52 = vld [vmem:[%s2392_s23 + $0xc8] ss:$12 sps:$4 sm:$0xff]   ;;  %v2072_v53 = vld [vmem:[%s2392_s23 + $0xc0] ss:$12 sps:$4 sm:$0xff]  }
  0x25   : > { %1745 = vmatpush3.bf16.msra.mxu0 %v2016_v10  ;;  %1914 = vmatpush3.bf16.msra.mxu1 %v2016_v10  ;;  %v2073_v54 = vld [vmem:[%s2392_s23 + $0xe0] ss:$12 sps:$4 sm:$0xff]   ;;  %v2074_v55 = vld [vmem:[%s2392_s23 + $0xdc] ss:$12 sps:$4 sm:$0xff]   ;;  %v2076_v56 = vld [vmem:[%s2392_s23 + $0xf8] ss:$12 sps:$4 sm:$0xff]  }
  0x26   : > { %1746 = vmatprep.subr.bf16.mxu0 %v2017_v11  ;;  %1907 = vmatprep.subr.bf16.mxu1 %v2017_v11  ;;  %v2077_v57 = vld [vmem:[%s2392_s23 + $0xd8] ss:$12 sps:$4 sm:$0xff]   ;;  %v2078_v58 = vld [vmem:[%s2392_s23 + $0x110] ss:$12 sps:$4 sm:$0xff]   ;;  %v2079_v59 = vld [vmem:[%s2392_s23 + $0xf4] ss:$12 sps:$4 sm:$0xff]  }
  0x27   : > { %v2081_v60 = vld [vmem:[%s2392_s23 + $0x128] ss:$12 sps:$4 sm:$0xff]   ;;  %v2082_v61 = vld [vmem:[%s2392_s23 + $0xf0] ss:$12 sps:$4 sm:$0xff]   ;;  %v2083_v62 = vld [vmem:[%s2392_s23 + $0x140] ss:$12 sps:$4 sm:$0xff]  }
  0x28   : > { %v2084_v63 = vld [vmem:[%s2392_s23 + $0x10c] ss:$12 sps:$4 sm:$0xff]   ;;  %v2087_v1 = vld [vmem:[%s2392_s23 + $0x108] ss:$12 sps:$4 sm:$0xff]   ;;  %v2088_v2 = vld [vmem:[%s2392_s23 + $0x170] ss:$12 sps:$4 sm:$0xff]  }
  0x29   : > { %1747 = vmatpush3.bf16.msra.mxu0 %v2018_v14  ;;  %1915 = vmatpush3.bf16.msra.mxu1 %v2018_v14  ;;  %v2086_v0 = vld [vmem:[%s2392_s23 + $0x158] ss:$12 sps:$4 sm:$0xff]   ;;  %s1262_s23 = ssub.s32 (%p2353_p4), 196, %s2361_s24 }
  0x2a   : > { %1748 = vmatprep.subr.bf16.mxu0 %v2019_v15  ;;  %1908 = vmatprep.subr.bf16.mxu1 %v2019_v15  ;;  %p1263_p8 = scmp.lt.s32.totalorder (%p2353_p4), %s1262_s23, 32 }
  0x2d   : > { %1749 = vmatpush3.bf16.msra.mxu0 %v2020_v16  ;;  %1916 = vmatpush3.bf16.msra.mxu1 %v2020_v16 }
  0x2e   : > { %1750 = vmatprep.subr.bf16.mxu0 %v2021_v17  ;;  %1909 = vmatprep.subr.bf16.mxu1 %v2021_v17 }
  0x31   : > { %1751 = vmatpush3.bf16.msra.mxu0 %v2022_v18  ;;  %1917 = vmatpush3.bf16.msra.mxu1 %v2022_v18 }
  0x32   : > { %1866 = vmatprep.subr.bf16.mxu1 %v2029_v19 }
  0x34   : > { %740 = vmatmul.mubr.bf16.vlgmr.msra.gmra.mxu0 %v2023_v20  ;;  %836 = vmatmul.mubr.bf16.vlgmr.msra.gmra.mxu1 %v2026_v21 }
  0x35   : > { %1867 = vmatpush3.bf16.msra.mxu1 %v2029_v19  ;;  %747 = vmatprep.mubr.bf16.mxu0 %v2030_v22 }
  0x36   : > { %843 = vmatprep.mubr.bf16.mxu1 %v2032_v23  ;;  %1868 = vmatprep.subr.bf16.mxu1 %v2042_v24 }
  0x39   : > { %1869 = vmatpush3.bf16.msra.mxu1 %v2042_v24 }
  0x3c   : > { %748 = vmatmul.mubr.bf16.gmra.mxu0 %v2034_v25  ;;  %844 = vmatmul.mubr.bf16.gmra.mxu1 %v2035_v26 }
  0x3d   : > { %755 = vmatprep.mubr.bf16.mxu0 %v2036_v27  ;;  %851 = vmatprep.mubr.bf16.mxu1 %v2038_v28 }
  0x44   : > { %756 = vmatmul.mubr.bf16.gmra.mxu0 %v2040_v29  ;;  %852 = vmatmul.mubr.bf16.gmra.mxu1 %v2041_v30 }
  0x45   : > { %763 = vmatprep.mubr.bf16.mxu0 %v2043_v31  ;;  %859 = vmatprep.mubr.bf16.mxu1 %v2045_v32 }
  0x4c   : > { %764 = vmatmul.mubr.bf16.gmra.mxu0 %v2047_v33  ;;  %860 = vmatmul.mubr.bf16.gmra.mxu1 %v2048_v34 }
  0x4d   : > { %771 = vmatprep.mubr.bf16.mxu0 %v2049_v35  ;;  %1870 = vmatprep.mubr.msk.bf16.mxu1 %vm658_vm0, %v2051_v36 }
  0x54   : > { %772 = vmatmul.mubr.bf16.gmra.mxu0 %v2052_v37  ;;  %1871 = vmatmul.mubr.msk.bf16.vlgmr.msra.gmra.mxu1 %vm658_vm0, %v2053_v38 }
  0x55   : > { %779 = vmatprep.mubr.bf16.mxu0 %v2054_v39  ;;  %1874 = vmatprep.mubr.msk.bf16.mxu1 %vm658_vm0, %v2056_v40 }
  0x5c   : > { %780 = vmatmul.mubr.bf16.gmra.mxu0 %v2057_v41  ;;  %1875 = vmatmul.mubr.msk.bf16.gmra.mxu1 %vm658_vm0, %v2058_v42 }
  0x5d   : > { %787 = vmatprep.mubr.bf16.mxu0 %v2059_v43  ;;  %1878 = vmatprep.mubr.msk.bf16.mxu1 %vm658_vm0, %v2061_v44  ;;  %v2505_v43 = vld [vmem:[#allocation2] ss:$0 sm:$0xff] }
  0x64   : > { %788 = vmatmul.mubr.bf16.gmra.mxu0 %v2062_v45  ;;  %1879 = vmatmul.mubr.msk.bf16.gmra.mxu1 %vm658_vm0, %v2063_v46 }
  0x65   : > { %795 = vmatprep.mubr.bf16.mxu0 %v2064_v47  ;;  %1882 = vmatprep.mubr.msk.bf16.mxu1 %vm658_vm0, %v2066_v48 }
  0x6c   : > { %796 = vmatmul.mubr.bf16.gmra.mxu0 %v2067_v49  ;;  %1883 = vmatmul.mubr.msk.bf16.gmra.mxu1 %vm658_vm0, %v2068_v50 }
  0x6d   : > { %803 = vmatprep.mubr.bf16.mxu0 %v2069_v51  ;;  %1886 = vmatprep.mubr.msk.bf16.mxu1 %vm658_vm0, %v2071_v52 }
  0x74   : > { %804 = vmatmul.mubr.bf16.gmra.mxu0 %v2072_v53  ;;  %1887 = vmatmul.mubr.msk.bf16.gmra.mxu1 %vm658_vm0, %v2073_v54 }
  0x75   : > { %811 = vmatprep.mubr.bf16.mxu0 %v2074_v55  ;;  %1890 = vmatprep.mubr.msk.bf16.mxu1 %vm658_vm0, %v2076_v56 }
  0x7c   : > { %812 = vmatmul.mubr.bf16.gmra.mxu0 %v2077_v57  ;;  %1891 = vmatmul.mubr.msk.bf16.gmra.mxu1 %vm658_vm0, %v2078_v58 }
  0x7d   : > { %819 = vmatprep.mubr.bf16.mxu0 %v2079_v59  ;;  %1894 = vmatprep.mubr.msk.bf16.mxu1 %vm658_vm0, %v2081_v60 }
  0x84   : > { %820 = vmatmul.mubr.bf16.gmra.mxu0 %v2082_v61  ;;  %1895 = vmatmul.mubr.msk.bf16.gmra.mxu1 %vm658_vm0, %v2083_v62 }
  0x85   : > { %827 = vmatprep.mubr.bf16.mxu0 %v2084_v63  ;;  %1898 = vmatprep.mubr.msk.bf16.mxu1 %vm658_vm0, %v2086_v0 }
  0x8c   : > { %828 = vmatmul.mubr.bf16.gmra.mxu0 %v2087_v1  ;;  %1899 = vmatmul.mubr.msk.bf16.gmra.mxu1 %vm658_vm0, %v2088_v2 }
  0xf4   : > { %v1752_v3 = vpop.f32.mrf.mxu0  ;;  %v1824_v4 = vpop.f32.mrf.mxu1 }
  0xf6   : > { %v1753_v5 = vpop.f32.mrf.mxu0  ;;  %v1825_v6 = vpop.f32.mrf.mxu1 }
  0xf7   : > { %v2485_v7 = vadd.f32 %v1825_v6, %v1824_v4  ;;  %v1754_v40 = vadd.f32 %v1753_v5, %v1752_v3 }
  0xf8   : > { %v1755_v8 = vpop.f32.mrf.mxu0  ;;  %v1827_v9 = vpop.f32.mrf.mxu1 }
  0xf9   : > { %v742_v50 = vadd.f32 %v1754_v40, %v2505_v43 }
  0xfa   : > { %v1756_v10 = vpop.f32.mrf.mxu0  ;;  %v1828_v11 = vpop.f32.mrf.mxu1 }
  0xfb   : > { %v2487_v12 = vadd.f32 %v1828_v11, %v1827_v9  ;;  %v1757_v48 = vadd.f32 %v1756_v10, %v1755_v8 }
  0xfc   : > { %v1758_v13 = vpop.f32.mrf.mxu0  ;;  %v1830_v14 = vpop.f32.mrf.mxu1 }
  0xfd   : > { %v745_v62 = vadd.f32 %v1757_v48, %v2505_v43 }
  0xfe   : > { %v1759_v15 = vpop.f32.mrf.mxu0  ;;  %v1831_v16 = vpop.f32.mrf.mxu1 }
  0xff   : > { %v2489_v17 = vadd.f32 %v1831_v16, %v1830_v14  ;;  %v1760_v37 = vadd.f32 %v1759_v15, %v1758_v13 }
 0x100   : > { %v1761_v18 = vpop.f32.mrf.mxu0  ;;  %v1833_v19 = vpop.f32.mrf.mxu1 }
 0x101   : > { %v750_v45 = vadd.f32 %v1760_v37, %v2505_v43 }
 0x102   : > { %v1762_v20 = vpop.f32.mrf.mxu0  ;;  %v1834_v21 = vpop.f32.mrf.mxu1 }
 0x103   : > { %v2491_v22 = vadd.f32 %v1834_v21, %v1833_v19  ;;  %v1763_v44 = vadd.f32 %v1762_v20, %v1761_v18 }
 0x104   : > { %v1764_v23 = vpop.f32.mrf.mxu0  ;;  %v1836_v24 = vpop.f32.mrf.mxu1 }
 0x105   : > { %v753_v56 = vadd.f32 %v1763_v44, %v2505_v43 }
 0x106   : > { %v1765_v25 = vpop.f32.mrf.mxu0  ;;  %v1837_v26 = vpop.f32.mrf.mxu1 }
 0x107   : > { %v2493_v27 = vadd.f32 %v1837_v26, %v1836_v24  ;;  %v1766_v57 = vadd.f32 %v1765_v25, %v1764_v23 }
 0x108   : > { %v1767_v28 = vpop.f32.mrf.mxu0  ;;  %v1839_v29 = vpop.f32.mrf.mxu1 }
 0x109   : > { %v758_v8 = vadd.f32 %v1766_v57, %v2505_v43 }
 0x10a   : > { %v1768_v30 = vpop.f32.mrf.mxu0  ;;  %v1840_v31 = vpop.f32.mrf.mxu1 }
 0x10b   : > { %v2495_v32 = vadd.f32 %v1840_v31, %v1839_v29  ;;  %v1769_v9 = vadd.f32 %v1768_v30, %v1767_v28 }
 0x10c   : > { %v1770_v33 = vpop.f32.mrf.mxu0  ;;  %v2497_v34 = vpop.f32.mrf.mxu1 }
 0x10d   : > { %v761_v25 = vadd.f32 %v1769_v9, %v2505_v43 }
 0x10e   : > { %v1771_v35 = vpop.f32.mrf.mxu0  ;;  %v2499_v36 = vpop.f32.mrf.mxu1 }
 0x10f   : > { %v1772_v53 = vadd.f32 %v1771_v35, %v1770_v33 }
 0x110   : > { %v1773_v38 = vpop.f32.mrf.mxu0  ;;  %v2501_v39 = vpop.f32.mrf.mxu1 }
 0x111   : > { %v766_v4 = vadd.f32 %v1772_v53, %v2505_v43 }
 0x112   : > { %v1774_v41 = vpop.f32.mrf.mxu0  ;;  %v2503_v42 = vpop.f32.mrf.mxu1 }
 0x113   : > { %v1775_v63 = vadd.f32 %v1774_v41, %v1773_v38 }
 0x114   : > { %v1776_v46 = vpop.f32.mrf.mxu0  ;;  %v1872_v47 = vpop.f32.mrf.mxu1 }
 0x115   : > { %v911_v49 = vadd.f32 %v1872_v47, %v750_v45  ;;  %v769_v15 = vadd.f32 %v1775_v63, %v2505_v43 }
 0x116   : > { %v1777_v51 = vpop.f32.mrf.mxu0  ;;  %v902_v52 = vpop.f32.mrf.mxu1 }
 0x117   : > { %v1686_v54 = vmul.f32 -1.442695, %v911_v49  ;;  %v903_v55 = vadd.f32 %v902_v52, %v742_v50  ;;  %v1778_v26 = vadd.f32 %v1777_v51, %v1776_v46 }
 0x118   : > { %v1779_v58 = vpop.f32.mrf.mxu0  ;;  %v1873_v59 = vpop.f32.mrf.mxu1 }
 0x119   : > { %2089 = vpow2.f32 %v1686_v54  ;;  %v1684_v60 = vmul.f32 -1.442695, %v903_v55  ;;  %v914_v61 = vadd.f32 %v1873_v59, %v753_v56  ;;  %v774_v48 = vadd.f32 %v1778_v26, %v2505_v43 }
 0x11a   : > { %v1780_v0 = vpop.f32.mrf.mxu0  ;;  %v905_v1 = vpop.f32.mrf.mxu1 }
 0x11b   : > { %2091 = vpow2.f32 %v1684_v60  ;;  %v1687_v2 = vmul.f32 -1.442695, %v914_v61  ;;  %v906_v3 = vadd.f32 %v905_v1, %v745_v62  ;;  %v1781_v45 = vadd.f32 %v1780_v0, %v1779_v58 }
 0x11c   : > { %v1782_v5 = vpop.f32.mrf.mxu0  ;;  %v1876_v6 = vpop.f32.mrf.mxu1 }
 0x11d   : > { %2093 = vpow2.f32 %v1687_v2  ;;  %v1685_v10 = vmul.f32 -1.442695, %v906_v3  ;;  %v927_v11 = vadd.f32 %v1876_v6, %v766_v4  ;;  %v777_v62 = vadd.f32 %v1781_v45, %v2505_v43 }
 0x11e   : > { %v1783_v13 = vpop.f32.mrf.mxu0  ;;  %v918_v14 = vpop.f32.mrf.mxu1 }
 0x11f   : > { %2095 = vpow2.f32 %v1685_v10  ;;  %v1690_v16 = vmul.f32 -1.442695, %v927_v11  ;;  %v1784_v18 = vadd.f32 %v1783_v13, %v1782_v5  ;;  %v919_v19 = vadd.f32 %v918_v14, %v758_v8 }
 0x120   : > { %v1785_v20 = vpop.f32.mrf.mxu0  ;;  %v1877_v21 = vpop.f32.mrf.mxu1 }
 0x121   : > { %2097 = vpow2.f32 %v1690_v16  ;;  %v1688_v23 = vmul.f32 -1.442695, %v919_v19  ;;  %v930_v24 = vadd.f32 %v1877_v21, %v769_v15  ;;  %v782_v30 = vadd.f32 %v1784_v18, %v2505_v43 }
 0x122   : > { %v1786_v28 = vpop.f32.mrf.mxu0  ;;  %v921_v29 = vpop.f32.mrf.mxu1 }
 0x123   : > { %2099 = vpow2.f32 %v1688_v23  ;;  %v1691_v31 = vmul.f32 -1.442695, %v930_v24  ;;  %v1787_v33 = vadd.f32 %v1786_v28, %v1785_v20  ;;  %v922_v35 = vadd.f32 %v921_v29, %v761_v25 }
 0x124   : > { %v1788_v37 = vpop.f32.mrf.mxu0  ;;  %v1880_v38 = vpop.f32.mrf.mxu1 }
 0x125   : > { %2101 = vpow2.f32 %v1691_v31  ;;  %v1689_v40 = vmul.f32 -1.442695, %v922_v35  ;;  %v943_v41 = vadd.f32 %v1880_v38, %v782_v30  ;;  %v785_v51 = vadd.f32 %v1787_v33, %v2505_v43 }
 0x126   : > { %v2090_v44 = vpop.eup %2089  ;;  %v1789_v47 = vpop.f32.mrf.mxu0 }
 0x127   : > { %v934_v49 = vpop.f32.mrf.mxu1  ;;  %v1127_v46 = vadd.f32 1.0, %v2090_v44  ;;  %2103 = vpow2.f32 %v1689_v40  ;;  %v1694_v50 = vmul.f32 -1.442695, %v943_v41  ;;  %v1790_v57 = vadd.f32 %v1789_v47, %v1788_v37 }
 0x128   : > { %v2092_v52 = vpop.eup %2091  ;;  %v935_v53 = vadd.f32 %v934_v49, %v774_v48  ;;  %v1791_v54 = vpop.f32.mrf.mxu0 }
 0x129   : > { %v1881_v55 = vpop.f32.mrf.mxu1  ;;  %2105 = vrcp.f32 %v1127_v46  ;;  %v1125_v56 = vadd.f32 1.0, %v2092_v52  ;;  %v790_v8 = vadd.f32 %v1790_v57, %v2505_v43 }
 0x12a   : > { %v946_v59 = vadd.f32 %v1881_v55, %v785_v51  ;;  %v2094_v60 = vpop.eup %2093  ;;  %2107 = vpow2.f32 %v1694_v50  ;;  %v1692_v58 = vmul.f32 -1.442695, %v935_v53  ;;  %v1792_v61 = vpop.f32.mrf.mxu0 }
 0x12b   : > { %v937_v63 = vpop.f32.mrf.mxu1  ;;  %2109 = vrcp.f32 %v1125_v56  ;;  %v1128_v0 = vadd.f32 1.0, %v2094_v60  ;;  %v1793_v10 = vadd.f32 %v1792_v61, %v1791_v54 }
 0x12c   : > { %v1695_v1 = vmul.f32 -1.442695, %v946_v59  ;;  %v2096_v2 = vpop.eup %2095  ;;  %2111 = vpow2.f32 %v1692_v58  ;;  %v938_v3 = vadd.f32 %v937_v63, %v777_v62  ;;  %v1794_v4 = vpop.f32.mrf.mxu0 }
 0x12d   : > { %v1884_v5 = vpop.f32.mrf.mxu1  ;;  %2113 = vrcp.f32 %v1128_v0  ;;  %v1126_v6 = vadd.f32 1.0, %v2096_v2  ;;  %v793_v29 = vadd.f32 %v1793_v10, %v2505_v43 }
 0x12e   : > { %v2098_v9 = vpop.eup %2097  ;;  %2115 = vpow2.f32 %v1695_v1  ;;  %v1693_v11 = vmul.f32 -1.442695, %v938_v3  ;;  %v1795_v13 = vpop.f32.mrf.mxu0 }
 0x12f   : > { %v950_v14 = vpop.f32.mrf.mxu1  ;;  %2117 = vrcp.f32 %v1126_v6  ;;  %v1131_v15 = vadd.f32 1.0, %v2098_v9  ;;  %v1796_v16 = vadd.f32 %v1795_v13, %v1794_v4 }
 0x130   : > { %v951_v18 = vadd.f32 %v950_v14, %v790_v8  ;;  %v2100_v19 = vpop.eup %2099  ;;  %2119 = vpow2.f32 %v1693_v11  ;;  %v1797_v20 = vpop.f32.mrf.mxu0 }
 0x131   : > { %v1885_v21 = vpop.f32.mrf.mxu1  ;;  %2121 = vrcp.f32 %v1131_v15  ;;  %v1129_v23 = vadd.f32 1.0, %v2100_v19  ;;  %v798_v24 = vadd.f32 %v1796_v16, %v2505_v43 }
 0x132   : > { %v1696_v25 = vmul.f32 -1.442695, %v951_v18  ;;  %v2102_v26 = vpop.eup %2101  ;;  %v1798_v28 = vpop.f32.mrf.mxu0 }
 0x133   : > { %v953_v30 = vpop.f32.mrf.mxu1  ;;  %2123 = vrcp.f32 %v1129_v23  ;;  %v1132_v31 = vadd.f32 1.0, %v2102_v26  ;;  %v959_v33 = vadd.f32 %v1884_v5, %v798_v24  ;;  %v1799_v35 = vadd.f32 %v1798_v28, %v1797_v20 }
 0x134   : > { %v2104_v37 = vpop.eup %2103  ;;  %2125 = vpow2.f32 %v1696_v25  ;;  %v954_v38 = vadd.f32 %v953_v30, %v793_v29  ;;  %v1800_v40 = vpop.f32.mrf.mxu0 }
 0x135   : > { %v2523_v41 = vpop.f32.mrf.mxu1  ;;  %2127 = vrcp.f32 %v1132_v31  ;;  %v1130_v44 = vadd.f32 1.0, %v2104_v37  ;;  %v1698_v45 = vmul.f32 -1.442695, %v959_v33  ;;  %v801_v47 = vadd.f32 %v1799_v35, %v2505_v43 }
 0x136   : > { %v2106_v48 = vpop.eup %2105  ;;  %v1697_v49 = vmul.f32 -1.442695, %v954_v38  ;;  %v1801_v46 = vpop.f32.mrf.mxu0  ;;  %v846_v37 = vadd.f32 %v2489_v17, %v2505_v43  ;;  %v849_v17 = vadd.f32 %v2491_v22, %v2505_v43 }
 0x137   : > { %v966_v50 = vpop.f32.mrf.mxu1  ;;  %v2108_v51 = vpop.eup %2107  ;;  %1224 = vst.msk [vmem:[%s2526_s14 + $0x10] sm:$0xff] %vm1221_vm1, %v2106_v48  ;;  %2129 = vrcp.f32 %v1130_v44  ;;  %v962_v52 = vadd.f32 %v1885_v21, %v801_v47  ;;  %v1802_v53 = vadd.f32 %v1801_v46, %v1800_v40 }
 0x138   : > { %v2110_v54 = vpop.eup %2109  ;;  %v1135_v55 = vadd.f32 1.0, %v2108_v51  ;;  %2131 = vpow2.f32 %v1698_v45  ;;  %v1803_v56 = vpop.f32.mrf.mxu0 }
 0x139   : > { %v2530_v57 = vpop.f32.mrf.mxu1  ;;  %v2112_v59 = vpop.eup %2111  ;;  %1222 = vst.msk [vmem:[%s2526_s14] sm:$0xff] %vm1221_vm1, %v2110_v54  ;;  %v1699_v60 = vmul.f32 -1.442695, %v962_v52  ;;  %2133 = vpow2.f32 %v1697_v49  ;;  %v806_v58 = vadd.f32 %v1802_v53, %v2505_v43  ;;  %v841_v53 = vadd.f32 %v2487_v12, %v2505_v43 }
 0x13a   : > { %v2114_v61 = vpop.eup %2113  ;;  %2135 = vrcp.f32 %v1135_v55  ;;  %v1133_v62 = vadd.f32 1.0, %v2112_v59  ;;  %v1804_v63 = vpop.f32.mrf.mxu0 }
 0x13b   : > { %v969_v0 = vpop.f32.mrf.mxu1  ;;  %v2116_v1 = vpop.eup %2115  ;;  %1225 = vst.msk [vmem:[%s2526_s14 + $0x18] sm:$0xff] %vm1221_vm1, %v2114_v61  ;;  %2137 = vpow2.f32 %v1699_v60  ;;  %v967_v2 = vadd.f32 %v966_v50, %v806_v58  ;;  %v1805_v3 = vadd.f32 %v1804_v63, %v1803_v56  ;;  %v1844_v58 = vadd.f32 %v2499_v36, %v2497_v34 }
 0x13c   : > { %v2118_v4 = vpop.eup %2117  ;;  %2139 = vrcp.f32 %v1133_v62  ;;  %v1136_v5 = vadd.f32 1.0, %v2116_v1  ;;  %v1806_v6 = vpop.f32.mrf.mxu0 }
 0x13d   : > { %v2537_v8 = vpop.f32.mrf.mxu1  ;;  %v2120_v9 = vpop.eup %2119  ;;  %1223 = vst.msk [vmem:[%s2526_s14 + $0x8] sm:$0xff] %vm1221_vm1, %v2118_v4  ;;  %v1700_v10 = vmul.f32 -1.442695, %v967_v2  ;;  %v809_v11 = vadd.f32 %v1805_v3, %v2505_v43  ;;  %v854_v3 = vadd.f32 %v2493_v27, %v2505_v43 }
 0x13e   : > { %v2122_v13 = vpop.eup %2121  ;;  %2141 = vrcp.f32 %v1136_v5  ;;  %v1134_v14 = vadd.f32 1.0, %v2120_v9  ;;  %v1807_v15 = vpop.f32.mrf.mxu0 }
 0x13f   : > { %v2542_v16 = vpop.f32.mrf.mxu1  ;;  %1228 = vst.msk [vmem:[%s2526_s14 + $0x30] sm:$0xff] %vm1221_vm1, %v2122_v13  ;;  %2143 = vpow2.f32 %v1700_v10  ;;  %v970_v18 = vadd.f32 %v969_v0, %v809_v11  ;;  %v1808_v19 = vadd.f32 %v1807_v15, %v1806_v6  ;;  %v1847_v11 = vadd.f32 %v2503_v42, %v2501_v39 }
 0x140   : > { %v2124_v20 = vpop.eup %2123  ;;  %2145 = vrcp.f32 %v1134_v14  ;;  %v1809_v21 = vpop.f32.mrf.mxu0  ;;  %v862_v15 = vadd.f32 %v1844_v58, %v2505_v43 }
 0x141   : > { %v2546_v23 = vpop.f32.mrf.mxu1  ;;  %v2126_v24 = vpop.eup %2125  ;;  %1226 = vst.msk [vmem:[%s2526_s14 + $0x20] sm:$0xff] %vm1221_vm1, %v2124_v20  ;;  %v1701_v25 = vmul.f32 -1.442695, %v970_v18  ;;  %v814_v26 = vadd.f32 %v1808_v19, %v2505_v43 }
 0x142   : > { %v2128_v28 = vpop.eup %2127  ;;  %v1137_v29 = vadd.f32 1.0, %v2126_v24  ;;  %v1810_v30 = vpop.f32.mrf.mxu0 }
 0x143   : > { %v2551_v31 = vpop.f32.mrf.mxu1  ;;  %1229 = vst.msk [vmem:[%s2526_s14 + $0x38] sm:$0xff] %vm1221_vm1, %v2128_v28  ;;  %2147 = vpow2.f32 %v1701_v25  ;;  %v975_v33 = vadd.f32 %v2523_v41, %v814_v26  ;;  %v1811_v35 = vadd.f32 %v1810_v30, %v1809_v21  ;;  %v838_v41 = vadd.f32 %v2485_v7, %v2505_v43 }
 0x144   : > { %v2130_v38 = vpop.eup %2129  ;;  %2149 = vrcp.f32 %v1137_v29  ;;  %v1812_v40 = vpop.f32.mrf.mxu0 }
 0x145   : > { %v1896_v44 = vpop.f32.mrf.mxu1  ;;  %v2132_v45 = vpop.eup %2131  ;;  %1227 = vst.msk [vmem:[%s2526_s14 + $0x28] sm:$0xff] %vm1221_vm1, %v2130_v38  ;;  %v1702_v47 = vmul.f32 -1.442695, %v975_v33  ;;  %v817_v48 = vadd.f32 %v1811_v35, %v2505_v43  ;;  %v865_v35 = vadd.f32 %v1847_v11, %v2505_v43  ;;  %v857_v38 = vadd.f32 %v2495_v32, %v2505_v43 }
 0x146   : > { %v1007_v49 = vadd.f32 %v1896_v44, %v846_v37  ;;  %v2134_v46 = vpop.eup %2133  ;;  %v1139_v50 = vadd.f32 1.0, %v2132_v45  ;;  %v1813_v51 = vpop.f32.mrf.mxu0 }
 0x147   : > { %v998_v52 = vpop.f32.mrf.mxu1  ;;  %v2136_v54 = vpop.eup %2135  ;;  %v1138_v55 = vadd.f32 1.0, %v2134_v46  ;;  %2151 = vpow2.f32 %v1702_v47  ;;  %v978_v56 = vadd.f32 %v2530_v57, %v817_v48  ;;  %v1814_v7 = vadd.f32 %v1813_v51, %v1812_v40 }
 0x148   : > { %v1710_v59 = vmul.f32 -1.442695, %v1007_v49  ;;  %v2138_v60 = vpop.eup %2137  ;;  %1232 = vst.msk [vmem:[%s2526_s14 + $0x50] sm:$0xff] %vm1221_vm1, %v2136_v54  ;;  %2153 = vrcp.f32 %v1139_v50  ;;  %v999_v61 = vadd.f32 %v998_v52, %v838_v41  ;;  %v1815_v22 = vpop.f32.mrf.mxu0 }
 0x149   : > { %v1897_v62 = vpop.f32.mrf.mxu1  ;;  %v2140_v63 = vpop.eup %2139  ;;  %v1140_v12 = vadd.f32 1.0, %v2138_v60  ;;  %2155 = vrcp.f32 %v1138_v55  ;;  %v1703_v0 = vmul.f32 -1.442695, %v978_v56  ;;  %v822_v57 = vadd.f32 %v1814_v7, %v2505_v43 }
 0x14a   : > { %v1010_v1 = vadd.f32 %v1897_v62, %v849_v17  ;;  %1230 = vst.msk [vmem:[%s2526_s14 + $0x40] sm:$0xff] %vm1221_vm1, %v2140_v63  ;;  %2157 = vpow2.f32 %v1710_v59  ;;  %v1708_v2 = vmul.f32 -1.442695, %v999_v61  ;;  %v1816_v34 = vpop.f32.mrf.mxu0 }
 0x14b   : > { %v1001_v36 = vpop.f32.mrf.mxu1  ;;  %v2142_v4 = vpop.eup %2141  ;;  %2159 = vrcp.f32 %v1140_v12  ;;  %v1817_v6 = vadd.f32 %v1816_v34, %v1815_v22  ;;  %v983_v13 = vadd.f32 %v2542_v16, %v822_v57 }
 0x14c   : > { %v1711_v5 = vmul.f32 -1.442695, %v1010_v1  ;;  %v1002_v9 = vadd.f32 %v1001_v36, %v841_v53  ;;  %v2144_v10 = vpop.eup %2143  ;;  %1233 = vst.msk [vmem:[%s2526_s14 + $0x58] sm:$0xff] %vm1221_vm1, %v2142_v4  ;;  %2161 = vpow2.f32 %v1703_v0  ;;  %v1818_v14 = vpop.f32.mrf.mxu0 }
 0x14d   : > { %v1900_v18 = vpop.f32.mrf.mxu1  ;;  %v2146_v27 = vpop.eup %2145  ;;  %v1141_v19 = vadd.f32 1.0, %v2144_v10  ;;  %2163 = vpow2.f32 %v1708_v2  ;;  %v825_v20 = vadd.f32 %v1817_v6, %v2505_v43  ;;  %v1704_v24 = vmul.f32 -1.442695, %v983_v13 }
 0x14e   : > { %v1709_v21 = vmul.f32 -1.442695, %v1002_v9  ;;  %1231 = vst.msk [vmem:[%s2526_s14 + $0x48] sm:$0xff] %vm1221_vm1, %v2146_v27  ;;  %2165 = vpow2.f32 %v1711_v5  ;;  %v1023_v39 = vadd.f32 %v1900_v18, %v862_v15  ;;  %v1819_v42 = vpop.f32.mrf.mxu0 }
 0x14f   : > { %v1014_v25 = vpop.f32.mrf.mxu1  ;;  %2167 = vrcp.f32 %v1141_v19  ;;  %v986_v16 = vadd.f32 %v2551_v31, %v825_v20  ;;  %v1820_v26 = vadd.f32 %v1819_v42, %v1818_v14 }
 0x150   : > { %v1015_v28 = vadd.f32 %v1014_v25, %v854_v3  ;;  %v2148_v29 = vpop.eup %2147  ;;  %2169 = vpow2.f32 %v1704_v24  ;;  %v1714_v30 = vmul.f32 -1.442695, %v1023_v39  ;;  %v1821_v33 = vpop.f32.mrf.mxu0 }
 0x151   : > { %v1901_v37 = vpop.f32.mrf.mxu1  ;;  %v2150_v40 = vpop.eup %2149  ;;  %v1142_v44 = vadd.f32 1.0, %v2148_v29  ;;  %v1705_v45 = vmul.f32 -1.442695, %v986_v16  ;;  %2171 = vpow2.f32 %v1709_v21  ;;  %v830_v47 = vadd.f32 %v1820_v26, %v2505_v43 }
 0x152   : > { %1234 = vst.msk [vmem:[%s2526_s14 + $0x60] sm:$0xff] %vm1221_vm1, %v2150_v40  ;;  %2173 = vpow2.f32 %v1714_v30  ;;  %v1712_v31 = vmul.f32 -1.442695, %v1015_v28  ;;  %v1026_v48 = vadd.f32 %v1901_v37, %v865_v35  ;;  %v1822_v49 = vpop.f32.mrf.mxu0 }
 0x153   : > { %v1017_v46 = vpop.f32.mrf.mxu1  ;;  %2175 = vrcp.f32 %v1142_v44  ;;  %v991_v50 = vadd.f32 %v2537_v8, %v830_v47  ;;  %v1823_v51 = vadd.f32 %v1822_v49, %v1821_v33 }
 0x154   : > { %v1018_v32 = vadd.f32 %v1017_v46, %v857_v38  ;;  %v2152_v41 = vpop.eup %2151  ;;  %2177 = vpow2.f32 %v1705_v45  ;;  %v1715_v52 = vmul.f32 -1.442695, %v1026_v48 }
 0x155   : > { %v2154_v17 = vpop.eup %2153  ;;  %v1143_v53 = vadd.f32 1.0, %v2152_v41  ;;  %v1706_v54 = vmul.f32 -1.442695, %v991_v50  ;;  %2179 = vpow2.f32 %v1712_v31  ;;  %v833_v55 = vadd.f32 %v1823_v51, %v2505_v43 }
 0x156   : > { %v2156_v56 = vpop.eup %2155  ;;  %1236 = vst.msk [vmem:[%s2526_s14 + $0x70] sm:$0xff] %vm1221_vm1, %v2154_v17  ;;  %2181 = vpow2.f32 %v1715_v52  ;;  %v1713_v59 = vmul.f32 -1.442695, %v1018_v32 }
 0x157   : > { %v2158_v60 = vpop.eup %2157  ;;  %1235 = vst.msk [vmem:[%s2526_s14 + $0x68] sm:$0xff] %vm1221_vm1, %v2156_v56  ;;  %2183 = vrcp.f32 %v1143_v53  ;;  %v994_v8 = vadd.f32 %v2546_v23, %v833_v55 }
 0x158   : > { %v2160_v58 = vpop.eup %2159  ;;  %v1151_v7 = vadd.f32 1.0, %v2158_v60  ;;  %2185 = vpow2.f32 %v1706_v54 }
 0x159   : > { %v2162_v61 = vpop.eup %2161  ;;  %1237 = vst.msk [vmem:[%s2526_s14 + $0x78] sm:$0xff] %vm1221_vm1, %v2160_v58  ;;  %v1707_v22 = vmul.f32 -1.442695, %v994_v8  ;;  %2187 = vpow2.f32 %v1713_v59 }
 0x15a   : > { %v2164_v43 = vpop.eup %2163  ;;  %v1144_v62 = vadd.f32 1.0, %v2162_v61  ;;  %2189 = vrcp.f32 %v1151_v7 }
 0x15b   : > { %v2166_v63 = vpop.eup %2165  ;;  %v1149_v12 = vadd.f32 1.0, %v2164_v43  ;;  %2191 = vpow2.f32 %v1707_v22 }
 0x15c   : > { %v2168_v0 = vpop.eup %2167  ;;  %2193 = vrcp.f32 %v1144_v62  ;;  %v1152_v1 = vadd.f32 1.0, %v2166_v63 }
 0x15d   : > { %v2170_v23 = vpop.eup %2169  ;;  %1238 = vst.msk [vmem:[%s2526_s14 + $0x80] sm:$0xff] %vm1221_vm1, %v2168_v0  ;;  %2195 = vrcp.f32 %v1149_v12 }
 0x15e   : > { %v2172_v57 = vpop.eup %2171  ;;  %v1145_v2 = vadd.f32 1.0, %v2170_v23  ;;  %2197 = vrcp.f32 %v1152_v1 }
 0x15f   : > { %v2174_v34 = vpop.eup %2173  ;;  %v1150_v36 = vadd.f32 1.0, %v2172_v57 }
 0x160   : > { %v2176_v3 = vpop.eup %2175  ;;  %2199 = vrcp.f32 %v1145_v2  ;;  %v1155_v4 = vadd.f32 1.0, %v2174_v34 }
 0x161   : > { %v2178_v5 = vpop.eup %2177  ;;  %1239 = vst.msk [vmem:[%s2526_s14 + $0x88] sm:$0xff] %vm1221_vm1, %v2176_v3  ;;  %2201 = vrcp.f32 %v1150_v36 }
 0x162   : > { %v2180_v6 = vpop.eup %2179  ;;  %v1146_v9 = vadd.f32 1.0, %v2178_v5  ;;  %2203 = vrcp.f32 %v1155_v4 }
 0x163   : > { %v2182_v10 = vpop.eup %2181  ;;  %v1153_v11 = vadd.f32 1.0, %v2180_v6 }
 0x164   : > { %v2184_v13 = vpop.eup %2183  ;;  %2205 = vrcp.f32 %v1146_v9  ;;  %v1156_v14 = vadd.f32 1.0, %v2182_v10 }
 0x165   : > { %v2186_v15 = vpop.eup %2185  ;;  %1240 = vst.msk [vmem:[%s2526_s14 + $0x90] sm:$0xff] %vm1221_vm1, %v2184_v13  ;;  %2207 = vrcp.f32 %v1153_v11 }
 0x166   : > { %v2188_v18 = vpop.eup %2187  ;;  %v1147_v27 = vadd.f32 1.0, %v2186_v15  ;;  %2209 = vrcp.f32 %v1156_v14 }
 0x167   : > { %v2190_v19 = vpop.eup %2189  ;;  %v1154_v20 = vadd.f32 1.0, %v2188_v18 }
 0x168   : > { %v2192_v21 = vpop.eup %2191  ;;  %1248 = vst.msk [vmem:[%s2526_s14 + $0xd0] sm:$0xff] %vm1221_vm1, %v2190_v19  ;;  %2211 = vrcp.f32 %v1147_v27 }
 0x169   : > { %v2194_v24 = vpop.eup %2193  ;;  %v1148_v39 = vadd.f32 1.0, %v2192_v21  ;;  %2213 = vrcp.f32 %v1154_v20 }
 0x16a   : > { %v2196_v42 = vpop.eup %2195  ;;  %1241 = vst.msk [vmem:[%s2526_s14 + $0x98] sm:$0xff] %vm1221_vm1, %v2194_v24 }
 0x16b   : > { %v2198_v25 = vpop.eup %2197  ;;  %1246 = vst.msk [vmem:[%s2526_s14 + $0xc0] sm:$0xff] %vm1221_vm1, %v2196_v42  ;;  %2215 = vrcp.f32 %v1148_v39 }
 0x16c   : > { %1249 = vst.msk [vmem:[%s2526_s14 + $0xd8] sm:$0xff] %vm1221_vm1, %v2198_v25 }
 0x16d   : > { %v2200_v16 = vpop.eup %2199 }
 0x16e   : > { %v2202_v26 = vpop.eup %2201  ;;  %1242 = vst.msk [vmem:[%s2526_s14 + $0xa0] sm:$0xff] %vm1221_vm1, %v2200_v16 }
 0x16f   : > { %v2204_v28 = vpop.eup %2203  ;;  %1247 = vst.msk [vmem:[%s2526_s14 + $0xc8] sm:$0xff] %vm1221_vm1, %v2202_v26 }
 0x170   : > { %1252 = vst.msk [vmem:[%s2526_s14 + $0xf0] sm:$0xff] %vm1221_vm1, %v2204_v28 }
 0x171   : > { %v2206_v29 = vpop.eup %2205 }
 0x172   : > { %v2208_v30 = vpop.eup %2207  ;;  %1243 = vst.msk [vmem:[%s2526_s14 + $0xa8] sm:$0xff] %vm1221_vm1, %v2206_v29 }
 0x173   : > { %v2210_v33 = vpop.eup %2209  ;;  %1250 = vst.msk [vmem:[%s2526_s14 + $0xe0] sm:$0xff] %vm1221_vm1, %v2208_v30 }
 0x174   : > { %1253 = vst.msk [vmem:[%s2526_s14 + $0xf8] sm:$0xff] %vm1221_vm1, %v2210_v33 }
 0x175   : > { %v2212_v35 = vpop.eup %2211  ;;  %1260 = sbr.rel (!%p2353_p4) target bundleno = 426 (0x1aa), region = 36 }
 0x176   : > { %v2214_v37 = vpop.eup %2213  ;;  %1244 = vst.msk [vmem:[%s2526_s14 + $0xb0] sm:$0xff] %vm1221_vm1, %v2212_v35 }
 0x177   : > { %1251 = vst.msk [vmem:[%s2526_s14 + $0xe8] sm:$0xff] %vm1221_vm1, %v2214_v37 }
 0x178   : > { %v2216_v38 = vpop.eup %2215 }
 0x179   : > { %1245 = vst.msk [vmem:[%s2526_s14 + $0xb8] sm:$0xff] %vm1221_vm1, %v2216_v38 }
 0x17a   : > { %s2787_s23 = smov (!%p1263_p8, %s1262_s23), 32 }
 0x17b   : > { %s1718_s29 = sshll.u32 %s2787_s23, 7 }
 0x17c   : > { %p1721_p9 = scmp.eq.s32.totalorder %s1718_s29, 0 }
 0x17d   : > { %s2647_s30 = sshrl.u32 (!%p1721_p9), %s2787_s23, 5 }
 0x17e   : > { %1271 = sbr.rel (%p1721_p9) target bundleno = 426 (0x1aa), region = 40  ;;  %p1722_p10 = scmp.le.s32.totalorder (!%p1721_p9), %s2647_s30, 0 }
 0x183   : > { %1550 = sbr.rel (%p1722_p10) target bundleno = 409 (0x199), region = 116  ;;  %s2778_s2 = smov (!%p1722_p10), %s2641_s28 }
 0x184   : > { %s2779_s21 = smov (!%p1722_p10), %s2526_s14  ;;  %s2656_s24 = smov (!%p1722_p10), 0  }
 0x185   : > { %s2658_s4 = smov (!%p1722_p10), 0  }
 0x188 LB: >> { %v1396_v40 = vld [vmem:[%s2279_s21] sm:$0xff]  ;;  %v1398_v44 = vld [vmem:[%s2279_s21 + $0x8] sm:$0xff]  ;;  %v1400_v45 = vld [vmem:[%s2279_s21 + $0x10] sm:$0xff]  ;;  %s1460_s5 = sadd.s32 1, %s2283_s24  ;;  %s1390_s4 = sadd.s32 1, %s2287_s4   ;;  %s2287_s4 = sphi %s2658_s4, %s1390_s4   ;;  %s2283_s24 = sphi %s2656_s24, %s2782_s24   ;;  %s2279_s21 = sphi %s2779_s21, %s2781_s21   ;;  %s2275_s2 = sphi %s2778_s2, %s2780_s2  }
 0x189   : >> { %1397 = vst [vmem:[%s2275_s2] sm:$0xff] %v1396_v40  ;;  %1399 = vst [vmem:[%s2275_s2 + $0x8] sm:$0xff] %v1398_v44  ;;  %v1402_v47 = vld [vmem:[%s2279_s21 + $0x18] sm:$0xff]  ;;  %v1404_v31 = vld [vmem:[%s2279_s21 + $0x20] sm:$0xff]  ;;  %p1461_p11 = scmp.ge.s32.totalorder %s1460_s5, %s2647_s30  ;;  %p1389_p12 = scmp.ge.s32.totalorder %s1390_s4, %s2647_s30 }
 0x18a   : >> { %1401 = vst [vmem:[%s2275_s2 + $0x10] sm:$0xff] %v1400_v45  ;;  %v1406_v48 = vld [vmem:[%s2279_s21 + $0x28] sm:$0xff]  ;;  %1403 = vst [vmem:[%s2275_s2 + $0x18] sm:$0xff] %v1402_v47  ;;  %v1408_v49 = vld [vmem:[%s2279_s21 + $0x30] sm:$0xff] }
 0x18b   : >> { %1405 = vst [vmem:[%s2275_s2 + $0x20] sm:$0xff] %v1404_v31  ;;  %1407 = vst [vmem:[%s2275_s2 + $0x28] sm:$0xff] %v1406_v48  ;;  %v1410_v46 = vld [vmem:[%s2279_s21 + $0x38] sm:$0xff]  ;;  %v1412_v50 = vld [vmem:[%s2279_s21 + $0x40] sm:$0xff]  ;;  %s2789_s5 = smov (%p1461_p11, %s1460_s5), 0 }
 0x18c   : >> { %1409 = vst [vmem:[%s2275_s2 + $0x30] sm:$0xff] %v1408_v49  ;;  %1411 = vst [vmem:[%s2275_s2 + $0x38] sm:$0xff] %v1410_v46  ;;  %v1414_v51 = vld [vmem:[%s2279_s21 + $0x48] sm:$0xff]  ;;  %v1416_v32 = vld [vmem:[%s2279_s21 + $0x50] sm:$0xff]  ;;  %s1723_s6 = sshll.u32 %s2789_s5, 8  ;;  %s2782_s24 = smov %s2789_s5 }
 0x18d   : >> { %1413 = vst [vmem:[%s2275_s2 + $0x40] sm:$0xff] %v1412_v50  ;;  %v1418_v41 = vld [vmem:[%s2279_s21 + $0x58] sm:$0xff]  ;;  %1415 = vst [vmem:[%s2275_s2 + $0x48] sm:$0xff] %v1414_v51  ;;  %v1420_v52 = vld [vmem:[%s2279_s21 + $0x60] sm:$0xff]  ;;  %s2714_s7 = scalar_lea.vmem %s2526_s14, %s1723_s6 [#allocation3]   ;;  %s1466_s8 = scalar_lea.vmem %s2641_s28, %s1723_s6  }
 0x18e   : >> { %1417 = vst [vmem:[%s2275_s2 + $0x50] sm:$0xff] %v1416_v32  ;;  %1419 = vst [vmem:[%s2275_s2 + $0x58] sm:$0xff] %v1418_v41  ;;  %v1422_v17 = vld [vmem:[%s2279_s21 + $0x68] sm:$0xff]  ;;  %v1424_v53 = vld [vmem:[%s2279_s21 + $0x70] sm:$0xff] }
 0x18f   : >> { %1421 = vst [vmem:[%s2275_s2 + $0x60] sm:$0xff] %v1420_v52  ;;  %1423 = vst [vmem:[%s2275_s2 + $0x68] sm:$0xff] %v1422_v17  ;;  %v1426_v54 = vld [vmem:[%s2279_s21 + $0x78] sm:$0xff]  ;;  %v1428_v55 = vld [vmem:[%s2279_s21 + $0x80] sm:$0xff] }
 0x190   : >> { %1425 = vst [vmem:[%s2275_s2 + $0x70] sm:$0xff] %v1424_v53  ;;  %v1430_v56 = vld [vmem:[%s2279_s21 + $0x88] sm:$0xff]  ;;  %1427 = vst [vmem:[%s2275_s2 + $0x78] sm:$0xff] %v1426_v54  ;;  %v1432_v59 = vld [vmem:[%s2279_s21 + $0x90] sm:$0xff] }
 0x191   : >> { %1429 = vst [vmem:[%s2275_s2 + $0x80] sm:$0xff] %v1428_v55  ;;  %1431 = vst [vmem:[%s2275_s2 + $0x88] sm:$0xff] %v1430_v56  ;;  %v1434_v60 = vld [vmem:[%s2279_s21 + $0x98] sm:$0xff]  ;;  %v1436_v8 = vld [vmem:[%s2279_s21 + $0xa0] sm:$0xff] }
 0x192   : >> { %1433 = vst [vmem:[%s2275_s2 + $0x90] sm:$0xff] %v1432_v59  ;;  %1435 = vst [vmem:[%s2275_s2 + $0x98] sm:$0xff] %v1434_v60  ;;  %v1438_v58 = vld [vmem:[%s2279_s21 + $0xa8] sm:$0xff]  ;;  %v1440_v7 = vld [vmem:[%s2279_s21 + $0xb0] sm:$0xff] }
 0x193   : >> { %1437 = vst [vmem:[%s2275_s2 + $0xa0] sm:$0xff] %v1436_v8  ;;  %v1442_v61 = vld [vmem:[%s2279_s21 + $0xb8] sm:$0xff]  ;;  %1439 = vst [vmem:[%s2275_s2 + $0xa8] sm:$0xff] %v1438_v58  ;;  %v1444_v22 = vld [vmem:[%s2279_s21 + $0xc0] sm:$0xff] }
 0x194   : >> { %1441 = vst [vmem:[%s2275_s2 + $0xb0] sm:$0xff] %v1440_v7  ;;  %1443 = vst [vmem:[%s2275_s2 + $0xb8] sm:$0xff] %v1442_v61  ;;  %v1446_v43 = vld [vmem:[%s2279_s21 + $0xc8] sm:$0xff]  ;;  %v1448_v62 = vld [vmem:[%s2279_s21 + $0xd0] sm:$0xff]  ;;  %1392 = sbr.rel (!%p1389_p12) target bundleno = 392 (0x188), region = 122 }
 0x195   : >> { %1445 = vst [vmem:[%s2275_s2 + $0xc0] sm:$0xff] %v1444_v22  ;;  %1447 = vst [vmem:[%s2275_s2 + $0xc8] sm:$0xff] %v1446_v43  ;;  %v1450_v63 = vld [vmem:[%s2279_s21 + $0xd8] sm:$0xff]  ;;  %v1452_v12 = vld [vmem:[%s2279_s21 + $0xe0] sm:$0xff] }
 0x196   : >> { %1449 = vst [vmem:[%s2275_s2 + $0xd0] sm:$0xff] %v1448_v62  ;;  %v1454_v0 = vld [vmem:[%s2279_s21 + $0xe8] sm:$0xff]  ;;  %1451 = vst [vmem:[%s2275_s2 + $0xd8] sm:$0xff] %v1450_v63  ;;  %v1456_v1 = vld [vmem:[%s2279_s21 + $0xf0] sm:$0xff] }
 0x197   : >> { %1453 = vst [vmem:[%s2275_s2 + $0xe0] sm:$0xff] %v1452_v12  ;;  %1455 = vst [vmem:[%s2275_s2 + $0xe8] sm:$0xff] %v1454_v0  ;;  %v1458_v23 = vld [vmem:[%s2279_s21 + $0xf8] sm:$0xff]  ;;  %s2781_s21 = smov %s2714_s7 }
 0x198   : >> { %1457 = vst [vmem:[%s2275_s2 + $0xf0] sm:$0xff] %v1456_v1  ;;  %1459 = vst [vmem:[%s2275_s2 + $0xf8] sm:$0xff] %v1458_v23  ;;  %s2780_s2 = smov %s1466_s8 }
 0x199 PF: > { %s2755_s9 = sand.u32 31, %s2787_s23   ;;  %s1734_s10 = sshll.u32 %s2647_s30, 8 }
 0x19a   : > { %s1471_s11 = scalar_lea.vmem %s2526_s14, %s1734_s10 [#allocation3]   ;;  %s1473_s12 = scalar_lea.vmem %s2641_s28, %s1734_s10  }
 0x19b   : > { %p1728_p13 = scmp.le.s32.totalorder %s2755_s9, 0 }
 0x19c   : > { %s2289_s13 = smov (!%p1728_p13), %s1473_s12   ;;  %s2293_s16 = smov (!%p1728_p13), %s1471_s11  }
 0x19d   : > { %1564 = sbr.rel (%p1728_p13) target bundleno = 426 (0x1aa), region = 127  ;;  %s2297_s18 = smov (!%p1728_p13), 0  }
 0x19e   : > { %s2301_s19 = smov (!%p1728_p13), 0  }
 0x1a2 LB: >> { %v1483_v57 = vld [vmem:[%s2295_s16] sm:$0xff]  ;;  %s1485_s22 = sadd.s32 1, %s2299_s18  ;;  %s1477_s19 = sadd.s32 1, %s2303_s19   ;;  %s2303_s19 = sphi %s2301_s19, %s1477_s19   ;;  %s2299_s18 = sphi %s2297_s18, %s2298_s18   ;;  %s2295_s16 = sphi %s2293_s16, %s1490_s16   ;;  %s2291_s13 = sphi %s2289_s13, %s1491_s13  }
 0x1a3   : >> { %1484 = vst [vmem:[%s2291_s13] sm:$0xff] %v1483_v57  ;;  %p1486_p0 = scmp.ge.s32.totalorder %s1485_s22, %s2755_s9  ;;  %p1476_p1 = scmp.ge.s32.totalorder %s1477_s19, %s2755_s9 }
 0x1a5   : >> { %s2791_s22 = smov (%p1486_p0, %s1485_s22), 0  ;;  %1479 = sbr.rel (!%p1476_p1) target bundleno = 418 (0x1a2), region = 133 }
 0x1a6   : >> { %s1729_s14 = sshll.u32 %s2791_s22, 3  ;;  %s2298_s18 = smov %s2791_s22  }
 0x1a7   : >> { %s1490_s16 = scalar_lea.vmem %s1471_s11, %s1729_s14 [#allocation3]   ;;  %s1491_s13 = scalar_lea.vmem %s1473_s12, %s1729_s14  }
 0x1aa PF: > { %p12_p2 = scmp.ge.s32.totalorder %s2343_s17, 9   ;;  %s2783_s14 = smov %s2267_s15 }
 0x1ab   : > { %s2784_s15 = smov %s2351_s20  ;;  %s2785_s16 = smov %s2343_s17 }
 0x1ac   :  { %14 = sbr.rel (!%p12_p2) target bundleno = 5 (0x5), region = 144 }

</bundles_post_ra>
